<compile_context>
chip_gen: v7x
topology: tpu7x:2x2x1
jax: 0.10.0
libtpu: 0.0.40
codegen_flags: <defaults>
</compile_context>

<pallas_src>
import numpy as np
import jax
import jax.numpy as jnp
from jax import lax
from jax.experimental import pallas as pl
from jax.experimental.pallas import tpu as pltpu

_SMEM = pltpu.MemorySpace.SMEM


# --------------------------------------------------------------------------
# In-kernel helpers (all operate on full-size, lane-dense arrays)
# --------------------------------------------------------------------------
def _smooth_l1(d):
    ad = jnp.abs(d)
    return jnp.where(ad < 1.0, 0.5 * d * d, ad - 0.5)


def _shift_in(x, k, axis):
    """out[..., i, ...] = x[..., i+k, ...].

    Positions past the end hold wrap-around values (XLU roll path) or zeros
    (concat fallback); every consumer masks them with dx/dy/pool validity masks,
    so either fill is correct.  The roll runs on the otherwise-idle XLU slot and
    avoids materializing a full-size concat temporary in VMEM; it is used
    whenever the rolled axis is lane/sublane aligned for the Mosaic rotate
    lowering (e.g. after padding W to a multiple of 128 at production shapes).
    """
    if k == 0:
        return x
    axis = axis % x.ndim
    n = x.shape[axis]
    lane_ok = (axis == x.ndim - 1) and (n % 128 == 0)
    sublane_ok = (axis == x.ndim - 2) and (n % 8 == 0) and (x.shape[-1] % 128 == 0)
    if lane_ok or sublane_ok:
        return pltpu.roll(x, (n - k) % n, axis)
    # Fallback: shift + zero fill (keeps the full, lane-dense shape).
    idx = [slice(None)] * x.ndim
    idx[axis] = slice(k, n)
    pad_shape = list(x.shape)
    pad_shape[axis] = k
    return jnp.concatenate([x[tuple(idx)], jnp.zeros(pad_shape, x.dtype)], axis=axis)


def _pool3x3_sum(x):
    """Separable 3x3 window sum.  Valid region is [..., :H-2, :W-2]."""
    s = x + _shift_in(x, 1, -1) + _shift_in(x, 2, -1)      # row pass (lane axis)
    s = s + _shift_in(s, 1, -2) + _shift_in(s, 2, -2)      # column pass (sublane axis)
    return s


def _derived_vmem_limit(block_bytes):
    """Scoped-VMEM limit derived from the block working set and the queried
    per-generation VMEM capacity (instead of a hard-coded 32 MiB)."""
    try:
        cap = int(getattr(pltpu.get_tpu_info(), "vmem_capacity_bytes",
                          128 * 1024 * 1024))
    except Exception:
        cap = 128 * 1024 * 1024
    want = max(32 * 1024 * 1024, 4 * int(block_bytes))     # x4: double buffers + temps
    return int(min(cap - 8 * 1024 * 1024, want))


# --------------------------------------------------------------------------
# Pallas kernels
# --------------------------------------------------------------------------
def _view_loss_kernel(warped_ref, mask_ref, ref_ref, depth_ref,
                      view_out_ref, smooth_out_ref, mu_x_ref, sig_x_ref):
    """Fused per-(batch, view) reconstruction + SSIM partial sums, with the
    ref-only SSIM pools and the edge-aware depth smoothness hoisted to v == 0
    (ref / depth blocks are VMEM-resident across the view axis).

    grid = (B, Vm), batch outer / view inner.
    view_out_ref  : SMEM (B*Vm, 4)  row b*Vm+v =
        [sum smoothL1(masked diff), sum smoothL1(d/dx), sum smoothL1(d/dy),
         sum masked clamped SSIM-dissimilarity]
    smooth_out_ref: SMEM (B, 2)     row b = [sum|dx*wx|, sum|dy*wy|]
    mu_x_ref / sig_x_ref: VMEM (C, H, W) hoisted ref statistics.
    """
    b = pl.program_id(0)
    v = pl.program_id(1)
    nv = pl.num_programs(1)

    w = warped_ref[0, 0]                                    # (C, H, W) f32
    r = ref_ref[0]                                          # (C, H, W) f32
    m = mask_ref[0, 0].astype(jnp.float32)                  # (1, H, W)
    _, H, W = w.shape

    col = lax.broadcasted_iota(jnp.int32, (1, H, W), 2)
    row = lax.broadcasted_iota(jnp.int32, (1, H, W), 1)
    dx_valid = col < (W - 1)
    dy_valid = row < (H - 1)
    pool_valid = jnp.logical_and(col < (W - 2), row < (H - 2))

    ninth = 1.0 / 9.0
    c1 = 0.01 ** 2
    c2 = 0.03 ** 2

    # ---- hoisted per-batch work (ref-only SSIM pools + depth smoothness) ---
    @pl.when(v == 0)
    def _():
        mu_x0 = _pool3x3_sum(r) * ninth
        mu_x_ref[...] = mu_x0
        sig_x_ref[...] = _pool3x3_sum(r * r) * ninth - mu_x0 * mu_x0

        d = depth_ref[0]                                    # (1, H, W)
        d_dx = d - _shift_in(d, 1, -1)
        d_dy = d - _shift_in(d, 1, -2)
        i_dx = r - _shift_in(r, 1, -1)
        i_dy = r - _shift_in(r, 1, -2)
        # lambda_wt = 1.0 in the reference call
        wx = jnp.exp(-jnp.mean(jnp.abs(i_dx), axis=0, keepdims=True))
        wy = jnp.exp(-jnp.mean(jnp.abs(i_dy), axis=0, keepdims=True))
        smooth_out_ref[b, 0] = jnp.sum(jnp.where(dx_valid, jnp.abs(d_dx * wx), 0.0))
        smooth_out_ref[b, 1] = jnp.sum(jnp.where(dy_valid, jnp.abs(d_dy * wy), 0.0))

    # ---- smooth-L1 photometric + gradient sums on masked images -----------
    e = (w - r) * m                                         # = warped*mask - ref*mask
    photo_sum = jnp.sum(_smooth_l1(e))
    ex = jnp.where(dx_valid, _shift_in(e, 1, -1) - e, 0.0)
    ey = jnp.where(dy_valid, _shift_in(e, 1, -2) - e, 0.0)
    dx_sum = jnp.sum(_smooth_l1(ex))
    dy_sum = jnp.sum(_smooth_l1(ey))

    # ---- SSIM(ref, warped, mask): reuse the hoisted ref statistics --------
    mu_x = mu_x_ref[...]
    sig_x = sig_x_ref[...]
    mu_y = _pool3x3_sum(w) * ninth
    sig_y = _pool3x3_sum(w * w) * ninth - mu_y * mu_y
    sig_xy = _pool3x3_sum(r * w) * ninth - mu_x * mu_y
    ssim_mask = _pool3x3_sum(m) * ninth                     # (1, H, W)

    ssim_n = (2.0 * mu_x * mu_y + c1) * (2.0 * sig_xy + c2)
    ssim_d = (mu_x * mu_x + mu_y * mu_y + c1) * (sig_x + sig_y + c2)
    # approx reciprocal: EUP slot, frees the saturated VALU (bounded by c2/clip).
    dssim = jnp.clip((1.0 - ssim_n * pl.reciprocal(ssim_d, approx=True)) * 0.5,
                     0.0, 1.0)
    ssim_sum = jnp.sum(jnp.where(pool_valid, ssim_mask * dssim, 0.0))

    row_idx = b * nv + v
    view_out_ref[row_idx, 0] = photo_sum
    view_out_ref[row_idx, 1] = dx_sum
    view_out_ref[row_idx, 2] = dy_sum
    view_out_ref[row_idx, 3] = ssim_sum


def _reproj_kernel(rl_ref, mask_ref, out_ref, min_ref):
    """Top-1 (min over views) reprojection selection with a per-batch-element
    running-min scratch.

    grid = (B, Vm).  rl_ref: SMEM (Vm,) per-view scalar reconstruction loss.
    mask_ref block: one (b, v) warp-validity mask (1,1,1,H,W) int8.
    out_ref: SMEM (B,) per-batch sum of the selected (valid) per-pixel minima.
    """
    b = pl.program_id(0)
    v = pl.program_id(1)
    nv = pl.num_programs(1)

    m = mask_ref[0, 0].astype(jnp.float32)                  # (1, H, W)
    cur = rl_ref[v] + 10000.0 * (1.0 - m)

    @pl.when(v == 0)
    def _():
        min_ref[...] = cur

    @pl.when(v > 0)
    def _():
        min_ref[...] = jnp.minimum(min_ref[...], cur)

    @pl.when(v == nv - 1)
    def _():
        best = min_ref[...]
        out_ref[b] = jnp.sum(jnp.where(best < 10000.0, best, 0.0))


# --------------------------------------------------------------------------
# Pallas wrappers
# --------------------------------------------------------------------------
def _fused_view_and_smooth_losses(warped_stack, mask_stack, ref_img, depth_b1hw):
    """warped_stack: [Vm,B,C,H,W] f32, mask_stack: [Vm,B,1,H,W] int8,
       ref_img: [B,C,H,W] f32, depth_b1hw: [B,1,H,W] f32
       -> (reconstr_per_view [Vm], ssim_mean_per_view [Vm], smooth_loss scalar)."""
    Vm, B, C, H, W = warped_stack.shape
    block_bytes = (C * H * W * 4          # warped block
                   + H * W                # int8 mask block
                   + C * H * W * 4        # ref block
                   + H * W * 4            # depth block
                   + 2 * C * H * W * 4)   # hoisted-pool scratch

    view_sums, smooth_sums = pl.pallas_call(
        _view_loss_kernel,
        out_shape=(jax.ShapeDtypeStruct((B * Vm, 4), jnp.float32),
                   jax.ShapeDtypeStruct((B, 2), jnp.float32)),
        grid=(B, Vm),                                      # batch outer, view inner:
        in_specs=[                                         # ref/depth resident over views
            pl.BlockSpec((1, 1, C, H, W), lambda b, v: (v, b, 0, 0, 0)),
            pl.BlockSpec((1, 1, 1, H, W), lambda b, v: (v, b, 0, 0, 0)),
            pl.BlockSpec((1, C, H, W), lambda b, v: (b, 0, 0, 0)),
            pl.BlockSpec((1, 1, H, W), lambda b, v: (b, 0, 0, 0)),
        ],
        out_specs=(pl.BlockSpec(memory_space=_SMEM),
                   pl.BlockSpec(memory_space=_SMEM)),
        scratch_shapes=[pltpu.VMEM((C, H, W), jnp.float32),
                        pltpu.VMEM((C, H, W), jnp.float32)],
        compiler_params=pltpu.CompilerParams(
            dimension_semantics=("arbitrary", "arbitrary"),
            vmem_limit_bytes=_derived_vmem_limit(block_bytes),
        ),
    )(warped_stack, mask_stack, ref_img, depth_b1hw)

    sums = jnp.sum(view_sums.reshape(B, Vm, 4), axis=0)    # accumulate over batch
    photo = sums[:, 0] / (B * C * H * W)
    gx = sums[:, 1] / (B * C * H * (W - 1))
    gy = sums[:, 2] / (B * C * (H - 1) * W)
    ssim_mean = sums[:, 3] / (B * C * (H - 2) * (W - 2))
    alpha = 0.5
    reconstr_per_view = (1.0 - alpha) * photo + alpha * (gx + gy)

    smooth_loss = (jnp.sum(smooth_sums[:, 0]) / (B * H * (W - 1))
                   + jnp.sum(smooth_sums[:, 1]) / (B * (H - 1) * W))
    return reconstr_per_view, ssim_mean, smooth_loss


def _final_reconstr_loss(rl_per_view, mask_stack):
    """rl_per_view: [Vm] f32, mask_stack: [Vm,B,1,H,W] int8 -> scalar."""
    Vm, B, _, H, W = mask_stack.shape
    s = pl.pallas_call(
        _reproj_kernel,
        out_shape=jax.ShapeDtypeStruct((B,), jnp.float32),
        grid=(B, Vm),
        in_specs=[
            pl.BlockSpec(memory_space=_SMEM),
            pl.BlockSpec((1, 1, 1, H, W), lambda b, v: (v, b, 0, 0, 0)),
        ],
        out_specs=pl.BlockSpec(memory_space=_SMEM),
        scratch_shapes=[pltpu.VMEM((1, H, W), jnp.float32)],
        compiler_params=pltpu.CompilerParams(
            dimension_semantics=("arbitrary", "arbitrary"),
            vmem_limit_bytes=_derived_vmem_limit(H * W * (1 + 4)),
        ),
    )(rl_per_view.astype(jnp.float32), mask_stack)
    return jnp.sum(s) / (B * H * W)


# --------------------------------------------------------------------------
# JAX glue: bilinear gather (C-contiguous) + inverse warping
# --------------------------------------------------------------------------
def _bilinear_sample_nchw(img, x, y):
    """img: [B,C,H,W]; x, y: [B,H,W] absolute source pixel coords.
       Gathers C-contiguous pixel vectors from a channels-last flat view, then
       returns warped [B,C,H,W] and validity mask [B,1,H,W]."""
    B, C, H, W = img.shape
    x0 = jnp.floor(x).astype(jnp.int32)
    x1 = x0 + 1
    y0 = jnp.floor(y).astype(jnp.int32)
    y1 = y0 + 1
    valid = (x0 >= 0) & (x1 <= W - 1) & (y0 >= 0) & (y1 <= H - 1)
    mask = valid.astype(jnp.float32)[:, None, :, :]

    x0c = jnp.clip(x0, 0, W - 1)
    x1c = jnp.clip(x1, 0, W - 1)
    y0c = jnp.clip(y0, 0, H - 1)
    y1c = jnp.clip(y1, 0, H - 1)

    # Channels-last flat view: each gathered element is a contiguous C-vector
    # (one gather per corner per pixel instead of C scalar gathers).
    img_flat = img.transpose(0, 2, 3, 1).reshape(B, H * W, C)

    # TODO(synk): data-dependent gather; no clean Pallas/TPU equivalent, stays in JAX.
    def gather(yy, xx):
        idx = (yy * W + xx).reshape(B, H * W, 1)
        return jnp.take_along_axis(img_flat, idx, axis=1)   # (B, H*W, C)

    ia = gather(y0c, x0c)
    ib = gather(y1c, x0c)
    ic = gather(y0c, x1c)
    idd = gather(y1c, x1c)

    x1f = x1.astype(jnp.float32).reshape(B, H * W, 1)
    y1f = y1.astype(jnp.float32).reshape(B, H * W, 1)
    xe = x.reshape(B, H * W, 1)
    ye = y.reshape(B, H * W, 1)
    wa = (x1f - xe) * (y1f - ye)
    wb = (x1f - xe) * (1.0 - (y1f - ye))
    wc = (1.0 - (x1f - xe)) * (y1f - ye)
    wd = (1.0 - (x1f - xe)) * (1.0 - (y1f - ye))
    out = wa * ia + wb * ib + wc * ic + wd * idd             # (B, H*W, C)
    out = out.reshape(B, H, W, C).transpose(0, 3, 1, 2)
    return out, mask


def _inverse_warping(img, left_cam, right_cam, depth):
    """SfMLearner-style inverse warp.  img: [B,C,H,W], cams: [B,2,4,4], depth: [B,H,W]."""
    B, _, H, W = img.shape
    R_left = left_cam[:, 0, 0:3, 0:3]
    t_left = left_cam[:, 0, 0:3, 3:4]
    R_right = right_cam[:, 0, 0:3, 0:3]
    t_right = right_cam[:, 0, 0:3, 3:4]
    K_left = left_cam[:, 1, 0:3, 0:3]
    K_left_inv = jnp.linalg.inv(K_left)

    R_left_T = jnp.swapaxes(R_left, 1, 2)
    R_rel = jnp.matmul(R_right, R_left_T)
    t_rel = jnp.matmul(R_right, jnp.matmul(R_left_T, -t_left)) + t_right

    filler = jnp.broadcast_to(jnp.array([[0.0, 0.0, 0.0, 1.0]], jnp.float32), (B, 1, 4))
    transform = jnp.concatenate([jnp.concatenate([R_rel, t_rel], axis=2), filler], axis=1)

    # absolute meshgrid (x, y, 1)
    x_t = jnp.tile(jnp.linspace(-1.0, 1.0, W)[None, :], (H, 1))
    y_t = jnp.tile(jnp.linspace(-1.0, 1.0, H)[:, None], (1, W))
    x_t = (x_t + 1.0) * 0.5 * (W - 1)
    y_t = (y_t + 1.0) * 0.5 * (H - 1)
    grid = jnp.stack([x_t, y_t, jnp.ones_like(x_t)], axis=0).reshape(3, -1)
    grid = jnp.broadcast_to(grid[None], (B, 3, H * W))

    depth_flat = depth.reshape(B, 1, H * W)
    cam = jnp.matmul(K_left_inv, grid) * depth_flat
    cam_hom = jnp.concatenate([cam, jnp.ones((B, 1, H * W), jnp.float32)], axis=1)

    K_hom = jnp.concatenate([K_left, jnp.zeros((B, 3, 1), jnp.float32)], axis=2)
    K_hom = jnp.concatenate([K_hom, filler], axis=1)
    proj = jnp.matmul(K_hom, transform)
    pcoords = jnp.matmul(proj, cam_hom)
    x_u = pcoords[:, 0, :]
    y_u = pcoords[:, 1, :]
    z_u = pcoords[:, 2, :]
    x_src = (x_u / (z_u + 1e-10)).reshape(B, H, W)
    y_src = (y_u / (z_u + 1e-10)).reshape(B, H, W)

    # spatial-transformer normalize / denormalize round trip (kept to match reference)
    px = x_src / (W - 1) * 2.0 - 1.0
    py = y_src / (H - 1) * 2.0 - 1.0
    x_abs = (px + 1.0) * (W - 1) / 2.0
    y_abs = (py + 1.0) * (H - 1) / 2.0
    return _bilinear_sample_nchw(img, x_abs, y_abs)


# --------------------------------------------------------------------------
# UnSupLoss / multi-stage forward
# --------------------------------------------------------------------------
def unsup_loss_single_stage(imgs, cams_stage, depth, stage_idx):
    """imgs: [B,V,C,H,W], cams_stage: [B,V,2,4,4], depth: [B,Hs,Ws]."""
    B, V, C, H, W = imgs.shape
    factor = {0: 4, 1: 2}.get(stage_idx, 1)

    ref_img = imgs[:, 0]
    if factor > 1:
        ref_img = ref_img[:, :, ::factor, ::factor]         # nearest downsample
    Hs, Ws = ref_img.shape[2], ref_img.shape[3]
    ref_cam = cams_stage[:, 0]

    warped_list = []
    mask_list = []
    for view in range(1, V):
        view_img = imgs[:, view]
        if factor > 1:
            view_img = view_img[:, :, ::factor, ::factor]
        warped, mask = _inverse_warping(view_img, ref_cam, cams_stage[:, view], depth)
        warped_list.append(warped)                           # [B,C,Hs,Ws]
        mask_list.append(mask)                               # [B,1,Hs,Ws]

    warped_stack = jnp.stack(warped_list, axis=0)                   # [Vm,B,C,Hs,Ws]
    mask_stack = jnp.stack(mask_list, axis=0).astype(jnp.int8)      # binary -> exact

    reconstr_per_view, ssim_per_view, smooth_loss = _fused_view_and_smooth_losses(
        warped_stack, mask_stack, ref_img, depth.reshape(B, 1, Hs, Ws))
    ssim_loss = jnp.sum(ssim_per_view[:min(2, V - 1)])              # views 1..2 only
    reconstr_loss = _final_reconstr_loss(reconstr_per_view, mask_stack)

    # 0.18 matches the reference module
    unsup = 12.0 * reconstr_loss + 6.0 * ssim_loss + 0.18 * smooth_loss
    return unsup, reconstr_loss, ssim_loss, smooth_loss


def unsup_loss_multistage(inputs, imgs, cams, **kwargs):
    depth_loss_weights = kwargs.get("dlossw", None)
    total_loss = jnp.float32(0.0)
    scalar_outputs = {}
    for stage_key in [k for k in inputs.keys() if "stage" in k]:
        stage_idx = int(stage_key.replace("stage", "")) - 1
        depth_est = inputs[stage_key]["depth"]
        dl, rl, sl, sm = unsup_loss_single_stage(imgs, cams[stage_key], depth_est, stage_idx)
        w = depth_loss_weights[stage_idx] if depth_loss_weights is not None else 1.0
        total_loss = total_loss + w * dl
        scalar_outputs["depth_loss_stage{}".format(stage_idx + 1)] = dl
        scalar_outputs["reconstr_loss_stage{}".format(stage_idx + 1)] = rl
        scalar_outputs["ssim_loss_stage{}".format(stage_idx + 1)] = sl
        scalar_outputs["smooth_loss_stage{}".format(stage_idx + 1)] = sm
    return total_loss, scalar_outputs


# --------------------------------------------------------------------------
# Demo / self-test
# --------------------------------------------------------------------------
if __name__ == "__main__":
    key = jax.random.PRNGKey(0)
    B, V, C, H, W = 2, 3, 3, 16, 16
    k_img, k_d1, k_d2, k_d3 = jax.random.split(key, 4)

    imgs = jax.random.uniform(k_img, (B, V, C, H, W), jnp.float32)

    def make_cams(Hs, Ws):
        cams_np = np.zeros((B, V, 2, 4, 4), np.float32)
        for b in range(B):
            for v in range(V):
                E = np.eye(4, dtype=np.float32)              # extrinsic [R|t]
                E[0, 3] = 0.08 * v + 0.01 * b
                E[1, 3] = 0.03 * v
                cams_np[b, v, 0] = E
                K = np.eye(4, dtype=np.float32)              # intrinsic (top-left 3x3 used)
                K[0, 0] = float(Ws)
                K[1, 1] = float(Ws)
                K[0, 2] = (Ws - 1) / 2.0
                K[1, 2] = (Hs - 1) / 2.0
                cams_np[b, v, 1] = K
        return jnp.asarray(cams_np)

    cams = {
        "stage1": make_cams(H // 4, W // 4),
        "stage2": make_cams(H // 2, W // 2),
        "stage3": make_cams(H, W),
    }
    inputs = {
        "stage1": {"depth": 2.0 + jax.random.uniform(k_d1, (B, H // 4, W // 4), jnp.float32)},
        "stage2": {"depth": 2.0 + jax.random.uniform(k_d2, (B, H // 2, W // 2), jnp.float32)},
        "stage3": {"depth": 2.0 + jax.random.uniform(k_d3, (B, H, W), jnp.float32)},
    }

    total_loss, scalar_outputs = jax.jit(unsup_loss_multistage)(inputs, imgs, cams)
    total_loss = jax.block_until_ready(total_loss)
    jax.block_until_ready(scalar_outputs)
    assert bool(jnp.isfinite(total_loss)), "non-finite total loss"
    print("KERNEL_OK")
</pallas_src>

<mosaic_0001>
module attributes {stable_mosaic.version = 11 : i64} {
  func.func @_reproj_kernel(%arg0: i32, %arg1: i32, %arg2: memref<2xf32, #tpu.memory_space<smem>>, %arg3: memref<1x1x1x4x4xi8, #tpu.memory_space<vmem>>, %arg4: memref<2xf32, #tpu.memory_space<smem>>, %arg5: memref<1x4x4xf32, #tpu.memory_space<vmem>>) attributes {dimension_semantics = [#tpu.dimension_semantics<arbitrary>, #tpu.dimension_semantics<arbitrary>], iteration_bounds = array<i64: 2, 2>, scalar_prefetch = 0 : i64, scratch_operands = 1 : i64, tpu.core_type = #tpu.core_type<tc>, window_params = [{transform_indices = @transform_0, window_bounds = array<i64: 2>}, {transform_indices = @transform_1, window_bounds = array<i64: 1, 1, 1, 4, 4>}, {transform_indices = @transform_2, window_bounds = array<i64: 2>}]} {
    %c0 = arith.constant 0 : index
    %c0_0 = arith.constant 0 : index
    %c0_1 = arith.constant 0 : index
    %c0_2 = arith.constant 0 : index
    %c0_3 = arith.constant 0 : index
    %0 = vector.load %arg3[%c0, %c0_0, %c0_1, %c0_2, %c0_3] : memref<1x1x1x4x4xi8, #tpu.memory_space<vmem>>, vector<1x1x1x4x4xi8>
    %1 = vector.shape_cast %0 : vector<1x1x1x4x4xi8> to vector<1x4x4xi8>
    %2 = arith.sitofp %1 : vector<1x4x4xi8> to vector<1x4x4xf32>
    %3 = arith.index_cast %arg1 : i32 to index
    %4 = memref.load %arg2[%3] : memref<2xf32, #tpu.memory_space<smem>>
    %cst = arith.constant 1.000000e+00 : f32
    %5 = vector.broadcast %cst : f32 to vector<1x4x4xf32>
    %6 = arith.subf %5, %2 : vector<1x4x4xf32>
    %cst_4 = arith.constant 1.000000e+04 : f32
    %7 = vector.broadcast %cst_4 : f32 to vector<1x4x4xf32>
    %8 = arith.mulf %7, %6 : vector<1x4x4xf32>
    %9 = vector.broadcast %4 : f32 to vector<1x4x4xf32>
    %10 = arith.addf %9, %8 : vector<1x4x4xf32>
    %c0_i32 = arith.constant 0 : i32
    %11 = arith.cmpi eq, %arg1, %c0_i32 : i32
    %12 = arith.extui %11 : i1 to i32
    %c0_i32_5 = arith.constant 0 : i32
    %13 = arith.cmpi ne, %12, %c0_i32_5 : i32
    scf.if %13 {
      %c0_9 = arith.constant 0 : index
      %c0_10 = arith.constant 0 : index
      %c0_11 = arith.constant 0 : index
      %20 = vector.load %arg5[%c0_9, %c0_10, %c0_11] : memref<1x4x4xf32, #tpu.memory_space<vmem>>, vector<1x4x4xf32>
      tpu.vector_store %arg5[%c0_9, %c0_10, %c0_11], %10 {strides = array<i32>} : memref<1x4x4xf32, #tpu.memory_space<vmem>>, vector<1x4x4xf32>,
    } else {
    }
    %c0_i32_6 = arith.constant 0 : i32
    %14 = arith.cmpi sgt, %arg1, %c0_i32_6 : i32
    %15 = arith.extui %14 : i1 to i32
    %c0_i32_7 = arith.constant 0 : i32
    %16 = arith.cmpi ne, %15, %c0_i32_7 : i32
    scf.if %16 {
      %c0_9 = arith.constant 0 : index
      %c0_10 = arith.constant 0 : index
      %c0_11 = arith.constant 0 : index
      %20 = vector.load %arg5[%c0_9, %c0_10, %c0_11] : memref<1x4x4xf32, #tpu.memory_space<vmem>>, vector<1x4x4xf32>
      %21 = arith.minimumf %20, %10 : vector<1x4x4xf32>
      %c0_12 = arith.constant 0 : index
      %c0_13 = arith.constant 0 : index
      %c0_14 = arith.constant 0 : index
      %22 = vector.load %arg5[%c0_12, %c0_13, %c0_14] : memref<1x4x4xf32, #tpu.memory_space<vmem>>, vector<1x4x4xf32>
      tpu.vector_store %arg5[%c0_12, %c0_13, %c0_14], %21 {strides = array<i32>} : memref<1x4x4xf32, #tpu.memory_space<vmem>>, vector<1x4x4xf32>,
    } else {
    }
    %c1_i32 = arith.constant 1 : i32
    %17 = arith.cmpi eq, %arg1, %c1_i32 : i32
    %18 = arith.extui %17 : i1 to i32
    %c0_i32_8 = arith.constant 0 : i32
    %19 = arith.cmpi ne, %18, %c0_i32_8 : i32
    scf.if %19 {
      %c0_9 = arith.constant 0 : index
      %c0_10 = arith.constant 0 : index
      %c0_11 = arith.constant 0 : index
      %20 = vector.load %arg5[%c0_9, %c0_10, %c0_11] : memref<1x4x4xf32, #tpu.memory_space<vmem>>, vector<1x4x4xf32>
      %cst_12 = arith.constant 1.000000e+04 : f32
      %21 = vector.broadcast %cst_12 : f32 to vector<1x4x4xf32>
      %22 = arith.cmpf olt, %20, %21 : vector<1x4x4xf32>
      %cst_13 = arith.constant 0.000000e+00 : f32
      %23 = vector.broadcast %cst_13 : f32 to vector<1x4x4xf32>
      %24 = arith.select %22, %20, %23 : vector<1x4x4xi1>, vector<1x4x4xf32>
      %25 = vector.shape_cast %24 : vector<1x4x4xf32> to vector<1x1x4x4xf32>
      %cst_14 = arith.constant dense<0.000000e+00> : vector<1xf32>
      %26 = vector.multi_reduction <add>, %25, %cst_14 [1, 2, 3] : vector<1x1x4x4xf32> to vector<1xf32>
      %27 = vector.shape_cast %26 : vector<1xf32> to vector<1x1x1x1xf32>
      %28 = vector.extract %27[0, 0, 0, 0] : f32 from vector<1x1x1x1xf32>
      %29 = arith.index_cast %arg0 : i32 to index
      %30 = memref.load %arg4[%29] : memref<2xf32, #tpu.memory_space<smem>>
      memref.store %28, %arg4[%29] : memref<2xf32, #tpu.memory_space<smem>>
    } else {
    }
    return
  }
  func.func @transform_0(%arg0: i32, %arg1: i32) -> i32 {
    %c0_i32 = arith.constant 0 : i32
    %c0_i32_0 = arith.constant 0 : i32
    return %c0_i32 : i32
  }
  func.func @transform_1(%arg0: i32, %arg1: i32) -> (i32, i32, i32, i32, i32) {
    %c0_i32 = arith.constant 0 : i32
    %c0_i32_0 = arith.constant 0 : i32
    %c0_i32_1 = arith.constant 0 : i32
    %c0_i32_2 = arith.constant 0 : i32
    return %arg1, %arg0, %c0_i32, %c0_i32_0, %c0_i32_1 : i32, i32, i32, i32, i32
  }
  func.func @transform_2(%arg0: i32, %arg1: i32) -> i32 {
    %c0_i32 = arith.constant 0 : i32
    %c0_i32_0 = arith.constant 0 : i32
    return %c0_i32 : i32
  }
}

module attributes {stable_mosaic.version = 11 : i64} {
  func.func @_view_loss_kernel(%arg0: i32, %arg1: i32, %arg2: memref<1x1x3x4x4xf32, #tpu.memory_space<vmem>>, %arg3: memref<1x1x1x4x4xi8, #tpu.memory_space<vmem>>, %arg4: memref<1x3x4x4xf32, #tpu.memory_space<vmem>>, %arg5: memref<1x1x4x4xf32, #tpu.memory_space<vmem>>, %arg6: memref<4x4xf32, #tpu.memory_space<smem>>, %arg7: memref<2x2xf32, #tpu.memory_space<smem>>, %arg8: memref<3x4x4xf32, #tpu.memory_space<vmem>>, %arg9: memref<3x4x4xf32, #tpu.memory_space<vmem>>) attributes {dimension_semantics = [#tpu.dimension_semantics<arbitrary>, #tpu.dimension_semantics<arbitrary>], iteration_bounds = array<i64: 2, 2>, scalar_prefetch = 0 : i64, scratch_operands = 2 : i64, tpu.core_type = #tpu.core_type<tc>, window_params = [{transform_indices = @transform_0, window_bounds = array<i64: 1, 1, 3, 4, 4>}, {transform_indices = @transform_1, window_bounds = array<i64: 1, 1, 1, 4, 4>}, {transform_indices = @transform_2, window_bounds = array<i64: 1, 3, 4, 4>}, {transform_indices = @transform_3, window_bounds = array<i64: 1, 1, 4, 4>}, {transform_indices = @transform_4, window_bounds = array<i64: 4, 4>}, {transform_indices = @transform_5, window_bounds = array<i64: 2, 2>}]} {
    %c0 = arith.constant 0 : index
    %c0_0 = arith.constant 0 : index
    %c0_1 = arith.constant 0 : index
    %c0_2 = arith.constant 0 : index
    %c0_3 = arith.constant 0 : index
    %0 = vector.load %arg2[%c0, %c0_0, %c0_1, %c0_2, %c0_3] : memref<1x1x3x4x4xf32, #tpu.memory_space<vmem>>, vector<1x1x3x4x4xf32>
    %1 = vector.shape_cast %0 : vector<1x1x3x4x4xf32> to vector<3x4x4xf32>
    %c0_4 = arith.constant 0 : index
    %c0_5 = arith.constant 0 : index
    %c0_6 = arith.constant 0 : index
    %c0_7 = arith.constant 0 : index
    %2 = vector.load %arg4[%c0_4, %c0_5, %c0_6, %c0_7] : memref<1x3x4x4xf32, #tpu.memory_space<vmem>>, vector<1x3x4x4xf32>
    %3 = vector.shape_cast %2 : vector<1x3x4x4xf32> to vector<3x4x4xf32>
    %c0_8 = arith.constant 0 : index
    %c0_9 = arith.constant 0 : index
    %c0_10 = arith.constant 0 : index
    %c0_11 = arith.constant 0 : index
    %c0_12 = arith.constant 0 : index
    %4 = vector.load %arg3[%c0_8, %c0_9, %c0_10, %c0_11, %c0_12] : memref<1x1x1x4x4xi8, #tpu.memory_space<vmem>>, vector<1x1x1x4x4xi8>
    %5 = vector.shape_cast %4 : vector<1x1x1x4x4xi8> to vector<1x4x4xi8>
    %6 = arith.sitofp %5 : vector<1x4x4xi8> to vector<1x4x4xf32>
    %7 = tpu.iota {dimensions = array<i32: 2>} : vector<1x4x4xi32>
    %8 = tpu.iota {dimensions = array<i32: 1>} : vector<1x4x4xi32>
    %c3_i32 = arith.constant 3 : i32
    %9 = vector.broadcast %c3_i32 : i32 to vector<1x4x4xi32>
    %10 = arith.cmpi slt, %7, %9 : vector<1x4x4xi32>
    %c3_i32_13 = arith.constant 3 : i32
    %11 = vector.broadcast %c3_i32_13 : i32 to vector<1x4x4xi32>
    %12 = arith.cmpi slt, %8, %11 : vector<1x4x4xi32>
    %c2_i32 = arith.constant 2 : i32
    %13 = vector.broadcast %c2_i32 : i32 to vector<1x4x4xi32>
    %14 = arith.cmpi slt, %7, %13 : vector<1x4x4xi32>
    %c2_i32_14 = arith.constant 2 : i32
    %15 = vector.broadcast %c2_i32_14 : i32 to vector<1x4x4xi32>
    %16 = arith.cmpi slt, %8, %15 : vector<1x4x4xi32>
    %17 = arith.andi %14, %16 : vector<1x4x4xi1>
    %c0_i32 = arith.constant 0 : i32
    %18 = arith.cmpi eq, %arg1, %c0_i32 : i32
    %19 = arith.extui %18 : i1 to i32
    %c0_i32_15 = arith.constant 0 : i32
    %20 = arith.cmpi ne, %19, %c0_i32_15 : i32
    scf.if %20 {
      %208 = vector.extract_strided_slice %3 {offsets = [0, 0, 1], sizes = [3, 4, 3], strides = [1, 1, 1]} : vector<3x4x4xf32> to vector<3x4x3xf32>
      %cst_71 = arith.constant 0.000000e+00 : f32
      %209 = vector.broadcast %cst_71 : f32 to vector<3x4x1xf32>
      %210 = tpu.concatenate %208, %209 in 2 : vector<3x4x3xf32>, vector<3x4x1xf32> -> vector<3x4x4xf32>
      %211 = arith.addf %3, %210 : vector<3x4x4xf32>
      %212 = vector.extract_strided_slice %3 {offsets = [0, 0, 2], sizes = [3, 4, 2], strides = [1, 1, 1]} : vector<3x4x4xf32> to vector<3x4x2xf32>
      %cst_72 = arith.constant 0.000000e+00 : f32
      %213 = vector.broadcast %cst_72 : f32 to vector<3x4x2xf32>
      %214 = tpu.concatenate %212, %213 in 2 : vector<3x4x2xf32>, vector<3x4x2xf32> -> vector<3x4x4xf32>
      %215 = arith.addf %211, %214 : vector<3x4x4xf32>
      %216 = vector.extract_strided_slice %215 {offsets = [0, 1, 0], sizes = [3, 3, 4], strides = [1, 1, 1]} : vector<3x4x4xf32> to vector<3x3x4xf32>
      %cst_73 = arith.constant 0.000000e+00 : f32
      %217 = vector.broadcast %cst_73 : f32 to vector<3x1x4xf32>
      %218 = tpu.concatenate %216, %217 in 1 : vector<3x3x4xf32>, vector<3x1x4xf32> -> vector<3x4x4xf32>
      %219 = arith.addf %215, %218 : vector<3x4x4xf32>
      %220 = vector.extract_strided_slice %215 {offsets = [0, 2, 0], sizes = [3, 2, 4], strides = [1, 1, 1]} : vector<3x4x4xf32> to vector<3x2x4xf32>
      %cst_74 = arith.constant 0.000000e+00 : f32
      %221 = vector.broadcast %cst_74 : f32 to vector<3x2x4xf32>
      %222 = tpu.concatenate %220, %221 in 1 : vector<3x2x4xf32>, vector<3x2x4xf32> -> vector<3x4x4xf32>
      %223 = arith.addf %219, %222 : vector<3x4x4xf32>
      %cst_75 = arith.constant 0.111111112 : f32
      %224 = vector.broadcast %cst_75 : f32 to vector<3x4x4xf32>
      %225 = arith.mulf %223, %224 : vector<3x4x4xf32>
      %c0_76 = arith.constant 0 : index
      %c0_77 = arith.constant 0 : index
      %c0_78 = arith.constant 0 : index
      %226 = vector.load %arg8[%c0_76, %c0_77, %c0_78] : memref<3x4x4xf32, #tpu.memory_space<vmem>>, vector<3x4x4xf32>
      tpu.vector_store %arg8[%c0_76, %c0_77, %c0_78], %225 {strides = array<i32>} : memref<3x4x4xf32, #tpu.memory_space<vmem>>, vector<3x4x4xf32>,
      %227 = arith.mulf %3, %3 : vector<3x4x4xf32>
      %228 = vector.extract_strided_slice %227 {offsets = [0, 0, 1], sizes = [3, 4, 3], strides = [1, 1, 1]} : vector<3x4x4xf32> to vector<3x4x3xf32>
      %cst_79 = arith.constant 0.000000e+00 : f32
      %229 = vector.broadcast %cst_79 : f32 to vector<3x4x1xf32>
      %230 = tpu.concatenate %228, %229 in 2 : vector<3x4x3xf32>, vector<3x4x1xf32> -> vector<3x4x4xf32>
      %231 = arith.addf %227, %230 : vector<3x4x4xf32>
      %232 = vector.extract_strided_slice %227 {offsets = [0, 0, 2], sizes = [3, 4, 2], strides = [1, 1, 1]} : vector<3x4x4xf32> to vector<3x4x2xf32>
      %cst_80 = arith.constant 0.000000e+00 : f32
      %233 = vector.broadcast %cst_80 : f32 to vector<3x4x2xf32>
      %234 = tpu.concatenate %232, %233 in 2 : vector<3x4x2xf32>, vector<3x4x2xf32> -> vector<3x4x4xf32>
      %235 = arith.addf %231, %234 : vector<3x4x4xf32>
      %236 = vector.extract_strided_slice %235 {offsets = [0, 1, 0], sizes = [3, 3, 4], strides = [1, 1, 1]} : vector<3x4x4xf32> to vector<3x3x4xf32>
      %cst_81 = arith.constant 0.000000e+00 : f32
      %237 = vector.broadcast %cst_81 : f32 to vector<3x1x4xf32>
      %238 = tpu.concatenate %236, %237 in 1 : vector<3x3x4xf32>, vector<3x1x4xf32> -> vector<3x4x4xf32>
      %239 = arith.addf %235, %238 : vector<3x4x4xf32>
      %240 = vector.extract_strided_slice %235 {offsets = [0, 2, 0], sizes = [3, 2, 4], strides = [1, 1, 1]} : vector<3x4x4xf32> to vector<3x2x4xf32>
      %cst_82 = arith.constant 0.000000e+00 : f32
      %241 = vector.broadcast %cst_82 : f32 to vector<3x2x4xf32>
      %242 = tpu.concatenate %240, %241 in 1 : vector<3x2x4xf32>, vector<3x2x4xf32> -> vector<3x4x4xf32>
      %243 = arith.addf %239, %242 : vector<3x4x4xf32>
      %cst_83 = arith.constant 0.111111112 : f32
      %244 = vector.broadcast %cst_83 : f32 to vector<3x4x4xf32>
      %245 = arith.mulf %243, %244 : vector<3x4x4xf32>
      %246 = arith.mulf %225, %225 : vector<3x4x4xf32>
      %247 = arith.subf %245, %246 : vector<3x4x4xf32>
      %c0_84 = arith.constant 0 : index
      %c0_85 = arith.constant 0 : index
      %c0_86 = arith.constant 0 : index
      %248 = vector.load %arg9[%c0_84, %c0_85, %c0_86] : memref<3x4x4xf32, #tpu.memory_space<vmem>>, vector<3x4x4xf32>
      tpu.vector_store %arg9[%c0_84, %c0_85, %c0_86], %247 {strides = array<i32>} : memref<3x4x4xf32, #tpu.memory_space<vmem>>, vector<3x4x4xf32>,
      %c0_87 = arith.constant 0 : index
      %c0_88 = arith.constant 0 : index
      %c0_89 = arith.constant 0 : index
      %c0_90 = arith.constant 0 : index
      %249 = vector.load %arg5[%c0_87, %c0_88, %c0_89, %c0_90] : memref<1x1x4x4xf32, #tpu.memory_space<vmem>>, vector<1x1x4x4xf32>
      %250 = vector.shape_cast %249 : vector<1x1x4x4xf32> to vector<1x4x4xf32>
      %251 = vector.extract_strided_slice %250 {offsets = [0, 0, 1], sizes = [1, 4, 3], strides = [1, 1, 1]} : vector<1x4x4xf32> to vector<1x4x3xf32>
      %cst_91 = arith.constant 0.000000e+00 : f32
      %252 = vector.broadcast %cst_91 : f32 to vector<1x4x1xf32>
      %253 = tpu.concatenate %251, %252 in 2 : vector<1x4x3xf32>, vector<1x4x1xf32> -> vector<1x4x4xf32>
      %254 = arith.subf %250, %253 : vector<1x4x4xf32>
      %255 = vector.extract_strided_slice %250 {offsets = [0, 1, 0], sizes = [1, 3, 4], strides = [1, 1, 1]} : vector<1x4x4xf32> to vector<1x3x4xf32>
      %cst_92 = arith.constant 0.000000e+00 : f32
      %256 = vector.broadcast %cst_92 : f32 to vector<1x1x4xf32>
      %257 = tpu.concatenate %255, %256 in 1 : vector<1x3x4xf32>, vector<1x1x4xf32> -> vector<1x4x4xf32>
      %258 = arith.subf %250, %257 : vector<1x4x4xf32>
      %259 = vector.extract_strided_slice %3 {offsets = [0, 0, 1], sizes = [3, 4, 3], strides = [1, 1, 1]} : vector<3x4x4xf32> to vector<3x4x3xf32>
      %cst_93 = arith.constant 0.000000e+00 : f32
      %260 = vector.broadcast %cst_93 : f32 to vector<3x4x1xf32>
      %261 = tpu.concatenate %259, %260 in 2 : vector<3x4x3xf32>, vector<3x4x1xf32> -> vector<3x4x4xf32>
      %262 = arith.subf %3, %261 : vector<3x4x4xf32>
      %263 = vector.extract_strided_slice %3 {offsets = [0, 1, 0], sizes = [3, 3, 4], strides = [1, 1, 1]} : vector<3x4x4xf32> to vector<3x3x4xf32>
      %cst_94 = arith.constant 0.000000e+00 : f32
      %264 = vector.broadcast %cst_94 : f32 to vector<3x1x4xf32>
      %265 = tpu.concatenate %263, %264 in 1 : vector<3x3x4xf32>, vector<3x1x4xf32> -> vector<3x4x4xf32>
      %266 = arith.subf %3, %265 : vector<3x4x4xf32>
      %267 = math.absf %262 : vector<3x4x4xf32>
      %cst_95 = arith.constant dense<0.000000e+00> : vector<4x4xf32>
      %268 = vector.multi_reduction <add>, %267, %cst_95 [0] : vector<3x4x4xf32> to vector<4x4xf32>
      %269 = vector.shape_cast %268 : vector<4x4xf32> to vector<1x4x4xf32>
      %cst_96 = arith.constant 3.000000e+00 : f32
      %270 = vector.broadcast %cst_96 : f32 to vector<1x4x4xf32>
      %271 = arith.divf %269, %270 : vector<1x4x4xf32>
      %cst_97 = arith.constant 0.000000e+00 : f32
      %272 = vector.broadcast %cst_97 : f32 to vector<1x4x4xf32>
      %273 = arith.subf %272, %271 : vector<1x4x4xf32>
      %274 = math.exp %273 : vector<1x4x4xf32>
      %275 = math.absf %266 : vector<3x4x4xf32>
      %cst_98 = arith.constant dense<0.000000e+00> : vector<4x4xf32>
      %276 = vector.multi_reduction <add>, %275, %cst_98 [0] : vector<3x4x4xf32> to vector<4x4xf32>
      %277 = vector.shape_cast %276 : vector<4x4xf32> to vector<1x4x4xf32>
      %cst_99 = arith.constant 3.000000e+00 : f32
      %278 = vector.broadcast %cst_99 : f32 to vector<1x4x4xf32>
      %279 = arith.divf %277, %278 : vector<1x4x4xf32>
      %cst_100 = arith.constant 0.000000e+00 : f32
      %280 = vector.broadcast %cst_100 : f32 to vector<1x4x4xf32>
      %281 = arith.subf %280, %279 : vector<1x4x4xf32>
      %282 = math.exp %281 : vector<1x4x4xf32>
      %283 = arith.mulf %254, %274 : vector<1x4x4xf32>
      %284 = math.absf %283 : vector<1x4x4xf32>
      %cst_101 = arith.constant 0.000000e+00 : f32
      %285 = vector.broadcast %cst_101 : f32 to vector<1x4x4xf32>
      %286 = arith.select %10, %284, %285 : vector<1x4x4xi1>, vector<1x4x4xf32>
      %287 = vector.shape_cast %286 : vector<1x4x4xf32> to vector<1x1x4x4xf32>
      %cst_102 = arith.constant dense<0.000000e+00> : vector<1xf32>
      %288 = vector.multi_reduction <add>, %287, %cst_102 [1, 2, 3] : vector<1x1x4x4xf32> to vector<1xf32>
      %289 = vector.shape_cast %288 : vector<1xf32> to vector<1x1x1x1xf32>
      %290 = vector.extract %289[0, 0, 0, 0] : f32 from vector<1x1x1x1xf32>
      %291 = arith.index_cast %arg0 : i32 to index
      %c0_103 = arith.constant 0 : index
      %292 = memref.load %arg7[%291, %c0_103] : memref<2x2xf32, #tpu.memory_space<smem>>
      memref.store %290, %arg7[%291, %c0_103] : memref<2x2xf32, #tpu.memory_space<smem>>
      %293 = arith.mulf %258, %282 : vector<1x4x4xf32>
      %294 = math.absf %293 : vector<1x4x4xf32>
      %cst_104 = arith.constant 0.000000e+00 : f32
      %295 = vector.broadcast %cst_104 : f32 to vector<1x4x4xf32>
      %296 = arith.select %12, %294, %295 : vector<1x4x4xi1>, vector<1x4x4xf32>
      %297 = vector.shape_cast %296 : vector<1x4x4xf32> to vector<1x1x4x4xf32>
      %cst_105 = arith.constant dense<0.000000e+00> : vector<1xf32>
      %298 = vector.multi_reduction <add>, %297, %cst_105 [1, 2, 3] : vector<1x1x4x4xf32> to vector<1xf32>
      %299 = vector.shape_cast %298 : vector<1xf32> to vector<1x1x1x1xf32>
      %300 = vector.extract %299[0, 0, 0, 0] : f32 from vector<1x1x1x1xf32>
      %301 = arith.index_cast %arg0 : i32 to index
      %c1_106 = arith.constant 1 : index
      %302 = memref.load %arg7[%301, %c1_106] : memref<2x2xf32, #tpu.memory_space<smem>>
      memref.store %300, %arg7[%301, %c1_106] : memref<2x2xf32, #tpu.memory_space<smem>>
    } else {
    }
    %21 = arith.subf %1, %3 : vector<3x4x4xf32>
    %22 = vector.broadcast %6 : vector<1x4x4xf32> to vector<3x4x4xf32>
    %23 = arith.mulf %21, %22 : vector<3x4x4xf32>
    %24 = math.absf %23 : vector<3x4x4xf32>
    %cst = arith.constant 1.000000e+00 : f32
    %25 = vector.broadcast %cst : f32 to vector<3x4x4xf32>
    %26 = arith.cmpf olt, %24, %25 : vector<3x4x4xf32>
    %cst_16 = arith.constant 5.000000e-01 : f32
    %27 = vector.broadcast %cst_16 : f32 to vector<3x4x4xf32>
    %28 = arith.mulf %27, %23 : vector<3x4x4xf32>
    %29 = arith.mulf %28, %23 : vector<3x4x4xf32>
    %cst_17 = arith.constant 5.000000e-01 : f32
    %30 = vector.broadcast %cst_17 : f32 to vector<3x4x4xf32>
    %31 = arith.subf %24, %30 : vector<3x4x4xf32>
    %32 = arith.select %26, %29, %31 : vector<3x4x4xi1>, vector<3x4x4xf32>
    %33 = vector.shape_cast %32 : vector<3x4x4xf32> to vector<1x3x4x4xf32>
    %cst_18 = arith.constant dense<0.000000e+00> : vector<1xf32>
    %34 = vector.multi_reduction <add>, %33, %cst_18 [1, 2, 3] : vector<1x3x4x4xf32> to vector<1xf32>
    %35 = vector.shape_cast %34 : vector<1xf32> to vector<1x1x1x1xf32>
    %36 = vector.extract %35[0, 0, 0, 0] : f32 from vector<1x1x1x1xf32>
    %37 = vector.extract_strided_slice %23 {offsets = [0, 0, 1], sizes = [3, 4, 3], strides = [1, 1, 1]} : vector<3x4x4xf32> to vector<3x4x3xf32>
    %cst_19 = arith.constant 0.000000e+00 : f32
    %38 = vector.broadcast %cst_19 : f32 to vector<3x4x1xf32>
    %39 = tpu.concatenate %37, %38 in 2 : vector<3x4x3xf32>, vector<3x4x1xf32> -> vector<3x4x4xf32>
    %40 = arith.subf %39, %23 : vector<3x4x4xf32>
    %cst_20 = arith.constant 0.000000e+00 : f32
    %41 = vector.shape_cast %10 : vector<1x4x4xi1> to vector<1x4x4xi1>
    %42 = vector.broadcast %41 : vector<1x4x4xi1> to vector<3x4x4xi1>
    %43 = vector.broadcast %cst_20 : f32 to vector<3x4x4xf32>
    %44 = arith.select %42, %40, %43 : vector<3x4x4xi1>, vector<3x4x4xf32>
    %45 = vector.extract_strided_slice %23 {offsets = [0, 1, 0], sizes = [3, 3, 4], strides = [1, 1, 1]} : vector<3x4x4xf32> to vector<3x3x4xf32>
    %cst_21 = arith.constant 0.000000e+00 : f32
    %46 = vector.broadcast %cst_21 : f32 to vector<3x1x4xf32>
    %47 = tpu.concatenate %45, %46 in 1 : vector<3x3x4xf32>, vector<3x1x4xf32> -> vector<3x4x4xf32>
    %48 = arith.subf %47, %23 : vector<3x4x4xf32>
    %cst_22 = arith.constant 0.000000e+00 : f32
    %49 = vector.shape_cast %12 : vector<1x4x4xi1> to vector<1x4x4xi1>
    %50 = vector.broadcast %49 : vector<1x4x4xi1> to vector<3x4x4xi1>
    %51 = vector.broadcast %cst_22 : f32 to vector<3x4x4xf32>
    %52 = arith.select %50, %48, %51 : vector<3x4x4xi1>, vector<3x4x4xf32>
    %53 = math.absf %44 : vector<3x4x4xf32>
    %cst_23 = arith.constant 1.000000e+00 : f32
    %54 = vector.broadcast %cst_23 : f32 to vector<3x4x4xf32>
    %55 = arith.cmpf olt, %53, %54 : vector<3x4x4xf32>
    %cst_24 = arith.constant 5.000000e-01 : f32
    %56 = vector.broadcast %cst_24 : f32 to vector<3x4x4xf32>
    %57 = arith.mulf %56, %44 : vector<3x4x4xf32>
    %58 = arith.mulf %57, %44 : vector<3x4x4xf32>
    %cst_25 = arith.constant 5.000000e-01 : f32
    %59 = vector.broadcast %cst_25 : f32 to vector<3x4x4xf32>
    %60 = arith.subf %53, %59 : vector<3x4x4xf32>
    %61 = arith.select %55, %58, %60 : vector<3x4x4xi1>, vector<3x4x4xf32>
    %62 = vector.shape_cast %61 : vector<3x4x4xf32> to vector<1x3x4x4xf32>
    %cst_26 = arith.constant dense<0.000000e+00> : vector<1xf32>
    %63 = vector.multi_reduction <add>, %62, %cst_26 [1, 2, 3] : vector<1x3x4x4xf32> to vector<1xf32>
    %64 = vector.shape_cast %63 : vector<1xf32> to vector<1x1x1x1xf32>
    %65 = vector.extract %64[0, 0, 0, 0] : f32 from vector<1x1x1x1xf32>
    %66 = math.absf %52 : vector<3x4x4xf32>
    %cst_27 = arith.constant 1.000000e+00 : f32
    %67 = vector.broadcast %cst_27 : f32 to vector<3x4x4xf32>
    %68 = arith.cmpf olt, %66, %67 : vector<3x4x4xf32>
    %cst_28 = arith.constant 5.000000e-01 : f32
    %69 = vector.broadcast %cst_28 : f32 to vector<3x4x4xf32>
    %70 = arith.mulf %69, %52 : vector<3x4x4xf32>
    %71 = arith.mulf %70, %52 : vector<3x4x4xf32>
    %cst_29 = arith.constant 5.000000e-01 : f32
    %72 = vector.broadcast %cst_29 : f32 to vector<3x4x4xf32>
    %73 = arith.subf %66, %72 : vector<3x4x4xf32>
    %74 = arith.select %68, %71, %73 : vector<3x4x4xi1>, vector<3x4x4xf32>
    %75 = vector.shape_cast %74 : vector<3x4x4xf32> to vector<1x3x4x4xf32>
    %cst_30 = arith.constant dense<0.000000e+00> : vector<1xf32>
    %76 = vector.multi_reduction <add>, %75, %cst_30 [1, 2, 3] : vector<1x3x4x4xf32> to vector<1xf32>
    %77 = vector.shape_cast %76 : vector<1xf32> to vector<1x1x1x1xf32>
    %78 = vector.extract %77[0, 0, 0, 0] : f32 from vector<1x1x1x1xf32>
    %c0_31 = arith.constant 0 : index
    %c0_32 = arith.constant 0 : index
    %c0_33 = arith.constant 0 : index
    %79 = vector.load %arg8[%c0_31, %c0_32, %c0_33] : memref<3x4x4xf32, #tpu.memory_space<vmem>>, vector<3x4x4xf32>
    %c0_34 = arith.constant 0 : index
    %c0_35 = arith.constant 0 : index
    %c0_36 = arith.constant 0 : index
    %80 = vector.load %arg9[%c0_34, %c0_35, %c0_36] : memref<3x4x4xf32, #tpu.memory_space<vmem>>, vector<3x4x4xf32>
    %81 = vector.extract_strided_slice %1 {offsets = [0, 0, 1], sizes = [3, 4, 3], strides = [1, 1, 1]} : vector<3x4x4xf32> to vector<3x4x3xf32>
    %cst_37 = arith.constant 0.000000e+00 : f32
    %82 = vector.broadcast %cst_37 : f32 to vector<3x4x1xf32>
    %83 = tpu.concatenate %81, %82 in 2 : vector<3x4x3xf32>, vector<3x4x1xf32> -> vector<3x4x4xf32>
    %84 = arith.addf %1, %83 : vector<3x4x4xf32>
    %85 = vector.extract_strided_slice %1 {offsets = [0, 0, 2], sizes = [3, 4, 2], strides = [1, 1, 1]} : vector<3x4x4xf32> to vector<3x4x2xf32>
    %cst_38 = arith.constant 0.000000e+00 : f32
    %86 = vector.broadcast %cst_38 : f32 to vector<3x4x2xf32>
    %87 = tpu.concatenate %85, %86 in 2 : vector<3x4x2xf32>, vector<3x4x2xf32> -> vector<3x4x4xf32>
    %88 = arith.addf %84, %87 : vector<3x4x4xf32>
    %89 = vector.extract_strided_slice %88 {offsets = [0, 1, 0], sizes = [3, 3, 4], strides = [1, 1, 1]} : vector<3x4x4xf32> to vector<3x3x4xf32>
    %cst_39 = arith.constant 0.000000e+00 : f32
    %90 = vector.broadcast %cst_39 : f32 to vector<3x1x4xf32>
    %91 = tpu.concatenate %89, %90 in 1 : vector<3x3x4xf32>, vector<3x1x4xf32> -> vector<3x4x4xf32>
    %92 = arith.addf %88, %91 : vector<3x4x4xf32>
    %93 = vector.extract_strided_slice %88 {offsets = [0, 2, 0], sizes = [3, 2, 4], strides = [1, 1, 1]} : vector<3x4x4xf32> to vector<3x2x4xf32>
    %cst_40 = arith.constant 0.000000e+00 : f32
    %94 = vector.broadcast %cst_40 : f32 to vector<3x2x4xf32>
    %95 = tpu.concatenate %93, %94 in 1 : vector<3x2x4xf32>, vector<3x2x4xf32> -> vector<3x4x4xf32>
    %96 = arith.addf %92, %95 : vector<3x4x4xf32>
    %cst_41 = arith.constant 0.111111112 : f32
    %97 = vector.broadcast %cst_41 : f32 to vector<3x4x4xf32>
    %98 = arith.mulf %96, %97 : vector<3x4x4xf32>
    %99 = arith.mulf %1, %1 : vector<3x4x4xf32>
    %100 = vector.extract_strided_slice %99 {offsets = [0, 0, 1], sizes = [3, 4, 3], strides = [1, 1, 1]} : vector<3x4x4xf32> to vector<3x4x3xf32>
    %cst_42 = arith.constant 0.000000e+00 : f32
    %101 = vector.broadcast %cst_42 : f32 to vector<3x4x1xf32>
    %102 = tpu.concatenate %100, %101 in 2 : vector<3x4x3xf32>, vector<3x4x1xf32> -> vector<3x4x4xf32>
    %103 = arith.addf %99, %102 : vector<3x4x4xf32>
    %104 = vector.extract_strided_slice %99 {offsets = [0, 0, 2], sizes = [3, 4, 2], strides = [1, 1, 1]} : vector<3x4x4xf32> to vector<3x4x2xf32>
    %cst_43 = arith.constant 0.000000e+00 : f32
    %105 = vector.broadcast %cst_43 : f32 to vector<3x4x2xf32>
    %106 = tpu.concatenate %104, %105 in 2 : vector<3x4x2xf32>, vector<3x4x2xf32> -> vector<3x4x4xf32>
    %107 = arith.addf %103, %106 : vector<3x4x4xf32>
    %108 = vector.extract_strided_slice %107 {offsets = [0, 1, 0], sizes = [3, 3, 4], strides = [1, 1, 1]} : vector<3x4x4xf32> to vector<3x3x4xf32>
    %cst_44 = arith.constant 0.000000e+00 : f32
    %109 = vector.broadcast %cst_44 : f32 to vector<3x1x4xf32>
    %110 = tpu.concatenate %108, %109 in 1 : vector<3x3x4xf32>, vector<3x1x4xf32> -> vector<3x4x4xf32>
    %111 = arith.addf %107, %110 : vector<3x4x4xf32>
    %112 = vector.extract_strided_slice %107 {offsets = [0, 2, 0], sizes = [3, 2, 4], strides = [1, 1, 1]} : vector<3x4x4xf32> to vector<3x2x4xf32>
    %cst_45 = arith.constant 0.000000e+00 : f32
    %113 = vector.broadcast %cst_45 : f32 to vector<3x2x4xf32>
    %114 = tpu.concatenate %112, %113 in 1 : vector<3x2x4xf32>, vector<3x2x4xf32> -> vector<3x4x4xf32>
    %115 = arith.addf %111, %114 : vector<3x4x4xf32>
    %cst_46 = arith.constant 0.111111112 : f32
    %116 = vector.broadcast %cst_46 : f32 to vector<3x4x4xf32>
    %117 = arith.mulf %115, %116 : vector<3x4x4xf32>
    %118 = arith.mulf %98, %98 : vector<3x4x4xf32>
    %119 = arith.subf %117, %118 : vector<3x4x4xf32>
    %120 = arith.mulf %3, %1 : vector<3x4x4xf32>
    %121 = vector.extract_strided_slice %120 {offsets = [0, 0, 1], sizes = [3, 4, 3], strides = [1, 1, 1]} : vector<3x4x4xf32> to vector<3x4x3xf32>
    %cst_47 = arith.constant 0.000000e+00 : f32
    %122 = vector.broadcast %cst_47 : f32 to vector<3x4x1xf32>
    %123 = tpu.concatenate %121, %122 in 2 : vector<3x4x3xf32>, vector<3x4x1xf32> -> vector<3x4x4xf32>
    %124 = arith.addf %120, %123 : vector<3x4x4xf32>
    %125 = vector.extract_strided_slice %120 {offsets = [0, 0, 2], sizes = [3, 4, 2], strides = [1, 1, 1]} : vector<3x4x4xf32> to vector<3x4x2xf32>
    %cst_48 = arith.constant 0.000000e+00 : f32
    %126 = vector.broadcast %cst_48 : f32 to vector<3x4x2xf32>
    %127 = tpu.concatenate %125, %126 in 2 : vector<3x4x2xf32>, vector<3x4x2xf32> -> vector<3x4x4xf32>
    %128 = arith.addf %124, %127 : vector<3x4x4xf32>
    %129 = vector.extract_strided_slice %128 {offsets = [0, 1, 0], sizes = [3, 3, 4], strides = [1, 1, 1]} : vector<3x4x4xf32> to vector<3x3x4xf32>
    %cst_49 = arith.constant 0.000000e+00 : f32
    %130 = vector.broadcast %cst_49 : f32 to vector<3x1x4xf32>
    %131 = tpu.concatenate %129, %130 in 1 : vector<3x3x4xf32>, vector<3x1x4xf32> -> vector<3x4x4xf32>
    %132 = arith.addf %128, %131 : vector<3x4x4xf32>
    %133 = vector.extract_strided_slice %128 {offsets = [0, 2, 0], sizes = [3, 2, 4], strides = [1, 1, 1]} : vector<3x4x4xf32> to vector<3x2x4xf32>
    %cst_50 = arith.constant 0.000000e+00 : f32
    %134 = vector.broadcast %cst_50 : f32 to vector<3x2x4xf32>
    %135 = tpu.concatenate %133, %134 in 1 : vector<3x2x4xf32>, vector<3x2x4xf32> -> vector<3x4x4xf32>
    %136 = arith.addf %132, %135 : vector<3x4x4xf32>
    %cst_51 = arith.constant 0.111111112 : f32
    %137 = vector.broadcast %cst_51 : f32 to vector<3x4x4xf32>
    %138 = arith.mulf %136, %137 : vector<3x4x4xf32>
    %139 = arith.mulf %79, %98 : vector<3x4x4xf32>
    %140 = arith.subf %138, %139 : vector<3x4x4xf32>
    %141 = vector.extract_strided_slice %6 {offsets = [0, 0, 1], sizes = [1, 4, 3], strides = [1, 1, 1]} : vector<1x4x4xf32> to vector<1x4x3xf32>
    %cst_52 = arith.constant 0.000000e+00 : f32
    %142 = vector.broadcast %cst_52 : f32 to vector<1x4x1xf32>
    %143 = tpu.concatenate %141, %142 in 2 : vector<1x4x3xf32>, vector<1x4x1xf32> -> vector<1x4x4xf32>
    %144 = arith.addf %6, %143 : vector<1x4x4xf32>
    %145 = vector.extract_strided_slice %6 {offsets = [0, 0, 2], sizes = [1, 4, 2], strides = [1, 1, 1]} : vector<1x4x4xf32> to vector<1x4x2xf32>
    %cst_53 = arith.constant 0.000000e+00 : f32
    %146 = vector.broadcast %cst_53 : f32 to vector<1x4x2xf32>
    %147 = tpu.concatenate %145, %146 in 2 : vector<1x4x2xf32>, vector<1x4x2xf32> -> vector<1x4x4xf32>
    %148 = arith.addf %144, %147 : vector<1x4x4xf32>
    %149 = vector.extract_strided_slice %148 {offsets = [0, 1, 0], sizes = [1, 3, 4], strides = [1, 1, 1]} : vector<1x4x4xf32> to vector<1x3x4xf32>
    %cst_54 = arith.constant 0.000000e+00 : f32
    %150 = vector.broadcast %cst_54 : f32 to vector<1x1x4xf32>
    %151 = tpu.concatenate %149, %150 in 1 : vector<1x3x4xf32>, vector<1x1x4xf32> -> vector<1x4x4xf32>
    %152 = arith.addf %148, %151 : vector<1x4x4xf32>
    %153 = vector.extract_strided_slice %148 {offsets = [0, 2, 0], sizes = [1, 2, 4], strides = [1, 1, 1]} : vector<1x4x4xf32> to vector<1x2x4xf32>
    %cst_55 = arith.constant 0.000000e+00 : f32
    %154 = vector.broadcast %cst_55 : f32 to vector<1x2x4xf32>
    %155 = tpu.concatenate %153, %154 in 1 : vector<1x2x4xf32>, vector<1x2x4xf32> -> vector<1x4x4xf32>
    %156 = arith.addf %152, %155 : vector<1x4x4xf32>
    %cst_56 = arith.constant 0.111111112 : f32
    %157 = vector.broadcast %cst_56 : f32 to vector<1x4x4xf32>
    %158 = arith.mulf %156, %157 : vector<1x4x4xf32>
    %cst_57 = arith.constant 2.000000e+00 : f32
    %159 = vector.broadcast %cst_57 : f32 to vector<3x4x4xf32>
    %160 = arith.mulf %159, %79 : vector<3x4x4xf32>
    %161 = arith.mulf %160, %98 : vector<3x4x4xf32>
    %cst_58 = arith.constant 9.99999974E-5 : f32
    %162 = vector.broadcast %cst_58 : f32 to vector<3x4x4xf32>
    %163 = arith.addf %161, %162 : vector<3x4x4xf32>
    %cst_59 = arith.constant 2.000000e+00 : f32
    %164 = vector.broadcast %cst_59 : f32 to vector<3x4x4xf32>
    %165 = arith.mulf %164, %140 : vector<3x4x4xf32>
    %cst_60 = arith.constant 8.99999984E-4 : f32
    %166 = vector.broadcast %cst_60 : f32 to vector<3x4x4xf32>
    %167 = arith.addf %165, %166 : vector<3x4x4xf32>
    %168 = arith.mulf %163, %167 : vector<3x4x4xf32>
    %169 = arith.mulf %79, %79 : vector<3x4x4xf32>
    %170 = arith.mulf %98, %98 : vector<3x4x4xf32>
    %171 = arith.addf %169, %170 : vector<3x4x4xf32>
    %cst_61 = arith.constant 9.99999974E-5 : f32
    %172 = vector.broadcast %cst_61 : f32 to vector<3x4x4xf32>
    %173 = arith.addf %171, %172 : vector<3x4x4xf32>
    %174 = arith.addf %80, %119 : vector<3x4x4xf32>
    %cst_62 = arith.constant 8.99999984E-4 : f32
    %175 = vector.broadcast %cst_62 : f32 to vector<3x4x4xf32>
    %176 = arith.addf %174, %175 : vector<3x4x4xf32>
    %177 = arith.mulf %173, %176 : vector<3x4x4xf32>
    %178 = tpu.reciprocal %177 {approx = true} : vector<3x4x4xf32> -> vector<3x4x4xf32>
    %179 = arith.mulf %168, %178 : vector<3x4x4xf32>
    %cst_63 = arith.constant 1.000000e+00 : f32
    %180 = vector.broadcast %cst_63 : f32 to vector<3x4x4xf32>
    %181 = arith.subf %180, %179 : vector<3x4x4xf32>
    %cst_64 = arith.constant 5.000000e-01 : f32
    %182 = vector.broadcast %cst_64 : f32 to vector<3x4x4xf32>
    %183 = arith.mulf %181, %182 : vector<3x4x4xf32>
    %cst_65 = arith.constant 0.000000e+00 : f32
    %cst_66 = arith.constant 1.000000e+00 : f32
    %184 = vector.broadcast %cst_65 : f32 to vector<3x4x4xf32>
    %185 = arith.maximumf %184, %183 : vector<3x4x4xf32>
    %186 = vector.broadcast %cst_66 : f32 to vector<3x4x4xf32>
    %187 = arith.minimumf %186, %185 : vector<3x4x4xf32>
    %188 = vector.broadcast %158 : vector<1x4x4xf32> to vector<3x4x4xf32>
    %189 = arith.mulf %188, %187 : vector<3x4x4xf32>
    %cst_67 = arith.constant 0.000000e+00 : f32
    %190 = vector.shape_cast %17 : vector<1x4x4xi1> to vector<1x4x4xi1>
    %191 = vector.broadcast %190 : vector<1x4x4xi1> to vector<3x4x4xi1>
    %192 = vector.broadcast %cst_67 : f32 to vector<3x4x4xf32>
    %193 = arith.select %191, %189, %192 : vector<3x4x4xi1>, vector<3x4x4xf32>
    %194 = vector.shape_cast %193 : vector<3x4x4xf32> to vector<1x3x4x4xf32>
    %cst_68 = arith.constant dense<0.000000e+00> : vector<1xf32>
    %195 = vector.multi_reduction <add>, %194, %cst_68 [1, 2, 3] : vector<1x3x4x4xf32> to vector<1xf32>
    %196 = vector.shape_cast %195 : vector<1xf32> to vector<1x1x1x1xf32>
    %197 = vector.extract %196[0, 0, 0, 0] : f32 from vector<1x1x1x1xf32>
    %c2_i32_69 = arith.constant 2 : i32
    %198 = arith.muli %arg0, %c2_i32_69 : i32
    %199 = arith.addi %198, %arg1 : i32
    %200 = arith.index_cast %199 : i32 to index
    %c0_70 = arith.constant 0 : index
    %201 = memref.load %arg6[%200, %c0_70] : memref<4x4xf32, #tpu.memory_space<smem>>
    memref.store %36, %arg6[%200, %c0_70] : memref<4x4xf32, #tpu.memory_space<smem>>
    %202 = arith.index_cast %199 : i32 to index
    %c1 = arith.constant 1 : index
    %203 = memref.load %arg6[%202, %c1] : memref<4x4xf32, #tpu.memory_space<smem>>
    memref.store %65, %arg6[%202, %c1] : memref<4x4xf32, #tpu.memory_space<smem>>
    %204 = arith.index_cast %199 : i32 to index
    %c2 = arith.constant 2 : index
    %205 = memref.load %arg6[%204, %c2] : memref<4x4xf32, #tpu.memory_space<smem>>
    memref.store %78, %arg6[%204, %c2] : memref<4x4xf32, #tpu.memory_space<smem>>
    %206 = arith.index_cast %199 : i32 to index
    %c3 = arith.constant 3 : index
    %207 = memref.load %arg6[%206, %c3] : memref<4x4xf32, #tpu.memory_space<smem>>
    memref.store %197, %arg6[%206, %c3] : memref<4x4xf32, #tpu.memory_space<smem>>
    return
  }
  func.func @transform_0(%arg0: i32, %arg1: i32) -> (i32, i32, i32, i32, i32) {
    %c0_i32 = arith.constant 0 : i32
    %c0_i32_0 = arith.constant 0 : i32
    %c0_i32_1 = arith.constant 0 : i32
    %c0_i32_2 = arith.constant 0 : i32
    return %arg1, %arg0, %c0_i32, %c0_i32_0, %c0_i32_1 : i32, i32, i32, i32, i32
  }
  func.func @transform_1(%arg0: i32, %arg1: i32) -> (i32, i32, i32, i32, i32) {
    %c0_i32 = arith.constant 0 : i32
    %c0_i32_0 = arith.constant 0 : i32
    %c0_i32_1 = arith.constant 0 : i32
    %c0_i32_2 = arith.constant 0 : i32
    return %arg1, %arg0, %c0_i32, %c0_i32_0, %c0_i32_1 : i32, i32, i32, i32, i32
  }
  func.func @transform_2(%arg0: i32, %arg1: i32) -> (i32, i32, i32, i32) {
    %c0_i32 = arith.constant 0 : i32
    %c0_i32_0 = arith.constant 0 : i32
    %c0_i32_1 = arith.constant 0 : i32
    %c0_i32_2 = arith.constant 0 : i32
    return %arg0, %c0_i32, %c0_i32_0, %c0_i32_1 : i32, i32, i32, i32
  }
  func.func @transform_3(%arg0: i32, %arg1: i32) -> (i32, i32, i32, i32) {
    %c0_i32 = arith.constant 0 : i32
    %c0_i32_0 = arith.constant 0 : i32
    %c0_i32_1 = arith.constant 0 : i32
    %c0_i32_2 = arith.constant 0 : i32
    return %arg0, %c0_i32, %c0_i32_0, %c0_i32_1 : i32, i32, i32, i32
  }
  func.func @transform_4(%arg0: i32, %arg1: i32) -> (i32, i32) {
    %c0_i32 = arith.constant 0 : i32
    %c0_i32_0 = arith.constant 0 : i32
    %c0_i32_1 = arith.constant 0 : i32
    return %c0_i32, %c0_i32_0 : i32, i32
  }
  func.func @transform_5(%arg0: i32, %arg1: i32) -> (i32, i32) {
    %c0_i32 = arith.constant 0 : i32
    %c0_i32_0 = arith.constant 0 : i32
    %c0_i32_1 = arith.constant 0 : i32
    return %c0_i32, %c0_i32_0 : i32, i32
  }
}

module attributes {stable_mosaic.version = 11 : i64} {
  func.func @_view_loss_kernel(%arg0: i32, %arg1: i32, %arg2: memref<1x1x3x8x8xf32, #tpu.memory_space<vmem>>, %arg3: memref<1x1x1x8x8xi8, #tpu.memory_space<vmem>>, %arg4: memref<1x3x8x8xf32, #tpu.memory_space<vmem>>, %arg5: memref<1x1x8x8xf32, #tpu.memory_space<vmem>>, %arg6: memref<4x4xf32, #tpu.memory_space<smem>>, %arg7: memref<2x2xf32, #tpu.memory_space<smem>>, %arg8: memref<3x8x8xf32, #tpu.memory_space<vmem>>, %arg9: memref<3x8x8xf32, #tpu.memory_space<vmem>>) attributes {dimension_semantics = [#tpu.dimension_semantics<arbitrary>, #tpu.dimension_semantics<arbitrary>], iteration_bounds = array<i64: 2, 2>, scalar_prefetch = 0 : i64, scratch_operands = 2 : i64, tpu.core_type = #tpu.core_type<tc>, window_params = [{transform_indices = @transform_0, window_bounds = array<i64: 1, 1, 3, 8, 8>}, {transform_indices = @transform_1, window_bounds = array<i64: 1, 1, 1, 8, 8>}, {transform_indices = @transform_2, window_bounds = array<i64: 1, 3, 8, 8>}, {transform_indices = @transform_3, window_bounds = array<i64: 1, 1, 8, 8>}, {transform_indices = @transform_4, window_bounds = array<i64: 4, 4>}, {transform_indices = @transform_5, window_bounds = array<i64: 2, 2>}]} {
    %c0 = arith.constant 0 : index
    %c0_0 = arith.constant 0 : index
    %c0_1 = arith.constant 0 : index
    %c0_2 = arith.constant 0 : index
    %c0_3 = arith.constant 0 : index
    %0 = vector.load %arg2[%c0, %c0_0, %c0_1, %c0_2, %c0_3] : memref<1x1x3x8x8xf32, #tpu.memory_space<vmem>>, vector<1x1x3x8x8xf32>
    %1 = vector.shape_cast %0 : vector<1x1x3x8x8xf32> to vector<3x8x8xf32>
    %c0_4 = arith.constant 0 : index
    %c0_5 = arith.constant 0 : index
    %c0_6 = arith.constant 0 : index
    %c0_7 = arith.constant 0 : index
    %2 = vector.load %arg4[%c0_4, %c0_5, %c0_6, %c0_7] : memref<1x3x8x8xf32, #tpu.memory_space<vmem>>, vector<1x3x8x8xf32>
    %3 = vector.shape_cast %2 : vector<1x3x8x8xf32> to vector<3x8x8xf32>
    %c0_8 = arith.constant 0 : index
    %c0_9 = arith.constant 0 : index
    %c0_10 = arith.constant 0 : index
    %c0_11 = arith.constant 0 : index
    %c0_12 = arith.constant 0 : index
    %4 = vector.load %arg3[%c0_8, %c0_9, %c0_10, %c0_11, %c0_12] : memref<1x1x1x8x8xi8, #tpu.memory_space<vmem>>, vector<1x1x1x8x8xi8>
    %5 = vector.shape_cast %4 : vector<1x1x1x8x8xi8> to vector<1x8x8xi8>
    %6 = arith.sitofp %5 : vector<1x8x8xi8> to vector<1x8x8xf32>
    %7 = tpu.iota {dimensions = array<i32: 2>} : vector<1x8x8xi32>
    %8 = tpu.iota {dimensions = array<i32: 1>} : vector<1x8x8xi32>
    %c7_i32 = arith.constant 7 : i32
    %9 = vector.broadcast %c7_i32 : i32 to vector<1x8x8xi32>
    %10 = arith.cmpi slt, %7, %9 : vector<1x8x8xi32>
    %c7_i32_13 = arith.constant 7 : i32
    %11 = vector.broadcast %c7_i32_13 : i32 to vector<1x8x8xi32>
    %12 = arith.cmpi slt, %8, %11 : vector<1x8x8xi32>
    %c6_i32 = arith.constant 6 : i32
    %13 = vector.broadcast %c6_i32 : i32 to vector<1x8x8xi32>
    %14 = arith.cmpi slt, %7, %13 : vector<1x8x8xi32>
    %c6_i32_14 = arith.constant 6 : i32
    %15 = vector.broadcast %c6_i32_14 : i32 to vector<1x8x8xi32>
    %16 = arith.cmpi slt, %8, %15 : vector<1x8x8xi32>
    %17 = arith.andi %14, %16 : vector<1x8x8xi1>
    %c0_i32 = arith.constant 0 : i32
    %18 = arith.cmpi eq, %arg1, %c0_i32 : i32
    %19 = arith.extui %18 : i1 to i32
    %c0_i32_15 = arith.constant 0 : i32
    %20 = arith.cmpi ne, %19, %c0_i32_15 : i32
    scf.if %20 {
      %208 = vector.extract_strided_slice %3 {offsets = [0, 0, 1], sizes = [3, 8, 7], strides = [1, 1, 1]} : vector<3x8x8xf32> to vector<3x8x7xf32>
      %cst_70 = arith.constant 0.000000e+00 : f32
      %209 = vector.broadcast %cst_70 : f32 to vector<3x8x1xf32>
      %210 = tpu.concatenate %208, %209 in 2 : vector<3x8x7xf32>, vector<3x8x1xf32> -> vector<3x8x8xf32>
      %211 = arith.addf %3, %210 : vector<3x8x8xf32>
      %212 = vector.extract_strided_slice %3 {offsets = [0, 0, 2], sizes = [3, 8, 6], strides = [1, 1, 1]} : vector<3x8x8xf32> to vector<3x8x6xf32>
      %cst_71 = arith.constant 0.000000e+00 : f32
      %213 = vector.broadcast %cst_71 : f32 to vector<3x8x2xf32>
      %214 = tpu.concatenate %212, %213 in 2 : vector<3x8x6xf32>, vector<3x8x2xf32> -> vector<3x8x8xf32>
      %215 = arith.addf %211, %214 : vector<3x8x8xf32>
      %216 = vector.extract_strided_slice %215 {offsets = [0, 1, 0], sizes = [3, 7, 8], strides = [1, 1, 1]} : vector<3x8x8xf32> to vector<3x7x8xf32>
      %cst_72 = arith.constant 0.000000e+00 : f32
      %217 = vector.broadcast %cst_72 : f32 to vector<3x1x8xf32>
      %218 = tpu.concatenate %216, %217 in 1 : vector<3x7x8xf32>, vector<3x1x8xf32> -> vector<3x8x8xf32>
      %219 = arith.addf %215, %218 : vector<3x8x8xf32>
      %220 = vector.extract_strided_slice %215 {offsets = [0, 2, 0], sizes = [3, 6, 8], strides = [1, 1, 1]} : vector<3x8x8xf32> to vector<3x6x8xf32>
      %cst_73 = arith.constant 0.000000e+00 : f32
      %221 = vector.broadcast %cst_73 : f32 to vector<3x2x8xf32>
      %222 = tpu.concatenate %220, %221 in 1 : vector<3x6x8xf32>, vector<3x2x8xf32> -> vector<3x8x8xf32>
      %223 = arith.addf %219, %222 : vector<3x8x8xf32>
      %cst_74 = arith.constant 0.111111112 : f32
      %224 = vector.broadcast %cst_74 : f32 to vector<3x8x8xf32>
      %225 = arith.mulf %223, %224 : vector<3x8x8xf32>
      %c0_75 = arith.constant 0 : index
      %c0_76 = arith.constant 0 : index
      %c0_77 = arith.constant 0 : index
      %226 = vector.load %arg8[%c0_75, %c0_76, %c0_77] : memref<3x8x8xf32, #tpu.memory_space<vmem>>, vector<3x8x8xf32>
      tpu.vector_store %arg8[%c0_75, %c0_76, %c0_77], %225 {strides = array<i32>} : memref<3x8x8xf32, #tpu.memory_space<vmem>>, vector<3x8x8xf32>,
      %227 = arith.mulf %3, %3 : vector<3x8x8xf32>
      %228 = vector.extract_strided_slice %227 {offsets = [0, 0, 1], sizes = [3, 8, 7], strides = [1, 1, 1]} : vector<3x8x8xf32> to vector<3x8x7xf32>
      %cst_78 = arith.constant 0.000000e+00 : f32
      %229 = vector.broadcast %cst_78 : f32 to vector<3x8x1xf32>
      %230 = tpu.concatenate %228, %229 in 2 : vector<3x8x7xf32>, vector<3x8x1xf32> -> vector<3x8x8xf32>
      %231 = arith.addf %227, %230 : vector<3x8x8xf32>
      %232 = vector.extract_strided_slice %227 {offsets = [0, 0, 2], sizes = [3, 8, 6], strides = [1, 1, 1]} : vector<3x8x8xf32> to vector<3x8x6xf32>
      %cst_79 = arith.constant 0.000000e+00 : f32
      %233 = vector.broadcast %cst_79 : f32 to vector<3x8x2xf32>
      %234 = tpu.concatenate %232, %233 in 2 : vector<3x8x6xf32>, vector<3x8x2xf32> -> vector<3x8x8xf32>
      %235 = arith.addf %231, %234 : vector<3x8x8xf32>
      %236 = vector.extract_strided_slice %235 {offsets = [0, 1, 0], sizes = [3, 7, 8], strides = [1, 1, 1]} : vector<3x8x8xf32> to vector<3x7x8xf32>
      %cst_80 = arith.constant 0.000000e+00 : f32
      %237 = vector.broadcast %cst_80 : f32 to vector<3x1x8xf32>
      %238 = tpu.concatenate %236, %237 in 1 : vector<3x7x8xf32>, vector<3x1x8xf32> -> vector<3x8x8xf32>
      %239 = arith.addf %235, %238 : vector<3x8x8xf32>
      %240 = vector.extract_strided_slice %235 {offsets = [0, 2, 0], sizes = [3, 6, 8], strides = [1, 1, 1]} : vector<3x8x8xf32> to vector<3x6x8xf32>
      %cst_81 = arith.constant 0.000000e+00 : f32
      %241 = vector.broadcast %cst_81 : f32 to vector<3x2x8xf32>
      %242 = tpu.concatenate %240, %241 in 1 : vector<3x6x8xf32>, vector<3x2x8xf32> -> vector<3x8x8xf32>
      %243 = arith.addf %239, %242 : vector<3x8x8xf32>
      %cst_82 = arith.constant 0.111111112 : f32
      %244 = vector.broadcast %cst_82 : f32 to vector<3x8x8xf32>
      %245 = arith.mulf %243, %244 : vector<3x8x8xf32>
      %246 = arith.mulf %225, %225 : vector<3x8x8xf32>
      %247 = arith.subf %245, %246 : vector<3x8x8xf32>
      %c0_83 = arith.constant 0 : index
      %c0_84 = arith.constant 0 : index
      %c0_85 = arith.constant 0 : index
      %248 = vector.load %arg9[%c0_83, %c0_84, %c0_85] : memref<3x8x8xf32, #tpu.memory_space<vmem>>, vector<3x8x8xf32>
      tpu.vector_store %arg9[%c0_83, %c0_84, %c0_85], %247 {strides = array<i32>} : memref<3x8x8xf32, #tpu.memory_space<vmem>>, vector<3x8x8xf32>,
      %c0_86 = arith.constant 0 : index
      %c0_87 = arith.constant 0 : index
      %c0_88 = arith.constant 0 : index
      %c0_89 = arith.constant 0 : index
      %249 = vector.load %arg5[%c0_86, %c0_87, %c0_88, %c0_89] : memref<1x1x8x8xf32, #tpu.memory_space<vmem>>, vector<1x1x8x8xf32>
      %250 = vector.shape_cast %249 : vector<1x1x8x8xf32> to vector<1x8x8xf32>
      %251 = vector.extract_strided_slice %250 {offsets = [0, 0, 1], sizes = [1, 8, 7], strides = [1, 1, 1]} : vector<1x8x8xf32> to vector<1x8x7xf32>
      %cst_90 = arith.constant 0.000000e+00 : f32
      %252 = vector.broadcast %cst_90 : f32 to vector<1x8x1xf32>
      %253 = tpu.concatenate %251, %252 in 2 : vector<1x8x7xf32>, vector<1x8x1xf32> -> vector<1x8x8xf32>
      %254 = arith.subf %250, %253 : vector<1x8x8xf32>
      %255 = vector.extract_strided_slice %250 {offsets = [0, 1, 0], sizes = [1, 7, 8], strides = [1, 1, 1]} : vector<1x8x8xf32> to vector<1x7x8xf32>
      %cst_91 = arith.constant 0.000000e+00 : f32
      %256 = vector.broadcast %cst_91 : f32 to vector<1x1x8xf32>
      %257 = tpu.concatenate %255, %256 in 1 : vector<1x7x8xf32>, vector<1x1x8xf32> -> vector<1x8x8xf32>
      %258 = arith.subf %250, %257 : vector<1x8x8xf32>
      %259 = vector.extract_strided_slice %3 {offsets = [0, 0, 1], sizes = [3, 8, 7], strides = [1, 1, 1]} : vector<3x8x8xf32> to vector<3x8x7xf32>
      %cst_92 = arith.constant 0.000000e+00 : f32
      %260 = vector.broadcast %cst_92 : f32 to vector<3x8x1xf32>
      %261 = tpu.concatenate %259, %260 in 2 : vector<3x8x7xf32>, vector<3x8x1xf32> -> vector<3x8x8xf32>
      %262 = arith.subf %3, %261 : vector<3x8x8xf32>
      %263 = vector.extract_strided_slice %3 {offsets = [0, 1, 0], sizes = [3, 7, 8], strides = [1, 1, 1]} : vector<3x8x8xf32> to vector<3x7x8xf32>
      %cst_93 = arith.constant 0.000000e+00 : f32
      %264 = vector.broadcast %cst_93 : f32 to vector<3x1x8xf32>
      %265 = tpu.concatenate %263, %264 in 1 : vector<3x7x8xf32>, vector<3x1x8xf32> -> vector<3x8x8xf32>
      %266 = arith.subf %3, %265 : vector<3x8x8xf32>
      %267 = math.absf %262 : vector<3x8x8xf32>
      %cst_94 = arith.constant dense<0.000000e+00> : vector<8x8xf32>
      %268 = vector.multi_reduction <add>, %267, %cst_94 [0] : vector<3x8x8xf32> to vector<8x8xf32>
      %269 = vector.shape_cast %268 : vector<8x8xf32> to vector<1x8x8xf32>
      %cst_95 = arith.constant 3.000000e+00 : f32
      %270 = vector.broadcast %cst_95 : f32 to vector<1x8x8xf32>
      %271 = arith.divf %269, %270 : vector<1x8x8xf32>
      %cst_96 = arith.constant 0.000000e+00 : f32
      %272 = vector.broadcast %cst_96 : f32 to vector<1x8x8xf32>
      %273 = arith.subf %272, %271 : vector<1x8x8xf32>
      %274 = math.exp %273 : vector<1x8x8xf32>
      %275 = math.absf %266 : vector<3x8x8xf32>
      %cst_97 = arith.constant dense<0.000000e+00> : vector<8x8xf32>
      %276 = vector.multi_reduction <add>, %275, %cst_97 [0] : vector<3x8x8xf32> to vector<8x8xf32>
      %277 = vector.shape_cast %276 : vector<8x8xf32> to vector<1x8x8xf32>
      %cst_98 = arith.constant 3.000000e+00 : f32
      %278 = vector.broadcast %cst_98 : f32 to vector<1x8x8xf32>
      %279 = arith.divf %277, %278 : vector<1x8x8xf32>
      %cst_99 = arith.constant 0.000000e+00 : f32
      %280 = vector.broadcast %cst_99 : f32 to vector<1x8x8xf32>
      %281 = arith.subf %280, %279 : vector<1x8x8xf32>
      %282 = math.exp %281 : vector<1x8x8xf32>
      %283 = arith.mulf %254, %274 : vector<1x8x8xf32>
      %284 = math.absf %283 : vector<1x8x8xf32>
      %cst_100 = arith.constant 0.000000e+00 : f32
      %285 = vector.broadcast %cst_100 : f32 to vector<1x8x8xf32>
      %286 = arith.select %10, %284, %285 : vector<1x8x8xi1>, vector<1x8x8xf32>
      %287 = vector.shape_cast %286 : vector<1x8x8xf32> to vector<1x1x8x8xf32>
      %cst_101 = arith.constant dense<0.000000e+00> : vector<1xf32>
      %288 = vector.multi_reduction <add>, %287, %cst_101 [1, 2, 3] : vector<1x1x8x8xf32> to vector<1xf32>
      %289 = vector.shape_cast %288 : vector<1xf32> to vector<1x1x1x1xf32>
      %290 = vector.extract %289[0, 0, 0, 0] : f32 from vector<1x1x1x1xf32>
      %291 = arith.index_cast %arg0 : i32 to index
      %c0_102 = arith.constant 0 : index
      %292 = memref.load %arg7[%291, %c0_102] : memref<2x2xf32, #tpu.memory_space<smem>>
      memref.store %290, %arg7[%291, %c0_102] : memref<2x2xf32, #tpu.memory_space<smem>>
      %293 = arith.mulf %258, %282 : vector<1x8x8xf32>
      %294 = math.absf %293 : vector<1x8x8xf32>
      %cst_103 = arith.constant 0.000000e+00 : f32
      %295 = vector.broadcast %cst_103 : f32 to vector<1x8x8xf32>
      %296 = arith.select %12, %294, %295 : vector<1x8x8xi1>, vector<1x8x8xf32>
      %297 = vector.shape_cast %296 : vector<1x8x8xf32> to vector<1x1x8x8xf32>
      %cst_104 = arith.constant dense<0.000000e+00> : vector<1xf32>
      %298 = vector.multi_reduction <add>, %297, %cst_104 [1, 2, 3] : vector<1x1x8x8xf32> to vector<1xf32>
      %299 = vector.shape_cast %298 : vector<1xf32> to vector<1x1x1x1xf32>
      %300 = vector.extract %299[0, 0, 0, 0] : f32 from vector<1x1x1x1xf32>
      %301 = arith.index_cast %arg0 : i32 to index
      %c1_105 = arith.constant 1 : index
      %302 = memref.load %arg7[%301, %c1_105] : memref<2x2xf32, #tpu.memory_space<smem>>
      memref.store %300, %arg7[%301, %c1_105] : memref<2x2xf32, #tpu.memory_space<smem>>
    } else {
    }
    %21 = arith.subf %1, %3 : vector<3x8x8xf32>
    %22 = vector.broadcast %6 : vector<1x8x8xf32> to vector<3x8x8xf32>
    %23 = arith.mulf %21, %22 : vector<3x8x8xf32>
    %24 = math.absf %23 : vector<3x8x8xf32>
    %cst = arith.constant 1.000000e+00 : f32
    %25 = vector.broadcast %cst : f32 to vector<3x8x8xf32>
    %26 = arith.cmpf olt, %24, %25 : vector<3x8x8xf32>
    %cst_16 = arith.constant 5.000000e-01 : f32
    %27 = vector.broadcast %cst_16 : f32 to vector<3x8x8xf32>
    %28 = arith.mulf %27, %23 : vector<3x8x8xf32>
    %29 = arith.mulf %28, %23 : vector<3x8x8xf32>
    %cst_17 = arith.constant 5.000000e-01 : f32
    %30 = vector.broadcast %cst_17 : f32 to vector<3x8x8xf32>
    %31 = arith.subf %24, %30 : vector<3x8x8xf32>
    %32 = arith.select %26, %29, %31 : vector<3x8x8xi1>, vector<3x8x8xf32>
    %33 = vector.shape_cast %32 : vector<3x8x8xf32> to vector<1x3x8x8xf32>
    %cst_18 = arith.constant dense<0.000000e+00> : vector<1xf32>
    %34 = vector.multi_reduction <add>, %33, %cst_18 [1, 2, 3] : vector<1x3x8x8xf32> to vector<1xf32>
    %35 = vector.shape_cast %34 : vector<1xf32> to vector<1x1x1x1xf32>
    %36 = vector.extract %35[0, 0, 0, 0] : f32 from vector<1x1x1x1xf32>
    %37 = vector.extract_strided_slice %23 {offsets = [0, 0, 1], sizes = [3, 8, 7], strides = [1, 1, 1]} : vector<3x8x8xf32> to vector<3x8x7xf32>
    %cst_19 = arith.constant 0.000000e+00 : f32
    %38 = vector.broadcast %cst_19 : f32 to vector<3x8x1xf32>
    %39 = tpu.concatenate %37, %38 in 2 : vector<3x8x7xf32>, vector<3x8x1xf32> -> vector<3x8x8xf32>
    %40 = arith.subf %39, %23 : vector<3x8x8xf32>
    %cst_20 = arith.constant 0.000000e+00 : f32
    %41 = vector.shape_cast %10 : vector<1x8x8xi1> to vector<1x8x8xi1>
    %42 = vector.broadcast %41 : vector<1x8x8xi1> to vector<3x8x8xi1>
    %43 = vector.broadcast %cst_20 : f32 to vector<3x8x8xf32>
    %44 = arith.select %42, %40, %43 : vector<3x8x8xi1>, vector<3x8x8xf32>
    %45 = vector.extract_strided_slice %23 {offsets = [0, 1, 0], sizes = [3, 7, 8], strides = [1, 1, 1]} : vector<3x8x8xf32> to vector<3x7x8xf32>
    %cst_21 = arith.constant 0.000000e+00 : f32
    %46 = vector.broadcast %cst_21 : f32 to vector<3x1x8xf32>
    %47 = tpu.concatenate %45, %46 in 1 : vector<3x7x8xf32>, vector<3x1x8xf32> -> vector<3x8x8xf32>
    %48 = arith.subf %47, %23 : vector<3x8x8xf32>
    %cst_22 = arith.constant 0.000000e+00 : f32
    %49 = vector.shape_cast %12 : vector<1x8x8xi1> to vector<1x8x8xi1>
    %50 = vector.broadcast %49 : vector<1x8x8xi1> to vector<3x8x8xi1>
    %51 = vector.broadcast %cst_22 : f32 to vector<3x8x8xf32>
    %52 = arith.select %50, %48, %51 : vector<3x8x8xi1>, vector<3x8x8xf32>
    %53 = math.absf %44 : vector<3x8x8xf32>
    %cst_23 = arith.constant 1.000000e+00 : f32
    %54 = vector.broadcast %cst_23 : f32 to vector<3x8x8xf32>
    %55 = arith.cmpf olt, %53, %54 : vector<3x8x8xf32>
    %cst_24 = arith.constant 5.000000e-01 : f32
    %56 = vector.broadcast %cst_24 : f32 to vector<3x8x8xf32>
    %57 = arith.mulf %56, %44 : vector<3x8x8xf32>
    %58 = arith.mulf %57, %44 : vector<3x8x8xf32>
    %cst_25 = arith.constant 5.000000e-01 : f32
    %59 = vector.broadcast %cst_25 : f32 to vector<3x8x8xf32>
    %60 = arith.subf %53, %59 : vector<3x8x8xf32>
    %61 = arith.select %55, %58, %60 : vector<3x8x8xi1>, vector<3x8x8xf32>
    %62 = vector.shape_cast %61 : vector<3x8x8xf32> to vector<1x3x8x8xf32>
    %cst_26 = arith.constant dense<0.000000e+00> : vector<1xf32>
    %63 = vector.multi_reduction <add>, %62, %cst_26 [1, 2, 3] : vector<1x3x8x8xf32> to vector<1xf32>
    %64 = vector.shape_cast %63 : vector<1xf32> to vector<1x1x1x1xf32>
    %65 = vector.extract %64[0, 0, 0, 0] : f32 from vector<1x1x1x1xf32>
    %66 = math.absf %52 : vector<3x8x8xf32>
    %cst_27 = arith.constant 1.000000e+00 : f32
    %67 = vector.broadcast %cst_27 : f32 to vector<3x8x8xf32>
    %68 = arith.cmpf olt, %66, %67 : vector<3x8x8xf32>
    %cst_28 = arith.constant 5.000000e-01 : f32
    %69 = vector.broadcast %cst_28 : f32 to vector<3x8x8xf32>
    %70 = arith.mulf %69, %52 : vector<3x8x8xf32>
    %71 = arith.mulf %70, %52 : vector<3x8x8xf32>
    %cst_29 = arith.constant 5.000000e-01 : f32
    %72 = vector.broadcast %cst_29 : f32 to vector<3x8x8xf32>
    %73 = arith.subf %66, %72 : vector<3x8x8xf32>
    %74 = arith.select %68, %71, %73 : vector<3x8x8xi1>, vector<3x8x8xf32>
    %75 = vector.shape_cast %74 : vector<3x8x8xf32> to vector<1x3x8x8xf32>
    %cst_30 = arith.constant dense<0.000000e+00> : vector<1xf32>
    %76 = vector.multi_reduction <add>, %75, %cst_30 [1, 2, 3] : vector<1x3x8x8xf32> to vector<1xf32>
    %77 = vector.shape_cast %76 : vector<1xf32> to vector<1x1x1x1xf32>
    %78 = vector.extract %77[0, 0, 0, 0] : f32 from vector<1x1x1x1xf32>
    %c0_31 = arith.constant 0 : index
    %c0_32 = arith.constant 0 : index
    %c0_33 = arith.constant 0 : index
    %79 = vector.load %arg8[%c0_31, %c0_32, %c0_33] : memref<3x8x8xf32, #tpu.memory_space<vmem>>, vector<3x8x8xf32>
    %c0_34 = arith.constant 0 : index
    %c0_35 = arith.constant 0 : index
    %c0_36 = arith.constant 0 : index
    %80 = vector.load %arg9[%c0_34, %c0_35, %c0_36] : memref<3x8x8xf32, #tpu.memory_space<vmem>>, vector<3x8x8xf32>
    %81 = vector.extract_strided_slice %1 {offsets = [0, 0, 1], sizes = [3, 8, 7], strides = [1, 1, 1]} : vector<3x8x8xf32> to vector<3x8x7xf32>
    %cst_37 = arith.constant 0.000000e+00 : f32
    %82 = vector.broadcast %cst_37 : f32 to vector<3x8x1xf32>
    %83 = tpu.concatenate %81, %82 in 2 : vector<3x8x7xf32>, vector<3x8x1xf32> -> vector<3x8x8xf32>
    %84 = arith.addf %1, %83 : vector<3x8x8xf32>
    %85 = vector.extract_strided_slice %1 {offsets = [0, 0, 2], sizes = [3, 8, 6], strides = [1, 1, 1]} : vector<3x8x8xf32> to vector<3x8x6xf32>
    %cst_38 = arith.constant 0.000000e+00 : f32
    %86 = vector.broadcast %cst_38 : f32 to vector<3x8x2xf32>
    %87 = tpu.concatenate %85, %86 in 2 : vector<3x8x6xf32>, vector<3x8x2xf32> -> vector<3x8x8xf32>
    %88 = arith.addf %84, %87 : vector<3x8x8xf32>
    %89 = vector.extract_strided_slice %88 {offsets = [0, 1, 0], sizes = [3, 7, 8], strides = [1, 1, 1]} : vector<3x8x8xf32> to vector<3x7x8xf32>
    %cst_39 = arith.constant 0.000000e+00 : f32
    %90 = vector.broadcast %cst_39 : f32 to vector<3x1x8xf32>
    %91 = tpu.concatenate %89, %90 in 1 : vector<3x7x8xf32>, vector<3x1x8xf32> -> vector<3x8x8xf32>
    %92 = arith.addf %88, %91 : vector<3x8x8xf32>
    %93 = vector.extract_strided_slice %88 {offsets = [0, 2, 0], sizes = [3, 6, 8], strides = [1, 1, 1]} : vector<3x8x8xf32> to vector<3x6x8xf32>
    %cst_40 = arith.constant 0.000000e+00 : f32
    %94 = vector.broadcast %cst_40 : f32 to vector<3x2x8xf32>
    %95 = tpu.concatenate %93, %94 in 1 : vector<3x6x8xf32>, vector<3x2x8xf32> -> vector<3x8x8xf32>
    %96 = arith.addf %92, %95 : vector<3x8x8xf32>
    %cst_41 = arith.constant 0.111111112 : f32
    %97 = vector.broadcast %cst_41 : f32 to vector<3x8x8xf32>
    %98 = arith.mulf %96, %97 : vector<3x8x8xf32>
    %99 = arith.mulf %1, %1 : vector<3x8x8xf32>
    %100 = vector.extract_strided_slice %99 {offsets = [0, 0, 1], sizes = [3, 8, 7], strides = [1, 1, 1]} : vector<3x8x8xf32> to vector<3x8x7xf32>
    %cst_42 = arith.constant 0.000000e+00 : f32
    %101 = vector.broadcast %cst_42 : f32 to vector<3x8x1xf32>
    %102 = tpu.concatenate %100, %101 in 2 : vector<3x8x7xf32>, vector<3x8x1xf32> -> vector<3x8x8xf32>
    %103 = arith.addf %99, %102 : vector<3x8x8xf32>
    %104 = vector.extract_strided_slice %99 {offsets = [0, 0, 2], sizes = [3, 8, 6], strides = [1, 1, 1]} : vector<3x8x8xf32> to vector<3x8x6xf32>
    %cst_43 = arith.constant 0.000000e+00 : f32
    %105 = vector.broadcast %cst_43 : f32 to vector<3x8x2xf32>
    %106 = tpu.concatenate %104, %105 in 2 : vector<3x8x6xf32>, vector<3x8x2xf32> -> vector<3x8x8xf32>
    %107 = arith.addf %103, %106 : vector<3x8x8xf32>
    %108 = vector.extract_strided_slice %107 {offsets = [0, 1, 0], sizes = [3, 7, 8], strides = [1, 1, 1]} : vector<3x8x8xf32> to vector<3x7x8xf32>
    %cst_44 = arith.constant 0.000000e+00 : f32
    %109 = vector.broadcast %cst_44 : f32 to vector<3x1x8xf32>
    %110 = tpu.concatenate %108, %109 in 1 : vector<3x7x8xf32>, vector<3x1x8xf32> -> vector<3x8x8xf32>
    %111 = arith.addf %107, %110 : vector<3x8x8xf32>
    %112 = vector.extract_strided_slice %107 {offsets = [0, 2, 0], sizes = [3, 6, 8], strides = [1, 1, 1]} : vector<3x8x8xf32> to vector<3x6x8xf32>
    %cst_45 = arith.constant 0.000000e+00 : f32
    %113 = vector.broadcast %cst_45 : f32 to vector<3x2x8xf32>
    %114 = tpu.concatenate %112, %113 in 1 : vector<3x6x8xf32>, vector<3x2x8xf32> -> vector<3x8x8xf32>
    %115 = arith.addf %111, %114 : vector<3x8x8xf32>
    %cst_46 = arith.constant 0.111111112 : f32
    %116 = vector.broadcast %cst_46 : f32 to vector<3x8x8xf32>
    %117 = arith.mulf %115, %116 : vector<3x8x8xf32>
    %118 = arith.mulf %98, %98 : vector<3x8x8xf32>
    %119 = arith.subf %117, %118 : vector<3x8x8xf32>
    %120 = arith.mulf %3, %1 : vector<3x8x8xf32>
    %121 = vector.extract_strided_slice %120 {offsets = [0, 0, 1], sizes = [3, 8, 7], strides = [1, 1, 1]} : vector<3x8x8xf32> to vector<3x8x7xf32>
    %cst_47 = arith.constant 0.000000e+00 : f32
    %122 = vector.broadcast %cst_47 : f32 to vector<3x8x1xf32>
    %123 = tpu.concatenate %121, %122 in 2 : vector<3x8x7xf32>, vector<3x8x1xf32> -> vector<3x8x8xf32>
    %124 = arith.addf %120, %123 : vector<3x8x8xf32>
    %125 = vector.extract_strided_slice %120 {offsets = [0, 0, 2], sizes = [3, 8, 6], strides = [1, 1, 1]} : vector<3x8x8xf32> to vector<3x8x6xf32>
    %cst_48 = arith.constant 0.000000e+00 : f32
    %126 = vector.broadcast %cst_48 : f32 to vector<3x8x2xf32>
    %127 = tpu.concatenate %125, %126 in 2 : vector<3x8x6xf32>, vector<3x8x2xf32> -> vector<3x8x8xf32>
    %128 = arith.addf %124, %127 : vector<3x8x8xf32>
    %129 = vector.extract_strided_slice %128 {offsets = [0, 1, 0], sizes = [3, 7, 8], strides = [1, 1, 1]} : vector<3x8x8xf32> to vector<3x7x8xf32>
    %cst_49 = arith.constant 0.000000e+00 : f32
    %130 = vector.broadcast %cst_49 : f32 to vector<3x1x8xf32>
    %131 = tpu.concatenate %129, %130 in 1 : vector<3x7x8xf32>, vector<3x1x8xf32> -> vector<3x8x8xf32>
    %132 = arith.addf %128, %131 : vector<3x8x8xf32>
    %133 = vector.extract_strided_slice %128 {offsets = [0, 2, 0], sizes = [3, 6, 8], strides = [1, 1, 1]} : vector<3x8x8xf32> to vector<3x6x8xf32>
    %cst_50 = arith.constant 0.000000e+00 : f32
    %134 = vector.broadcast %cst_50 : f32 to vector<3x2x8xf32>
    %135 = tpu.concatenate %133, %134 in 1 : vector<3x6x8xf32>, vector<3x2x8xf32> -> vector<3x8x8xf32>
    %136 = arith.addf %132, %135 : vector<3x8x8xf32>
    %cst_51 = arith.constant 0.111111112 : f32
    %137 = vector.broadcast %cst_51 : f32 to vector<3x8x8xf32>
    %138 = arith.mulf %136, %137 : vector<3x8x8xf32>
    %139 = arith.mulf %79, %98 : vector<3x8x8xf32>
    %140 = arith.subf %138, %139 : vector<3x8x8xf32>
    %141 = vector.extract_strided_slice %6 {offsets = [0, 0, 1], sizes = [1, 8, 7], strides = [1, 1, 1]} : vector<1x8x8xf32> to vector<1x8x7xf32>
    %cst_52 = arith.constant 0.000000e+00 : f32
    %142 = vector.broadcast %cst_52 : f32 to vector<1x8x1xf32>
    %143 = tpu.concatenate %141, %142 in 2 : vector<1x8x7xf32>, vector<1x8x1xf32> -> vector<1x8x8xf32>
    %144 = arith.addf %6, %143 : vector<1x8x8xf32>
    %145 = vector.extract_strided_slice %6 {offsets = [0, 0, 2], sizes = [1, 8, 6], strides = [1, 1, 1]} : vector<1x8x8xf32> to vector<1x8x6xf32>
    %cst_53 = arith.constant 0.000000e+00 : f32
    %146 = vector.broadcast %cst_53 : f32 to vector<1x8x2xf32>
    %147 = tpu.concatenate %145, %146 in 2 : vector<1x8x6xf32>, vector<1x8x2xf32> -> vector<1x8x8xf32>
    %148 = arith.addf %144, %147 : vector<1x8x8xf32>
    %149 = vector.extract_strided_slice %148 {offsets = [0, 1, 0], sizes = [1, 7, 8], strides = [1, 1, 1]} : vector<1x8x8xf32> to vector<1x7x8xf32>
    %cst_54 = arith.constant 0.000000e+00 : f32
    %150 = vector.broadcast %cst_54 : f32 to vector<1x1x8xf32>
    %151 = tpu.concatenate %149, %150 in 1 : vector<1x7x8xf32>, vector<1x1x8xf32> -> vector<1x8x8xf32>
    %152 = arith.addf %148, %151 : vector<1x8x8xf32>
    %153 = vector.extract_strided_slice %148 {offsets = [0, 2, 0], sizes = [1, 6, 8], strides = [1, 1, 1]} : vector<1x8x8xf32> to vector<1x6x8xf32>
    %cst_55 = arith.constant 0.000000e+00 : f32
    %154 = vector.broadcast %cst_55 : f32 to vector<1x2x8xf32>
    %155 = tpu.concatenate %153, %154 in 1 : vector<1x6x8xf32>, vector<1x2x8xf32> -> vector<1x8x8xf32>
    %156 = arith.addf %152, %155 : vector<1x8x8xf32>
    %cst_56 = arith.constant 0.111111112 : f32
    %157 = vector.broadcast %cst_56 : f32 to vector<1x8x8xf32>
    %158 = arith.mulf %156, %157 : vector<1x8x8xf32>
    %cst_57 = arith.constant 2.000000e+00 : f32
    %159 = vector.broadcast %cst_57 : f32 to vector<3x8x8xf32>
    %160 = arith.mulf %159, %79 : vector<3x8x8xf32>
    %161 = arith.mulf %160, %98 : vector<3x8x8xf32>
    %cst_58 = arith.constant 9.99999974E-5 : f32
    %162 = vector.broadcast %cst_58 : f32 to vector<3x8x8xf32>
    %163 = arith.addf %161, %162 : vector<3x8x8xf32>
    %cst_59 = arith.constant 2.000000e+00 : f32
    %164 = vector.broadcast %cst_59 : f32 to vector<3x8x8xf32>
    %165 = arith.mulf %164, %140 : vector<3x8x8xf32>
    %cst_60 = arith.constant 8.99999984E-4 : f32
    %166 = vector.broadcast %cst_60 : f32 to vector<3x8x8xf32>
    %167 = arith.addf %165, %166 : vector<3x8x8xf32>
    %168 = arith.mulf %163, %167 : vector<3x8x8xf32>
    %169 = arith.mulf %79, %79 : vector<3x8x8xf32>
    %170 = arith.mulf %98, %98 : vector<3x8x8xf32>
    %171 = arith.addf %169, %170 : vector<3x8x8xf32>
    %cst_61 = arith.constant 9.99999974E-5 : f32
    %172 = vector.broadcast %cst_61 : f32 to vector<3x8x8xf32>
    %173 = arith.addf %171, %172 : vector<3x8x8xf32>
    %174 = arith.addf %80, %119 : vector<3x8x8xf32>
    %cst_62 = arith.constant 8.99999984E-4 : f32
    %175 = vector.broadcast %cst_62 : f32 to vector<3x8x8xf32>
    %176 = arith.addf %174, %175 : vector<3x8x8xf32>
    %177 = arith.mulf %173, %176 : vector<3x8x8xf32>
    %178 = tpu.reciprocal %177 {approx = true} : vector<3x8x8xf32> -> vector<3x8x8xf32>
    %179 = arith.mulf %168, %178 : vector<3x8x8xf32>
    %cst_63 = arith.constant 1.000000e+00 : f32
    %180 = vector.broadcast %cst_63 : f32 to vector<3x8x8xf32>
    %181 = arith.subf %180, %179 : vector<3x8x8xf32>
    %cst_64 = arith.constant 5.000000e-01 : f32
    %182 = vector.broadcast %cst_64 : f32 to vector<3x8x8xf32>
    %183 = arith.mulf %181, %182 : vector<3x8x8xf32>
    %cst_65 = arith.constant 0.000000e+00 : f32
    %cst_66 = arith.constant 1.000000e+00 : f32
    %184 = vector.broadcast %cst_65 : f32 to vector<3x8x8xf32>
    %185 = arith.maximumf %184, %183 : vector<3x8x8xf32>
    %186 = vector.broadcast %cst_66 : f32 to vector<3x8x8xf32>
    %187 = arith.minimumf %186, %185 : vector<3x8x8xf32>
    %188 = vector.broadcast %158 : vector<1x8x8xf32> to vector<3x8x8xf32>
    %189 = arith.mulf %188, %187 : vector<3x8x8xf32>
    %cst_67 = arith.constant 0.000000e+00 : f32
    %190 = vector.shape_cast %17 : vector<1x8x8xi1> to vector<1x8x8xi1>
    %191 = vector.broadcast %190 : vector<1x8x8xi1> to vector<3x8x8xi1>
    %192 = vector.broadcast %cst_67 : f32 to vector<3x8x8xf32>
    %193 = arith.select %191, %189, %192 : vector<3x8x8xi1>, vector<3x8x8xf32>
    %194 = vector.shape_cast %193 : vector<3x8x8xf32> to vector<1x3x8x8xf32>
    %cst_68 = arith.constant dense<0.000000e+00> : vector<1xf32>
    %195 = vector.multi_reduction <add>, %194, %cst_68 [1, 2, 3] : vector<1x3x8x8xf32> to vector<1xf32>
    %196 = vector.shape_cast %195 : vector<1xf32> to vector<1x1x1x1xf32>
    %197 = vector.extract %196[0, 0, 0, 0] : f32 from vector<1x1x1x1xf32>
    %c2_i32 = arith.constant 2 : i32
    %198 = arith.muli %arg0, %c2_i32 : i32
    %199 = arith.addi %198, %arg1 : i32
    %200 = arith.index_cast %199 : i32 to index
    %c0_69 = arith.constant 0 : index
    %201 = memref.load %arg6[%200, %c0_69] : memref<4x4xf32, #tpu.memory_space<smem>>
    memref.store %36, %arg6[%200, %c0_69] : memref<4x4xf32, #tpu.memory_space<smem>>
    %202 = arith.index_cast %199 : i32 to index
    %c1 = arith.constant 1 : index
    %203 = memref.load %arg6[%202, %c1] : memref<4x4xf32, #tpu.memory_space<smem>>
    memref.store %65, %arg6[%202, %c1] : memref<4x4xf32, #tpu.memory_space<smem>>
    %204 = arith.index_cast %199 : i32 to index
    %c2 = arith.constant 2 : index
    %205 = memref.load %arg6[%204, %c2] : memref<4x4xf32, #tpu.memory_space<smem>>
    memref.store %78, %arg6[%204, %c2] : memref<4x4xf32, #tpu.memory_space<smem>>
    %206 = arith.index_cast %199 : i32 to index
    %c3 = arith.constant 3 : index
    %207 = memref.load %arg6[%206, %c3] : memref<4x4xf32, #tpu.memory_space<smem>>
    memref.store %197, %arg6[%206, %c3] : memref<4x4xf32, #tpu.memory_space<smem>>
    return
  }
  func.func @transform_0(%arg0: i32, %arg1: i32) -> (i32, i32, i32, i32, i32) {
    %c0_i32 = arith.constant 0 : i32
    %c0_i32_0 = arith.constant 0 : i32
    %c0_i32_1 = arith.constant 0 : i32
    %c0_i32_2 = arith.constant 0 : i32
    return %arg1, %arg0, %c0_i32, %c0_i32_0, %c0_i32_1 : i32, i32, i32, i32, i32
  }
  func.func @transform_1(%arg0: i32, %arg1: i32) -> (i32, i32, i32, i32, i32) {
    %c0_i32 = arith.constant 0 : i32
    %c0_i32_0 = arith.constant 0 : i32
    %c0_i32_1 = arith.constant 0 : i32
    %c0_i32_2 = arith.constant 0 : i32
    return %arg1, %arg0, %c0_i32, %c0_i32_0, %c0_i32_1 : i32, i32, i32, i32, i32
  }
  func.func @transform_2(%arg0: i32, %arg1: i32) -> (i32, i32, i32, i32) {
    %c0_i32 = arith.constant 0 : i32
    %c0_i32_0 = arith.constant 0 : i32
    %c0_i32_1 = arith.constant 0 : i32
    %c0_i32_2 = arith.constant 0 : i32
    return %arg0, %c0_i32, %c0_i32_0, %c0_i32_1 : i32, i32, i32, i32
  }
  func.func @transform_3(%arg0: i32, %arg1: i32) -> (i32, i32, i32, i32) {
    %c0_i32 = arith.constant 0 : i32
    %c0_i32_0 = arith.constant 0 : i32
    %c0_i32_1 = arith.constant 0 : i32
    %c0_i32_2 = arith.constant 0 : i32
    return %arg0, %c0_i32, %c0_i32_0, %c0_i32_1 : i32, i32, i32, i32
  }
  func.func @transform_4(%arg0: i32, %arg1: i32) -> (i32, i32) {
    %c0_i32 = arith.constant 0 : i32
    %c0_i32_0 = arith.constant 0 : i32
    %c0_i32_1 = arith.constant 0 : i32
    return %c0_i32, %c0_i32_0 : i32, i32
  }
  func.func @transform_5(%arg0: i32, %arg1: i32) -> (i32, i32) {
    %c0_i32 = arith.constant 0 : i32
    %c0_i32_0 = arith.constant 0 : i32
    %c0_i32_1 = arith.constant 0 : i32
    return %c0_i32, %c0_i32_0 : i32, i32
  }
}

module attributes {stable_mosaic.version = 11 : i64} {
  func.func @_reproj_kernel(%arg0: i32, %arg1: i32, %arg2: memref<2xf32, #tpu.memory_space<smem>>, %arg3: memref<1x1x1x8x8xi8, #tpu.memory_space<vmem>>, %arg4: memref<2xf32, #tpu.memory_space<smem>>, %arg5: memref<1x8x8xf32, #tpu.memory_space<vmem>>) attributes {dimension_semantics = [#tpu.dimension_semantics<arbitrary>, #tpu.dimension_semantics<arbitrary>], iteration_bounds = array<i64: 2, 2>, scalar_prefetch = 0 : i64, scratch_operands = 1 : i64, tpu.core_type = #tpu.core_type<tc>, window_params = [{transform_indices = @transform_0, window_bounds = array<i64: 2>}, {transform_indices = @transform_1, window_bounds = array<i64: 1, 1, 1, 8, 8>}, {transform_indices = @transform_2, window_bounds = array<i64: 2>}]} {
    %c0 = arith.constant 0 : index
    %c0_0 = arith.constant 0 : index
    %c0_1 = arith.constant 0 : index
    %c0_2 = arith.constant 0 : index
    %c0_3 = arith.constant 0 : index
    %0 = vector.load %arg3[%c0, %c0_0, %c0_1, %c0_2, %c0_3] : memref<1x1x1x8x8xi8, #tpu.memory_space<vmem>>, vector<1x1x1x8x8xi8>
    %1 = vector.shape_cast %0 : vector<1x1x1x8x8xi8> to vector<1x8x8xi8>
    %2 = arith.sitofp %1 : vector<1x8x8xi8> to vector<1x8x8xf32>
    %3 = arith.index_cast %arg1 : i32 to index
    %4 = memref.load %arg2[%3] : memref<2xf32, #tpu.memory_space<smem>>
    %cst = arith.constant 1.000000e+00 : f32
    %5 = vector.broadcast %cst : f32 to vector<1x8x8xf32>
    %6 = arith.subf %5, %2 : vector<1x8x8xf32>
    %cst_4 = arith.constant 1.000000e+04 : f32
    %7 = vector.broadcast %cst_4 : f32 to vector<1x8x8xf32>
    %8 = arith.mulf %7, %6 : vector<1x8x8xf32>
    %9 = vector.broadcast %4 : f32 to vector<1x8x8xf32>
    %10 = arith.addf %9, %8 : vector<1x8x8xf32>
    %c0_i32 = arith.constant 0 : i32
    %11 = arith.cmpi eq, %arg1, %c0_i32 : i32
    %12 = arith.extui %11 : i1 to i32
    %c0_i32_5 = arith.constant 0 : i32
    %13 = arith.cmpi ne, %12, %c0_i32_5 : i32
    scf.if %13 {
      %c0_9 = arith.constant 0 : index
      %c0_10 = arith.constant 0 : index
      %c0_11 = arith.constant 0 : index
      %20 = vector.load %arg5[%c0_9, %c0_10, %c0_11] : memref<1x8x8xf32, #tpu.memory_space<vmem>>, vector<1x8x8xf32>
      tpu.vector_store %arg5[%c0_9, %c0_10, %c0_11], %10 {strides = array<i32>} : memref<1x8x8xf32, #tpu.memory_space<vmem>>, vector<1x8x8xf32>,
    } else {
    }
    %c0_i32_6 = arith.constant 0 : i32
    %14 = arith.cmpi sgt, %arg1, %c0_i32_6 : i32
    %15 = arith.extui %14 : i1 to i32
    %c0_i32_7 = arith.constant 0 : i32
    %16 = arith.cmpi ne, %15, %c0_i32_7 : i32
    scf.if %16 {
      %c0_9 = arith.constant 0 : index
      %c0_10 = arith.constant 0 : index
      %c0_11 = arith.constant 0 : index
      %20 = vector.load %arg5[%c0_9, %c0_10, %c0_11] : memref<1x8x8xf32, #tpu.memory_space<vmem>>, vector<1x8x8xf32>
      %21 = arith.minimumf %20, %10 : vector<1x8x8xf32>
      %c0_12 = arith.constant 0 : index
      %c0_13 = arith.constant 0 : index
      %c0_14 = arith.constant 0 : index
      %22 = vector.load %arg5[%c0_12, %c0_13, %c0_14] : memref<1x8x8xf32, #tpu.memory_space<vmem>>, vector<1x8x8xf32>
      tpu.vector_store %arg5[%c0_12, %c0_13, %c0_14], %21 {strides = array<i32>} : memref<1x8x8xf32, #tpu.memory_space<vmem>>, vector<1x8x8xf32>,
    } else {
    }
    %c1_i32 = arith.constant 1 : i32
    %17 = arith.cmpi eq, %arg1, %c1_i32 : i32
    %18 = arith.extui %17 : i1 to i32
    %c0_i32_8 = arith.constant 0 : i32
    %19 = arith.cmpi ne, %18, %c0_i32_8 : i32
    scf.if %19 {
      %c0_9 = arith.constant 0 : index
      %c0_10 = arith.constant 0 : index
      %c0_11 = arith.constant 0 : index
      %20 = vector.load %arg5[%c0_9, %c0_10, %c0_11] : memref<1x8x8xf32, #tpu.memory_space<vmem>>, vector<1x8x8xf32>
      %cst_12 = arith.constant 1.000000e+04 : f32
      %21 = vector.broadcast %cst_12 : f32 to vector<1x8x8xf32>
      %22 = arith.cmpf olt, %20, %21 : vector<1x8x8xf32>
      %cst_13 = arith.constant 0.000000e+00 : f32
      %23 = vector.broadcast %cst_13 : f32 to vector<1x8x8xf32>
      %24 = arith.select %22, %20, %23 : vector<1x8x8xi1>, vector<1x8x8xf32>
      %25 = vector.shape_cast %24 : vector<1x8x8xf32> to vector<1x1x8x8xf32>
      %cst_14 = arith.constant dense<0.000000e+00> : vector<1xf32>
      %26 = vector.multi_reduction <add>, %25, %cst_14 [1, 2, 3] : vector<1x1x8x8xf32> to vector<1xf32>
      %27 = vector.shape_cast %26 : vector<1xf32> to vector<1x1x1x1xf32>
      %28 = vector.extract %27[0, 0, 0, 0] : f32 from vector<1x1x1x1xf32>
      %29 = arith.index_cast %arg0 : i32 to index
      %30 = memref.load %arg4[%29] : memref<2xf32, #tpu.memory_space<smem>>
      memref.store %28, %arg4[%29] : memref<2xf32, #tpu.memory_space<smem>>
    } else {
    }
    return
  }
  func.func @transform_0(%arg0: i32, %arg1: i32) -> i32 {
    %c0_i32 = arith.constant 0 : i32
    %c0_i32_0 = arith.constant 0 : i32
    return %c0_i32 : i32
  }
  func.func @transform_1(%arg0: i32, %arg1: i32) -> (i32, i32, i32, i32, i32) {
    %c0_i32 = arith.constant 0 : i32
    %c0_i32_0 = arith.constant 0 : i32
    %c0_i32_1 = arith.constant 0 : i32
    %c0_i32_2 = arith.constant 0 : i32
    return %arg1, %arg0, %c0_i32, %c0_i32_0, %c0_i32_1 : i32, i32, i32, i32, i32
  }
  func.func @transform_2(%arg0: i32, %arg1: i32) -> i32 {
    %c0_i32 = arith.constant 0 : i32
    %c0_i32_0 = arith.constant 0 : i32
    return %c0_i32 : i32
  }
}

module attributes {stable_mosaic.version = 11 : i64} {
  func.func @_reproj_kernel(%arg0: i32, %arg1: i32, %arg2: memref<2xf32, #tpu.memory_space<smem>>, %arg3: memref<1x1x1x16x16xi8, #tpu.memory_space<vmem>>, %arg4: memref<2xf32, #tpu.memory_space<smem>>, %arg5: memref<1x16x16xf32, #tpu.memory_space<vmem>>) attributes {dimension_semantics = [#tpu.dimension_semantics<arbitrary>, #tpu.dimension_semantics<arbitrary>], iteration_bounds = array<i64: 2, 2>, scalar_prefetch = 0 : i64, scratch_operands = 1 : i64, tpu.core_type = #tpu.core_type<tc>, window_params = [{transform_indices = @transform_0, window_bounds = array<i64: 2>}, {transform_indices = @transform_1, window_bounds = array<i64: 1, 1, 1, 16, 16>}, {transform_indices = @transform_2, window_bounds = array<i64: 2>}]} {
    %c0 = arith.constant 0 : index
    %c0_0 = arith.constant 0 : index
    %c0_1 = arith.constant 0 : index
    %c0_2 = arith.constant 0 : index
    %c0_3 = arith.constant 0 : index
    %0 = vector.load %arg3[%c0, %c0_0, %c0_1, %c0_2, %c0_3] : memref<1x1x1x16x16xi8, #tpu.memory_space<vmem>>, vector<1x1x1x16x16xi8>
    %1 = vector.shape_cast %0 : vector<1x1x1x16x16xi8> to vector<1x16x16xi8>
    %2 = arith.sitofp %1 : vector<1x16x16xi8> to vector<1x16x16xf32>
    %3 = arith.index_cast %arg1 : i32 to index
    %4 = memref.load %arg2[%3] : memref<2xf32, #tpu.memory_space<smem>>
    %cst = arith.constant 1.000000e+00 : f32
    %5 = vector.broadcast %cst : f32 to vector<1x16x16xf32>
    %6 = arith.subf %5, %2 : vector<1x16x16xf32>
    %cst_4 = arith.constant 1.000000e+04 : f32
    %7 = vector.broadcast %cst_4 : f32 to vector<1x16x16xf32>
    %8 = arith.mulf %7, %6 : vector<1x16x16xf32>
    %9 = vector.broadcast %4 : f32 to vector<1x16x16xf32>
    %10 = arith.addf %9, %8 : vector<1x16x16xf32>
    %c0_i32 = arith.constant 0 : i32
    %11 = arith.cmpi eq, %arg1, %c0_i32 : i32
    %12 = arith.extui %11 : i1 to i32
    %c0_i32_5 = arith.constant 0 : i32
    %13 = arith.cmpi ne, %12, %c0_i32_5 : i32
    scf.if %13 {
      %c0_9 = arith.constant 0 : index
      %c0_10 = arith.constant 0 : index
      %c0_11 = arith.constant 0 : index
      %20 = vector.load %arg5[%c0_9, %c0_10, %c0_11] : memref<1x16x16xf32, #tpu.memory_space<vmem>>, vector<1x16x16xf32>
      tpu.vector_store %arg5[%c0_9, %c0_10, %c0_11], %10 {strides = array<i32>} : memref<1x16x16xf32, #tpu.memory_space<vmem>>, vector<1x16x16xf32>,
    } else {
    }
    %c0_i32_6 = arith.constant 0 : i32
    %14 = arith.cmpi sgt, %arg1, %c0_i32_6 : i32
    %15 = arith.extui %14 : i1 to i32
    %c0_i32_7 = arith.constant 0 : i32
    %16 = arith.cmpi ne, %15, %c0_i32_7 : i32
    scf.if %16 {
      %c0_9 = arith.constant 0 : index
      %c0_10 = arith.constant 0 : index
      %c0_11 = arith.constant 0 : index
      %20 = vector.load %arg5[%c0_9, %c0_10, %c0_11] : memref<1x16x16xf32, #tpu.memory_space<vmem>>, vector<1x16x16xf32>
      %21 = arith.minimumf %20, %10 : vector<1x16x16xf32>
      %c0_12 = arith.constant 0 : index
      %c0_13 = arith.constant 0 : index
      %c0_14 = arith.constant 0 : index
      %22 = vector.load %arg5[%c0_12, %c0_13, %c0_14] : memref<1x16x16xf32, #tpu.memory_space<vmem>>, vector<1x16x16xf32>
      tpu.vector_store %arg5[%c0_12, %c0_13, %c0_14], %21 {strides = array<i32>} : memref<1x16x16xf32, #tpu.memory_space<vmem>>, vector<1x16x16xf32>,
    } else {
    }
    %c1_i32 = arith.constant 1 : i32
    %17 = arith.cmpi eq, %arg1, %c1_i32 : i32
    %18 = arith.extui %17 : i1 to i32
    %c0_i32_8 = arith.constant 0 : i32
    %19 = arith.cmpi ne, %18, %c0_i32_8 : i32
    scf.if %19 {
      %c0_9 = arith.constant 0 : index
      %c0_10 = arith.constant 0 : index
      %c0_11 = arith.constant 0 : index
      %20 = vector.load %arg5[%c0_9, %c0_10, %c0_11] : memref<1x16x16xf32, #tpu.memory_space<vmem>>, vector<1x16x16xf32>
      %cst_12 = arith.constant 1.000000e+04 : f32
      %21 = vector.broadcast %cst_12 : f32 to vector<1x16x16xf32>
      %22 = arith.cmpf olt, %20, %21 : vector<1x16x16xf32>
      %cst_13 = arith.constant 0.000000e+00 : f32
      %23 = vector.broadcast %cst_13 : f32 to vector<1x16x16xf32>
      %24 = arith.select %22, %20, %23 : vector<1x16x16xi1>, vector<1x16x16xf32>
      %25 = vector.shape_cast %24 : vector<1x16x16xf32> to vector<1x1x16x16xf32>
      %cst_14 = arith.constant dense<0.000000e+00> : vector<1xf32>
      %26 = vector.multi_reduction <add>, %25, %cst_14 [1, 2, 3] : vector<1x1x16x16xf32> to vector<1xf32>
      %27 = vector.shape_cast %26 : vector<1xf32> to vector<1x1x1x1xf32>
      %28 = vector.extract %27[0, 0, 0, 0] : f32 from vector<1x1x1x1xf32>
      %29 = arith.index_cast %arg0 : i32 to index
      %30 = memref.load %arg4[%29] : memref<2xf32, #tpu.memory_space<smem>>
      memref.store %28, %arg4[%29] : memref<2xf32, #tpu.memory_space<smem>>
    } else {
    }
    return
  }
  func.func @transform_0(%arg0: i32, %arg1: i32) -> i32 {
    %c0_i32 = arith.constant 0 : i32
    %c0_i32_0 = arith.constant 0 : i32
    return %c0_i32 : i32
  }
  func.func @transform_1(%arg0: i32, %arg1: i32) -> (i32, i32, i32, i32, i32) {
    %c0_i32 = arith.constant 0 : i32
    %c0_i32_0 = arith.constant 0 : i32
    %c0_i32_1 = arith.constant 0 : i32
    %c0_i32_2 = arith.constant 0 : i32
    return %arg1, %arg0, %c0_i32, %c0_i32_0, %c0_i32_1 : i32, i32, i32, i32, i32
  }
  func.func @transform_2(%arg0: i32, %arg1: i32) -> i32 {
    %c0_i32 = arith.constant 0 : i32
    %c0_i32_0 = arith.constant 0 : i32
    return %c0_i32 : i32
  }
}

module attributes {stable_mosaic.version = 11 : i64} {
  func.func @_view_loss_kernel(%arg0: i32, %arg1: i32, %arg2: memref<1x1x3x16x16xf32, #tpu.memory_space<vmem>>, %arg3: memref<1x1x1x16x16xi8, #tpu.memory_space<vmem>>, %arg4: memref<1x3x16x16xf32, #tpu.memory_space<vmem>>, %arg5: memref<1x1x16x16xf32, #tpu.memory_space<vmem>>, %arg6: memref<4x4xf32, #tpu.memory_space<smem>>, %arg7: memref<2x2xf32, #tpu.memory_space<smem>>, %arg8: memref<3x16x16xf32, #tpu.memory_space<vmem>>, %arg9: memref<3x16x16xf32, #tpu.memory_space<vmem>>) attributes {dimension_semantics = [#tpu.dimension_semantics<arbitrary>, #tpu.dimension_semantics<arbitrary>], iteration_bounds = array<i64: 2, 2>, scalar_prefetch = 0 : i64, scratch_operands = 2 : i64, tpu.core_type = #tpu.core_type<tc>, window_params = [{transform_indices = @transform_0, window_bounds = array<i64: 1, 1, 3, 16, 16>}, {transform_indices = @transform_1, window_bounds = array<i64: 1, 1, 1, 16, 16>}, {transform_indices = @transform_2, window_bounds = array<i64: 1, 3, 16, 16>}, {transform_indices = @transform_3, window_bounds = array<i64: 1, 1, 16, 16>}, {transform_indices = @transform_4, window_bounds = array<i64: 4, 4>}, {transform_indices = @transform_5, window_bounds = array<i64: 2, 2>}]} {
    %c0 = arith.constant 0 : index
    %c0_0 = arith.constant 0 : index
    %c0_1 = arith.constant 0 : index
    %c0_2 = arith.constant 0 : index
    %c0_3 = arith.constant 0 : index
    %0 = vector.load %arg2[%c0, %c0_0, %c0_1, %c0_2, %c0_3] : memref<1x1x3x16x16xf32, #tpu.memory_space<vmem>>, vector<1x1x3x16x16xf32>
    %1 = vector.shape_cast %0 : vector<1x1x3x16x16xf32> to vector<3x16x16xf32>
    %c0_4 = arith.constant 0 : index
    %c0_5 = arith.constant 0 : index
    %c0_6 = arith.constant 0 : index
    %c0_7 = arith.constant 0 : index
    %2 = vector.load %arg4[%c0_4, %c0_5, %c0_6, %c0_7] : memref<1x3x16x16xf32, #tpu.memory_space<vmem>>, vector<1x3x16x16xf32>
    %3 = vector.shape_cast %2 : vector<1x3x16x16xf32> to vector<3x16x16xf32>
    %c0_8 = arith.constant 0 : index
    %c0_9 = arith.constant 0 : index
    %c0_10 = arith.constant 0 : index
    %c0_11 = arith.constant 0 : index
    %c0_12 = arith.constant 0 : index
    %4 = vector.load %arg3[%c0_8, %c0_9, %c0_10, %c0_11, %c0_12] : memref<1x1x1x16x16xi8, #tpu.memory_space<vmem>>, vector<1x1x1x16x16xi8>
    %5 = vector.shape_cast %4 : vector<1x1x1x16x16xi8> to vector<1x16x16xi8>
    %6 = arith.sitofp %5 : vector<1x16x16xi8> to vector<1x16x16xf32>
    %7 = tpu.iota {dimensions = array<i32: 2>} : vector<1x16x16xi32>
    %8 = tpu.iota {dimensions = array<i32: 1>} : vector<1x16x16xi32>
    %c15_i32 = arith.constant 15 : i32
    %9 = vector.broadcast %c15_i32 : i32 to vector<1x16x16xi32>
    %10 = arith.cmpi slt, %7, %9 : vector<1x16x16xi32>
    %c15_i32_13 = arith.constant 15 : i32
    %11 = vector.broadcast %c15_i32_13 : i32 to vector<1x16x16xi32>
    %12 = arith.cmpi slt, %8, %11 : vector<1x16x16xi32>
    %c14_i32 = arith.constant 14 : i32
    %13 = vector.broadcast %c14_i32 : i32 to vector<1x16x16xi32>
    %14 = arith.cmpi slt, %7, %13 : vector<1x16x16xi32>
    %c14_i32_14 = arith.constant 14 : i32
    %15 = vector.broadcast %c14_i32_14 : i32 to vector<1x16x16xi32>
    %16 = arith.cmpi slt, %8, %15 : vector<1x16x16xi32>
    %17 = arith.andi %14, %16 : vector<1x16x16xi1>
    %c0_i32 = arith.constant 0 : i32
    %18 = arith.cmpi eq, %arg1, %c0_i32 : i32
    %19 = arith.extui %18 : i1 to i32
    %c0_i32_15 = arith.constant 0 : i32
    %20 = arith.cmpi ne, %19, %c0_i32_15 : i32
    scf.if %20 {
      %208 = vector.extract_strided_slice %3 {offsets = [0, 0, 1], sizes = [3, 16, 15], strides = [1, 1, 1]} : vector<3x16x16xf32> to vector<3x16x15xf32>
      %cst_70 = arith.constant 0.000000e+00 : f32
      %209 = vector.broadcast %cst_70 : f32 to vector<3x16x1xf32>
      %210 = tpu.concatenate %208, %209 in 2 : vector<3x16x15xf32>, vector<3x16x1xf32> -> vector<3x16x16xf32>
      %211 = arith.addf %3, %210 : vector<3x16x16xf32>
      %212 = vector.extract_strided_slice %3 {offsets = [0, 0, 2], sizes = [3, 16, 14], strides = [1, 1, 1]} : vector<3x16x16xf32> to vector<3x16x14xf32>
      %cst_71 = arith.constant 0.000000e+00 : f32
      %213 = vector.broadcast %cst_71 : f32 to vector<3x16x2xf32>
      %214 = tpu.concatenate %212, %213 in 2 : vector<3x16x14xf32>, vector<3x16x2xf32> -> vector<3x16x16xf32>
      %215 = arith.addf %211, %214 : vector<3x16x16xf32>
      %216 = vector.extract_strided_slice %215 {offsets = [0, 1, 0], sizes = [3, 15, 16], strides = [1, 1, 1]} : vector<3x16x16xf32> to vector<3x15x16xf32>
      %cst_72 = arith.constant 0.000000e+00 : f32
      %217 = vector.broadcast %cst_72 : f32 to vector<3x1x16xf32>
      %218 = tpu.concatenate %216, %217 in 1 : vector<3x15x16xf32>, vector<3x1x16xf32> -> vector<3x16x16xf32>
      %219 = arith.addf %215, %218 : vector<3x16x16xf32>
      %220 = vector.extract_strided_slice %215 {offsets = [0, 2, 0], sizes = [3, 14, 16], strides = [1, 1, 1]} : vector<3x16x16xf32> to vector<3x14x16xf32>
      %cst_73 = arith.constant 0.000000e+00 : f32
      %221 = vector.broadcast %cst_73 : f32 to vector<3x2x16xf32>
      %222 = tpu.concatenate %220, %221 in 1 : vector<3x14x16xf32>, vector<3x2x16xf32> -> vector<3x16x16xf32>
      %223 = arith.addf %219, %222 : vector<3x16x16xf32>
      %cst_74 = arith.constant 0.111111112 : f32
      %224 = vector.broadcast %cst_74 : f32 to vector<3x16x16xf32>
      %225 = arith.mulf %223, %224 : vector<3x16x16xf32>
      %c0_75 = arith.constant 0 : index
      %c0_76 = arith.constant 0 : index
      %c0_77 = arith.constant 0 : index
      %226 = vector.load %arg8[%c0_75, %c0_76, %c0_77] : memref<3x16x16xf32, #tpu.memory_space<vmem>>, vector<3x16x16xf32>
      tpu.vector_store %arg8[%c0_75, %c0_76, %c0_77], %225 {strides = array<i32>} : memref<3x16x16xf32, #tpu.memory_space<vmem>>, vector<3x16x16xf32>,
      %227 = arith.mulf %3, %3 : vector<3x16x16xf32>
      %228 = vector.extract_strided_slice %227 {offsets = [0, 0, 1], sizes = [3, 16, 15], strides = [1, 1, 1]} : vector<3x16x16xf32> to vector<3x16x15xf32>
      %cst_78 = arith.constant 0.000000e+00 : f32
      %229 = vector.broadcast %cst_78 : f32 to vector<3x16x1xf32>
      %230 = tpu.concatenate %228, %229 in 2 : vector<3x16x15xf32>, vector<3x16x1xf32> -> vector<3x16x16xf32>
      %231 = arith.addf %227, %230 : vector<3x16x16xf32>
      %232 = vector.extract_strided_slice %227 {offsets = [0, 0, 2], sizes = [3, 16, 14], strides = [1, 1, 1]} : vector<3x16x16xf32> to vector<3x16x14xf32>
      %cst_79 = arith.constant 0.000000e+00 : f32
      %233 = vector.broadcast %cst_79 : f32 to vector<3x16x2xf32>
      %234 = tpu.concatenate %232, %233 in 2 : vector<3x16x14xf32>, vector<3x16x2xf32> -> vector<3x16x16xf32>
      %235 = arith.addf %231, %234 : vector<3x16x16xf32>
      %236 = vector.extract_strided_slice %235 {offsets = [0, 1, 0], sizes = [3, 15, 16], strides = [1, 1, 1]} : vector<3x16x16xf32> to vector<3x15x16xf32>
      %cst_80 = arith.constant 0.000000e+00 : f32
      %237 = vector.broadcast %cst_80 : f32 to vector<3x1x16xf32>
      %238 = tpu.concatenate %236, %237 in 1 : vector<3x15x16xf32>, vector<3x1x16xf32> -> vector<3x16x16xf32>
      %239 = arith.addf %235, %238 : vector<3x16x16xf32>
      %240 = vector.extract_strided_slice %235 {offsets = [0, 2, 0], sizes = [3, 14, 16], strides = [1, 1, 1]} : vector<3x16x16xf32> to vector<3x14x16xf32>
      %cst_81 = arith.constant 0.000000e+00 : f32
      %241 = vector.broadcast %cst_81 : f32 to vector<3x2x16xf32>
      %242 = tpu.concatenate %240, %241 in 1 : vector<3x14x16xf32>, vector<3x2x16xf32> -> vector<3x16x16xf32>
      %243 = arith.addf %239, %242 : vector<3x16x16xf32>
      %cst_82 = arith.constant 0.111111112 : f32
      %244 = vector.broadcast %cst_82 : f32 to vector<3x16x16xf32>
      %245 = arith.mulf %243, %244 : vector<3x16x16xf32>
      %246 = arith.mulf %225, %225 : vector<3x16x16xf32>
      %247 = arith.subf %245, %246 : vector<3x16x16xf32>
      %c0_83 = arith.constant 0 : index
      %c0_84 = arith.constant 0 : index
      %c0_85 = arith.constant 0 : index
      %248 = vector.load %arg9[%c0_83, %c0_84, %c0_85] : memref<3x16x16xf32, #tpu.memory_space<vmem>>, vector<3x16x16xf32>
      tpu.vector_store %arg9[%c0_83, %c0_84, %c0_85], %247 {strides = array<i32>} : memref<3x16x16xf32, #tpu.memory_space<vmem>>, vector<3x16x16xf32>,
      %c0_86 = arith.constant 0 : index
      %c0_87 = arith.constant 0 : index
      %c0_88 = arith.constant 0 : index
      %c0_89 = arith.constant 0 : index
      %249 = vector.load %arg5[%c0_86, %c0_87, %c0_88, %c0_89] : memref<1x1x16x16xf32, #tpu.memory_space<vmem>>, vector<1x1x16x16xf32>
      %250 = vector.shape_cast %249 : vector<1x1x16x16xf32> to vector<1x16x16xf32>
      %251 = vector.extract_strided_slice %250 {offsets = [0, 0, 1], sizes = [1, 16, 15], strides = [1, 1, 1]} : vector<1x16x16xf32> to vector<1x16x15xf32>
      %cst_90 = arith.constant 0.000000e+00 : f32
      %252 = vector.broadcast %cst_90 : f32 to vector<1x16x1xf32>
      %253 = tpu.concatenate %251, %252 in 2 : vector<1x16x15xf32>, vector<1x16x1xf32> -> vector<1x16x16xf32>
      %254 = arith.subf %250, %253 : vector<1x16x16xf32>
      %255 = vector.extract_strided_slice %250 {offsets = [0, 1, 0], sizes = [1, 15, 16], strides = [1, 1, 1]} : vector<1x16x16xf32> to vector<1x15x16xf32>
      %cst_91 = arith.constant 0.000000e+00 : f32
      %256 = vector.broadcast %cst_91 : f32 to vector<1x1x16xf32>
      %257 = tpu.concatenate %255, %256 in 1 : vector<1x15x16xf32>, vector<1x1x16xf32> -> vector<1x16x16xf32>
      %258 = arith.subf %250, %257 : vector<1x16x16xf32>
      %259 = vector.extract_strided_slice %3 {offsets = [0, 0, 1], sizes = [3, 16, 15], strides = [1, 1, 1]} : vector<3x16x16xf32> to vector<3x16x15xf32>
      %cst_92 = arith.constant 0.000000e+00 : f32
      %260 = vector.broadcast %cst_92 : f32 to vector<3x16x1xf32>
      %261 = tpu.concatenate %259, %260 in 2 : vector<3x16x15xf32>, vector<3x16x1xf32> -> vector<3x16x16xf32>
      %262 = arith.subf %3, %261 : vector<3x16x16xf32>
      %263 = vector.extract_strided_slice %3 {offsets = [0, 1, 0], sizes = [3, 15, 16], strides = [1, 1, 1]} : vector<3x16x16xf32> to vector<3x15x16xf32>
      %cst_93 = arith.constant 0.000000e+00 : f32
      %264 = vector.broadcast %cst_93 : f32 to vector<3x1x16xf32>
      %265 = tpu.concatenate %263, %264 in 1 : vector<3x15x16xf32>, vector<3x1x16xf32> -> vector<3x16x16xf32>
      %266 = arith.subf %3, %265 : vector<3x16x16xf32>
      %267 = math.absf %262 : vector<3x16x16xf32>
      %cst_94 = arith.constant dense<0.000000e+00> : vector<16x16xf32>
      %268 = vector.multi_reduction <add>, %267, %cst_94 [0] : vector<3x16x16xf32> to vector<16x16xf32>
      %269 = vector.shape_cast %268 : vector<16x16xf32> to vector<1x16x16xf32>
      %cst_95 = arith.constant 3.000000e+00 : f32
      %270 = vector.broadcast %cst_95 : f32 to vector<1x16x16xf32>
      %271 = arith.divf %269, %270 : vector<1x16x16xf32>
      %cst_96 = arith.constant 0.000000e+00 : f32
      %272 = vector.broadcast %cst_96 : f32 to vector<1x16x16xf32>
      %273 = arith.subf %272, %271 : vector<1x16x16xf32>
      %274 = math.exp %273 : vector<1x16x16xf32>
      %275 = math.absf %266 : vector<3x16x16xf32>
      %cst_97 = arith.constant dense<0.000000e+00> : vector<16x16xf32>
      %276 = vector.multi_reduction <add>, %275, %cst_97 [0] : vector<3x16x16xf32> to vector<16x16xf32>
      %277 = vector.shape_cast %276 : vector<16x16xf32> to vector<1x16x16xf32>
      %cst_98 = arith.constant 3.000000e+00 : f32
      %278 = vector.broadcast %cst_98 : f32 to vector<1x16x16xf32>
      %279 = arith.divf %277, %278 : vector<1x16x16xf32>
      %cst_99 = arith.constant 0.000000e+00 : f32
      %280 = vector.broadcast %cst_99 : f32 to vector<1x16x16xf32>
      %281 = arith.subf %280, %279 : vector<1x16x16xf32>
      %282 = math.exp %281 : vector<1x16x16xf32>
      %283 = arith.mulf %254, %274 : vector<1x16x16xf32>
      %284 = math.absf %283 : vector<1x16x16xf32>
      %cst_100 = arith.constant 0.000000e+00 : f32
      %285 = vector.broadcast %cst_100 : f32 to vector<1x16x16xf32>
      %286 = arith.select %10, %284, %285 : vector<1x16x16xi1>, vector<1x16x16xf32>
      %287 = vector.shape_cast %286 : vector<1x16x16xf32> to vector<1x1x16x16xf32>
      %cst_101 = arith.constant dense<0.000000e+00> : vector<1xf32>
      %288 = vector.multi_reduction <add>, %287, %cst_101 [1, 2, 3] : vector<1x1x16x16xf32> to vector<1xf32>
      %289 = vector.shape_cast %288 : vector<1xf32> to vector<1x1x1x1xf32>
      %290 = vector.extract %289[0, 0, 0, 0] : f32 from vector<1x1x1x1xf32>
      %291 = arith.index_cast %arg0 : i32 to index
      %c0_102 = arith.constant 0 : index
      %292 = memref.load %arg7[%291, %c0_102] : memref<2x2xf32, #tpu.memory_space<smem>>
      memref.store %290, %arg7[%291, %c0_102] : memref<2x2xf32, #tpu.memory_space<smem>>
      %293 = arith.mulf %258, %282 : vector<1x16x16xf32>
      %294 = math.absf %293 : vector<1x16x16xf32>
      %cst_103 = arith.constant 0.000000e+00 : f32
      %295 = vector.broadcast %cst_103 : f32 to vector<1x16x16xf32>
      %296 = arith.select %12, %294, %295 : vector<1x16x16xi1>, vector<1x16x16xf32>
      %297 = vector.shape_cast %296 : vector<1x16x16xf32> to vector<1x1x16x16xf32>
      %cst_104 = arith.constant dense<0.000000e+00> : vector<1xf32>
      %298 = vector.multi_reduction <add>, %297, %cst_104 [1, 2, 3] : vector<1x1x16x16xf32> to vector<1xf32>
      %299 = vector.shape_cast %298 : vector<1xf32> to vector<1x1x1x1xf32>
      %300 = vector.extract %299[0, 0, 0, 0] : f32 from vector<1x1x1x1xf32>
      %301 = arith.index_cast %arg0 : i32 to index
      %c1_105 = arith.constant 1 : index
      %302 = memref.load %arg7[%301, %c1_105] : memref<2x2xf32, #tpu.memory_space<smem>>
      memref.store %300, %arg7[%301, %c1_105] : memref<2x2xf32, #tpu.memory_space<smem>>
    } else {
    }
    %21 = arith.subf %1, %3 : vector<3x16x16xf32>
    %22 = vector.broadcast %6 : vector<1x16x16xf32> to vector<3x16x16xf32>
    %23 = arith.mulf %21, %22 : vector<3x16x16xf32>
    %24 = math.absf %23 : vector<3x16x16xf32>
    %cst = arith.constant 1.000000e+00 : f32
    %25 = vector.broadcast %cst : f32 to vector<3x16x16xf32>
    %26 = arith.cmpf olt, %24, %25 : vector<3x16x16xf32>
    %cst_16 = arith.constant 5.000000e-01 : f32
    %27 = vector.broadcast %cst_16 : f32 to vector<3x16x16xf32>
    %28 = arith.mulf %27, %23 : vector<3x16x16xf32>
    %29 = arith.mulf %28, %23 : vector<3x16x16xf32>
    %cst_17 = arith.constant 5.000000e-01 : f32
    %30 = vector.broadcast %cst_17 : f32 to vector<3x16x16xf32>
    %31 = arith.subf %24, %30 : vector<3x16x16xf32>
    %32 = arith.select %26, %29, %31 : vector<3x16x16xi1>, vector<3x16x16xf32>
    %33 = vector.shape_cast %32 : vector<3x16x16xf32> to vector<1x3x16x16xf32>
    %cst_18 = arith.constant dense<0.000000e+00> : vector<1xf32>
    %34 = vector.multi_reduction <add>, %33, %cst_18 [1, 2, 3] : vector<1x3x16x16xf32> to vector<1xf32>
    %35 = vector.shape_cast %34 : vector<1xf32> to vector<1x1x1x1xf32>
    %36 = vector.extract %35[0, 0, 0, 0] : f32 from vector<1x1x1x1xf32>
    %37 = vector.extract_strided_slice %23 {offsets = [0, 0, 1], sizes = [3, 16, 15], strides = [1, 1, 1]} : vector<3x16x16xf32> to vector<3x16x15xf32>
    %cst_19 = arith.constant 0.000000e+00 : f32
    %38 = vector.broadcast %cst_19 : f32 to vector<3x16x1xf32>
    %39 = tpu.concatenate %37, %38 in 2 : vector<3x16x15xf32>, vector<3x16x1xf32> -> vector<3x16x16xf32>
    %40 = arith.subf %39, %23 : vector<3x16x16xf32>
    %cst_20 = arith.constant 0.000000e+00 : f32
    %41 = vector.shape_cast %10 : vector<1x16x16xi1> to vector<1x16x16xi1>
    %42 = vector.broadcast %41 : vector<1x16x16xi1> to vector<3x16x16xi1>
    %43 = vector.broadcast %cst_20 : f32 to vector<3x16x16xf32>
    %44 = arith.select %42, %40, %43 : vector<3x16x16xi1>, vector<3x16x16xf32>
    %45 = vector.extract_strided_slice %23 {offsets = [0, 1, 0], sizes = [3, 15, 16], strides = [1, 1, 1]} : vector<3x16x16xf32> to vector<3x15x16xf32>
    %cst_21 = arith.constant 0.000000e+00 : f32
    %46 = vector.broadcast %cst_21 : f32 to vector<3x1x16xf32>
    %47 = tpu.concatenate %45, %46 in 1 : vector<3x15x16xf32>, vector<3x1x16xf32> -> vector<3x16x16xf32>
    %48 = arith.subf %47, %23 : vector<3x16x16xf32>
    %cst_22 = arith.constant 0.000000e+00 : f32
    %49 = vector.shape_cast %12 : vector<1x16x16xi1> to vector<1x16x16xi1>
    %50 = vector.broadcast %49 : vector<1x16x16xi1> to vector<3x16x16xi1>
    %51 = vector.broadcast %cst_22 : f32 to vector<3x16x16xf32>
    %52 = arith.select %50, %48, %51 : vector<3x16x16xi1>, vector<3x16x16xf32>
    %53 = math.absf %44 : vector<3x16x16xf32>
    %cst_23 = arith.constant 1.000000e+00 : f32
    %54 = vector.broadcast %cst_23 : f32 to vector<3x16x16xf32>
    %55 = arith.cmpf olt, %53, %54 : vector<3x16x16xf32>
    %cst_24 = arith.constant 5.000000e-01 : f32
    %56 = vector.broadcast %cst_24 : f32 to vector<3x16x16xf32>
    %57 = arith.mulf %56, %44 : vector<3x16x16xf32>
    %58 = arith.mulf %57, %44 : vector<3x16x16xf32>
    %cst_25 = arith.constant 5.000000e-01 : f32
    %59 = vector.broadcast %cst_25 : f32 to vector<3x16x16xf32>
    %60 = arith.subf %53, %59 : vector<3x16x16xf32>
    %61 = arith.select %55, %58, %60 : vector<3x16x16xi1>, vector<3x16x16xf32>
    %62 = vector.shape_cast %61 : vector<3x16x16xf32> to vector<1x3x16x16xf32>
    %cst_26 = arith.constant dense<0.000000e+00> : vector<1xf32>
    %63 = vector.multi_reduction <add>, %62, %cst_26 [1, 2, 3] : vector<1x3x16x16xf32> to vector<1xf32>
    %64 = vector.shape_cast %63 : vector<1xf32> to vector<1x1x1x1xf32>
    %65 = vector.extract %64[0, 0, 0, 0] : f32 from vector<1x1x1x1xf32>
    %66 = math.absf %52 : vector<3x16x16xf32>
    %cst_27 = arith.constant 1.000000e+00 : f32
    %67 = vector.broadcast %cst_27 : f32 to vector<3x16x16xf32>
    %68 = arith.cmpf olt, %66, %67 : vector<3x16x16xf32>
    %cst_28 = arith.constant 5.000000e-01 : f32
    %69 = vector.broadcast %cst_28 : f32 to vector<3x16x16xf32>
    %70 = arith.mulf %69, %52 : vector<3x16x16xf32>
    %71 = arith.mulf %70, %52 : vector<3x16x16xf32>
    %cst_29 = arith.constant 5.000000e-01 : f32
    %72 = vector.broadcast %cst_29 : f32 to vector<3x16x16xf32>
    %73 = arith.subf %66, %72 : vector<3x16x16xf32>
    %74 = arith.select %68, %71, %73 : vector<3x16x16xi1>, vector<3x16x16xf32>
    %75 = vector.shape_cast %74 : vector<3x16x16xf32> to vector<1x3x16x16xf32>
    %cst_30 = arith.constant dense<0.000000e+00> : vector<1xf32>
    %76 = vector.multi_reduction <add>, %75, %cst_30 [1, 2, 3] : vector<1x3x16x16xf32> to vector<1xf32>
    %77 = vector.shape_cast %76 : vector<1xf32> to vector<1x1x1x1xf32>
    %78 = vector.extract %77[0, 0, 0, 0] : f32 from vector<1x1x1x1xf32>
    %c0_31 = arith.constant 0 : index
    %c0_32 = arith.constant 0 : index
    %c0_33 = arith.constant 0 : index
    %79 = vector.load %arg8[%c0_31, %c0_32, %c0_33] : memref<3x16x16xf32, #tpu.memory_space<vmem>>, vector<3x16x16xf32>
    %c0_34 = arith.constant 0 : index
    %c0_35 = arith.constant 0 : index
    %c0_36 = arith.constant 0 : index
    %80 = vector.load %arg9[%c0_34, %c0_35, %c0_36] : memref<3x16x16xf32, #tpu.memory_space<vmem>>, vector<3x16x16xf32>
    %81 = vector.extract_strided_slice %1 {offsets = [0, 0, 1], sizes = [3, 16, 15], strides = [1, 1, 1]} : vector<3x16x16xf32> to vector<3x16x15xf32>
    %cst_37 = arith.constant 0.000000e+00 : f32
    %82 = vector.broadcast %cst_37 : f32 to vector<3x16x1xf32>
    %83 = tpu.concatenate %81, %82 in 2 : vector<3x16x15xf32>, vector<3x16x1xf32> -> vector<3x16x16xf32>
    %84 = arith.addf %1, %83 : vector<3x16x16xf32>
    %85 = vector.extract_strided_slice %1 {offsets = [0, 0, 2], sizes = [3, 16, 14], strides = [1, 1, 1]} : vector<3x16x16xf32> to vector<3x16x14xf32>
    %cst_38 = arith.constant 0.000000e+00 : f32
    %86 = vector.broadcast %cst_38 : f32 to vector<3x16x2xf32>
    %87 = tpu.concatenate %85, %86 in 2 : vector<3x16x14xf32>, vector<3x16x2xf32> -> vector<3x16x16xf32>
    %88 = arith.addf %84, %87 : vector<3x16x16xf32>
    %89 = vector.extract_strided_slice %88 {offsets = [0, 1, 0], sizes = [3, 15, 16], strides = [1, 1, 1]} : vector<3x16x16xf32> to vector<3x15x16xf32>
    %cst_39 = arith.constant 0.000000e+00 : f32
    %90 = vector.broadcast %cst_39 : f32 to vector<3x1x16xf32>
    %91 = tpu.concatenate %89, %90 in 1 : vector<3x15x16xf32>, vector<3x1x16xf32> -> vector<3x16x16xf32>
    %92 = arith.addf %88, %91 : vector<3x16x16xf32>
    %93 = vector.extract_strided_slice %88 {offsets = [0, 2, 0], sizes = [3, 14, 16], strides = [1, 1, 1]} : vector<3x16x16xf32> to vector<3x14x16xf32>
    %cst_40 = arith.constant 0.000000e+00 : f32
    %94 = vector.broadcast %cst_40 : f32 to vector<3x2x16xf32>
    %95 = tpu.concatenate %93, %94 in 1 : vector<3x14x16xf32>, vector<3x2x16xf32> -> vector<3x16x16xf32>
    %96 = arith.addf %92, %95 : vector<3x16x16xf32>
    %cst_41 = arith.constant 0.111111112 : f32
    %97 = vector.broadcast %cst_41 : f32 to vector<3x16x16xf32>
    %98 = arith.mulf %96, %97 : vector<3x16x16xf32>
    %99 = arith.mulf %1, %1 : vector<3x16x16xf32>
    %100 = vector.extract_strided_slice %99 {offsets = [0, 0, 1], sizes = [3, 16, 15], strides = [1, 1, 1]} : vector<3x16x16xf32> to vector<3x16x15xf32>
    %cst_42 = arith.constant 0.000000e+00 : f32
    %101 = vector.broadcast %cst_42 : f32 to vector<3x16x1xf32>
    %102 = tpu.concatenate %100, %101 in 2 : vector<3x16x15xf32>, vector<3x16x1xf32> -> vector<3x16x16xf32>
    %103 = arith.addf %99, %102 : vector<3x16x16xf32>
    %104 = vector.extract_strided_slice %99 {offsets = [0, 0, 2], sizes = [3, 16, 14], strides = [1, 1, 1]} : vector<3x16x16xf32> to vector<3x16x14xf32>
    %cst_43 = arith.constant 0.000000e+00 : f32
    %105 = vector.broadcast %cst_43 : f32 to vector<3x16x2xf32>
    %106 = tpu.concatenate %104, %105 in 2 : vector<3x16x14xf32>, vector<3x16x2xf32> -> vector<3x16x16xf32>
    %107 = arith.addf %103, %106 : vector<3x16x16xf32>
    %108 = vector.extract_strided_slice %107 {offsets = [0, 1, 0], sizes = [3, 15, 16], strides = [1, 1, 1]} : vector<3x16x16xf32> to vector<3x15x16xf32>
    %cst_44 = arith.constant 0.000000e+00 : f32
    %109 = vector.broadcast %cst_44 : f32 to vector<3x1x16xf32>
    %110 = tpu.concatenate %108, %109 in 1 : vector<3x15x16xf32>, vector<3x1x16xf32> -> vector<3x16x16xf32>
    %111 = arith.addf %107, %110 : vector<3x16x16xf32>
    %112 = vector.extract_strided_slice %107 {offsets = [0, 2, 0], sizes = [3, 14, 16], strides = [1, 1, 1]} : vector<3x16x16xf32> to vector<3x14x16xf32>
    %cst_45 = arith.constant 0.000000e+00 : f32
    %113 = vector.broadcast %cst_45 : f32 to vector<3x2x16xf32>
    %114 = tpu.concatenate %112, %113 in 1 : vector<3x14x16xf32>, vector<3x2x16xf32> -> vector<3x16x16xf32>
    %115 = arith.addf %111, %114 : vector<3x16x16xf32>
    %cst_46 = arith.constant 0.111111112 : f32
    %116 = vector.broadcast %cst_46 : f32 to vector<3x16x16xf32>
    %117 = arith.mulf %115, %116 : vector<3x16x16xf32>
    %118 = arith.mulf %98, %98 : vector<3x16x16xf32>
    %119 = arith.subf %117, %118 : vector<3x16x16xf32>
    %120 = arith.mulf %3, %1 : vector<3x16x16xf32>
    %121 = vector.extract_strided_slice %120 {offsets = [0, 0, 1], sizes = [3, 16, 15], strides = [1, 1, 1]} : vector<3x16x16xf32> to vector<3x16x15xf32>
    %cst_47 = arith.constant 0.000000e+00 : f32
    %122 = vector.broadcast %cst_47 : f32 to vector<3x16x1xf32>
    %123 = tpu.concatenate %121, %122 in 2 : vector<3x16x15xf32>, vector<3x16x1xf32> -> vector<3x16x16xf32>
    %124 = arith.addf %120, %123 : vector<3x16x16xf32>
    %125 = vector.extract_strided_slice %120 {offsets = [0, 0, 2], sizes = [3, 16, 14], strides = [1, 1, 1]} : vector<3x16x16xf32> to vector<3x16x14xf32>
    %cst_48 = arith.constant 0.000000e+00 : f32
    %126 = vector.broadcast %cst_48 : f32 to vector<3x16x2xf32>
    %127 = tpu.concatenate %125, %126 in 2 : vector<3x16x14xf32>, vector<3x16x2xf32> -> vector<3x16x16xf32>
    %128 = arith.addf %124, %127 : vector<3x16x16xf32>
    %129 = vector.extract_strided_slice %128 {offsets = [0, 1, 0], sizes = [3, 15, 16], strides = [1, 1, 1]} : vector<3x16x16xf32> to vector<3x15x16xf32>
    %cst_49 = arith.constant 0.000000e+00 : f32
    %130 = vector.broadcast %cst_49 : f32 to vector<3x1x16xf32>
    %131 = tpu.concatenate %129, %130 in 1 : vector<3x15x16xf32>, vector<3x1x16xf32> -> vector<3x16x16xf32>
    %132 = arith.addf %128, %131 : vector<3x16x16xf32>
    %133 = vector.extract_strided_slice %128 {offsets = [0, 2, 0], sizes = [3, 14, 16], strides = [1, 1, 1]} : vector<3x16x16xf32> to vector<3x14x16xf32>
    %cst_50 = arith.constant 0.000000e+00 : f32
    %134 = vector.broadcast %cst_50 : f32 to vector<3x2x16xf32>
    %135 = tpu.concatenate %133, %134 in 1 : vector<3x14x16xf32>, vector<3x2x16xf32> -> vector<3x16x16xf32>
    %136 = arith.addf %132, %135 : vector<3x16x16xf32>
    %cst_51 = arith.constant 0.111111112 : f32
    %137 = vector.broadcast %cst_51 : f32 to vector<3x16x16xf32>
    %138 = arith.mulf %136, %137 : vector<3x16x16xf32>
    %139 = arith.mulf %79, %98 : vector<3x16x16xf32>
    %140 = arith.subf %138, %139 : vector<3x16x16xf32>
    %141 = vector.extract_strided_slice %6 {offsets = [0, 0, 1], sizes = [1, 16, 15], strides = [1, 1, 1]} : vector<1x16x16xf32> to vector<1x16x15xf32>
    %cst_52 = arith.constant 0.000000e+00 : f32
    %142 = vector.broadcast %cst_52 : f32 to vector<1x16x1xf32>
    %143 = tpu.concatenate %141, %142 in 2 : vector<1x16x15xf32>, vector<1x16x1xf32> -> vector<1x16x16xf32>
    %144 = arith.addf %6, %143 : vector<1x16x16xf32>
    %145 = vector.extract_strided_slice %6 {offsets = [0, 0, 2], sizes = [1, 16, 14], strides = [1, 1, 1]} : vector<1x16x16xf32> to vector<1x16x14xf32>
    %cst_53 = arith.constant 0.000000e+00 : f32
    %146 = vector.broadcast %cst_53 : f32 to vector<1x16x2xf32>
    %147 = tpu.concatenate %145, %146 in 2 : vector<1x16x14xf32>, vector<1x16x2xf32> -> vector<1x16x16xf32>
    %148 = arith.addf %144, %147 : vector<1x16x16xf32>
    %149 = vector.extract_strided_slice %148 {offsets = [0, 1, 0], sizes = [1, 15, 16], strides = [1, 1, 1]} : vector<1x16x16xf32> to vector<1x15x16xf32>
    %cst_54 = arith.constant 0.000000e+00 : f32
    %150 = vector.broadcast %cst_54 : f32 to vector<1x1x16xf32>
    %151 = tpu.concatenate %149, %150 in 1 : vector<1x15x16xf32>, vector<1x1x16xf32> -> vector<1x16x16xf32>
    %152 = arith.addf %148, %151 : vector<1x16x16xf32>
    %153 = vector.extract_strided_slice %148 {offsets = [0, 2, 0], sizes = [1, 14, 16], strides = [1, 1, 1]} : vector<1x16x16xf32> to vector<1x14x16xf32>
    %cst_55 = arith.constant 0.000000e+00 : f32
    %154 = vector.broadcast %cst_55 : f32 to vector<1x2x16xf32>
    %155 = tpu.concatenate %153, %154 in 1 : vector<1x14x16xf32>, vector<1x2x16xf32> -> vector<1x16x16xf32>
    %156 = arith.addf %152, %155 : vector<1x16x16xf32>
    %cst_56 = arith.constant 0.111111112 : f32
    %157 = vector.broadcast %cst_56 : f32 to vector<1x16x16xf32>
    %158 = arith.mulf %156, %157 : vector<1x16x16xf32>
    %cst_57 = arith.constant 2.000000e+00 : f32
    %159 = vector.broadcast %cst_57 : f32 to vector<3x16x16xf32>
    %160 = arith.mulf %159, %79 : vector<3x16x16xf32>
    %161 = arith.mulf %160, %98 : vector<3x16x16xf32>
    %cst_58 = arith.constant 9.99999974E-5 : f32
    %162 = vector.broadcast %cst_58 : f32 to vector<3x16x16xf32>
    %163 = arith.addf %161, %162 : vector<3x16x16xf32>
    %cst_59 = arith.constant 2.000000e+00 : f32
    %164 = vector.broadcast %cst_59 : f32 to vector<3x16x16xf32>
    %165 = arith.mulf %164, %140 : vector<3x16x16xf32>
    %cst_60 = arith.constant 8.99999984E-4 : f32
    %166 = vector.broadcast %cst_60 : f32 to vector<3x16x16xf32>
    %167 = arith.addf %165, %166 : vector<3x16x16xf32>
    %168 = arith.mulf %163, %167 : vector<3x16x16xf32>
    %169 = arith.mulf %79, %79 : vector<3x16x16xf32>
    %170 = arith.mulf %98, %98 : vector<3x16x16xf32>
    %171 = arith.addf %169, %170 : vector<3x16x16xf32>
    %cst_61 = arith.constant 9.99999974E-5 : f32
    %172 = vector.broadcast %cst_61 : f32 to vector<3x16x16xf32>
    %173 = arith.addf %171, %172 : vector<3x16x16xf32>
    %174 = arith.addf %80, %119 : vector<3x16x16xf32>
    %cst_62 = arith.constant 8.99999984E-4 : f32
    %175 = vector.broadcast %cst_62 : f32 to vector<3x16x16xf32>
    %176 = arith.addf %174, %175 : vector<3x16x16xf32>
    %177 = arith.mulf %173, %176 : vector<3x16x16xf32>
    %178 = tpu.reciprocal %177 {approx = true} : vector<3x16x16xf32> -> vector<3x16x16xf32>
    %179 = arith.mulf %168, %178 : vector<3x16x16xf32>
    %cst_63 = arith.constant 1.000000e+00 : f32
    %180 = vector.broadcast %cst_63 : f32 to vector<3x16x16xf32>
    %181 = arith.subf %180, %179 : vector<3x16x16xf32>
    %cst_64 = arith.constant 5.000000e-01 : f32
    %182 = vector.broadcast %cst_64 : f32 to vector<3x16x16xf32>
    %183 = arith.mulf %181, %182 : vector<3x16x16xf32>
    %cst_65 = arith.constant 0.000000e+00 : f32
    %cst_66 = arith.constant 1.000000e+00 : f32
    %184 = vector.broadcast %cst_65 : f32 to vector<3x16x16xf32>
    %185 = arith.maximumf %184, %183 : vector<3x16x16xf32>
    %186 = vector.broadcast %cst_66 : f32 to vector<3x16x16xf32>
    %187 = arith.minimumf %186, %185 : vector<3x16x16xf32>
    %188 = vector.broadcast %158 : vector<1x16x16xf32> to vector<3x16x16xf32>
    %189 = arith.mulf %188, %187 : vector<3x16x16xf32>
    %cst_67 = arith.constant 0.000000e+00 : f32
    %190 = vector.shape_cast %17 : vector<1x16x16xi1> to vector<1x16x16xi1>
    %191 = vector.broadcast %190 : vector<1x16x16xi1> to vector<3x16x16xi1>
    %192 = vector.broadcast %cst_67 : f32 to vector<3x16x16xf32>
    %193 = arith.select %191, %189, %192 : vector<3x16x16xi1>, vector<3x16x16xf32>
    %194 = vector.shape_cast %193 : vector<3x16x16xf32> to vector<1x3x16x16xf32>
    %cst_68 = arith.constant dense<0.000000e+00> : vector<1xf32>
    %195 = vector.multi_reduction <add>, %194, %cst_68 [1, 2, 3] : vector<1x3x16x16xf32> to vector<1xf32>
    %196 = vector.shape_cast %195 : vector<1xf32> to vector<1x1x1x1xf32>
    %197 = vector.extract %196[0, 0, 0, 0] : f32 from vector<1x1x1x1xf32>
    %c2_i32 = arith.constant 2 : i32
    %198 = arith.muli %arg0, %c2_i32 : i32
    %199 = arith.addi %198, %arg1 : i32
    %200 = arith.index_cast %199 : i32 to index
    %c0_69 = arith.constant 0 : index
    %201 = memref.load %arg6[%200, %c0_69] : memref<4x4xf32, #tpu.memory_space<smem>>
    memref.store %36, %arg6[%200, %c0_69] : memref<4x4xf32, #tpu.memory_space<smem>>
    %202 = arith.index_cast %199 : i32 to index
    %c1 = arith.constant 1 : index
    %203 = memref.load %arg6[%202, %c1] : memref<4x4xf32, #tpu.memory_space<smem>>
    memref.store %65, %arg6[%202, %c1] : memref<4x4xf32, #tpu.memory_space<smem>>
    %204 = arith.index_cast %199 : i32 to index
    %c2 = arith.constant 2 : index
    %205 = memref.load %arg6[%204, %c2] : memref<4x4xf32, #tpu.memory_space<smem>>
    memref.store %78, %arg6[%204, %c2] : memref<4x4xf32, #tpu.memory_space<smem>>
    %206 = arith.index_cast %199 : i32 to index
    %c3 = arith.constant 3 : index
    %207 = memref.load %arg6[%206, %c3] : memref<4x4xf32, #tpu.memory_space<smem>>
    memref.store %197, %arg6[%206, %c3] : memref<4x4xf32, #tpu.memory_space<smem>>
    return
  }
  func.func @transform_0(%arg0: i32, %arg1: i32) -> (i32, i32, i32, i32, i32) {
    %c0_i32 = arith.constant 0 : i32
    %c0_i32_0 = arith.constant 0 : i32
    %c0_i32_1 = arith.constant 0 : i32
    %c0_i32_2 = arith.constant 0 : i32
    return %arg1, %arg0, %c0_i32, %c0_i32_0, %c0_i32_1 : i32, i32, i32, i32, i32
  }
  func.func @transform_1(%arg0: i32, %arg1: i32) -> (i32, i32, i32, i32, i32) {
    %c0_i32 = arith.constant 0 : i32
    %c0_i32_0 = arith.constant 0 : i32
    %c0_i32_1 = arith.constant 0 : i32
    %c0_i32_2 = arith.constant 0 : i32
    return %arg1, %arg0, %c0_i32, %c0_i32_0, %c0_i32_1 : i32, i32, i32, i32, i32
  }
  func.func @transform_2(%arg0: i32, %arg1: i32) -> (i32, i32, i32, i32) {
    %c0_i32 = arith.constant 0 : i32
    %c0_i32_0 = arith.constant 0 : i32
    %c0_i32_1 = arith.constant 0 : i32
    %c0_i32_2 = arith.constant 0 : i32
    return %arg0, %c0_i32, %c0_i32_0, %c0_i32_1 : i32, i32, i32, i32
  }
  func.func @transform_3(%arg0: i32, %arg1: i32) -> (i32, i32, i32, i32) {
    %c0_i32 = arith.constant 0 : i32
    %c0_i32_0 = arith.constant 0 : i32
    %c0_i32_1 = arith.constant 0 : i32
    %c0_i32_2 = arith.constant 0 : i32
    return %arg0, %c0_i32, %c0_i32_0, %c0_i32_1 : i32, i32, i32, i32
  }
  func.func @transform_4(%arg0: i32, %arg1: i32) -> (i32, i32) {
    %c0_i32 = arith.constant 0 : i32
    %c0_i32_0 = arith.constant 0 : i32
    %c0_i32_1 = arith.constant 0 : i32
    return %c0_i32, %c0_i32_0 : i32, i32
  }
  func.func @transform_5(%arg0: i32, %arg1: i32) -> (i32, i32) {
    %c0_i32 = arith.constant 0 : i32
    %c0_i32_0 = arith.constant 0 : i32
    %c0_i32_1 = arith.constant 0 : i32
    return %c0_i32, %c0_i32_0 : i32, i32
  }
}

</mosaic_0001>

<bundles_post_ra>
// kernel: custom-call.77
= control target key start
LH: loop header
LB: loop body
LE: loop exit
PB: predicated region body
PF: predicated region fallthrough
CT: control target
= control target key end

     0   :  { %5 = vsyncpa [#allocation6], 0  ;;  %s896_s0 = inlined_call_operand.vmem [shape: f32[2,3,3], index: 0, kind: input, shape index: {}]   ;;  %s897_s1 = inlined_call_operand.vmem [shape: f32[2,3,3], index: 1, kind: output, shape index: {0}]   ;;  %s898_s2 = inlined_call_operand.hbm [shape: s32[2,3], index: 2, kind: output, shape index: {1}]   ;;  %s899_s3 = inlined_call_operand.vmem [shape: s32[2,3], index: 3, kind: output, shape index: {2}]  }
   0x1   :  { %7 = vsyncpa [#allocation6 + $0x1], 0  ;;  %s715_s12 = smov 0   ;;  %s717_s13 = smov 0  }
   0x2   :  { %s719_s14 = smov 0   ;;  %s721_s15 = smov 0  }
   0x3 LB: > { %s736_s16 = sadd.s32 4294967295, %s687_s15   ;;  %s550_s17 = sadd.s32 4294967294, %s687_s15   ;;  %s687_s15 = sphi %s721_s15, %s907_s15   ;;  %s683_s14 = sphi %s719_s14, %s906_s14   ;;  %s679_s13 = sphi %s717_s13, %s905_s13   ;;  %s675_s12 = sphi %s715_s12, %s904_s12  }
   0x4   : > { %s740_s18 = sadd.s32 1, %s687_s15   ;;  %s17_s19 = sshrl.u32 %s687_s15, 3 }
   0x5   : > { %s18_s20 = sshrl.u32 %s740_s18, 3  ;;  %s22_s21 = sadd.s32 1, %s683_s14 }
   0x6   : > { %s19_s22 = ssub.s32 %s17_s19, %s18_s20  ;;  %p32_p0 = scmp.ne.s32.totalorder %s683_s14, %s679_s13 }
   0x7   : > { %p20_p1 = scmp.eq.s32.totalorder %s19_s22, 0  ;;  %p33_p2 = scmp.eq.s32.totalorder %s736_s16, 1 }
   0x8   : > { %p38_p3 = scmp.ne.s32.totalorder %s679_s13, %s675_s12  ;;  %p39_p4 = scmp.eq.s32.totalorder %s550_s17, 1 }
   0x9   : > { %s751_s23 = scalar_select %p20_p1, %s683_s14, %s22_s21  }
   0xa   : > { %p753_p5 = por %p33_p2, %p32_p0  ;;  %p757_p6 = por %p39_p4, %p38_p3 }
   0xb   : > { %p552_p7 = scmp.ge.s32.totalorder %s687_s15, 2 }
   0xc   : > { %s85_s26 = sand.u32 (!%p552_p7), 1, %s687_s15   ;;  %s554_s27 = sshll.u32 (!%p552_p7), %s687_s15, 2 }
   0xd   : > { %83 = sbr.rel (%p552_p7) target bundleno = 20 (0x14), region = 16  ;;  %s553_s28 = sshll.u32 (!%p552_p7), %s85_s26, 2 }
   0xe   : > { %s89_s4 = scalar_lea.vmem (!%p552_p7), %s896_s0, %s554_s27  ;;  %s87_s5 = scalar_lea.vmem (!%p552_p7), [#allocation1], %s553_s28 }
   0xf   : > { %v105_v0 = vld [vmem:[%s89_s4] sm:$0xf] (!%p552_p7) }
  0x10   : > { %106 = vst [vmem:[%s87_s5] sm:$0xf] (!%p552_p7), %v105_v0 }
  0x14 PF: > { %p555_p8 = scmp.ge.s32.totalorder %s687_s15, 1  ;;  %p122_p9 = scmp.lt.s32.totalorder %s687_s15, 3 }
  0x16   : > { %p123_p10 = pnand %p555_p8, %p122_p9 }
  0x18   : > { %126 = sbr.rel (%p123_p10) target bundleno = 451 (0x1c3), region = 50 }
  0x1f   : > { %s133_s6 = sand.u32 1, %s736_s16   ;;  %s144_s7 = sand.u32 1, %s679_s13   ;;  %v166_v1 = vlaneseq  ;;  %v693_v4 = vmov 0  }
  0x20   : > { %s773_s8 = sshll.u32 %s133_s6, 2  ;;  %s777_s9 = sshll.u32 %s144_s7, 1 }
  0x21   : > { %v780_v2 = vshrl.u32 %v166_v1, 7  ;;  %s135_s10 = scalar_lea.vmem [#allocation1], %s773_s8  ;;  %s161_s11 = sand.u32 7, %s736_s16  }
  0x22   : > { %v155_v3 = vld [vmem:[%s135_s10] sm:$0xf]  ;;  %s785_s17 = scalar_lea.vmem [#allocation4], %s161_s11  ;;  %s139_s19 = scalar_lea.vmem [#allocation3], %s773_s8 }
  0x23   : > { %156 = vst [vmem:[#allocation0] sm:$0xf] %v155_v3  ;;  %170 = vst [vmem:[#allocation9] sm:$0xff] %v780_v2  ;;  %s146_s20 = scalar_lea.vmem [#allocation5], %s777_s9  ;;  %s152_s21 = scalar_lea.vmem [#allocation8], %s777_s9 }
  0x24   : > { %165 = vst [vmem:[%s785_s17] sm:$0x1] %v693_v4  ;;  %s791_s22 = scalar_lea.vmem [#allocation7], %s161_s11  ;;  %s793_s26 = smov 0  }
  0x2a   : > { %v159_v5 = vld [vmem:[#allocation0] sm:$0xff] }
  0x2b   : > { %160 = vst [vmem:[#allocation2] sm:$0xff] %v159_v5 }
  0x2c LB: >> { %vm186_vm0 = vcmp.lt.s32.totalorder %v780_v2, 3  ;;  %v800_v8 = vstv %s691_s26  ;;  %s227_s27 = ssub.s32 128, %s691_s26  ;;  %v233_v38 = vand.u32 127, %v166_v1  ;;  %v236_v40 = vld [vmem:[%s785_s17] ss:$0 sm:$0xff]  ;;  %s239_s28 = scalar_lea.vmem [#allocation2], %s691_s26  ;;  %s691_s26 = sphi %s793_s26, %s176_s26  }
  0x2d   : >> { %vm185_vm1 = vcmp.ge.s32.totalorder %v780_v2, %v800_v8  ;;  %s245_s30 = scalar_lea.vmem [#allocation9], %s691_s26  ;;  %vm265_vm15 = vcmp.gt.s32.totalorder %v780_v2, %v800_v8  ;;  %s176_s26 = sadd.s32 1, %s691_s26  }
  0x2e   : >> { %vm187_vm3 = vmand %vm185_vm1, %vm186_vm0  ;;  %vm257_vm12 = vcmp.gt.s32.totalorder %v233_v38, %v800_v8  ;;  %vm234_vm13 = vcmp.eq.s32.totalorder %v233_v38, %v800_v8  ;;  %v247_v42 = vld [vmem:[%s245_s30] ss:$0 sm:$0xff]  ;;  %p173_p11 = scmp.ge.s32.totalorder %s176_s26, 3  }
  0x2f   : >> { %vm269_vm1 = vmand %vm265_vm15, %vm234_vm13  ;;  %s900_s6 = sshrl.u32 (%p173_p11), %s736_s16, 3  ;;  %s564_s10 = sshll.u32 (%p173_p11), %s736_s16, 2 }
  0x30   : > { %s565_s11 = sshll.u32 (%p173_p11), %s900_s6, 5 }
  0x32   : >> { %v181_v6 = vld [vmem:[#allocation2] sm:$0xff]  ;;  %v241_v41 = vld [vmem:[%s239_s28] ss:$0 sm:$0xff] }
  0x33   : >> { %v182_v7 = vand.u32 2147483647, %v181_v6 }
  0x35   : >> { %vm560_vm2 = vcmp.gt.f32.partialorder %v182_v7, -inf }
  0x36   : >> { %vm189_vm4 = vmand %vm187_vm3, %vm560_vm2 }
  0x37   : >> { %v190_v9 = vsel %vm189_vm4, %v780_v2, %v800_v8  ;;  %v191_v10 = vsel %vm189_vm4, %v182_v7, -inf }
  0x38   : >> { %v192_v11 = vrot.slane %v191_v10, 1  ;;  %v193_v12 = vrot.slane %v190_v9, 1 }
  0x3a   : >> { %vm194_vm5 = vcmp.ge.f32.partialorder %v192_v11, %v191_v10  ;;  %v197_v13 = vrot.slane %v192_v11, 1  ;;  %v198_v14 = vrot.slane %v193_v12, 1 }
  0x3b   : >> { %v195_v15 = vsel %vm194_vm5, %v192_v11, %v191_v10  ;;  %v196_v16 = vsel %vm194_vm5, %v193_v12, %v190_v9 }
  0x3c   : >> { %vm199_vm6 = vcmp.ge.f32.partialorder %v197_v13, %v195_v15  ;;  %v202_v17 = vrot.slane %v197_v13, 1  ;;  %v203_v18 = vrot.slane %v198_v14, 1 }
  0x3d   : >> { %v200_v19 = vsel %vm199_vm6, %v197_v13, %v195_v15  ;;  %v201_v20 = vsel %vm199_vm6, %v198_v14, %v196_v16 }
  0x3e   : >> { %vm204_vm7 = vcmp.ge.f32.partialorder %v202_v17, %v200_v19  ;;  %v207_v21 = vrot.slane %v202_v17, 1  ;;  %v208_v22 = vrot.slane %v203_v18, 1 }
  0x3f   : >> { %v205_v23 = vsel %vm204_vm7, %v202_v17, %v200_v19  ;;  %v206_v24 = vsel %vm204_vm7, %v203_v18, %v201_v20 }
  0x40   : >> { %vm209_vm8 = vcmp.ge.f32.partialorder %v207_v21, %v205_v23  ;;  %v212_v25 = vrot.slane %v207_v21, 1  ;;  %v213_v26 = vrot.slane %v208_v22, 1 }
  0x41   : >> { %v210_v27 = vsel %vm209_vm8, %v207_v21, %v205_v23  ;;  %v211_v28 = vsel %vm209_vm8, %v208_v22, %v206_v24 }
  0x42   : >> { %vm214_vm9 = vcmp.ge.f32.partialorder %v212_v25, %v210_v27  ;;  %v217_v29 = vrot.slane %v212_v25, 1  ;;  %v218_v30 = vrot.slane %v213_v26, 1 }
  0x43   : >> { %v215_v31 = vsel %vm214_vm9, %v212_v25, %v210_v27  ;;  %v216_v32 = vsel %vm214_vm9, %v213_v26, %v211_v28 }
  0x44   : >> { %vm219_vm10 = vcmp.ge.f32.partialorder %v217_v29, %v215_v31  ;;  %v222_v33 = vrot.slane %v217_v29, 1  ;;  %v223_v34 = vrot.slane %v218_v30, 1 }
  0x45   : >> { %v220_v35 = vsel %vm219_vm10, %v217_v29, %v215_v31  ;;  %v221_v36 = vsel %vm219_vm10, %v218_v30, %v216_v32 }
  0x46   : >> { %vm224_vm11 = vcmp.ge.f32.partialorder %v222_v33, %v220_v35 }
  0x47   : >> { %v226_v37 = vsel %vm224_vm11, %v223_v34, %v221_v36 }
  0x48   : >> { %228 = vrot.lane.b32.xlu0 %v226_v37, %s227_s27  ;;  %s357_s27 = scalar_lea.vmem (%p173_p11), %s897_s1, %s564_s10 }
  0xba   : >> { %v229_v39 = vpop.permute.xlu0 %228 }
  0xbb   : >> { %569 = vpush %v229_v39 }
  0xec   : >> { %s570_s29 = spop %569 }
  0xed   : >> { %v235_v43 = vstv %s570_s29  ;;  %s240_s4 = scalar_lea.vmem [#allocation2], %s570_s29  ;;  %s246_s5 = scalar_lea.vmem [#allocation9], %s570_s29 }
  0xee   : >> { %v242_v44 = vld [vmem:[%s240_s4] ss:$0 sm:$0xff]  ;;  %v237_v46 = vsel %vm234_vm13, %v235_v43, %v236_v40 }
  0xef   : >> { %v248_v45 = vld [vmem:[%s246_s5] ss:$0 sm:$0xff]  ;;  %243 = vst [vmem:[%s240_s4] sm:$0x1] %v241_v41  ;;  %vm251_vm14 = vcmp.ne.f32.partialorder %v242_v44, 0.0  ;;  %238 = vst [vmem:[%s785_s17] sm:$0x1] %v237_v46  ;;  %v258_v53 = vsel %vm257_vm12, %v242_v44, 0.0 }
  0xf0   : >> { %249 = vst [vmem:[%s246_s5] sm:$0x1] %v247_v42  ;;  %244 = vst [vmem:[%s239_s28] sm:$0x1] %v242_v44  ;;  %s399_s4 = sshll.u32 (%p173_p11), %s146_s20, 4  ;;  %s348_s5 = scalar_lea.sflag (%p173_p11), [#allocation6], %s144_s7  ;;  %s400_s4 = int_to_ptr.vmem [resolvable:$true] %s399_s4 }
  0xf1   : >> { %250 = vst [vmem:[%s245_s30] sm:$0x1] %v248_v45  ;;  %vm252_vm0 = vmand %vm234_vm13, %vm251_vm14  ;;  %s843_s30 = scalar_lea.hbm (%p173_p11), %s898_s2, %s565_s11  ;;  %s621_s6 = scalar_lea.vmem (%p173_p11), %s400_s4, 32 }
  0xf2   : >> { %v253_v47 = vsel %vm252_vm0, %v242_v44, 1.0  ;;  %p622_p12 = scmp.ne.s32.totalorder (%p173_p11), %s400_s4, %s621_s6  ;;  %s694_s17 = smov (%p173_p11), [#allocation5]  }
  0xf3   : >> { %v266_v48 = vsel %vm265_vm15, %v253_v47, 1.0  ;;  %s625_s10 = sshll.u32 (%p173_p11), %s694_s17, 4  ;;  %s626_s10 = int_to_ptr.vmem [resolvable:$false] %s625_s10 }
  0xf4   : >> { %619 = vrcp.f32 %v266_v48  ;;  %p623_p13 = pnand (%p173_p11), %p622_p12, %p753_p5  ;;  %s627_s8 = scalar_lea.vmem (%p173_p11), %s626_s10, 64 }
  0xf5   : > { %p628_p1 = scmp.lt.s32.totalorder (%p173_p11), %s400_s4, %s626_s10  ;;  %p629_p2 = scmp.lt.s32.totalorder (%p173_p11), %s627_s8, %s621_s6 }
  0xf6   : > { %v334_v59 = vld [vmem:[#allocation4] sm:$0x3] (%p173_p11)  ;;  %p624_p0 = pneg (%p173_p11), %p623_p13 }
  0xf7   : >> { %v262_v50 = vld [vmem:[#allocation2] sm:$0xff]  ;;  %336 = vst [vmem:[%s146_s20] sm:$0x3] (%p173_p11), %v334_v59  ;;  %p630_p3 = por (%p173_p11), %p629_p2, %p628_p1 }
  0xf8   : > { %v276_v57 = vld [vmem:[#allocation9] sm:$0xff] (%p173_p11) }
  0xf9   : > { %p631_p4 = pnand (%p173_p11), %p630_p3, %p624_p0 }
  0xfe   : >> { %v620_v49 = vpop.eup %619 }
  0xff   : >> { %v268_v51 = vmul.f32 %v620_v49, %v262_v50 }
 0x101   : >> { %v270_v52 = vsel %vm269_vm1, %v268_v51, 0.0 }
 0x102   : >> { %271 = vadd.xlane.f32.xlu0 %v270_v52 }
 0x12f   : > { %292 = vxpose.xlu0.b32.start.end [1/1] (short) (narrow) (%p173_p11), %v276_v57, 8 }
 0x18e   : > { %175 = sbr.rel (!%p173_p11) target bundleno = 44 (0x2c), region = 202 }
 0x18f   : >> { %v272_v54 = vpop.xlane.xlu0 %271 }
 0x190   : >> { %v273_v55 = vmul.f32 %v272_v54, %v258_v53 }
 0x192   : >> { %v274_v56 = vsub.f32 %v268_v51, %v273_v55 }
 0x194   : >> { %275 = vst [vmem:[#allocation2] sm:$0xff] %v274_v56 }
 0x19b   : > { %v328_v58 = vld [vmem:[#allocation2] sm:$0xf] }
 0x19c   : > { %330 = vst [vmem:[%s139_s19] sm:$0xf] %v328_v58 }
 0x1a3   : > { %v373_v60 = vld [vmem:[%s139_s19] sm:$0xf] }
 0x1a4   : > { %374 = vst [vmem:[%s357_s27] sm:$0xf] %v373_v60 }
 0x1a5   : > { %634 = shalt.err (!%p631_p4)
}
 0x1a6   : > { %s635_s7 = scalar_lea.hbm %s843_s30, 32  ;;  %s639_s11 = scalar_lea.hbm %s898_s2, 32 }
 0x1a7   : > { %p636_p8 = scmp.ne.s32.totalorder %s843_s30, %s635_s7  ;;  %p640_p11 = scmp.lt.u32.totalorder %s843_s30, %s898_s2 }
 0x1a8   : > { %p641_p12 = scmp.lt.u32.totalorder %s639_s11, %s635_s7  ;;  %p643_p0 = scmp.lt.u32.totalorder %s635_s7, %s843_s30 }
 0x1a9   : > { %p637_p9 = pnand %p636_p8, %p753_p5 }
 0x1aa   : > { %p642_p13 = por %p641_p12, %p640_p11 }
 0x1ab   : > { %p638_p10 = pneg %p637_p9 }
 0x1ac   : > { %p644_p1 = por %p643_p0, %p642_p13 }
 0x1ae   : > { %p645_p2 = pnand %p644_p1, %p638_p10 }
 0x1b0   : > { %648 = shalt.err (!%p645_p2)
}
 0x1b1   : > { %571 = dma.vmem_to_hbm [thread:$0]  (%p753_p5), %s400_s4, 32, %s843_s30, %s348_s5   ;;  %v308_v61 = vpop.trf.xlu0 }
 0x1b2   : > { %324 = vst [vmem:[%s791_s22] sm:$0x1] %v308_v61  ;;  %s903_s6 = sshrl.u32 (%p753_p5), %s736_s16, 3 }
 0x1b3   : > { %s566_s28 = sshll.u32 (%p753_p5), %s903_s6, 1 }
 0x1b4   : > { %405 = sbr.rel (!%p753_p5) target bundleno = 451 (0x1c3), region = 96  ;;  %s408_s10 = scalar_lea.vmem (%p753_p5), %s899_s3, %s566_s28 }
 0x1b9   : > { %v340_v62 = vld [vmem:[#allocation7] sm:$0x3] }
 0x1ba   : > { %342 = vst [vmem:[%s152_s21] sm:$0x3] %v340_v62 }
 0x1c1   : > { %v424_v63 = vld [vmem:[%s152_s21] sm:$0x3] }
 0x1c2   : > { %425 = vst [vmem:[%s408_s10] sm:$0x3] %v424_v63 }
 0x1c3 PF: > { %s452_s22 = sand.u32 1, %s675_s12   ;;  %p574_p5 = pnand %p552_p7, %p757_p6 }
 0x1c4   : > { %s453_s24 = scalar_lea.sflag [#allocation6], %s452_s22 }
 0x1c5   : > { %670 = dma.done.wait (!%p574_p5), %s453_s24, 32  }
 0x1c6   : > { %672 = vsyncadd (!%p574_p5), %s453_s24, 4294967264  ;;  %p10_p3 = scmp.ge.s32.totalorder %s740_s18, 4   ;;  %s904_s12 = smov %s679_s13 }
 0x1c7   : > { %s905_s13 = smov %s683_s14  ;;  %s906_s14 = smov %s751_s23 }
 0x1c8   : > { %s907_s15 = smov %s740_s18  ;;  %12 = sbr.rel (!%p10_p3) target bundleno = 3 (0x3), region = 213 }
 0x1cf   :  { %465 = vsyncpa [#allocation6], 1 }
 0x1d0   :  { %467 = vsyncpa [#allocation6 + $0x1], 1 }

// kernel: custom-call.79
= control target key start
LH: loop header
LB: loop body
LE: loop exit
PB: predicated region body
PF: predicated region fallthrough
CT: control target
= control target key end

     0   :  { %s343_s6 = smov 0   ;;  %s345_s7 = smov 0   ;;  %s390_s0 = inlined_call_operand.vmem [shape: f32[2,1,3,3], index: 0, kind: input, shape index: {}]   ;;  %s391_s1 = inlined_call_operand.vmem [shape: f32[2,1,3,3], index: 1, kind: output, shape index: {}]  }
   0x1   :  { %s347_s8 = smov 0  }
   0x2 LB: > { %s269_s9 = sadd.s32 4294967295, %s330_s8   ;;  %s33_s10 = sadd.s32 1, %s326_s7  ;;  %s330_s8 = sphi %s347_s8, %s7_s8   ;;  %s326_s7 = sphi %s345_s7, %s393_s7   ;;  %s322_s6 = sphi %s343_s6, %s392_s6  }
   0x3   : > { %p35_p0 = scmp.ge.s32.totalorder %s33_s10, 2  ;;  %p271_p1 = scmp.ge.s32.totalorder %s330_s8, 2 }
   0x4   : > { %s49_s11 = sand.u32 (!%p271_p1), 1, %s330_s8   ;;  %s273_s12 = sshll.u32 (!%p271_p1), %s326_s7, 2 }
   0x5   : > { %s395_s10 = smov (%p35_p0, %s33_s10), 0  ;;  %47 = sbr.rel (%p271_p1) target bundleno = 12 (0xc), region = 16 }
   0x6   : > { %s272_s13 = sshll.u32 (!%p271_p1), %s49_s11, 2  ;;  %s56_s16 = scalar_lea.vmem (!%p271_p1), %s390_s0, %s273_s12 }
   0x7   : > { %v72_v0 = vld [vmem:[%s56_s16] sm:$0xf] (!%p271_p1)  ;;  %s51_s17 = scalar_lea.vmem (!%p271_p1), [#allocation1], %s272_s13 }
   0x8   : > { %73 = vst [vmem:[%s51_s17] sm:$0xf] (!%p271_p1), %v72_v0 }
   0xc PF: > { %p274_p2 = scmp.ge.s32.totalorder %s330_s8, 1  ;;  %p89_p3 = scmp.lt.s32.totalorder %s330_s8, 3 }
   0xe   : > { %p90_p4 = pnand %p274_p2, %p89_p3 }
  0x10   : > { %93 = sbr.rel (%p90_p4) target bundleno = 511 (0x1ff), region = 50 }
  0x17   : > { %s370_s18 = sand.u32 1, %s269_s9   ;;  %v111_v1 = vlaneseq  ;;  %v332_v11 = vmov -1.0   ;;  %s278_s22 = sshll.u32 %s322_s6, 2 }
  0x18   : > { %s275_s19 = sshll.u32 %s370_s18, 2  ;;  %s178_s25 = scalar_lea.vmem %s391_s1, %s278_s22 }
  0x19   : > { %s102_s20 = scalar_lea.vmem [#allocation1], %s275_s19  ;;  %v112_v3 = vand.u32 127, %v111_v1  ;;  %v115_v4 = vshrl.u32 %v111_v1, 7  ;;  %s106_s21 = scalar_lea.vmem [#allocation3], %s275_s19 }
  0x1a   : > { %v109_v2 = vld [vmem:[%s102_s20] sm:$0xf] }
  0x1b   : > { %110 = vst [vmem:[#allocation0] sm:$0xf] %v109_v2  ;;  %vm113_vm0 = vcmp.lt.s32.totalorder %v112_v3, 3  ;;  %vm122_vm1 = vcmp.ge.s32.totalorder %v115_v4, %v112_v3  ;;  %vm117_vm2 = vcmp.eq.s32.totalorder %v115_v4, %v112_v3  ;;  %vm136_vm4 = vcmp.eq.s32.totalorder %v112_v3, 0 }
  0x1c   : > { %vm123_vm3 = vmand %vm122_vm1, %vm113_vm0  ;;  %vm133_vm5 = vcmp.eq.s32.totalorder %v112_v3, %v115_v4  ;;  %v137_v12 = vsel %vm136_vm4, 1.0, %v332_v11  ;;  %vm144_vm6 = vcmp.eq.s32.totalorder %v112_v3, 1  ;;  %vm154_vm7 = vcmp.eq.s32.totalorder %v112_v3, 2 }
  0x1d   : > { %v138_v13 = vsel %vm133_vm5, %v137_v12, 0.0 }
  0x22   : > { %v118_v5 = vld [vmem:[#allocation0] sm:$0xff] }
  0x23   : > { %v119_v6 = vsel %vm117_vm2, %v118_v5, 0.0  ;;  %v124_v7 = vsel %vm123_vm3, %v118_v5, 0.0 }
  0x24   : > { %120 = vadd.xlane.f32.xlu0 %v119_v6 }
  0xb1   : > { %v121_v8 = vpop.xlane.xlu0 %120 }
  0xb2   : > { %306 = vrcp.f32 %v121_v8  ;;  %vm161_vm8 = vweird.f32 %v121_v8 }
  0xbc   : > { %v307_v9 = vpop.eup %306 }
  0xbd   : > { %v126_v10 = vmul.f32 %v307_v9, %v124_v7 }
  0xbf   : > { %127 = vst [vmem:[#allocation4] sm:$0xff] %v126_v10 }
  0xc6   : > { %v140_v14 = vld [vmem:[#allocation4 + $0x1] ss:$0 sm:$0xff]  ;;  %v150_v17 = vld [vmem:[#allocation4 + $0x2] ss:$0 sm:$0xff] }
  0xc7   : > { %v141_v15 = vxor.u32 2147483648, %v140_v14  ;;  %v151_v19 = vxor.u32 2147483648, %v150_v17 }
  0xc9   : > { %v145_v16 = vmul.f32 %v141_v15, %v138_v13 }
  0xcb   : > { %146 = vadd.xlane.f32.xlu0 %v145_v16 }
 0x158   : > { %v147_v18 = vpop.xlane.xlu0 %146 }
 0x159   : > { %v148_v20 = vsel %vm144_vm6, %v147_v18, %v138_v13 }
 0x15a   : > { %v155_v21 = vmul.f32 %v151_v19, %v148_v20 }
 0x15c   : > { %156 = vadd.xlane.f32.xlu1 %v155_v21 }
 0x1e9   : > { %v157_v22 = vpop.xlane.xlu1 %156 }
 0x1ea   : > { %v158_v23 = vsel %vm154_vm7, %v157_v22, %v148_v20 }
 0x1eb   : > { %v160_v24 = vmul.f32 %v307_v9, %v158_v23 }
 0x1ed   : > { %v162_v25 = vsel %vm161_vm8, %v158_v23, %v160_v24 }
 0x1ee   : > { %163 = vst [vmem:[#allocation2] sm:$0xff] %v162_v25 }
 0x1f5   : > { %v167_v26 = vld [vmem:[#allocation2] sm:$0xf] }
 0x1f6   : > { %169 = vst [vmem:[%s106_s21] sm:$0xf] %v167_v26 }
 0x1fd   : > { %v194_v27 = vld [vmem:[%s106_s21] sm:$0xf] }
 0x1fe   : > { %195 = vst [vmem:[%s178_s25] sm:$0xf] %v194_v27 }
 0x1ff PF: > { %s7_s8 = sadd.s32 1, %s330_s8   ;;  %s392_s6 = smov %s326_s7 }
 0x200   : > { %p4_p5 = scmp.ge.s32.totalorder %s7_s8, 4   ;;  %s393_s7 = smov %s395_s10 }
 0x202   :  { %6 = sbr.rel (!%p4_p5) target bundleno = 2 (0x2), region = 112 }

// kernel: custom-call.78
= control target key start
LH: loop header
LB: loop body
LE: loop exit
PB: predicated region body
PF: predicated region fallthrough
CT: control target
= control target key end

     0   :  { %s342_s6 = smov 0   ;;  %s344_s7 = smov 0   ;;  %s389_s0 = inlined_call_operand.vmem [shape: f32[2,1,3,3], index: 0, kind: input, shape index: {}]   ;;  %s390_s1 = inlined_call_operand.vmem [shape: f32[2,1,3,3], index: 1, kind: output, shape index: {}]  }
   0x1   :  { %s346_s8 = smov 0  }
   0x2 LB: > { %s268_s9 = sadd.s32 4294967295, %s329_s8   ;;  %s33_s10 = sadd.s32 1, %s325_s7  ;;  %s329_s8 = sphi %s346_s8, %s7_s8   ;;  %s325_s7 = sphi %s344_s7, %s392_s7   ;;  %s321_s6 = sphi %s342_s6, %s391_s6  }
   0x3   : > { %p35_p0 = scmp.ge.s32.totalorder %s33_s10, 2  ;;  %p270_p1 = scmp.ge.s32.totalorder %s329_s8, 2 }
   0x4   : > { %s49_s11 = sand.u32 (!%p270_p1), 1, %s329_s8   ;;  %s272_s12 = sshll.u32 (!%p270_p1), %s325_s7, 2 }
   0x5   : > { %s394_s10 = smov (%p35_p0, %s33_s10), 0  ;;  %47 = sbr.rel (%p270_p1) target bundleno = 12 (0xc), region = 16 }
   0x6   : > { %s271_s13 = sshll.u32 (!%p270_p1), %s49_s11, 2  ;;  %s56_s16 = scalar_lea.vmem (!%p270_p1), %s389_s0, %s272_s12 }
   0x7   : > { %v72_v0 = vld [vmem:[%s56_s16] sm:$0xf] (!%p270_p1)  ;;  %s51_s17 = scalar_lea.vmem (!%p270_p1), [#allocation1], %s271_s13 }
   0x8   : > { %73 = vst [vmem:[%s51_s17] sm:$0xf] (!%p270_p1), %v72_v0 }
   0xc PF: > { %p273_p2 = scmp.ge.s32.totalorder %s329_s8, 1  ;;  %p89_p3 = scmp.lt.s32.totalorder %s329_s8, 3 }
   0xe   : > { %p90_p4 = pnand %p273_p2, %p89_p3 }
  0x10   : > { %93 = sbr.rel (%p90_p4) target bundleno = 511 (0x1ff), region = 50 }
  0x17   : > { %s369_s18 = sand.u32 1, %s268_s9   ;;  %v111_v1 = vlaneseq  ;;  %v331_v11 = vmov -1.0   ;;  %s277_s22 = sshll.u32 %s321_s6, 2 }
  0x18   : > { %s274_s19 = sshll.u32 %s369_s18, 2  ;;  %s177_s25 = scalar_lea.vmem %s390_s1, %s277_s22 }
  0x19   : > { %s102_s20 = scalar_lea.vmem [#allocation1], %s274_s19  ;;  %v112_v3 = vand.u32 127, %v111_v1  ;;  %v115_v4 = vshrl.u32 %v111_v1, 7  ;;  %s106_s21 = scalar_lea.vmem [#allocation3], %s274_s19 }
  0x1a   : > { %v109_v2 = vld [vmem:[%s102_s20] sm:$0xf] }
  0x1b   : > { %110 = vst [vmem:[#allocation0] sm:$0xf] %v109_v2  ;;  %vm113_vm0 = vcmp.lt.s32.totalorder %v112_v3, 3  ;;  %vm122_vm1 = vcmp.le.s32.totalorder %v115_v4, %v112_v3  ;;  %vm117_vm2 = vcmp.eq.s32.totalorder %v115_v4, %v112_v3  ;;  %vm136_vm4 = vcmp.eq.s32.totalorder %v112_v3, 2 }
  0x1c   : > { %vm123_vm3 = vmand %vm122_vm1, %vm113_vm0  ;;  %vm133_vm5 = vcmp.eq.s32.totalorder %v112_v3, %v115_v4  ;;  %v137_v12 = vsel %vm136_vm4, 1.0, %v331_v11  ;;  %vm144_vm6 = vcmp.eq.s32.totalorder %v112_v3, 1  ;;  %vm153_vm7 = vcmp.eq.s32.totalorder %v112_v3, 0 }
  0x1d   : > { %v138_v13 = vsel %vm133_vm5, %v137_v12, 0.0 }
  0x22   : > { %v118_v5 = vld [vmem:[#allocation0] sm:$0xff] }
  0x23   : > { %v119_v6 = vsel %vm117_vm2, %v118_v5, 0.0  ;;  %v124_v7 = vsel %vm123_vm3, %v118_v5, 0.0 }
  0x24   : > { %120 = vadd.xlane.f32.xlu0 %v119_v6 }
  0xb1   : > { %v121_v8 = vpop.xlane.xlu0 %120 }
  0xb2   : > { %305 = vrcp.f32 %v121_v8  ;;  %vm160_vm8 = vweird.f32 %v121_v8 }
  0xbc   : > { %v306_v9 = vpop.eup %305 }
  0xbd   : > { %v126_v10 = vmul.f32 %v306_v9, %v124_v7 }
  0xbf   : > { %127 = vst [vmem:[#allocation4] sm:$0xff] %v126_v10 }
  0xc6   : > { %v140_v14 = vld [vmem:[#allocation4 + $0x1] ss:$0 sm:$0xff]  ;;  %v149_v17 = vld [vmem:[#allocation4] ss:$0 sm:$0xff] }
  0xc7   : > { %v141_v15 = vxor.u32 2147483648, %v140_v14  ;;  %v150_v19 = vxor.u32 2147483648, %v149_v17 }
  0xc9   : > { %v145_v16 = vmul.f32 %v141_v15, %v138_v13 }
  0xcb   : > { %146 = vadd.xlane.f32.xlu0 %v145_v16 }
 0x158   : > { %v147_v18 = vpop.xlane.xlu0 %146 }
 0x159   : > { %v148_v20 = vsel %vm144_vm6, %v147_v18, %v138_v13 }
 0x15a   : > { %v154_v21 = vmul.f32 %v150_v19, %v148_v20 }
 0x15c   : > { %155 = vadd.xlane.f32.xlu1 %v154_v21 }
 0x1e9   : > { %v156_v22 = vpop.xlane.xlu1 %155 }
 0x1ea   : > { %v157_v23 = vsel %vm153_vm7, %v156_v22, %v148_v20 }
 0x1eb   : > { %v159_v24 = vmul.f32 %v306_v9, %v157_v23 }
 0x1ed   : > { %v161_v25 = vsel %vm160_vm8, %v157_v23, %v159_v24 }
 0x1ee   : > { %162 = vst [vmem:[#allocation2] sm:$0xff] %v161_v25 }
 0x1f5   : > { %v166_v26 = vld [vmem:[#allocation2] sm:$0xf] }
 0x1f6   : > { %168 = vst [vmem:[%s106_s21] sm:$0xf] %v166_v26 }
 0x1fd   : > { %v193_v27 = vld [vmem:[%s106_s21] sm:$0xf] }
 0x1fe   : > { %194 = vst [vmem:[%s177_s25] sm:$0xf] %v193_v27 }
 0x1ff PF: > { %s7_s8 = sadd.s32 1, %s329_s8   ;;  %s391_s6 = smov %s325_s7 }
 0x200   : > { %p4_p5 = scmp.ge.s32.totalorder %s7_s8, 4   ;;  %s392_s7 = smov %s394_s10 }
 0x202   :  { %6 = sbr.rel (!%p4_p5) target bundleno = 2 (0x2), region = 111 }

// kernel: mul.284
= control target key start
LH: loop header
LB: loop body
LE: loop exit
PB: predicated region body
PF: predicated region fallthrough
CT: control target
= control target key end

     0   :  { %s29_s10 = smov 3  ;;  %s10_s11 = smov 3  ;;  %vm12_vm0 = vcmask 31744   ;;  %vm19_vm1 = vcmask 130144   ;;  %vm26_vm2 = vcmask 97344   ;;  %vm33_vm3 = vcmask 64544   ;;  %s67_s0 = inlined_call_operand.vmem [shape: f32[2,4,4], index: 0, kind: input, shape index: {}]   ;;  %s68_s1 = inlined_call_operand.vmem [shape: f32[2,16], index: 1, kind: output, shape index: {}]  }
   0x1   :  { %v41_v0 = vld [vmem:[%s67_s0 + $0x4] sm:$0xf]  ;;  %v8_v1 = vld [vmem:[%s67_s0] sm:$0xf]  ;;  %s15_s0 = smov 3  ;;  %s22_s12 = smov 3 }
   0x2   :  { %7 = vst [vmem:[#allocation1 + $0x8] sm:$0xf] %v41_v0  ;;  %9 = vst [vmem:[#allocation1] sm:$0xf] %v8_v1  ;;  %s45_s13 = smov 12   ;;  %s46_s14 = smov 4  }
   0x3   :  { %s47_s15 = smov 8  }
   0x9   :  { %v16_v2 = vld [vmem:[#allocation1 + $0x3] ss:$8 sm:%s15_s0]   ;;  %v30_v3 = vld [vmem:[#allocation1 + $0x1] ss:$8 sm:%s29_s10]   ;;  %v11_v4 = vld [vmem:[#allocation1] ss:$8 sm:%s10_s11]  }
   0xa   :  { %17 = vrot.lane.b32.xlu0 %v16_v2, %s45_s13  ;;  %31 = vrot.lane.b32.xlu1 %v30_v3, %s46_s14  ;;  %v23_v5 = vld [vmem:[#allocation1 + $0x2] ss:$8 sm:%s22_s12]   ;;  %13 = vst.msk [vmem:[#allocation0] sm:$0x3] %vm12_vm0, %v11_v4  }
   0xe   :  { %24 = vrot.lane.b32.xlu0 %v23_v5, %s47_s15 }
  0x7c   :  { %v18_v6 = vpop.permute.xlu0 %17   ;;  %v32_v7 = vpop.permute.xlu1 %31  }
  0x7d   :  { %20 = vst.msk [vmem:[#allocation0] sm:$0x3] %vm19_vm1, %v18_v6  }
  0x80   :  { %v25_v8 = vpop.permute.xlu0 %24  }
  0x81   :  { %27 = vst.msk [vmem:[#allocation0] sm:$0x3] %vm26_vm2, %v25_v8  }
  0x82   :  { %34 = vst.msk [vmem:[#allocation0] sm:$0x3] %vm33_vm3, %v32_v7  }
  0x89   :  { %v38_v9 = vld [vmem:[#allocation0] sm:$0x3] }
  0x8a   :  { %40 = vst [vmem:[%s68_s1] sm:$0x3] %v38_v9 }

// kernel: mul.361
= control target key start
LH: loop header
LB: loop body
LE: loop exit
PB: predicated region body
PF: predicated region fallthrough
CT: control target
= control target key end

     0   :  { %s7_s6 = smov 3  ;;  %s21_s9 = smov 3  ;;  %vm4_vm0 = vcmask 64512   ;;  %vm11_vm1 = vcmask 523712   ;;  %vm18_vm2 = vcmask 458112   ;;  %vm25_vm3 = vcmask 392512   ;;  %s119_s0 = inlined_call_operand.vmem [shape: f32[2,8,8], index: 0, kind: input, shape index: {}]   ;;  %s120_s1 = inlined_call_operand.vmem [shape: f32[2,64], index: 1, kind: output, shape index: {}]  }
   0x1   :  { %v61_v0 = vld [vmem:[%s119_s0 + $0x7] ss:$8 sm:%s7_s6]   ;;  %s75_s10 = smov 56   ;;  %v63_v1 = vld [vmem:[%s119_s0 + $0x5] ss:$8 sm:%s21_s9]   ;;  %s14_s13 = smov 3 }
   0x2   :  { %9 = vrot.lane.b32.xlu0 %v61_v0, %s75_s10  ;;  %s76_s14 = smov 40   ;;  %v62_v2 = vld [vmem:[%s119_s0 + $0x6] ss:$8 sm:%s14_s13]   ;;  %s28_s17 = smov 3  ;;  %vm32_vm4 = vcmask 326912   ;;  %vm39_vm5 = vcmask 261312  }
   0x3   :  { %23 = vrot.lane.b32.xlu1 %v63_v1, %s76_s14  ;;  %v64_v3 = vld [vmem:[%s119_s0 + $0x4] ss:$8 sm:%s28_s17]   ;;  %s35_s20 = smov 3  ;;  %s42_s21 = smov 3  ;;  %vm46_vm6 = vcmask 195712   ;;  %vm53_vm7 = vcmask 130112  }
   0x4   :  { %s77_s22 = smov 48   ;;  %s78_s23 = smov 32   ;;  %v65_v4 = vld [vmem:[%s119_s0 + $0x3] ss:$8 sm:%s35_s20]   ;;  %v66_v5 = vld [vmem:[%s119_s0 + $0x2] ss:$8 sm:%s42_s21]  }
   0x5   :  { %s2_s26 = smov 3  ;;  %s49_s29 = smov 3 }
   0x6   :  { %16 = vrot.lane.b32.xlu0 %v62_v2, %s77_s22  ;;  %v3_v6 = vld [vmem:[%s119_s0] ss:$8 sm:%s2_s26]   ;;  %s79_s3 = smov 24   ;;  %s80_s4 = smov 16  }
   0x7   :  { %30 = vrot.lane.b32.xlu1 %v64_v3, %s78_s23  ;;  %5 = vst.msk [vmem:[#allocation0] sm:$0x3] %vm4_vm0, %v3_v6   ;;  %v67_v7 = vld [vmem:[%s119_s0 + $0x1] ss:$8 sm:%s49_s29]   ;;  %s81_s0 = smov 8  }
   0xa   :  { %37 = vrot.lane.b32.xlu0 %v65_v4, %s79_s3 }
   0xb   :  { %44 = vrot.lane.b32.xlu1 %v66_v5, %s80_s4 }
   0xe   :  { %51 = vrot.lane.b32.xlu0 %v67_v7, %s81_s0 }
  0x74   :  { %v10_v8 = vpop.permute.xlu0 %9  }
  0x75   :  { %12 = vst.msk [vmem:[#allocation0] sm:$0x3] %vm11_vm1, %v10_v8   ;;  %v24_v9 = vpop.permute.xlu1 %23  }
  0x78   :  { %v17_v10 = vpop.permute.xlu0 %16  }
  0x79   :  { %19 = vst.msk [vmem:[#allocation0] sm:$0x3] %vm18_vm2, %v17_v10   ;;  %v31_v11 = vpop.permute.xlu1 %30  }
  0x7a   :  { %26 = vst.msk [vmem:[#allocation0] sm:$0x3] %vm25_vm3, %v24_v9  }
  0x7b   :  { %33 = vst.msk [vmem:[#allocation0] sm:$0x3] %vm32_vm4, %v31_v11  }
  0x7c   :  { %v38_v12 = vpop.permute.xlu0 %37  }
  0x7d   :  { %40 = vst.msk [vmem:[#allocation0] sm:$0x3] %vm39_vm5, %v38_v12   ;;  %v45_v13 = vpop.permute.xlu1 %44  }
  0x7e   :  { %47 = vst.msk [vmem:[#allocation0] sm:$0x3] %vm46_vm6, %v45_v13  }
  0x80   :  { %v52_v14 = vpop.permute.xlu0 %51  }
  0x81   :  { %54 = vst.msk [vmem:[#allocation0] sm:$0x3] %vm53_vm7, %v52_v14  }
  0x88   :  { %v58_v15 = vld [vmem:[#allocation0] sm:$0x3] }
  0x89   :  { %60 = vst [vmem:[%s120_s1] sm:$0x3] %v58_v15 }

// kernel: unsup_loss_multistage.7
= control target key start
LH: loop header
LB: loop body
LE: loop exit
PB: predicated region body
PF: predicated region fallthrough
CT: control target
= control target key end

     0   :  { %7 = vsyncpa [#allocation4], 0  ;;  %s551_s0 = inlined_call_operand.vmem [shape: f32[2], index: 0, kind: input, shape index: {}]   ;;  %s552_s1 = inlined_call_operand.vmem [shape: s8[2,2,1,4,4], index: 1, kind: input, shape index: {}]   ;;  %s553_s2 = inlined_call_operand.vmem [shape: f32[2], index: 2, kind: output, shape index: {}]  }
   0x1   :  { %8 = vsyncpa [#allocation5], 0  ;;  %s449_s9 = smov 0   ;;  %s451_s10 = smov 0  }
   0x2   :  { %s453_s11 = smov 0   ;;  %s455_s12 = smov 0  }
   0x3   :  { %s457_s13 = smov 0  }
   0x4 LB: > { %s281_s14 = sadd.s32 4294967295, %s430_s13   ;;  %s23_s15 = sadd.s32 1, %s422_s11  ;;  %s430_s13 = sphi %s457_s13, %s14_s13   ;;  %s426_s12 = sphi %s455_s12, %s560_s12   ;;  %s422_s11 = sphi %s453_s11, %s559_s11   ;;  %s418_s10 = sphi %s451_s10, %s558_s10   ;;  %s414_s9 = sphi %s449_s9, %s557_s9  }
   0x5   : > { %p24_p0 = scmp.ge.s32.totalorder %s23_s15, 2  ;;  %s26_s16 = sadd.s32 1, %s426_s12 }
   0x6   : > { %p282_p1 = scmp.ge.s32.totalorder %s430_s13, 1  ;;  %p101_p2 = scmp.lt.s32.totalorder %s430_s13, 5 }
   0x7   : > { %s562_s15 = smov (%p24_p0, %s23_s15), 0  ;;  %s564_s16 = smov (!%p24_p0, %s26_s16), %s426_s12 }
   0x8   : > { %p482_p3 = pnand %p282_p1, %p101_p2  ;;  %p28_p4 = scmp.ge.s32.totalorder %s564_s16, 2 }
   0x9   : > { %p488_p5 = scmp.eq.s32.totalorder %s281_s14, 0  ;;  %s114_s21 = sshll.u32 %s551_s0, 4  ;;  %s115_s21 = int_to_ptr.vmem [resolvable:$true] %s114_s21 }
   0xa   : > { %p305_p6 = pneg %p482_p3  ;;  %s566_s16 = smov (%p28_p4, %s564_s16), 0 }
   0xb   : > { %s355_s22 = scalar_lea.vmem %s115_s21, 16  ;;  %p363_p12 = scmp.lt.s32.totalorder %s115_s21, %s115_s21 }
   0xc   : > { %p306_p7 = pnand %p488_p5, %p305_p6  ;;  %p356_p8 = scmp.ne.s32.totalorder %s115_s21, %s355_s22 }
   0xd   : > { %p364_p13 = scmp.lt.s32.totalorder %s355_s22, %s355_s22 }
   0xe   : > { %p357_p9 = pneg %p306_p7 }
   0xf   : > { %p365_p0 = por %p364_p13, %p363_p12 }
  0x10   : > { %p358_p10 = pnand %p357_p9, %p356_p8 }
  0x12   : > { %p359_p11 = pneg %p358_p10 }
  0x14   : > { %p366_p1 = pnand %p365_p0, %p359_p11 }
  0x16   : > { %369 = shalt.err (!%p366_p1)
}
  0x17   : > { %s432_s23 = smov [#allocation3]   ;;  %137 = sbr.rel (%p482_p3) target bundleno = 293 (0x125), region = 28 }
  0x18   : > { %308 = dma.vmem_to_smem (!%p306_p7), %s115_s21, 16, %s432_s23, [#allocation4]  }
  0x1e   : > { %405 = dma.done.wait (%p488_p5), [#allocation4], 16  }
  0x1f   : > { %407 = vsyncadd (%p488_p5), [#allocation4], 4294967280 }
  0x20   : > { %143 = sfence }
  0x21   : > { %p157_p2 = scmp.lt.s32.totalorder %s414_s9, 1  ;;  %p159_p4 = scmp.lt.s32.totalorder %s418_s10, 1 }
  0x22   : > { %s167_s28 = sld [smem:[#allocation3 + %s414_s9]]  ;;  %p288_p3 = scmp.ne.s32.totalorder %s414_s9, 0 }
  0x23   : > { %s158_s24 = scalar_select %p157_p2, %s414_s9, 1 }
  0x24   : > { %s160_s25 = scalar_select %p159_p4, %s418_s10, 1 }
  0x25   : > { %s287_s26 = sshll.u32 %s158_s24, 1  ;;  %vm176_vm0 = vcmask (!%p288_p3), 27648  }
  0x26   : > { %s162_s27 = sadd.s32 %s287_s26, %s160_s25 }
  0x27   : > { %s163_s3 = scalar_lea.vmem %s552_s1, %s162_s27 }
  0x28   : > { %v164_v0 = vld [vmem:[%s163_s3] sm:$0x1]  ;;  %v170_v4 = vstv %s167_s28 }
  0x29   : > { %v165_v1 = vunpack.c.0.s8 %v164_v0 }
  0x2b   : > { %v166_v2 = vcvt.s32.f32 %v165_v1  ;;  %175 = sbr.rel (%p288_p3) target bundleno = 52 (0x34), region = 36 }
  0x2d   : > { %v168_v3 = vsub.f32 1.0, %v166_v2 }
  0x2f   : > { %v169_v5 = vmul.f32 10000.0, %v168_v3 }
  0x31   : > { %v171_v6 = vadd.f32 %v170_v4, %v169_v5 }
  0x33   : > { %177 = vst.msk [vmem:[#allocation2] sm:$0xf] %vm176_vm0, %v171_v6 }
  0x34 PF: > { %p289_p5 = scmp.le.s32.totalorder %s414_s9, 0 }
  0x35   : > { %vm184_vm1 = vcmask (!%p289_p5), 27648  }
  0x36   : > { %181 = sbr.rel (%p289_p5) target bundleno = 62 (0x3e), region = 40 }
  0x3a   : > { %v182_v7 = vld [vmem:[#allocation2] sm:$0xf] (!%p289_p5) }
  0x3b   : > { %v183_v8 = vmin.f32 (!%p289_p5), %v182_v7, %v171_v6 }
  0x3d   : > { %185 = vst.msk [vmem:[#allocation2] sm:$0xf] %vm184_vm1, %v183_v8 }
  0x3e PF: > { %p290_p6 = scmp.ne.s32.totalorder %s414_s9, 1 }
  0x3f   : > { %vm193_vm2 = vcmask (!%p290_p6), 27648   ;;  %s204_s5 = scalar_lea.smem (!%p290_p6), [#allocation6], %s418_s10 }
  0x40   : > { %189 = sbr.rel (%p290_p6) target bundleno = 277 (0x115), region = 44 }
  0x44   : > { %v190_v9 = vld [vmem:[#allocation2] sm:$0xf] (!%p290_p6) }
  0x45   : > { %vm191_vm3 = vcmp.lt.f32.partialorder (!%p290_p6), %v190_v9, 10000.0 }
  0x46   : > { %v192_v10 = vsel (!%p290_p6), %vm191_vm3, %v190_v9, 0.0 }
  0x47   : > { %v194_v11 = vsel %vm193_vm2, %v192_v10, 0.0 }
  0x48   : > { %195 = vadd.xlane.f32.xlu0 %v194_v11 }
  0xd5   : > { %v196_v12 = vpop.xlane.xlu0 %195 }
  0xd6   : > { %v197_v13 = vrot.slane %v196_v12, 4 }
  0xd8   : > { %v198_v14 = vadd.f32 %v197_v13, %v196_v12 }
  0xda   : > { %v199_v15 = vrot.slane %v198_v14, 2 }
  0xdc   : > { %v200_v16 = vadd.f32 %v199_v15, %v198_v14 }
  0xde   : > { %v201_v17 = vrot.slane %v200_v16, 1 }
  0xe0   : > { %v202_v18 = vadd.f32 %v201_v17, %v200_v16 }
  0xe2   : > { %295 = vpush %v202_v18 }
 0x113   : > { %s296_s4 = spop %295 }
 0x114   : > { %205 = sst [smem:[%s204_s5]] %s296_s4 }
 0x115 PF: > { %p521_p7 = scmp.eq.s32.totalorder %s281_s14, 3  ;;  %s213_s9 = sshll.u32 %s553_s2, 4  ;;  %s214_s9 = int_to_ptr.vmem [resolvable:$true] %s213_s9 }
 0x116   : > { %s370_s17 = scalar_lea.vmem %s214_s9, 16  ;;  %p377_p11 = scmp.lt.s32.totalorder %s214_s9, %s214_s9 }
 0x117   : > { %p371_p8 = scmp.ne.s32.totalorder %s214_s9, %s370_s17  ;;  %p378_p12 = scmp.lt.s32.totalorder %s370_s17, %s370_s17 }
 0x119   : > { %p372_p9 = pnand %p371_p8, %p521_p7  ;;  %p379_p13 = por %p378_p12, %p377_p11 }
 0x11b   : > { %p373_p10 = pneg %p372_p9 }
 0x11d   : > { %p380_p0 = pnand %p379_p13, %p373_p10 }
 0x11f   : > { %383 = shalt.err (!%p380_p0)
}
 0x120   : > { %s433_s10 = smov [#allocation6]  }
 0x121   : > { %302 = dma.smem_to_vmem (%p521_p7), %s433_s10, 16, %s214_s9, [#allocation5]  }
 0x122   : > { %409 = dma.done.wait (%p521_p7), [#allocation5], 16  }
 0x123   : > { %411 = vsyncadd (%p521_p7), [#allocation5], 4294967280 }
 0x124   : > { %221 = sfence }
 0x125 PF: > { %s14_s13 = sadd.s32 1, %s430_s13   ;;  %s557_s9 = smov %s422_s11 }
 0x126   : > { %p11_p1 = scmp.ge.s32.totalorder %s14_s13, 6   ;;  %s558_s10 = smov %s426_s12 }
 0x127   : > { %s559_s11 = smov %s562_s15  ;;  %s560_s12 = smov %s566_s16 }
 0x128   :  { %13 = sbr.rel (!%p11_p1) target bundleno = 4 (0x4), region = 73 }
 0x12f   :  { %227 = vsyncpa [#allocation4], 1 }
 0x130   :  { %229 = vsyncpa [#allocation4 + $0x1], 1 }
 0x131   :  { %230 = vsyncpa [#allocation5], 1 }
 0x132   :  { %232 = vsyncpa [#allocation5 + $0x1], 1 }

// kernel: unsup_loss_multistage.6
= control target key start
LH: loop header
LB: loop body
LE: loop exit
PB: predicated region body
PF: predicated region fallthrough
CT: control target
= control target key end

     0   :  { %11 = vsyncpa [#allocation5], 0  ;;  %s1939_s0 = inlined_call_operand.vmem [shape: f32[2,2,3,4,4], index: 0, kind: input, shape index: {}]   ;;  %s1940_s1 = inlined_call_operand.vmem [shape: s8[2,2,1,4,4], index: 1, kind: input, shape index: {}]   ;;  %s1941_s2 = inlined_call_operand.vmem [shape: f32[2,3,4,4], index: 2, kind: input, shape index: {}]   ;;  %s1942_s3 = inlined_call_operand.vmem [shape: f32[2,1,4,4], index: 3, kind: input, shape index: {}]   ;;  %s1943_s4 = inlined_call_operand.vmem [shape: f32[4,4], index: 4, kind: output, shape index: {0}]   ;;  %s1944_s5 = inlined_call_operand.vmem [shape: f32[2,2], index: 5, kind: output, shape index: {1}]  }
   0x1   :  { %12 = vsyncpa [#allocation7], 0  ;;  %s1405_s18 = smov 0   ;;  %s1407_s19 = smov 0  }
   0x2   :  { %s1409_s20 = smov 0   ;;  %s1411_s21 = smov 0  }
   0x3   :  { %s1413_s22 = smov 0  }
   0x4 LB: > { %s27_s24 = sadd.s32 1, %s1359_s20  ;;  %s30_s25 = sadd.s32 1, %s1363_s21  ;;  %s1367_s22 = sphi %s1413_s22, %s18_s22   ;;  %s1363_s21 = sphi %s1411_s21, %s1964_s21   ;;  %s1359_s20 = sphi %s1409_s20, %s1963_s20   ;;  %s1355_s19 = sphi %s1407_s19, %s1962_s19   ;;  %s1351_s18 = sphi %s1405_s18, %s1961_s18  }
   0x5   : > { %p28_p0 = scmp.ge.s32.totalorder %s27_s24, 2  ;;  %p1179_p1 = scmp.ge.s32.totalorder %s1367_s22, 1 }
   0x6   : > { %p233_p2 = scmp.lt.s32.totalorder %s1367_s22, 5 }
   0x7   : > { %s1966_s24 = smov (%p28_p0, %s27_s24), 0  ;;  %s1968_s25 = smov (!%p28_p0, %s30_s25), %s1363_s21 }
   0x8   : > { %1945 = sst [smem:[#allocation10_spill]] %s1966_s24  ;;  %p234_p3 = pnand %p1179_p1, %p233_p2 }
   0x9   : > { %p32_p4 = scmp.ge.s32.totalorder %s1968_s25, 2  ;;  %p276_p5 = scmp.lt.s32.totalorder (!%p234_p3), %s1351_s18, 1  ;;  %v310_v0 = vlaneseq (!%p234_p3) }
   0xa   : > { %237 = sbr.rel (%p234_p3) target bundleno = 786 (0x312), region = 36  ;;  %p278_p6 = scmp.lt.s32.totalorder (!%p234_p3), %s1355_s19, 1 }
   0xb   : > { %s1970_s25 = smov (%p32_p4, %s1968_s25), 0  ;;  %v1443_v1 = vand.u32 (!%p234_p3), 127, %v310_v0  ;;  %v1445_v2 = vshrl.u32 (!%p234_p3), %v310_v0, 7  ;;  %p1184_p7 = scmp.ne.s32.totalorder (!%p234_p3), %s1351_s18, 0 }
   0xc   : > { %1946 = sst [smem:[#allocation11_spill]] %s1970_s25 }
   0xd   : > { %vm314_vm0 = vcmp.lt.s32.totalorder (!%p234_p3), %v1443_v1, 3  ;;  %vm315_vm1 = vcmp.lt.s32.totalorder (!%p234_p3), %v1445_v2, 3  ;;  %vm316_vm2 = vcmp.lt.s32.totalorder (!%p234_p3), %v1443_v1, 2  ;;  %vm317_vm3 = vcmp.lt.s32.totalorder (!%p234_p3), %v1445_v2, 2 }
   0xe   : > { %vm1452_vm4 = vmand (!%p234_p3), %vm316_vm2, %vm317_vm3 }
  0x11   : > { %s277_s26 = scalar_select %p276_p5, %s1351_s18, 1 }
  0x12   : > { %s279_s27 = scalar_select %p278_p6, %s1355_s19, 1 }
  0x13   : > { %s1211_s28 = smul.u32 6, %s277_s26  ;;  %s1181_s29 = sshll.u32 %s277_s26, 1  ;;  %vm367_vm5 = vcmask (!%p1184_p7), 1042432   ;;  %vm390_vm6 = vcmask (!%p1184_p7), 27648   ;;  %vm335_vm7 = vcmask (!%p1184_p7), 23552   ;;  %vm351_vm8 = vcmask (!%p1184_p7), 15360  }
  0x14   : > { %s1210_s30 = smul.u32 3, %s279_s27  ;;  %s290_s6 = sadd.s32 %s1181_s29, %s279_s27  ;;  %vm380_vm9 = vcmask (!%p1184_p7), 1041408  }
  0x15   : > { %s291_s9 = scalar_lea.vmem %s1940_s1, %s290_s6  ;;  %s1212_s10 = smul.u32 12, %s279_s27 }
  0x16   : > { %s282_s11 = sadd.s32 %s1211_s28, %s1210_s30  ;;  %s1183_s12 = sshll.u32 %s279_s27, 2  ;;  %v307_v4 = vld [vmem:[%s291_s9] sm:$0x1] }
  0x17   : > { %s1180_s13 = sshll.u32 %s282_s11, 2  ;;  %s296_s16 = scalar_lea.vmem %s1941_s2, %s1212_s10  ;;  %v308_v5 = vunpack.c.0.s8 %v307_v4 }
  0x18   : > { %s284_s29 = scalar_lea.vmem %s1939_s0, %s1180_s13  ;;  %s300_s24 = scalar_lea.vmem %s1942_s3, %s1183_s12  ;;  %v1468_v6 = vld [vmem:[%s296_s16] sm:$0xf]  ;;  %v1470_v7 = vld [vmem:[%s296_s16 + $0x4] sm:$0xf]  ;;  %v1472_v8 = vld [vmem:[%s296_s16 + $0x8] sm:$0xf] }
  0x19   : > { %v1474_v9 = vld [vmem:[%s284_s29] sm:$0xf]  ;;  %v1476_v10 = vld [vmem:[%s284_s29 + $0x4] sm:$0xf]  ;;  %v1478_v11 = vld [vmem:[%s284_s29 + $0x8] sm:$0xf]  ;;  %v1480_v12 = vcvt.s32.f32 %v308_v5  ;;  %v1515_v42 = vmul.f32 (!%p1184_p7), %v1468_v6, %v1468_v6  ;;  %v1521_v43 = vmul.f32 (!%p1184_p7), %v1472_v8, %v1472_v8  ;;  %v1527_v44 = vmul.f32 (!%p1184_p7), %v1470_v7, %v1470_v7 }
  0x1a   : > { %322 = sbr.rel (%p1184_p7) target bundleno = 385 (0x181), region = 40  ;;  %v483_v13 = vrot.slane (!%p1184_p7), %v1468_v6, 1  ;;  %s1369_s23 = smov (!%p1184_p7), 127   ;;  %v484_v14 = vrot.slane (!%p1184_p7), %v1470_v7, 1  ;;  %v485_v15 = vrot.slane (!%p1184_p7), %v1472_v8, 1 }
  0x1b   : > { %330 = vrot.lane.b32.xlu1 (!%p1184_p7), %v1472_v8, %s1369_s23  ;;  %326 = vrot.lane.b32.xlu0 (!%p1184_p7), %v1468_v6, %s1369_s23  ;;  %v1490_v16 = vld [vmem:[%s300_s24] sm:$0xf] (!%p1184_p7)  ;;  %s1370_s24 = smov (!%p1184_p7), 126   ;;  %s1185_s25 = sshll.u32 (!%p1184_p7), %s1355_s19, 7 }
  0x1c   : > { %v489_v17 = vsel (!%p1184_p7), %vm367_vm5, %v483_v13, 0.0  ;;  %v490_v18 = vsel (!%p1184_p7), %vm367_vm5, %v484_v14, 0.0  ;;  %v491_v19 = vsel (!%p1184_p7), %vm367_vm5, %v485_v15, 0.0  ;;  %v476_v34 = vrot.slane (!%p1184_p7), %v1490_v16, 1  ;;  %s534_s27 = scalar_lea.smem (!%p1184_p7), [#allocation6], %s1185_s25 }
  0x1d   : > { %v492_v20 = vsub.f32 (!%p1184_p7), %v1468_v6, %v489_v17  ;;  %v493_v21 = vsub.f32 (!%p1184_p7), %v1470_v7, %v490_v18  ;;  %v494_v22 = vsub.f32 (!%p1184_p7), %v1472_v8, %v491_v19  ;;  %s1103_s28 = scalar_lea.smem (!%p1184_p7), %s534_s27, 1 [#allocation6] }
  0x1e   : > { %v478_v35 = vsel (!%p1184_p7), %vm367_vm5, %v476_v34, 0.0 }
  0x1f   : > { %471 = vrot.lane.b32.xlu1 (!%p1184_p7), %v1490_v16, %s1369_s23  ;;  %328 = vrot.lane.b32.xlu0 (!%p1184_p7), %v1470_v7, %s1369_s23  ;;  %v508_v23 = vand.u32 (!%p1184_p7), 2147483647, %v492_v20  ;;  %v509_v24 = vand.u32 (!%p1184_p7), 2147483647, %v493_v21  ;;  %v510_v25 = vand.u32 (!%p1184_p7), 2147483647, %v494_v22  ;;  %v479_v36 = vsub.f32 (!%p1184_p7), %v1490_v16, %v478_v35 }
  0x21   : > { %v511_v26 = vsel %vm390_vm6, %v508_v23, 0.0  ;;  %v512_v27 = vsel %vm390_vm6, %v509_v24, 0.0  ;;  %v514_v28 = vsel %vm390_vm6, %v510_v25, 0.0 }
  0x22   : > { %v513_v29 = vadd.f32 %v512_v27, %v511_v26 }
  0x24   : > { %v515_v30 = vadd.f32 %v514_v28, %v513_v29 }
  0x26   : > { %v516_v31 = vmul.f32 0.33333334, %v515_v30 }
  0x28   : > { %v517_v32 = vsub.f32 0.0, %v516_v31 }
  0x2a   : > { %v518_v33 = vmul.f32 1.442695, %v517_v32 }
  0x2c   : > { %1283 = vpow2.f32 %v518_v33 }
  0x36   : > { %v1284_v37 = vpop.eup %1283 }
  0x37   : > { %v536_v38 = vmul.f32 %v1284_v37, %v479_v36 }
  0x39   : > { %v537_v39 = vand.u32 2147483647, %v536_v38 }
  0x3b   : > { %v538_v40 = vsel %vm315_vm1, %v537_v39, 0.0 }
  0x3c   : > { %v539_v41 = vsel %vm390_vm6, %v538_v40, 0.0 }
  0x43   : > { %540 = vadd.xlane.f32.xlu1 %v539_v41 }
  0x54   : > { %344 = vrot.lane.b32.xlu1 %v1470_v7, %s1370_s24 }
  0x58   : > { %400 = vrot.lane.b32.xlu1 %v1515_v42, %s1369_s23 }
  0x5c   : > { %404 = vrot.lane.b32.xlu1 %v1521_v43, %s1369_s23 }
  0x60   : > { %417 = vrot.lane.b32.xlu1 %v1527_v44, %s1370_s24 }
  0x8d   : > { %v327_v45 = vpop.permute.xlu0 %326  ;;  %v331_v46 = vpop.permute.xlu1 %330 }
  0x8e   : > { %v336_v47 = vsel %vm335_vm7, %v327_v45, 0.0  ;;  %v338_v48 = vsel %vm335_vm7, %v331_v46, 0.0 }
  0x8f   : > { %v480_v49 = vsub.f32 %v1468_v6, %v336_v47  ;;  %v482_v50 = vsub.f32 %v1472_v8, %v338_v48  ;;  %v339_v38 = vadd.f32 %v336_v47, %v1468_v6 }
  0x91   : > { %v329_v51 = vpop.permute.xlu0 %328  ;;  %v495_v53 = vand.u32 2147483647, %v480_v49  ;;  %v497_v55 = vand.u32 2147483647, %v482_v50  ;;  %v472_v4 = vpop.permute.xlu1 %471 }
  0x92   : > { %v337_v52 = vsel %vm335_vm7, %v329_v51, 0.0  ;;  %v474_v5 = vsel %vm335_vm7, %v472_v4, 0.0  ;;  %v341_v51 = vadd.f32 %v338_v48, %v1472_v8 }
  0x93   : > { %v481_v54 = vsub.f32 %v1470_v7, %v337_v52  ;;  %v498_v57 = vsel %vm390_vm6, %v495_v53, 0.0  ;;  %v501_v59 = vsel %vm390_vm6, %v497_v55, 0.0  ;;  %v475_v13 = vsub.f32 %v1490_v16, %v474_v5 }
  0x94   : > { %v340_v16 = vadd.f32 %v337_v52, %v1470_v7 }
  0x95   : > { %v496_v56 = vand.u32 2147483647, %v481_v54 }
  0x97   : > { %v499_v58 = vsel %vm390_vm6, %v496_v56, 0.0 }
  0x98   : > { %v500_v60 = vadd.f32 %v499_v58, %v498_v57 }
  0x9a   : > { %v502_v61 = vadd.f32 %v501_v59, %v500_v60 }
  0x9c   : > { %v504_v62 = vmul.f32 0.33333334, %v502_v61 }
  0x9e   : > { %v505_v63 = vsub.f32 0.0, %v504_v62 }
  0xa0   : > { %v506_v0 = vmul.f32 1.442695, %v505_v63 }
  0xa2   : > { %1285 = vpow2.f32 %v506_v0 }
  0xac   : > { %v1286_v14 = vpop.eup %1285 }
  0xad   : > { %v520_v15 = vmul.f32 %v1286_v14, %v475_v13 }
  0xaf   : > { %v521_v17 = vand.u32 2147483647, %v520_v15 }
  0xb1   : > { %v522_v18 = vsel %vm314_vm0, %v521_v17, 0.0 }
  0xb2   : > { %v523_v19 = vsel %vm390_vm6, %v522_v18, 0.0 }
  0xb3   : > { %524 = vadd.xlane.f32.xlu0 %v523_v19 }
  0xc9   : > { %342 = vrot.lane.b32.xlu0 %v1468_v6, %s1370_s24 }
  0xcd   : > { %346 = vrot.lane.b32.xlu0 %v1472_v8, %s1370_s24 }
  0xd0   : > { %v541_v20 = vpop.xlane.xlu1 %540 }
  0xd1   : > { %402 = vrot.lane.b32.xlu0 %v1527_v44, %s1369_s23  ;;  %v542_v31 = vrot.slane %v541_v20, 4 }
  0xd3   : > { %v543_v32 = vadd.f32 %v542_v31, %v541_v20 }
  0xd4   : > { %v345_v21 = vpop.permute.xlu1 %344 }
  0xd5   : > { %v353_v22 = vsel %vm351_vm8, %v345_v21, 0.0  ;;  %415 = vrot.lane.b32.xlu0 %v1515_v42, %s1370_s24  ;;  %v544_v34 = vrot.slane %v543_v32, 2 }
  0xd6   : > { %v356_v23 = vadd.f32 %v353_v22, %v340_v16 }
  0xd7   : > { %v545_v41 = vadd.f32 %v544_v34, %v543_v32 }
  0xd8   : > { %v362_v24 = vrot.slane %v356_v23, 1  ;;  %v375_v25 = vrot.slane %v356_v23, 2  ;;  %v401_v33 = vpop.permute.xlu1 %400 }
  0xd9   : > { %419 = vrot.lane.b32.xlu0 %v1521_v43, %s1370_s24  ;;  %v546_v55 = vrot.slane %v545_v41, 1  ;;  %v409_v61 = vsel %vm335_vm7, %v401_v33, 0.0 }
  0xda   : > { %v369_v26 = vsel %vm367_vm5, %v362_v24, 0.0  ;;  %v382_v28 = vsel %vm380_vm9, %v375_v25, 0.0  ;;  %v412_v17 = vadd.f32 %v409_v61, %v1515_v42 }
  0xdb   : > { %v372_v27 = vadd.f32 %v369_v26, %v356_v23  ;;  %v547_v5 = vadd.f32 %v546_v55, %v545_v41 }
  0xdc   : > { %v405_v40 = vpop.permute.xlu1 %404 }
  0xdd   : > { %v385_v29 = vadd.f32 %v382_v28, %v372_v27  ;;  %v411_v21 = vsel %vm335_vm7, %v405_v40, 0.0 }
  0xde   : > { %v414_v42 = vadd.f32 %v411_v21, %v1521_v43 }
  0xdf   : > { %v1559_v30 = vmul.f32 0.11111111, %v385_v29 }
  0xe0   : > { %v418_v59 = vpop.permute.xlu1 %417 }
  0xe1   : > { %392 = vst.msk [vmem:[#allocation2 + $0x4] sm:$0xf] %vm390_vm6, %v1559_v30  ;;  %v425_v15 = vsel %vm351_vm8, %v418_v59, 0.0 }
 0x140   : > { %v525_v35 = vpop.xlane.xlu0 %524 }
 0x141   : > { %v526_v36 = vrot.slane %v525_v35, 4 }
 0x143   : > { %v527_v37 = vadd.f32 %v526_v36, %v525_v35 }
 0x144   : > { %v343_v39 = vpop.permute.xlu0 %342 }
 0x145   : > { %v528_v45 = vrot.slane %v527_v37, 2  ;;  %v352_v46 = vsel %vm351_vm8, %v343_v39, 0.0 }
 0x146   : > { %v355_v49 = vadd.f32 %v352_v46, %v339_v38 }
 0x147   : > { %v529_v50 = vadd.f32 %v528_v45, %v527_v37 }
 0x148   : > { %v361_v52 = vrot.slane %v355_v49, 1  ;;  %v374_v53 = vrot.slane %v355_v49, 2  ;;  %v347_v54 = vpop.permute.xlu0 %346 }
 0x149   : > { %v354_v56 = vsel %vm351_vm8, %v347_v54, 0.0  ;;  %v530_v57 = vrot.slane %v529_v50, 1 }
 0x14a   : > { %v368_v58 = vsel %vm367_vm5, %v361_v52, 0.0  ;;  %v357_v47 = vadd.f32 %v354_v56, %v341_v51  ;;  %v381_v63 = vsel %vm380_vm9, %v374_v53, 0.0 }
 0x14b   : > { %v371_v60 = vadd.f32 %v368_v58, %v355_v49  ;;  %v531_v62 = vadd.f32 %v530_v57, %v529_v50  ;;  %v461_v49 = vmul.f32 %v1559_v30, %v1559_v30 }
 0x14c   : > { %v363_v0 = vrot.slane %v357_v47, 1  ;;  %v376_v4 = vrot.slane %v357_v47, 2  ;;  %v403_v48 = vpop.permute.xlu0 %402 }
 0x14d   : > { %v384_v13 = vadd.f32 %v381_v63, %v371_v60  ;;  %v410_v14 = vsel %vm335_vm7, %v403_v48, 0.0  ;;  %1213 = vpush %v531_v62 }
 0x14e   : > { %v370_v18 = vsel %vm367_vm5, %v363_v0, 0.0  ;;  %v413_v19 = vadd.f32 %v410_v14, %v1527_v44  ;;  %1215 = vpush %v547_v5  ;;  %v383_v22 = vsel %vm380_vm9, %v376_v4, 0.0 }
 0x14f   : > { %v387_v20 = vmul.f32 0.11111111, %v384_v13  ;;  %v373_v16 = vadd.f32 %v370_v18, %v357_v47 }
 0x150   : > { %v428_v23 = vadd.f32 %v425_v15, %v413_v19  ;;  %v416_v24 = vpop.permute.xlu0 %415 }
 0x151   : > { %391 = vst.msk [vmem:[#allocation2] sm:$0xf] %vm390_vm6, %v387_v20  ;;  %v386_v25 = vadd.f32 %v383_v22, %v373_v16  ;;  %v424_v26 = vsel %vm351_vm8, %v416_v24, 0.0  ;;  %v460_v54 = vmul.f32 %v387_v20, %v387_v20 }
 0x152   : > { %v434_v27 = vrot.slane %v428_v23, 1  ;;  %v446_v28 = vrot.slane %v428_v23, 2  ;;  %v427_v29 = vadd.f32 %v424_v26, %v412_v17 }
 0x153   : > { %v389_v44 = vmul.f32 0.11111111, %v386_v25 }
 0x154   : > { %v440_v31 = vsel %vm367_vm5, %v434_v27, 0.0  ;;  %v452_v32 = vsel %vm380_vm9, %v446_v28, 0.0  ;;  %v433_v33 = vrot.slane %v427_v29, 1  ;;  %v445_v34 = vrot.slane %v427_v29, 2  ;;  %v420_v35 = vpop.permute.xlu0 %419 }
 0x155   : > { %393 = vst.msk [vmem:[#allocation2 + $0x8] sm:$0xf] %vm390_vm6, %v389_v44  ;;  %v443_v36 = vadd.f32 %v440_v31, %v428_v23  ;;  %v426_v37 = vsel %vm351_vm8, %v420_v35, 0.0  ;;  %v462_v59 = vmul.f32 %v389_v44, %v389_v44 }
 0x156   : > { %v439_v38 = vsel %vm367_vm5, %v433_v33, 0.0  ;;  %v451_v43 = vsel %vm380_vm9, %v445_v34, 0.0  ;;  %v429_v39 = vadd.f32 %v426_v37, %v414_v42 }
 0x157   : > { %v455_v40 = vadd.f32 %v452_v32, %v443_v36  ;;  %v442_v41 = vadd.f32 %v439_v38, %v427_v29 }
 0x158   : > { %v435_v45 = vrot.slane %v429_v39, 1  ;;  %v447_v46 = vrot.slane %v429_v39, 2 }
 0x159   : > { %v458_v50 = vmul.f32 0.11111111, %v455_v40  ;;  %v454_v51 = vadd.f32 %v451_v43, %v442_v41 }
 0x15a   : > { %v441_v52 = vsel %vm367_vm5, %v435_v45, 0.0  ;;  %v453_v53 = vsel %vm380_vm9, %v447_v46, 0.0 }
 0x15b   : > { %v464_v55 = vsub.f32 %v458_v50, %v461_v49  ;;  %v457_v56 = vmul.f32 0.11111111, %v454_v51  ;;  %v444_v57 = vadd.f32 %v441_v52, %v429_v39 }
 0x15d   : > { %467 = vst.msk [vmem:[#allocation3 + $0x4] sm:$0xf] %vm390_vm6, %v464_v55  ;;  %v463_v58 = vsub.f32 %v457_v56, %v460_v54  ;;  %v456_v47 = vadd.f32 %v453_v53, %v444_v57 }
 0x15f   : > { %466 = vst.msk [vmem:[#allocation3] sm:$0xf] %vm390_vm6, %v463_v58  ;;  %v459_v60 = vmul.f32 0.11111111, %v456_v47 }
 0x161   : > { %v465_v30 = vsub.f32 %v459_v60, %v462_v59 }
 0x163   : > { %468 = vst.msk [vmem:[#allocation3 + $0x8] sm:$0xf] %vm390_vm6, %v465_v30 }
 0x17e   : > { %s1214_s30 = spop %1213 }
 0x17f   : > { %535 = sst [smem:[%s534_s27]] %s1214_s30  ;;  %s1216_s6 = spop %1215 }
 0x180   : > { %551 = sst [smem:[%s1103_s28]] %s1216_s6 }
 0x181 PF: > { %s1371_s7 = smov 127   ;;  %s1372_s8 = smov 126   ;;  %v1603_v61 = vmul.f32 %v1474_v9, %v1474_v9  ;;  %v1610_v62 = vmul.f32 %v1476_v10, %v1476_v10  ;;  %v1617_v63 = vmul.f32 %v1478_v11, %v1478_v11  ;;  %v1626_v0 = vmul.f32 %v1470_v7, %v1476_v10  ;;  %v1691_v50 = vld [vmem:[#allocation2] sm:$0xf]  ;;  %v1693_v51 = vld [vmem:[#allocation2 + $0x4] sm:$0xf] }
 0x182   : > { %710 = vrot.lane.b32.xlu1 %v1478_v11, %s1371_s7  ;;  %706 = vrot.lane.b32.xlu0 %v1474_v9, %s1371_s7  ;;  %v1630_v4 = vmul.f32 %v1468_v6, %v1474_v9  ;;  %v1638_v48 = vmul.f32 %v1472_v8, %v1478_v11  ;;  %v552_v5 = vsub.f32 %v1474_v9, %v1468_v6  ;;  %vm576_vm12 = vcmask 27648   ;;  %v1705_v60 = vld [vmem:[#allocation2 + $0x8] sm:$0xf]  ;;  %s1957_s9 = sadd.s32 4294967295, %s1367_s22   ;;  %s1041_s13 = sshll.u32 %s1944_s5, 4  ;;  %s1042_s13 = int_to_ptr.vmem [resolvable:$true] %s1041_s13 }
 0x183   : > { %v553_v13 = vsub.f32 %v1476_v10, %v1470_v7  ;;  %v554_v17 = vsub.f32 %v1478_v11, %v1472_v8  ;;  %vm621_vm14 = vcmask 1042432   ;;  %vm603_vm15 = vcmask 23552   ;;  %p1890_p8 = scmp.eq.s32.totalorder %s1957_s9, 3  ;;  %s1293_s14 = scalar_lea.vmem %s1042_s13, 32 }
 0x184   : > { %v1653_v14 = vmul.f32 %v552_v5, %v1480_v12  ;;  %vm730_vm2 = vcmask 15360   ;;  %vm758_vm3 = vcmask 1041408   ;;  %v933_v58 = vmul.f32 2.0, %v1691_v50  ;;  %p1294_p9 = scmp.ne.s32.totalorder %s1042_s13, %s1293_s14  ;;  %p1300_p12 = scmp.lt.s32.totalorder %s1042_s13, %s1042_s13 }
 0x185   : > { %v1656_v15 = vmul.f32 %v553_v13, %v1480_v12  ;;  %v1665_v6 = vmul.f32 %v554_v17, %v1480_v12  ;;  %v1712_v5 = vmul.f32 %v1691_v50, %v1691_v50  ;;  %v1716_v2 = vmul.f32 %v1705_v60, %v1705_v60  ;;  %p1301_p13 = scmp.lt.s32.totalorder %s1293_s14, %s1293_s14 }
 0x186   : > { %721 = vrot.lane.b32.xlu1 %v1474_v9, %s1372_s8  ;;  %708 = vrot.lane.b32.xlu0 %v1476_v10, %s1371_s7  ;;  %v558_v7 = vand.u32 2147483647, %v1653_v14  ;;  %v564_v19 = vmul.f32 0.5, %v1653_v14  ;;  %v615_v34 = vrot.slane %v1653_v14, 1  ;;  %v1720_v17 = vmul.f32 %v1693_v51, %v1693_v51  ;;  %p1295_p10 = pnand %p1294_p9, %p1890_p8 }
 0x187   : > { %v559_v18 = vand.u32 2147483647, %v1656_v15  ;;  %v565_v8 = vmul.f32 0.5, %v1656_v15  ;;  %v560_v20 = vand.u32 2147483647, %v1665_v6  ;;  %v566_v16 = vmul.f32 0.5, %v1665_v6  ;;  %p1302_p0 = por %p1301_p13, %p1300_p12 }
 0x188   : > { %v567_v21 = vmul.f32 %v564_v19, %v1653_v14  ;;  %v1187_v23 = vadd.f32 -0.5, %v558_v7  ;;  %vm561_vm10 = vcmp.lt.f32.partialorder %v558_v7, 1.0  ;;  %v616_v35 = vrot.slane %v1656_v15, 1  ;;  %p1296_p11 = pneg %p1295_p10 }
 0x189   : > { %v568_v22 = vmul.f32 %v565_v8, %v1656_v15  ;;  %v1188_v24 = vadd.f32 -0.5, %v559_v18  ;;  %vm562_vm11 = vcmp.lt.f32.partialorder %v559_v18, 1.0  ;;  %v569_v25 = vmul.f32 %v566_v16, %v1665_v6 }
 0x18a   : > { %774 = vrot.lane.b32.xlu1 %v1603_v61, %s1371_s7  ;;  %723 = vrot.lane.b32.xlu0 %v1476_v10, %s1372_s8  ;;  %v1189_v26 = vadd.f32 -0.5, %v560_v20  ;;  %v573_v42 = vsel %vm561_vm10, %v567_v21, %v1187_v23  ;;  %vm563_vm13 = vcmp.lt.f32.partialorder %v560_v20, 1.0  ;;  %v617_v36 = vrot.slane %v1665_v6, 1  ;;  %p1303_p1 = pnand %p1302_p0, %p1296_p11 }
 0x18b   : > { %v574_v27 = vsel %vm562_vm11, %v568_v22, %v1188_v24  ;;  %v577_v28 = vsel %vm576_vm12, %v573_v42, 0.0  ;;  %v622_v37 = vsel %vm621_vm14, %v615_v34, 0.0  ;;  %v623_v38 = vsel %vm621_vm14, %v616_v35, 0.0 }
 0x18c   : > { %v578_v29 = vsel %vm576_vm12, %v574_v27, 0.0  ;;  %v575_v44 = vsel %vm563_vm13, %v569_v25, %v1189_v26  ;;  %v624_v43 = vsel %vm621_vm14, %v617_v36, 0.0  ;;  %v625_v39 = vsub.f32 %v622_v37, %v1653_v14 }
 0x18d   : > { %v579_v31 = vadd.f32 %v578_v29, %v577_v28  ;;  %v580_v32 = vsel %vm576_vm12, %v575_v44, 0.0  ;;  %v626_v45 = vsub.f32 %v623_v38, %v1656_v15  ;;  %v627_v46 = vsub.f32 %v624_v43, %v1665_v6 }
 0x18e   : > { %725 = vrot.lane.b32.xlu1 %v1478_v11, %s1372_s8  ;;  %776 = vrot.lane.b32.xlu0 %v1610_v62, %s1371_s7  ;;  %v630_v52 = vsel %vm315_vm1, %v625_v39, 0.0  ;;  %v1724_v22 = vmul.f32 2.0, %v1705_v60 }
 0x18f   : > { %v581_v33 = vadd.f32 %v580_v32, %v579_v31  ;;  %v631_v56 = vsel %vm315_vm1, %v626_v45, 0.0  ;;  %v632_v57 = vsel %vm315_vm1, %v627_v46, 0.0  ;;  %v665_v13 = vand.u32 2147483647, %v630_v52 }
 0x190   : > { %v666_v7 = vand.u32 2147483647, %v631_v56  ;;  %v667_v18 = vand.u32 2147483647, %v632_v57  ;;  %v671_v25 = vmul.f32 0.5, %v630_v52  ;;  %v672_v26 = vmul.f32 0.5, %v631_v56 }
 0x191   : > { %vm1729_vm1 = vcmp.lt.f32.partialorder %v665_v13, 1.0  ;;  %v673_v29 = vmul.f32 0.5, %v632_v57  ;;  %v1741_v32 = vadd.f32 -0.5, %v665_v13 }
 0x192   : > { %789 = vrot.lane.b32.xlu1 %v1603_v61, %s1372_s8  ;;  %778 = vrot.lane.b32.xlu0 %v1617_v63, %s1371_s7  ;;  %vm1733_vm5 = vcmp.lt.f32.partialorder %v666_v7, 1.0  ;;  %vm1737_vm6 = vcmp.lt.f32.partialorder %v667_v18, 1.0 }
 0x196   : > { %793 = vrot.lane.b32.xlu1 %v1617_v63, %s1372_s8  ;;  %791 = vrot.lane.b32.xlu0 %v1610_v62, %s1372_s8 }
 0x19a   : > { %848 = vrot.lane.b32.xlu1 %v1626_v0, %s1371_s7  ;;  %846 = vrot.lane.b32.xlu0 %v1630_v4, %s1371_s7 }
 0x19e   : > { %861 = vrot.lane.b32.xlu1 %v1630_v4, %s1372_s8  ;;  %850 = vrot.lane.b32.xlu0 %v1638_v48, %s1371_s7 }
 0x1a2   : > { %865 = vrot.lane.b32.xlu1 %v1638_v48, %s1372_s8  ;;  %863 = vrot.lane.b32.xlu0 %v1626_v0, %s1372_s8 }
 0x1a6   : > { %913 = vrot.lane.b32.xlu0 %v1480_v12, %s1371_s7  ;;  %918 = vrot.lane.b32.xlu1 %v1480_v12, %s1372_s8 }
 0x1aa   : > { %594 = vrot.lane.b32.xlu0 %v1653_v14, %s1371_s7  ;;  %596 = vrot.lane.b32.xlu1 %v1656_v15, %s1371_s7 }
 0x1ae   : > { %598 = vrot.lane.b32.xlu0 %v1665_v6, %s1371_s7 }
 0x1ce   : > { %582 = vadd.xlane.f32.xlu1 %v581_v33 }
 0x1f4   : > { %v711_v40 = vpop.permute.xlu1 %710  ;;  %v707_v41 = vpop.permute.xlu0 %706 }
 0x1f5   : > { %v715_v49 = vsel %vm603_vm15, %v707_v41, 0.0  ;;  %v717_v23 = vsel %vm603_vm15, %v711_v40, 0.0  ;;  %v1747_v41 = vmul.f32 %v671_v25, %v630_v52 }
 0x1f6   : > { %v718_v53 = vadd.f32 %v715_v49, %v1474_v9  ;;  %v1708_v9 = vmul.f32 2.0, %v1693_v51  ;;  %v720_v33 = vadd.f32 %v717_v23, %v1478_v11  ;;  %v1750_v49 = vmul.f32 %v672_v26, %v631_v56 }
 0x1f7   : > { %v680_v25 = vsel %vm1729_vm1, %v1747_v41, %v1741_v32 }
 0x1f8   : > { %v722_v54 = vpop.permute.xlu1 %721  ;;  %v709_v55 = vpop.permute.xlu0 %708 }
 0x1f9   : > { %v731_v47 = vsel %vm730_vm2, %v722_v54, 0.0  ;;  %v716_v59 = vsel %vm603_vm15, %v709_v55, 0.0  ;;  %v1754_v55 = vadd.f32 -0.5, %v666_v7 }
 0x1fa   : > { %v734_v30 = vadd.f32 %v731_v47, %v718_v53  ;;  %v719_v20 = vadd.f32 %v716_v59, %v1476_v10  ;;  %v1752_v53 = vmul.f32 %v673_v29, %v632_v57  ;;  %v1756_v47 = vadd.f32 -0.5, %v667_v18 }
 0x1fc   : > { %v740_v19 = vrot.slane %v734_v30, 1  ;;  %v752_v8 = vrot.slane %v734_v30, 2  ;;  %v775_v16 = vpop.permute.xlu1 %774  ;;  %v724_v21 = vpop.permute.xlu0 %723 }
 0x1fd   : > { %v732_v24 = vsel %vm730_vm2, %v724_v21, 0.0  ;;  %v783_v39 = vsel %vm603_vm15, %v775_v16, 0.0 }
 0x1fe   : > { %v746_v42 = vsel %vm621_vm14, %v740_v19, 0.0  ;;  %v735_v27 = vadd.f32 %v732_v24, %v719_v20  ;;  %v759_v34 = vsel %vm758_vm3, %v752_v8, 0.0  ;;  %v786_v59 = vadd.f32 %v783_v39, %v1603_v61 }
 0x1ff   : > { %v749_v10 = vadd.f32 %v746_v42, %v734_v30 }
 0x200   : > { %v741_v35 = vrot.slane %v735_v27, 1  ;;  %v753_v36 = vrot.slane %v735_v27, 2  ;;  %v726_v37 = vpop.permute.xlu1 %725  ;;  %v777_v38 = vpop.permute.xlu0 %776 }
 0x201   : > { %v762_v43 = vadd.f32 %v759_v34, %v749_v10  ;;  %v733_v40 = vsel %vm730_vm2, %v726_v37, 0.0  ;;  %v784_v56 = vsel %vm603_vm15, %v777_v38, 0.0  ;;  %v682_v37 = vsel %vm1737_vm6, %v1752_v53, %v1756_v47 }
 0x202   : > { %v747_v45 = vsel %vm621_vm14, %v741_v35, 0.0  ;;  %v736_v46 = vadd.f32 %v733_v40, %v720_v33  ;;  %v760_v30 = vsel %vm758_vm3, %v753_v36, 0.0  ;;  %v787_v35 = vadd.f32 %v784_v56, %v1610_v62 }
 0x203   : > { %v765_v11 = vmul.f32 0.11111111, %v762_v43  ;;  %v750_v54 = vadd.f32 %v747_v45, %v735_v27 }
 0x204   : > { %v742_v13 = vrot.slane %v736_v46, 1  ;;  %v754_v52 = vrot.slane %v736_v46, 2  ;;  %v790_v19 = vpop.permute.xlu1 %789  ;;  %v779_v8 = vpop.permute.xlu0 %778 }
 0x205   : > { %v936_v20 = vmul.f32 %v933_v58, %v765_v11  ;;  %v763_v16 = vadd.f32 %v760_v30, %v750_v54  ;;  %v798_v57 = vsel %vm730_vm2, %v790_v19, 0.0  ;;  %v834_v23 = vmul.f32 %v765_v11, %v765_v11 }
 0x206   : > { %v748_v21 = vsel %vm621_vm14, %v742_v13, 0.0  ;;  %v801_v7 = vadd.f32 %v798_v57, %v786_v59  ;;  %v785_v18 = vsel %vm603_vm15, %v779_v8, 0.0  ;;  %v681_v58 = vsel %vm1733_vm5, %v1750_v49, %v1754_v55 }
 0x207   : > { %v1764_v24 = vmul.f32 0.11111111, %v763_v16  ;;  %v751_v61 = vadd.f32 %v748_v21, %v736_v46  ;;  %v761_v26 = vsel %vm758_vm3, %v754_v52, 0.0  ;;  %v788_v29 = vadd.f32 %v785_v18, %v1617_v63 }
 0x208   : > { %v807_v42 = vrot.slane %v801_v7, 1  ;;  %v819_v27 = vrot.slane %v801_v7, 2  ;;  %v794_v10 = vpop.permute.xlu1 %793  ;;  %v792_v33 = vpop.permute.xlu0 %791  ;;  %v1782_v38 = vadd.f32 0.0001, %v936_v20  ;;  %v954_v39 = vadd.f32 %v1712_v5, %v834_v23 }
 0x209   : > { %v764_v34 = vadd.f32 %v761_v26, %v751_v61  ;;  %v800_v36 = vsel %vm730_vm2, %v794_v10, 0.0  ;;  %v1790_v62 = vmul.f32 %v1764_v24, %v1764_v24  ;;  %v799_v46 = vsel %vm730_vm2, %v792_v33, 0.0 }
 0x20a   : > { %v813_v43 = vsel %vm621_vm14, %v807_v42, 0.0  ;;  %v803_v40 = vadd.f32 %v800_v36, %v788_v29  ;;  %v825_v54 = vsel %vm758_vm3, %v819_v27, 0.0  ;;  %v802_v13 = vadd.f32 %v799_v46, %v787_v35 }
 0x20b   : > { %v1786_v63 = vmul.f32 0.11111111, %v764_v34  ;;  %v816_v45 = vadd.f32 %v813_v43, %v801_v7  ;;  %v937_v5 = vmul.f32 %v1708_v9, %v1764_v24  ;;  %v1799_v16 = vmul.f32 %v765_v11, %v1691_v50  ;;  %v700_v9 = vld [vmem:[#allocation3] sm:$0xf] }
 0x20c   : > { %v809_v59 = vrot.slane %v803_v40, 1  ;;  %v821_v30 = vrot.slane %v803_v40, 2  ;;  %v849_v52 = vpop.permute.xlu1 %848  ;;  %v847_v19 = vpop.permute.xlu0 %846  ;;  %v957_v56 = vadd.f32 0.0001, %v954_v39  ;;  %v808_v21 = vrot.slane %v802_v13, 1 }
 0x20d   : > { %v828_v8 = vadd.f32 %v825_v54, %v816_v45  ;;  %v836_v20 = vmul.f32 %v1786_v63, %v1786_v63  ;;  %v855_v7 = vsel %vm603_vm15, %v847_v19, 0.0  ;;  %v955_v26 = vadd.f32 %v1720_v17, %v1790_v62 }
 0x20e   : > { %v815_v57 = vsel %vm621_vm14, %v809_v59, 0.0  ;;  %v820_v42 = vrot.slane %v802_v13, 2  ;;  %v827_v29 = vsel %vm758_vm3, %v821_v30, 0.0  ;;  %v814_v50 = vsel %vm621_vm14, %v808_v21, 0.0  ;;  %v702_v30 = vld [vmem:[#allocation3 + $0x8] sm:$0xf] }
 0x20f   : > { %v831_v18 = vmul.f32 0.11111111, %v828_v8  ;;  %v818_v61 = vadd.f32 %v815_v57, %v803_v40  ;;  %v956_v27 = vadd.f32 %v1716_v2, %v836_v20  ;;  %v856_v11 = vsel %vm603_vm15, %v849_v52, 0.0 }
 0x210   : > { %v862_v10 = vpop.permute.xlu1 %861  ;;  %v851_v33 = vpop.permute.xlu0 %850  ;;  %v817_v36 = vadd.f32 %v814_v50, %v802_v13  ;;  %v858_v43 = vadd.f32 %v855_v7, %v1630_v4  ;;  %v1810_v39 = vadd.f32 0.0001, %v937_v5  ;;  %v826_v17 = vsel %vm758_vm3, %v820_v42, 0.0 }
 0x211   : > { %v837_v34 = vsub.f32 %v831_v18, %v834_v23  ;;  %v830_v35 = vadd.f32 %v827_v29, %v818_v61  ;;  %v870_v40 = vsel %vm730_vm2, %v862_v10, 0.0  ;;  %v857_v2 = vsel %vm603_vm15, %v851_v33, 0.0  ;;  %v701_v18 = vld [vmem:[#allocation3 + $0x4] sm:$0xf] }
 0x212   : > { %v829_v54 = vadd.f32 %v826_v17, %v817_v36  ;;  %v873_v59 = vadd.f32 %v870_v40, %v858_v43  ;;  %v959_v52 = vadd.f32 0.0001, %v956_v27  ;;  %v958_v19 = vadd.f32 0.0001, %v955_v26 }
 0x213   : > { %v960_v45 = vadd.f32 %v837_v34, %v700_v9  ;;  %v833_v46 = vmul.f32 0.11111111, %v830_v35  ;;  %v859_v23 = vadd.f32 %v856_v11, %v1626_v0  ;;  %v860_v13 = vadd.f32 %v857_v2, %v1638_v48 }
 0x214   : > { %v866_v4 = vpop.permute.xlu1 %865  ;;  %v864_v5 = vpop.permute.xlu0 %863  ;;  %v832_v21 = vmul.f32 0.11111111, %v829_v54  ;;  %v879_v7 = vrot.slane %v873_v59, 1  ;;  %v891_v61 = vrot.slane %v873_v59, 2  ;;  %v938_v27 = vmul.f32 %v1724_v22, %v1786_v63 }
 0x215   : > { %v963_v8 = vadd.f32 0.0009, %v960_v45  ;;  %v839_v57 = vsub.f32 %v833_v46, %v836_v20  ;;  %v872_v42 = vsel %vm730_vm2, %v866_v4, 0.0  ;;  %v871_v9 = vsel %vm730_vm2, %v864_v5, 0.0 }
 0x216   : > { %v838_v0 = vsub.f32 %v832_v21, %v1790_v62  ;;  %v885_v48 = vsel %vm621_vm14, %v879_v7, 0.0  ;;  %v897_v20 = vsel %vm758_vm3, %v891_v61, 0.0  ;;  %v875_v11 = vadd.f32 %v872_v42, %v860_v13 }
 0x217   : > { %v966_v26 = vmul.f32 %v963_v8, %v957_v56  ;;  %v962_v29 = vadd.f32 %v839_v57, %v702_v30  ;;  %v888_v50 = vadd.f32 %v885_v48, %v873_v59  ;;  %v874_v10 = vadd.f32 %v871_v9, %v859_v23 }
 0x218   : > { %v914_v33 = vpop.permute.xlu0 %913  ;;  %v919_v34 = vpop.permute.xlu1 %918  ;;  %v961_v36 = vadd.f32 %v838_v0, %v701_v18  ;;  %v881_v22 = vrot.slane %v875_v11, 1  ;;  %v893_v56 = vrot.slane %v875_v11, 2  ;;  %v907_v48 = vmul.f32 %v1764_v24, %v1693_v51 }
 0x219   : > { %1287 = vrcp.f32 %v966_v26  ;;  %v965_v35 = vadd.f32 0.0009, %v962_v29  ;;  %v916_v43 = vsel %vm603_vm15, %v914_v33, 0.0  ;;  %v900_v17 = vadd.f32 %v897_v20, %v888_v50 }
 0x21a   : > { %v880_v40 = vrot.slane %v874_v10, 1  ;;  %v964_v62 = vadd.f32 0.0009, %v961_v36  ;;  %v892_v45 = vrot.slane %v874_v10, 2  ;;  %v917_v46 = vadd.f32 %v916_v43, %v1480_v12 }
 0x21b   : > { %v968_v2 = vmul.f32 %v965_v35, %v959_v52  ;;  %v903_v54 = vmul.f32 0.11111111, %v900_v17  ;;  %v887_v59 = vsel %vm621_vm14, %v881_v22, 0.0  ;;  %v899_v30 = vsel %vm758_vm3, %v893_v56, 0.0 }
 0x21c   : > { %v886_v23 = vsel %vm621_vm14, %v880_v40, 0.0  ;;  %v595_v13 = vpop.permute.xlu0 %594  ;;  %v967_v4 = vmul.f32 %v964_v62, %v958_v19  ;;  %v890_v5 = vadd.f32 %v887_v59, %v875_v11  ;;  %v597_v57 = vpop.permute.xlu1 %596  ;;  %v898_v52 = vsel %vm758_vm3, %v892_v45, 0.0 }
 0x21d   : > { %1289 = vrcp.f32 %v968_v2  ;;  %v889_v8 = vadd.f32 %v886_v23, %v874_v10  ;;  %v909_v21 = vsub.f32 %v903_v54, %v1799_v16  ;;  %v921_v7 = vsel %vm730_vm2, %v919_v34, 0.0 }
 0x21e   : > { %v604_v12 = vsel %vm603_vm15, %v595_v13, 0.0  ;;  %1291 = vrcp.f32 %v967_v4  ;;  %v902_v18 = vadd.f32 %v899_v30, %v890_v5  ;;  %v922_v42 = vadd.f32 %v921_v7, %v917_v46 }
 0x21f   : > { %v901_v61 = vadd.f32 %v898_v52, %v889_v8  ;;  %v942_v9 = vmul.f32 2.0, %v909_v21  ;;  %v908_v26 = vmul.f32 %v1786_v63, %v1705_v60  ;;  %v607_v19 = vsub.f32 %v604_v12, %v1653_v14 }
 0x220   : > { %v605_v29 = vsel %vm603_vm15, %v597_v57, 0.0  ;;  %v599_v0 = vpop.permute.xlu0 %598  ;;  %v905_v16 = vmul.f32 0.11111111, %v902_v18  ;;  %v924_v20 = vrot.slane %v922_v42, 1  ;;  %v928_v11 = vrot.slane %v922_v42, 2 }
 0x221   : > { %v904_v50 = vmul.f32 0.11111111, %v901_v61  ;;  %v612_v10 = vsel %vm314_vm0, %v607_v19, 0.0  ;;  %v608_v33 = vsub.f32 %v605_v29, %v1656_v15  ;;  %v941_v34 = vadd.f32 0.0001, %v938_v27 }
 0x222   : > { %v945_v60 = vadd.f32 0.0009, %v942_v9  ;;  %v911_v63 = vsub.f32 %v905_v16, %v908_v26  ;;  %v606_v36 = vsel %vm603_vm15, %v599_v0, 0.0  ;;  %v926_v43 = vsel %vm621_vm14, %v924_v20, 0.0 }
 0x223   : > { %v1288_v35 = vpop.eup %1287  ;;  %v910_v14 = vsub.f32 %v904_v50, %v907_v48  ;;  %v633_v17 = vand.u32 2147483647, %v612_v10  ;;  %v639_v22 = vmul.f32 0.5, %v612_v10  ;;  %v613_v51 = vsel %vm314_vm0, %v608_v33, 0.0 }
 0x224   : > { %v944_v24 = vmul.f32 2.0, %v911_v63  ;;  %v634_v40 = vand.u32 2147483647, %v613_v51  ;;  %v640_v2 = vmul.f32 0.5, %v613_v51  ;;  %v930_v15 = vsel %vm758_vm3, %v928_v11, 0.0 }
 0x225   : > { %v943_v56 = vmul.f32 2.0, %v910_v14  ;;  %vm636_vm7 = vcmp.lt.f32.partialorder %v633_v17, 1.0  ;;  %v642_v27 = vmul.f32 %v639_v22, %v612_v10  ;;  %v1190_v62 = vadd.f32 -0.5, %v633_v17 }
 0x226   : > { %v947_v46 = vadd.f32 0.0009, %v944_v24  ;;  %vm1847_vm8 = vcmp.lt.f32.partialorder %v634_v40, 1.0  ;;  %v643_v30 = vmul.f32 %v640_v2, %v613_v51  ;;  %v927_v23 = vadd.f32 %v926_v43, %v922_v42 }
 0x227   : > { %v1290_v45 = vpop.eup %1289  ;;  %v946_v54 = vadd.f32 0.0009, %v943_v56  ;;  %v1191_v13 = vadd.f32 -0.5, %v634_v40  ;;  %v609_v4 = vsub.f32 %v606_v36, %v1665_v6  ;;  %v648_v5 = vsel %vm636_vm7, %v642_v27, %v1190_v62 }
 0x228   : > { %v1292_v8 = vpop.eup %1291  ;;  %v651_v57 = vsel %vm576_vm12, %v648_v5, 0.0  ;;  %v948_v21 = vmul.f32 %v945_v60, %v1782_v38  ;;  %v950_v7 = vmul.f32 %v947_v46, %v941_v34  ;;  %v683_v6 = vsel %vm576_vm12, %v680_v25, 0.0 }
 0x229   : > { %v949_v52 = vmul.f32 %v946_v54, %v1810_v39  ;;  %v614_v12 = vsel %vm314_vm0, %v609_v4, 0.0  ;;  %v649_v18 = vsel %vm1847_vm8, %v643_v30, %v1191_v13  ;;  %v684_v38 = vsel %vm576_vm12, %v681_v58, 0.0 }
 0x22a   : > { %v635_v39 = vand.u32 2147483647, %v614_v12  ;;  %v641_v1 = vmul.f32 0.5, %v614_v12  ;;  %v652_v61 = vsel %vm576_vm12, %v649_v18, 0.0  ;;  %v972_v42 = vmul.f32 %v1288_v35, %v948_v21 }
 0x22b   : > { %v931_v9 = vadd.f32 %v930_v15, %v927_v23  ;;  %v653_v26 = vadd.f32 %v652_v61, %v651_v57  ;;  %v973_v28 = vmul.f32 %v1292_v8, %v949_v52  ;;  %v974_v19 = vmul.f32 %v1290_v45, %v950_v7 }
 0x22c   : > { %v644_v29 = vmul.f32 %v641_v1, %v614_v12  ;;  %v1192_v32 = vadd.f32 -0.5, %v635_v39  ;;  %vm638_vm0 = vcmp.lt.f32.partialorder %v635_v39, 1.0  ;;  %v975_v41 = vsub.f32 1.0, %v972_v42 }
 0x22d   : > { %v976_v25 = vsub.f32 1.0, %v973_v28  ;;  %v977_v44 = vsub.f32 1.0, %v974_v19  ;;  %v685_v16 = vadd.f32 %v684_v38, %v683_v6  ;;  %v686_v58 = vsel %vm576_vm12, %v682_v37, 0.0 }
 0x22e   : > { %v650_v0 = vsel %vm638_vm0, %v644_v29, %v1192_v32  ;;  %v978_v49 = vmul.f32 0.5, %v975_v41  ;;  %v932_v11 = vmul.f32 0.11111111, %v931_v9 }
 0x22f   : > { %v654_v55 = vsel %vm576_vm12, %v650_v0, 0.0  ;;  %v979_v48 = vmul.f32 0.5, %v976_v25  ;;  %v980_v50 = vmul.f32 0.5, %v977_v44  ;;  %v687_v35 = vadd.f32 %v686_v58, %v685_v16 }
 0x230   : > { %v655_v20 = vadd.f32 %v654_v55, %v653_v26  ;;  %v981_v10 = vmax.f32 %v978_v49, 0.0 }
 0x231   : > { %v982_v33 = vmax.f32 %v979_v48, 0.0  ;;  %v983_v34 = vmax.f32 %v980_v50, 0.0 }
 0x232   : > { %656 = vadd.xlane.f32.xlu0 %v655_v20  ;;  %v984_v60 = vmin.f32 %v981_v10, 1.0 }
 0x233   : > { %v985_v63 = vmin.f32 %v982_v33, 1.0  ;;  %v986_v14 = vmin.f32 %v983_v34, 1.0 }
 0x234   : > { %v987_v36 = vmul.f32 %v984_v60, %v932_v11 }
 0x235   : > { %v988_v43 = vmul.f32 %v985_v63, %v932_v11  ;;  %v989_v31 = vmul.f32 %v986_v14, %v932_v11 }
 0x236   : > { %688 = vadd.xlane.f32.xlu0 %v687_v35  ;;  %v992_v53 = vsel %vm1452_vm4, %v987_v36, 0.0 }
 0x237   : > { %v993_v47 = vsel %vm1452_vm4, %v988_v43, 0.0  ;;  %v994_v37 = vsel %vm1452_vm4, %v989_v31, 0.0  ;;  %v995_v17 = vsel %vm576_vm12, %v992_v53, 0.0 }
 0x238   : > { %v996_v22 = vsel %vm576_vm12, %v993_v47, 0.0  ;;  %v998_v24 = vsel %vm576_vm12, %v994_v37, 0.0 }
 0x239   : > { %v997_v51 = vadd.f32 %v996_v22, %v995_v17 }
 0x23b   : > { %v999_v56 = vadd.f32 %v998_v24, %v997_v51 }
 0x23d   : > { %1000 = vadd.xlane.f32.xlu1 %v999_v56 }
 0x25b   : > { %v583_v40 = vpop.xlane.xlu1 %582 }
 0x25c   : > { %v584_v2 = vrot.slane %v583_v40, 4 }
 0x25e   : > { %v585_v15 = vadd.f32 %v584_v2, %v583_v40 }
 0x260   : > { %v586_v27 = vrot.slane %v585_v15, 2 }
 0x262   : > { %v587_v62 = vadd.f32 %v586_v27, %v585_v15 }
 0x264   : > { %v588_v45 = vrot.slane %v587_v62, 1 }
 0x266   : > { %v589_v46 = vadd.f32 %v588_v45, %v587_v62 }
 0x268   : > { %1217 = vpush %v589_v46 }
 0x269   : > { %1306 = shalt.err (!%p1303_p1)
}
 0x26a   : > { %s1373_s15 = smov [#allocation6]   ;;  %s1196_s16 = sshll.u32 %s1355_s19, 1 }
 0x26b   : > { %1228 = dma.smem_to_vmem (%p1890_p8), %s1373_s15, 32, %s1042_s13, [#allocation7]  }
 0x26c   : > { %s1010_s17 = sadd.s32 %s1351_s18, %s1196_s16  ;;  %s1030_s30 = sshll.u32 %s1943_s4, 4  ;;  %s1031_s30 = int_to_ptr.vmem [resolvable:$true] %s1030_s30 }
 0x26d   : > { %s1197_s26 = sshll.u32 %s1010_s17, 7  ;;  %s1307_s8 = scalar_lea.vmem %s1031_s30, 64 }
 0x26e   : > { %s1903_s23 = scalar_lea.smem [#allocation4], %s1197_s26  ;;  %p1308_p2 = scmp.ne.s32.totalorder %s1031_s30, %s1307_s8 }
 0x26f   : > { %s1112_s18 = scalar_lea.smem %s1903_s23, 1 [#allocation4]  ;;  %s1117_s24 = scalar_lea.smem %s1903_s23, 2 [#allocation4] }
 0x270   : > { %s1122_s6 = scalar_lea.smem %s1903_s23, 3 [#allocation4]  ;;  %p1309_p3 = pnand %p1308_p2, %p1890_p8 }
 0x271   : > { %p1314_p5 = scmp.lt.s32.totalorder %s1031_s30, %s1031_s30  ;;  %p1315_p6 = scmp.lt.s32.totalorder %s1307_s8, %s1307_s8 }
 0x272   : > { %p1310_p4 = pneg %p1309_p3 }
 0x273   : > { %p1316_p7 = por %p1315_p6, %p1314_p5 }
 0x275   : > { %p1317_p9 = pnand %p1316_p7, %p1310_p4 }
 0x299   : > { %s1218_s29 = spop %1217 }
 0x29a   : > { %1013 = sst [smem:[%s1903_s23]] %s1218_s29 }
 0x2bf   : > { %v657_v3 = vpop.xlane.xlu0 %656 }
 0x2c0   : > { %v658_v54 = vrot.slane %v657_v3, 4 }
 0x2c2   : > { %v659_v59 = vadd.f32 %v658_v54, %v657_v3 }
 0x2c3   : > { %v689_v30 = vpop.xlane.xlu0 %688 }
 0x2c4   : > { %v660_v23 = vrot.slane %v659_v59, 2  ;;  %v690_v13 = vrot.slane %v689_v30, 4 }
 0x2c6   : > { %v691_v4 = vadd.f32 %v690_v13, %v689_v30  ;;  %v661_v5 = vadd.f32 %v660_v23, %v659_v59 }
 0x2c8   : > { %v692_v8 = vrot.slane %v691_v4, 2  ;;  %v662_v57 = vrot.slane %v661_v5, 1 }
 0x2ca   : > { %v693_v21 = vadd.f32 %v692_v8, %v691_v4  ;;  %v663_v52 = vadd.f32 %v662_v57, %v661_v5  ;;  %v1001_v7 = vpop.xlane.xlu1 %1000 }
 0x2cb   : > { %v1002_v12 = vrot.slane %v1001_v7, 4 }
 0x2cc   : > { %1219 = vpush %v663_v52  ;;  %v694_v18 = vrot.slane %v693_v21, 1 }
 0x2cd   : > { %v1003_v6 = vadd.f32 %v1002_v12, %v1001_v7 }
 0x2ce   : > { %v695_v38 = vadd.f32 %v694_v18, %v693_v21 }
 0x2cf   : > { %v1004_v39 = vrot.slane %v1003_v6, 2 }
 0x2d0   : > { %1221 = vpush %v695_v38 }
 0x2d1   : > { %v1005_v1 = vadd.f32 %v1004_v39, %v1003_v6 }
 0x2d3   : > { %v1006_v61 = vrot.slane %v1005_v1, 1 }
 0x2d5   : > { %v1007_v42 = vadd.f32 %v1006_v61, %v1005_v1 }
 0x2d7   : > { %1223 = vpush %v1007_v42 }
 0x2fd   : > { %s1220_s19 = spop %1219 }
 0x2fe   : > { %1016 = sst [smem:[%s1112_s18]] %s1220_s19 }
 0x301   : > { %s1222_s25 = spop %1221 }
 0x302   : > { %1019 = sst [smem:[%s1117_s24]] %s1222_s25 }
 0x308   : > { %s1224_s7 = spop %1223 }
 0x309   : > { %1022 = sst [smem:[%s1122_s6]] %s1224_s7 }
 0x30a   : > { %1320 = shalt.err (!%p1317_p9)
}
 0x30b   : > { %s1374_s9 = smov [#allocation4]  }
 0x30c   : > { %1226 = dma.smem_to_vmem (%p1890_p8), %s1374_s9, 64, %s1031_s30, [#allocation5]  }
 0x30d   : > { %1342 = dma.done.wait (%p1890_p8), [#allocation5], 64  }
 0x30e   : > { %1344 = vsyncadd (%p1890_p8), [#allocation5], 4294967232 }
 0x30f   : > { %1346 = dma.done.wait (%p1890_p8), [#allocation7], 32  }
 0x310   : > { %1348 = vsyncadd (%p1890_p8), [#allocation7], 4294967264 }
 0x311   : > { %1053 = sfence }
 0x312 PF: > { %s18_s22 = sadd.s32 1, %s1367_s22   ;;  %s1959_s11 = sld [smem:[#allocation10_spill]] }
 0x313   : > { %p15_p10 = scmp.ge.s32.totalorder %s18_s22, 6   ;;  %s1960_s12 = sld [smem:[#allocation11_spill]] }
 0x314   : > { %s1961_s18 = smov %s1359_s20  ;;  %s1962_s19 = smov %s1363_s21 }
 0x315   :  { %17 = sbr.rel (!%p15_p10) target bundleno = 4 (0x4), region = 90 }
 0x318   : > { %s1963_s20 = smov %s1959_s11 }
 0x319   : > { %s1964_s21 = smov %s1960_s12 }
 0x31c   :  { %1059 = vsyncpa [#allocation5], 1 }
 0x31d   :  { %1061 = vsyncpa [#allocation5 + $0x1], 1 }
 0x31e   :  { %1062 = vsyncpa [#allocation7], 1 }

// kernel: unsup_loss_multistage.9
= control target key start
LH: loop header
LB: loop body
LE: loop exit
PB: predicated region body
PF: predicated region fallthrough
CT: control target
= control target key end

     0   :  { %7 = vsyncpa [#allocation4], 0  ;;  %s558_s0 = inlined_call_operand.vmem [shape: f32[2], index: 0, kind: input, shape index: {}]   ;;  %s559_s1 = inlined_call_operand.vmem [shape: s8[2,2,1,8,8], index: 1, kind: input, shape index: {}]   ;;  %s560_s2 = inlined_call_operand.vmem [shape: f32[2], index: 2, kind: output, shape index: {}]  }
   0x1   :  { %8 = vsyncpa [#allocation5], 0  ;;  %s456_s9 = smov 0   ;;  %s458_s10 = smov 0  }
   0x2   :  { %s460_s11 = smov 0   ;;  %s462_s12 = smov 0  }
   0x3   :  { %s464_s13 = smov 0  }
   0x4 LB: > { %s287_s14 = sadd.s32 4294967295, %s437_s13   ;;  %s23_s15 = sadd.s32 1, %s429_s11  ;;  %s437_s13 = sphi %s464_s13, %s14_s13   ;;  %s433_s12 = sphi %s462_s12, %s567_s12   ;;  %s429_s11 = sphi %s460_s11, %s566_s11   ;;  %s425_s10 = sphi %s458_s10, %s565_s10   ;;  %s421_s9 = sphi %s456_s9, %s564_s9  }
   0x5   : > { %p24_p0 = scmp.ge.s32.totalorder %s23_s15, 2  ;;  %s26_s16 = sadd.s32 1, %s433_s12 }
   0x6   : > { %p288_p1 = scmp.ge.s32.totalorder %s437_s13, 1  ;;  %p101_p2 = scmp.lt.s32.totalorder %s437_s13, 5 }
   0x7   : > { %s569_s15 = smov (%p24_p0, %s23_s15), 0  ;;  %s571_s16 = smov (!%p24_p0, %s26_s16), %s433_s12 }
   0x8   : > { %p489_p3 = pnand %p288_p1, %p101_p2  ;;  %p28_p4 = scmp.ge.s32.totalorder %s571_s16, 2 }
   0x9   : > { %p495_p5 = scmp.eq.s32.totalorder %s287_s14, 0  ;;  %s114_s21 = sshll.u32 %s558_s0, 4  ;;  %s115_s21 = int_to_ptr.vmem [resolvable:$true] %s114_s21 }
   0xa   : > { %p312_p6 = pneg %p489_p3  ;;  %s573_s16 = smov (%p28_p4, %s571_s16), 0 }
   0xb   : > { %s362_s22 = scalar_lea.vmem %s115_s21, 16  ;;  %p370_p12 = scmp.lt.s32.totalorder %s115_s21, %s115_s21 }
   0xc   : > { %p313_p7 = pnand %p495_p5, %p312_p6  ;;  %p363_p8 = scmp.ne.s32.totalorder %s115_s21, %s362_s22 }
   0xd   : > { %p371_p13 = scmp.lt.s32.totalorder %s362_s22, %s362_s22 }
   0xe   : > { %p364_p9 = pneg %p313_p7 }
   0xf   : > { %p372_p0 = por %p371_p13, %p370_p12 }
  0x10   : > { %p365_p10 = pnand %p364_p9, %p363_p8 }
  0x12   : > { %p366_p11 = pneg %p365_p10 }
  0x14   : > { %p373_p1 = pnand %p372_p0, %p366_p11 }
  0x16   : > { %376 = shalt.err (!%p373_p1)
}
  0x17   : > { %s439_s23 = smov [#allocation3]   ;;  %138 = sbr.rel (%p489_p3) target bundleno = 294 (0x126), region = 28 }
  0x18   : > { %315 = dma.vmem_to_smem (!%p313_p7), %s115_s21, 16, %s439_s23, [#allocation4]  }
  0x1e   : > { %412 = dma.done.wait (%p495_p5), [#allocation4], 16  }
  0x1f   : > { %414 = vsyncadd (%p495_p5), [#allocation4], 4294967280 }
  0x20   : > { %144 = sfence }
  0x21   : > { %p159_p2 = scmp.lt.s32.totalorder %s421_s9, 1  ;;  %p161_p4 = scmp.lt.s32.totalorder %s425_s10, 1 }
  0x22   : > { %s170_s29 = sld [smem:[#allocation3 + %s421_s9]]  ;;  %p295_p3 = scmp.ne.s32.totalorder %s421_s9, 0 }
  0x23   : > { %s160_s24 = scalar_select %p159_p2, %s421_s9, 1 }
  0x24   : > { %s162_s25 = scalar_select %p161_p4, %s425_s10, 1 }
  0x25   : > { %s293_s26 = sshll.u32 %s160_s24, 1  ;;  %vm179_vm0 = vcmask (!%p295_p3), 64512  }
  0x26   : > { %s164_s27 = sadd.s32 %s293_s26, %s162_s25 }
  0x27   : > { %s294_s28 = sshll.u32 %s164_s27, 1 }
  0x28   : > { %s166_s4 = scalar_lea.vmem %s559_s1, %s294_s28  ;;  %v173_v4 = vstv %s170_s29 }
  0x29   : > { %v167_v0 = vld [vmem:[%s166_s4] sm:$0x3] }
  0x2a   : > { %v168_v1 = vunpack.c.0.s8 %v167_v0 }
  0x2c   : > { %v169_v2 = vcvt.s32.f32 %v168_v1  ;;  %178 = sbr.rel (%p295_p3) target bundleno = 53 (0x35), region = 36 }
  0x2e   : > { %v171_v3 = vsub.f32 1.0, %v169_v2 }
  0x30   : > { %v172_v5 = vmul.f32 10000.0, %v171_v3 }
  0x32   : > { %v174_v6 = vadd.f32 %v173_v4, %v172_v5 }
  0x34   : > { %180 = vst.msk [vmem:[#allocation2] sm:$0xff] %vm179_vm0, %v174_v6 }
  0x35 PF: > { %p296_p5 = scmp.le.s32.totalorder %s421_s9, 0 }
  0x36   : > { %vm187_vm1 = vcmask (!%p296_p5), 64512  }
  0x37   : > { %184 = sbr.rel (%p296_p5) target bundleno = 63 (0x3f), region = 40 }
  0x3b   : > { %v185_v7 = vld [vmem:[#allocation2] sm:$0xff] (!%p296_p5) }
  0x3c   : > { %v186_v8 = vmin.f32 (!%p296_p5), %v185_v7, %v174_v6 }
  0x3e   : > { %188 = vst.msk [vmem:[#allocation2] sm:$0xff] %vm187_vm1, %v186_v8 }
  0x3f PF: > { %p297_p6 = scmp.ne.s32.totalorder %s421_s9, 1 }
  0x40   : > { %vm196_vm2 = vcmask (!%p297_p6), 64512   ;;  %s207_s6 = scalar_lea.smem (!%p297_p6), [#allocation6], %s425_s10 }
  0x41   : > { %192 = sbr.rel (%p297_p6) target bundleno = 278 (0x116), region = 44 }
  0x45   : > { %v193_v9 = vld [vmem:[#allocation2] sm:$0xff] (!%p297_p6) }
  0x46   : > { %vm194_vm3 = vcmp.lt.f32.partialorder (!%p297_p6), %v193_v9, 10000.0 }
  0x47   : > { %v195_v10 = vsel (!%p297_p6), %vm194_vm3, %v193_v9, 0.0 }
  0x48   : > { %v197_v11 = vsel %vm196_vm2, %v195_v10, 0.0 }
  0x49   : > { %198 = vadd.xlane.f32.xlu0 %v197_v11 }
  0xd6   : > { %v199_v12 = vpop.xlane.xlu0 %198 }
  0xd7   : > { %v200_v13 = vrot.slane %v199_v12, 4 }
  0xd9   : > { %v201_v14 = vadd.f32 %v200_v13, %v199_v12 }
  0xdb   : > { %v202_v15 = vrot.slane %v201_v14, 2 }
  0xdd   : > { %v203_v16 = vadd.f32 %v202_v15, %v201_v14 }
  0xdf   : > { %v204_v17 = vrot.slane %v203_v16, 1 }
  0xe1   : > { %v205_v18 = vadd.f32 %v204_v17, %v203_v16 }
  0xe3   : > { %302 = vpush %v205_v18 }
 0x114   : > { %s303_s5 = spop %302 }
 0x115   : > { %208 = sst [smem:[%s207_s6]] %s303_s5 }
 0x116 PF: > { %p528_p7 = scmp.eq.s32.totalorder %s287_s14, 3  ;;  %s216_s17 = sshll.u32 %s560_s2, 4  ;;  %s217_s17 = int_to_ptr.vmem [resolvable:$true] %s216_s17 }
 0x117   : > { %s377_s18 = scalar_lea.vmem %s217_s17, 16  ;;  %p384_p11 = scmp.lt.s32.totalorder %s217_s17, %s217_s17 }
 0x118   : > { %p378_p8 = scmp.ne.s32.totalorder %s217_s17, %s377_s18  ;;  %p385_p12 = scmp.lt.s32.totalorder %s377_s18, %s377_s18 }
 0x11a   : > { %p379_p9 = pnand %p378_p8, %p528_p7  ;;  %p386_p13 = por %p385_p12, %p384_p11 }
 0x11c   : > { %p380_p10 = pneg %p379_p9 }
 0x11e   : > { %p387_p0 = pnand %p386_p13, %p380_p10 }
 0x120   : > { %390 = shalt.err (!%p387_p0)
}
 0x121   : > { %s440_s10 = smov [#allocation6]  }
 0x122   : > { %309 = dma.smem_to_vmem (%p528_p7), %s440_s10, 16, %s217_s17, [#allocation5]  }
 0x123   : > { %416 = dma.done.wait (%p528_p7), [#allocation5], 16  }
 0x124   : > { %418 = vsyncadd (%p528_p7), [#allocation5], 4294967280 }
 0x125   : > { %224 = sfence }
 0x126 PF: > { %s14_s13 = sadd.s32 1, %s437_s13   ;;  %s564_s9 = smov %s429_s11 }
 0x127   : > { %p11_p1 = scmp.ge.s32.totalorder %s14_s13, 6   ;;  %s565_s10 = smov %s433_s12 }
 0x128   : > { %s566_s11 = smov %s569_s15  ;;  %s567_s12 = smov %s573_s16 }
 0x129   :  { %13 = sbr.rel (!%p11_p1) target bundleno = 4 (0x4), region = 73 }
 0x130   :  { %230 = vsyncpa [#allocation4], 1 }
 0x131   :  { %232 = vsyncpa [#allocation4 + $0x1], 1 }
 0x132   :  { %233 = vsyncpa [#allocation5], 1 }
 0x133   :  { %235 = vsyncpa [#allocation5 + $0x1], 1 }

// kernel: mul.438
= control target key start
LH: loop header
LB: loop body
LE: loop exit
PB: predicated region body
PF: predicated region fallthrough
CT: control target
= control target key end

     0   :  { %s8_s6 = smov 3  ;;  %s11_s7 = smov 12  ;;  %vm13_vm0 = vcmask 1043458   ;;  %vm3_vm1 = vcmask 130048   ;;  %vm17_vm2 = vcmask 1048448   ;;  %vm31_vm3 = vcmask 917248   ;;  %s213_s0 = inlined_call_operand.vmem [shape: f32[2,16,16], index: 0, kind: input, shape index: {}]   ;;  %s214_s1 = inlined_call_operand.vmem [shape: f32[2,256], index: 1, kind: output, shape index: {}]  }
   0x1   :  { %v116_v0 = vld [vmem:[%s213_s0 + $0x7] ss:$16 sm:%s8_s6]   ;;  %v117_v1 = vld [vmem:[%s213_s0 - $0x11] ss:$16 sm:%s11_s7]   ;;  %s36_s12 = smov 3  ;;  %s39_s15 = smov 12 }
   0x2   :  { %v14_v2 = vsel %vm13_vm0, %v117_v1, %v116_v0  ;;  %v120_v3 = vld [vmem:[%s213_s0 + $0x5] ss:$16 sm:%s36_s12]   ;;  %s138_s16 = smov 112   ;;  %v121_v4 = vld [vmem:[%s213_s0 - $0x13] ss:$16 sm:%s39_s15]   ;;  %s22_s19 = smov 3 }
   0x3   :  { %15 = vrot.lane.b32.xlu0 %v14_v2, %s138_s16  ;;  %s25_s20 = smov 12  ;;  %v42_v5 = vsel %vm13_vm0, %v121_v4, %v120_v3  ;;  %v118_v6 = vld [vmem:[%s213_s0 + $0x6] ss:$16 sm:%s22_s19]   ;;  %s50_s25 = smov 3  ;;  %vm45_vm4 = vcmask 786048   ;;  %vm59_vm5 = vcmask 654848  }
   0x4   :  { %v119_v7 = vld [vmem:[%s213_s0 - $0x12] ss:$16 sm:%s25_s20]   ;;  %s139_s26 = smov 80   ;;  %v122_v9 = vld [vmem:[%s213_s0 + $0x4] ss:$16 sm:%s50_s25]   ;;  %s53_s29 = smov 12 }
   0x5   :  { %43 = vrot.lane.b32.xlu1 %v42_v5, %s139_s26  ;;  %v28_v8 = vsel %vm13_vm0, %v119_v7, %v118_v6  ;;  %v123_v10 = vld [vmem:[%s213_s0 - $0x14] ss:$16 sm:%s53_s29]   ;;  %s64_s3 = smov 3  ;;  %s67_s4 = smov 12  ;;  %vm73_vm6 = vcmask 523648   ;;  %vm87_vm7 = vcmask 392448  }
   0x6   :  { %s140_s5 = smov 96   ;;  %v56_v11 = vsel %vm13_vm0, %v123_v10, %v122_v9  ;;  %v124_v12 = vld [vmem:[%s213_s0 + $0x3] ss:$16 sm:%s64_s3]   ;;  %s78_s8 = smov 3  ;;  %v125_v13 = vld [vmem:[%s213_s0 - $0x15] ss:$16 sm:%s67_s4]  }
   0x7   :  { %29 = vrot.lane.b32.xlu0 %v28_v8, %s140_s5  ;;  %v126_v14 = vld [vmem:[%s213_s0 + $0x2] ss:$16 sm:%s78_s8]   ;;  %s81_s13 = smov 12  ;;  %s141_s14 = smov 64   ;;  %v70_v15 = vsel %vm13_vm0, %v125_v13, %v124_v12  ;;  %vm101_vm8 = vcmask 261248  }
   0x8   :  { %v127_v16 = vld [vmem:[%s213_s0 - $0x16] ss:$16 sm:%s81_s13]   ;;  %s92_s17 = smov 3  ;;  %s95_s18 = smov 12 }
   0x9   :  { %57 = vrot.lane.b32.xlu1 %v56_v11, %s141_s14  ;;  %v84_v17 = vsel %vm13_vm0, %v127_v16, %v126_v14  ;;  %v128_v18 = vld [vmem:[%s213_s0 + $0x1] ss:$16 sm:%s92_s17]   ;;  %s142_s23 = smov 48   ;;  %v2_v20 = vld [vmem:[%s213_s0] ss:$8 sm:$0xf]  }
   0xa   :  { %v129_v19 = vld [vmem:[%s213_s0 - $0x17] ss:$16 sm:%s95_s18]   ;;  %4 = vst.msk [vmem:[#allocation0] ss:$8 sm:$0x3] %vm3_vm1, %v2_v20   ;;  %s143_s0 = smov 32  }
   0xb   :  { %71 = vrot.lane.b32.xlu0 %v70_v15, %s142_s23  ;;  %v98_v21 = vsel %vm13_vm0, %v129_v19, %v128_v18  ;;  %6 = vst.msk [vmem:[#allocation0 - $0xf] ss:$8 sm:$0xc] %vm3_vm1, %v2_v20   ;;  %s144_s26 = smov 16  }
   0xd   :  { %85 = vrot.lane.b32.xlu1 %v84_v17, %s143_s0 }
   0xf   :  { %99 = vrot.lane.b32.xlu0 %v98_v21, %s144_s26 }
  0x75   :  { %v16_v22 = vpop.permute.xlu0 %15  }
  0x76   :  { %18 = vst.msk [vmem:[#allocation0] sm:$0x3] %vm17_vm2, %v16_v22   ;;  %20 = vst.msk [vmem:[#allocation0 + $0x6] sm:$0xc] %vm17_vm2, %v16_v22  }
  0x77   :  { %v44_v23 = vpop.permute.xlu1 %43  }
  0x79   :  { %v30_v24 = vpop.permute.xlu0 %29  }
  0x7a   :  { %32 = vst.msk [vmem:[#allocation0] sm:$0x3] %vm31_vm3, %v30_v24   ;;  %34 = vst.msk [vmem:[#allocation0 + $0x6] sm:$0xc] %vm31_vm3, %v30_v24  }
  0x7b   :  { %46 = vst.msk [vmem:[#allocation0] sm:$0x3] %vm45_vm4, %v44_v23   ;;  %48 = vst.msk [vmem:[#allocation0 + $0x6] sm:$0xc] %vm45_vm4, %v44_v23   ;;  %v58_v25 = vpop.permute.xlu1 %57  }
  0x7c   :  { %60 = vst.msk [vmem:[#allocation0] sm:$0x3] %vm59_vm5, %v58_v25   ;;  %62 = vst.msk [vmem:[#allocation0 + $0x6] sm:$0xc] %vm59_vm5, %v58_v25  }
  0x7d   :  { %v72_v26 = vpop.permute.xlu0 %71  }
  0x7e   :  { %74 = vst.msk [vmem:[#allocation0] sm:$0x3] %vm73_vm6, %v72_v26   ;;  %76 = vst.msk [vmem:[#allocation0 + $0x6] sm:$0xc] %vm73_vm6, %v72_v26  }
  0x7f   :  { %v86_v27 = vpop.permute.xlu1 %85  }
  0x80   :  { %88 = vst.msk [vmem:[#allocation0] sm:$0x3] %vm87_vm7, %v86_v27   ;;  %90 = vst.msk [vmem:[#allocation0 + $0x6] sm:$0xc] %vm87_vm7, %v86_v27  }
  0x81   :  { %v100_v28 = vpop.permute.xlu0 %99  }
  0x82   :  { %102 = vst.msk [vmem:[#allocation0] sm:$0x3] %vm101_vm8, %v100_v28   ;;  %104 = vst.msk [vmem:[#allocation0 + $0x6] sm:$0xc] %vm101_vm8, %v100_v28  }
  0x89   :  { %v108_v29 = vld [vmem:[#allocation0] sm:$0x3]  ;;  %v112_v30 = vld [vmem:[#allocation0 + $0x8] sm:$0x3] }
  0x8a   :  { %110 = vst [vmem:[%s214_s1] sm:$0x3] %v108_v29  ;;  %130 = vst [vmem:[%s214_s1 + $0x2] sm:$0x3] %v112_v30 }

// kernel: unsup_loss_multistage.8
= control target key start
LH: loop header
LB: loop body
LE: loop exit
PB: predicated region body
PF: predicated region fallthrough
CT: control target
= control target key end

     0   :  { %11 = vsyncpa [#allocation5], 0  ;;  %s1946_s0 = inlined_call_operand.vmem [shape: f32[2,2,3,8,8], index: 0, kind: input, shape index: {}]   ;;  %s1947_s1 = inlined_call_operand.vmem [shape: s8[2,2,1,8,8], index: 1, kind: input, shape index: {}]   ;;  %s1948_s2 = inlined_call_operand.vmem [shape: f32[2,3,8,8], index: 2, kind: input, shape index: {}]   ;;  %s1949_s3 = inlined_call_operand.vmem [shape: f32[2,1,8,8], index: 3, kind: input, shape index: {}]   ;;  %s1950_s4 = inlined_call_operand.vmem [shape: f32[4,4], index: 4, kind: output, shape index: {0}]   ;;  %s1951_s5 = inlined_call_operand.vmem [shape: f32[2,2], index: 5, kind: output, shape index: {1}]  }
   0x1   :  { %12 = vsyncpa [#allocation7], 0  ;;  %s1412_s18 = smov 0   ;;  %s1414_s19 = smov 0  }
   0x2   :  { %s1416_s20 = smov 0   ;;  %s1418_s21 = smov 0  }
   0x3   :  { %s1420_s22 = smov 0  }
   0x4 LB: > { %s27_s24 = sadd.s32 1, %s1366_s20  ;;  %s30_s25 = sadd.s32 1, %s1370_s21  ;;  %s1374_s22 = sphi %s1420_s22, %s18_s22   ;;  %s1370_s21 = sphi %s1418_s21, %s1967_s21   ;;  %s1366_s20 = sphi %s1416_s20, %s1966_s20   ;;  %s1362_s19 = sphi %s1414_s19, %s1965_s19   ;;  %s1358_s18 = sphi %s1412_s18, %s1964_s18  }
   0x5   : > { %p28_p0 = scmp.ge.s32.totalorder %s27_s24, 2  ;;  %p1185_p1 = scmp.ge.s32.totalorder %s1374_s22, 1 }
   0x6   : > { %p234_p2 = scmp.lt.s32.totalorder %s1374_s22, 5 }
   0x7   : > { %s1969_s24 = smov (%p28_p0, %s27_s24), 0  ;;  %s1971_s25 = smov (!%p28_p0, %s30_s25), %s1370_s21 }
   0x8   : > { %p235_p3 = pnand %p1185_p1, %p234_p2  ;;  %p32_p4 = scmp.ge.s32.totalorder %s1971_s25, 2 }
   0x9   : > { %p278_p5 = scmp.lt.s32.totalorder (!%p235_p3), %s1358_s18, 1  ;;  %p280_p6 = scmp.lt.s32.totalorder (!%p235_p3), %s1362_s19, 1  ;;  %v313_v0 = vlaneseq (!%p235_p3) }
   0xa   : > { %s1973_s25 = smov (%p32_p4, %s1971_s25), 0  ;;  %238 = sbr.rel (%p235_p3) target bundleno = 786 (0x312), region = 36 }
   0xb   : > { %v1450_v1 = vand.u32 (!%p235_p3), 127, %v313_v0  ;;  %v1452_v2 = vshrl.u32 (!%p235_p3), %v313_v0, 7  ;;  %p1191_p7 = scmp.ne.s32.totalorder (!%p235_p3), %s1358_s18, 0 }
   0xd   : > { %vm317_vm0 = vcmp.lt.s32.totalorder (!%p235_p3), %v1450_v1, 7  ;;  %vm318_vm1 = vcmp.lt.s32.totalorder (!%p235_p3), %v1452_v2, 7  ;;  %vm319_vm2 = vcmp.lt.s32.totalorder (!%p235_p3), %v1450_v1, 6  ;;  %vm320_vm3 = vcmp.lt.s32.totalorder (!%p235_p3), %v1452_v2, 6 }
   0xe   : > { %vm1459_vm4 = vmand (!%p235_p3), %vm319_vm2, %vm320_vm3 }
  0x11   : > { %s279_s26 = scalar_select %p278_p5, %s1358_s18, 1 }
  0x12   : > { %s281_s27 = scalar_select %p280_p6, %s1362_s19, 1 }
  0x13   : > { %s1218_s28 = smul.u32 6, %s279_s26  ;;  %s1187_s29 = sshll.u32 %s279_s26, 1  ;;  %vm370_vm5 = vcmask (!%p1191_p7), 1046528   ;;  %vm393_vm6 = vcmask (!%p1191_p7), 64512   ;;  %vm338_vm7 = vcmask (!%p1191_p7), 56320   ;;  %vm354_vm8 = vcmask (!%p1191_p7), 48128  }
  0x14   : > { %s1217_s30 = smul.u32 3, %s281_s27  ;;  %s292_s6 = sadd.s32 %s1187_s29, %s281_s27  ;;  %vm383_vm9 = vcmask (!%p1191_p7), 1045504  }
  0x15   : > { %s1188_s7 = sshll.u32 %s292_s6, 1  ;;  %s1219_s8 = smul.u32 24, %s281_s27 }
  0x16   : > { %s284_s9 = sadd.s32 %s1218_s28, %s1217_s30  ;;  %s294_s12 = scalar_lea.vmem %s1947_s1, %s1188_s7 }
  0x17   : > { %s1186_s13 = sshll.u32 %s284_s9, 3  ;;  %s299_s16 = scalar_lea.vmem %s1948_s2, %s1219_s8  ;;  %v310_v4 = vld [vmem:[%s294_s12] sm:$0x3] }
  0x18   : > { %s286_s29 = scalar_lea.vmem %s1946_s0, %s1186_s13  ;;  %s1190_s23 = sshll.u32 %s281_s27, 3  ;;  %v1472_v5 = vld [vmem:[%s299_s16] sm:$0xff]  ;;  %v1474_v6 = vld [vmem:[%s299_s16 + $0x8] sm:$0xff]  ;;  %v1476_v7 = vld [vmem:[%s299_s16 + $0x10] sm:$0xff]  ;;  %v311_v8 = vunpack.c.0.s8 %v310_v4 }
  0x19   : > { %s303_s6 = scalar_lea.vmem %s1949_s3, %s1190_s23  ;;  %v1481_v9 = vld [vmem:[%s286_s29] sm:$0xff]  ;;  %v1483_v10 = vld [vmem:[%s286_s29 + $0x8] sm:$0xff]  ;;  %v1485_v11 = vld [vmem:[%s286_s29 + $0x10] sm:$0xff]  ;;  %325 = sbr.rel (%p1191_p7) target bundleno = 385 (0x181), region = 40  ;;  %v486_v13 = vrot.slane (!%p1191_p7), %v1472_v5, 1  ;;  %v487_v14 = vrot.slane (!%p1191_p7), %v1474_v6, 1  ;;  %v1522_v42 = vmul.f32 (!%p1191_p7), %v1472_v5, %v1472_v5  ;;  %v1528_v43 = vmul.f32 (!%p1191_p7), %v1476_v7, %v1476_v7 }
  0x1a   : > { %v1487_v12 = vcvt.s32.f32 %v311_v8  ;;  %s1376_s27 = smov (!%p1191_p7), 127   ;;  %v488_v15 = vrot.slane (!%p1191_p7), %v1476_v7, 1  ;;  %v1497_v16 = vld [vmem:[%s303_s6] sm:$0xff] (!%p1191_p7)  ;;  %s1377_s23 = smov (!%p1191_p7), 126   ;;  %v1534_v44 = vmul.f32 (!%p1191_p7), %v1474_v6, %v1474_v6 }
  0x1b   : > { %333 = vrot.lane.b32.xlu1 (!%p1191_p7), %v1476_v7, %s1376_s27  ;;  %329 = vrot.lane.b32.xlu0 (!%p1191_p7), %v1472_v5, %s1376_s27  ;;  %v492_v17 = vsel (!%p1191_p7), %vm370_vm5, %v486_v13, 0.0  ;;  %v493_v18 = vsel (!%p1191_p7), %vm370_vm5, %v487_v14, 0.0  ;;  %v479_v34 = vrot.slane (!%p1191_p7), %v1497_v16, 1  ;;  %s1192_s7 = sshll.u32 (!%p1191_p7), %s1362_s19, 7 }
  0x1c   : > { %v494_v19 = vsel (!%p1191_p7), %vm370_vm5, %v488_v15, 0.0  ;;  %v495_v20 = vsub.f32 (!%p1191_p7), %v1472_v5, %v492_v17  ;;  %v496_v21 = vsub.f32 (!%p1191_p7), %v1474_v6, %v493_v18  ;;  %s537_s8 = scalar_lea.smem (!%p1191_p7), [#allocation6], %s1192_s7 }
  0x1d   : > { %v497_v22 = vsub.f32 (!%p1191_p7), %v1476_v7, %v494_v19  ;;  %v481_v35 = vsel (!%p1191_p7), %vm370_vm5, %v479_v34, 0.0  ;;  %s1109_s9 = scalar_lea.smem (!%p1191_p7), %s537_s8, 1 [#allocation6] }
  0x1e   : > { %v511_v23 = vand.u32 (!%p1191_p7), 2147483647, %v495_v20  ;;  %v512_v24 = vand.u32 (!%p1191_p7), 2147483647, %v496_v21  ;;  %v482_v36 = vsub.f32 (!%p1191_p7), %v1497_v16, %v481_v35 }
  0x1f   : > { %474 = vrot.lane.b32.xlu1 (!%p1191_p7), %v1497_v16, %s1376_s27  ;;  %331 = vrot.lane.b32.xlu0 (!%p1191_p7), %v1474_v6, %s1376_s27  ;;  %v513_v25 = vand.u32 (!%p1191_p7), 2147483647, %v497_v22 }
  0x20   : > { %v514_v26 = vsel %vm393_vm6, %v511_v23, 0.0  ;;  %v515_v27 = vsel %vm393_vm6, %v512_v24, 0.0 }
  0x21   : > { %v516_v28 = vadd.f32 %v515_v27, %v514_v26  ;;  %v517_v29 = vsel %vm393_vm6, %v513_v25, 0.0 }
  0x23   : > { %v518_v30 = vadd.f32 %v517_v29, %v516_v28 }
  0x25   : > { %v519_v31 = vmul.f32 0.33333334, %v518_v30 }
  0x27   : > { %v520_v32 = vsub.f32 0.0, %v519_v31 }
  0x29   : > { %v521_v33 = vmul.f32 1.442695, %v520_v32 }
  0x2b   : > { %1290 = vpow2.f32 %v521_v33 }
  0x35   : > { %v1291_v37 = vpop.eup %1290 }
  0x36   : > { %v539_v38 = vmul.f32 %v1291_v37, %v482_v36 }
  0x38   : > { %v540_v39 = vand.u32 2147483647, %v539_v38 }
  0x3a   : > { %v541_v40 = vsel %vm318_vm1, %v540_v39, 0.0 }
  0x3b   : > { %v542_v41 = vsel %vm393_vm6, %v541_v40, 0.0 }
  0x43   : > { %543 = vadd.xlane.f32.xlu1 %v542_v41 }
  0x54   : > { %347 = vrot.lane.b32.xlu1 %v1474_v6, %s1377_s23 }
  0x58   : > { %403 = vrot.lane.b32.xlu1 %v1522_v42, %s1376_s27 }
  0x5c   : > { %407 = vrot.lane.b32.xlu1 %v1528_v43, %s1376_s27 }
  0x60   : > { %420 = vrot.lane.b32.xlu1 %v1534_v44, %s1377_s23 }
  0x8d   : > { %v330_v45 = vpop.permute.xlu0 %329  ;;  %v334_v46 = vpop.permute.xlu1 %333 }
  0x8e   : > { %v339_v47 = vsel %vm338_vm7, %v330_v45, 0.0  ;;  %v341_v48 = vsel %vm338_vm7, %v334_v46, 0.0 }
  0x8f   : > { %v483_v49 = vsub.f32 %v1472_v5, %v339_v47  ;;  %v485_v50 = vsub.f32 %v1476_v7, %v341_v48  ;;  %v342_v38 = vadd.f32 %v339_v47, %v1472_v5 }
  0x91   : > { %v332_v51 = vpop.permute.xlu0 %331  ;;  %v498_v53 = vand.u32 2147483647, %v483_v49  ;;  %v500_v55 = vand.u32 2147483647, %v485_v50  ;;  %v475_v4 = vpop.permute.xlu1 %474 }
  0x92   : > { %v340_v52 = vsel %vm338_vm7, %v332_v51, 0.0  ;;  %v477_v8 = vsel %vm338_vm7, %v475_v4, 0.0  ;;  %v344_v51 = vadd.f32 %v341_v48, %v1476_v7 }
  0x93   : > { %v484_v54 = vsub.f32 %v1474_v6, %v340_v52  ;;  %v501_v57 = vsel %vm393_vm6, %v498_v53, 0.0  ;;  %v504_v59 = vsel %vm393_vm6, %v500_v55, 0.0  ;;  %v478_v13 = vsub.f32 %v1497_v16, %v477_v8 }
  0x94   : > { %v343_v16 = vadd.f32 %v340_v52, %v1474_v6 }
  0x95   : > { %v499_v56 = vand.u32 2147483647, %v484_v54 }
  0x97   : > { %v502_v58 = vsel %vm393_vm6, %v499_v56, 0.0 }
  0x98   : > { %v503_v60 = vadd.f32 %v502_v58, %v501_v57 }
  0x9a   : > { %v505_v61 = vadd.f32 %v504_v59, %v503_v60 }
  0x9c   : > { %v507_v62 = vmul.f32 0.33333334, %v505_v61 }
  0x9e   : > { %v508_v63 = vsub.f32 0.0, %v507_v62 }
  0xa0   : > { %v509_v0 = vmul.f32 1.442695, %v508_v63 }
  0xa2   : > { %1292 = vpow2.f32 %v509_v0 }
  0xac   : > { %v1293_v14 = vpop.eup %1292 }
  0xad   : > { %v523_v15 = vmul.f32 %v1293_v14, %v478_v13 }
  0xaf   : > { %v524_v17 = vand.u32 2147483647, %v523_v15 }
  0xb1   : > { %v525_v18 = vsel %vm317_vm0, %v524_v17, 0.0 }
  0xb2   : > { %v526_v19 = vsel %vm393_vm6, %v525_v18, 0.0 }
  0xb3   : > { %527 = vadd.xlane.f32.xlu0 %v526_v19 }
  0xc9   : > { %345 = vrot.lane.b32.xlu0 %v1472_v5, %s1377_s23 }
  0xcd   : > { %349 = vrot.lane.b32.xlu0 %v1476_v7, %s1377_s23 }
  0xd0   : > { %v544_v20 = vpop.xlane.xlu1 %543 }
  0xd1   : > { %405 = vrot.lane.b32.xlu0 %v1534_v44, %s1376_s27  ;;  %v545_v31 = vrot.slane %v544_v20, 4 }
  0xd3   : > { %v546_v32 = vadd.f32 %v545_v31, %v544_v20 }
  0xd4   : > { %v348_v21 = vpop.permute.xlu1 %347 }
  0xd5   : > { %v356_v22 = vsel %vm354_vm8, %v348_v21, 0.0  ;;  %418 = vrot.lane.b32.xlu0 %v1522_v42, %s1377_s23  ;;  %v547_v34 = vrot.slane %v546_v32, 2 }
  0xd6   : > { %v359_v23 = vadd.f32 %v356_v22, %v343_v16 }
  0xd7   : > { %v548_v41 = vadd.f32 %v547_v34, %v546_v32 }
  0xd8   : > { %v365_v24 = vrot.slane %v359_v23, 1  ;;  %v378_v25 = vrot.slane %v359_v23, 2  ;;  %v404_v33 = vpop.permute.xlu1 %403 }
  0xd9   : > { %422 = vrot.lane.b32.xlu0 %v1528_v43, %s1377_s23  ;;  %v549_v55 = vrot.slane %v548_v41, 1  ;;  %v412_v61 = vsel %vm338_vm7, %v404_v33, 0.0 }
  0xda   : > { %v372_v26 = vsel %vm370_vm5, %v365_v24, 0.0  ;;  %v385_v28 = vsel %vm383_vm9, %v378_v25, 0.0  ;;  %v415_v17 = vadd.f32 %v412_v61, %v1522_v42 }
  0xdb   : > { %v375_v27 = vadd.f32 %v372_v26, %v359_v23  ;;  %v550_v8 = vadd.f32 %v549_v55, %v548_v41 }
  0xdc   : > { %v408_v40 = vpop.permute.xlu1 %407 }
  0xdd   : > { %v388_v29 = vadd.f32 %v385_v28, %v375_v27  ;;  %v414_v21 = vsel %vm338_vm7, %v408_v40, 0.0 }
  0xde   : > { %v417_v42 = vadd.f32 %v414_v21, %v1528_v43 }
  0xdf   : > { %v1566_v30 = vmul.f32 0.11111111, %v388_v29 }
  0xe0   : > { %v421_v59 = vpop.permute.xlu1 %420 }
  0xe1   : > { %395 = vst.msk [vmem:[#allocation2 + $0x8] sm:$0xff] %vm393_vm6, %v1566_v30  ;;  %v428_v15 = vsel %vm354_vm8, %v421_v59, 0.0 }
 0x140   : > { %v528_v35 = vpop.xlane.xlu0 %527 }
 0x141   : > { %v529_v36 = vrot.slane %v528_v35, 4 }
 0x143   : > { %v530_v37 = vadd.f32 %v529_v36, %v528_v35 }
 0x144   : > { %v346_v39 = vpop.permute.xlu0 %345 }
 0x145   : > { %v531_v45 = vrot.slane %v530_v37, 2  ;;  %v355_v46 = vsel %vm354_vm8, %v346_v39, 0.0 }
 0x146   : > { %v358_v49 = vadd.f32 %v355_v46, %v342_v38 }
 0x147   : > { %v532_v50 = vadd.f32 %v531_v45, %v530_v37 }
 0x148   : > { %v364_v52 = vrot.slane %v358_v49, 1  ;;  %v377_v53 = vrot.slane %v358_v49, 2  ;;  %v350_v54 = vpop.permute.xlu0 %349 }
 0x149   : > { %v357_v56 = vsel %vm354_vm8, %v350_v54, 0.0  ;;  %v533_v57 = vrot.slane %v532_v50, 1 }
 0x14a   : > { %v371_v58 = vsel %vm370_vm5, %v364_v52, 0.0  ;;  %v360_v47 = vadd.f32 %v357_v56, %v344_v51  ;;  %v384_v63 = vsel %vm383_vm9, %v377_v53, 0.0 }
 0x14b   : > { %v374_v60 = vadd.f32 %v371_v58, %v358_v49  ;;  %v534_v62 = vadd.f32 %v533_v57, %v532_v50  ;;  %v464_v49 = vmul.f32 %v1566_v30, %v1566_v30 }
 0x14c   : > { %v366_v0 = vrot.slane %v360_v47, 1  ;;  %v379_v4 = vrot.slane %v360_v47, 2  ;;  %v406_v48 = vpop.permute.xlu0 %405 }
 0x14d   : > { %v387_v13 = vadd.f32 %v384_v63, %v374_v60  ;;  %v413_v14 = vsel %vm338_vm7, %v406_v48, 0.0  ;;  %1220 = vpush %v534_v62 }
 0x14e   : > { %v373_v18 = vsel %vm370_vm5, %v366_v0, 0.0  ;;  %v416_v19 = vadd.f32 %v413_v14, %v1534_v44  ;;  %1222 = vpush %v550_v8  ;;  %v386_v22 = vsel %vm383_vm9, %v379_v4, 0.0 }
 0x14f   : > { %v390_v20 = vmul.f32 0.11111111, %v387_v13  ;;  %v376_v16 = vadd.f32 %v373_v18, %v360_v47 }
 0x150   : > { %v431_v23 = vadd.f32 %v428_v15, %v416_v19  ;;  %v419_v24 = vpop.permute.xlu0 %418 }
 0x151   : > { %394 = vst.msk [vmem:[#allocation2] sm:$0xff] %vm393_vm6, %v390_v20  ;;  %v389_v25 = vadd.f32 %v386_v22, %v376_v16  ;;  %v427_v26 = vsel %vm354_vm8, %v419_v24, 0.0  ;;  %v463_v54 = vmul.f32 %v390_v20, %v390_v20 }
 0x152   : > { %v437_v27 = vrot.slane %v431_v23, 1  ;;  %v449_v28 = vrot.slane %v431_v23, 2  ;;  %v430_v29 = vadd.f32 %v427_v26, %v415_v17 }
 0x153   : > { %v392_v44 = vmul.f32 0.11111111, %v389_v25 }
 0x154   : > { %v443_v31 = vsel %vm370_vm5, %v437_v27, 0.0  ;;  %v455_v32 = vsel %vm383_vm9, %v449_v28, 0.0  ;;  %v436_v33 = vrot.slane %v430_v29, 1  ;;  %v448_v34 = vrot.slane %v430_v29, 2  ;;  %v423_v35 = vpop.permute.xlu0 %422 }
 0x155   : > { %396 = vst.msk [vmem:[#allocation2 + $0x10] sm:$0xff] %vm393_vm6, %v392_v44  ;;  %v446_v36 = vadd.f32 %v443_v31, %v431_v23  ;;  %v429_v37 = vsel %vm354_vm8, %v423_v35, 0.0  ;;  %v465_v59 = vmul.f32 %v392_v44, %v392_v44 }
 0x156   : > { %v442_v38 = vsel %vm370_vm5, %v436_v33, 0.0  ;;  %v454_v43 = vsel %vm383_vm9, %v448_v34, 0.0  ;;  %v432_v39 = vadd.f32 %v429_v37, %v417_v42 }
 0x157   : > { %v458_v40 = vadd.f32 %v455_v32, %v446_v36  ;;  %v445_v41 = vadd.f32 %v442_v38, %v430_v29 }
 0x158   : > { %v438_v45 = vrot.slane %v432_v39, 1  ;;  %v450_v46 = vrot.slane %v432_v39, 2 }
 0x159   : > { %v461_v50 = vmul.f32 0.11111111, %v458_v40  ;;  %v457_v51 = vadd.f32 %v454_v43, %v445_v41 }
 0x15a   : > { %v444_v52 = vsel %vm370_vm5, %v438_v45, 0.0  ;;  %v456_v53 = vsel %vm383_vm9, %v450_v46, 0.0 }
 0x15b   : > { %v467_v55 = vsub.f32 %v461_v50, %v464_v49  ;;  %v460_v56 = vmul.f32 0.11111111, %v457_v51  ;;  %v447_v57 = vadd.f32 %v444_v52, %v432_v39 }
 0x15d   : > { %470 = vst.msk [vmem:[#allocation3 + $0x8] sm:$0xff] %vm393_vm6, %v467_v55  ;;  %v466_v58 = vsub.f32 %v460_v56, %v463_v54  ;;  %v459_v47 = vadd.f32 %v456_v53, %v447_v57 }
 0x15f   : > { %469 = vst.msk [vmem:[#allocation3] sm:$0xff] %vm393_vm6, %v466_v58  ;;  %v462_v60 = vmul.f32 0.11111111, %v459_v47 }
 0x161   : > { %v468_v30 = vsub.f32 %v462_v60, %v465_v59 }
 0x163   : > { %471 = vst.msk [vmem:[#allocation3 + $0x10] sm:$0xff] %vm393_vm6, %v468_v30 }
 0x17e   : > { %s1221_s10 = spop %1220 }
 0x17f   : > { %538 = sst [smem:[%s537_s8]] %s1221_s10  ;;  %s1223_s11 = spop %1222 }
 0x180   : > { %554 = sst [smem:[%s1109_s9]] %s1223_s11 }
 0x181 PF: > { %s1378_s12 = smov 127   ;;  %s1379_s13 = smov 126   ;;  %v1610_v61 = vmul.f32 %v1481_v9, %v1481_v9  ;;  %v1617_v62 = vmul.f32 %v1483_v10, %v1483_v10  ;;  %v1624_v63 = vmul.f32 %v1485_v11, %v1485_v11  ;;  %v1633_v0 = vmul.f32 %v1474_v6, %v1483_v10  ;;  %v1698_v50 = vld [vmem:[#allocation2] sm:$0xff]  ;;  %v1700_v51 = vld [vmem:[#allocation2 + $0x8] sm:$0xff]  ;;  %v1712_v60 = vld [vmem:[#allocation2 + $0x10] sm:$0xff] }
 0x182   : > { %713 = vrot.lane.b32.xlu1 %v1485_v11, %s1378_s12  ;;  %709 = vrot.lane.b32.xlu0 %v1481_v9, %s1378_s12  ;;  %v1637_v4 = vmul.f32 %v1472_v5, %v1481_v9  ;;  %v1645_v48 = vmul.f32 %v1476_v7, %v1485_v11  ;;  %v555_v8 = vsub.f32 %v1481_v9, %v1472_v5  ;;  %vm579_vm12 = vcmask 64512   ;;  %s1962_s14 = sadd.s32 4294967295, %s1374_s22   ;;  %s1044_s26 = sshll.u32 %s1951_s5, 4  ;;  %s1045_s26 = int_to_ptr.vmem [resolvable:$true] %s1044_s26 }
 0x183   : > { %v556_v13 = vsub.f32 %v1483_v10, %v1474_v6  ;;  %v557_v17 = vsub.f32 %v1485_v11, %v1476_v7  ;;  %vm624_vm14 = vcmask 1046528   ;;  %vm606_vm15 = vcmask 56320   ;;  %p1897_p8 = scmp.eq.s32.totalorder %s1962_s14, 3  ;;  %s1300_s29 = scalar_lea.vmem %s1045_s26, 32 }
 0x184   : > { %v1660_v14 = vmul.f32 %v555_v8, %v1487_v12  ;;  %vm733_vm2 = vcmask 48128   ;;  %vm761_vm3 = vcmask 1045504   ;;  %v936_v58 = vmul.f32 2.0, %v1698_v50  ;;  %p1301_p9 = scmp.ne.s32.totalorder %s1045_s26, %s1300_s29  ;;  %p1307_p12 = scmp.lt.s32.totalorder %s1045_s26, %s1045_s26 }
 0x185   : > { %v1663_v15 = vmul.f32 %v556_v13, %v1487_v12  ;;  %v1672_v5 = vmul.f32 %v557_v17, %v1487_v12  ;;  %v1719_v8 = vmul.f32 %v1698_v50, %v1698_v50  ;;  %v1723_v2 = vmul.f32 %v1712_v60, %v1712_v60  ;;  %p1308_p13 = scmp.lt.s32.totalorder %s1300_s29, %s1300_s29 }
 0x186   : > { %724 = vrot.lane.b32.xlu1 %v1481_v9, %s1379_s13  ;;  %711 = vrot.lane.b32.xlu0 %v1483_v10, %s1378_s12  ;;  %v561_v6 = vand.u32 2147483647, %v1660_v14  ;;  %v567_v19 = vmul.f32 0.5, %v1660_v14  ;;  %v618_v34 = vrot.slane %v1660_v14, 1  ;;  %v1727_v17 = vmul.f32 %v1700_v51, %v1700_v51  ;;  %p1302_p10 = pnand %p1301_p9, %p1897_p8 }
 0x187   : > { %v562_v18 = vand.u32 2147483647, %v1663_v15  ;;  %v568_v7 = vmul.f32 0.5, %v1663_v15  ;;  %v563_v20 = vand.u32 2147483647, %v1672_v5  ;;  %v569_v16 = vmul.f32 0.5, %v1672_v5  ;;  %p1309_p0 = por %p1308_p13, %p1307_p12 }
 0x188   : > { %v570_v21 = vmul.f32 %v567_v19, %v1660_v14  ;;  %v1194_v23 = vadd.f32 -0.5, %v561_v6  ;;  %vm564_vm10 = vcmp.lt.f32.partialorder %v561_v6, 1.0  ;;  %v619_v35 = vrot.slane %v1663_v15, 1  ;;  %p1303_p11 = pneg %p1302_p10 }
 0x189   : > { %v571_v22 = vmul.f32 %v568_v7, %v1663_v15  ;;  %v1195_v24 = vadd.f32 -0.5, %v562_v18  ;;  %vm565_vm11 = vcmp.lt.f32.partialorder %v562_v18, 1.0  ;;  %v572_v25 = vmul.f32 %v569_v16, %v1672_v5 }
 0x18a   : > { %777 = vrot.lane.b32.xlu1 %v1610_v61, %s1378_s12  ;;  %726 = vrot.lane.b32.xlu0 %v1483_v10, %s1379_s13  ;;  %v1196_v26 = vadd.f32 -0.5, %v563_v20  ;;  %v576_v42 = vsel %vm564_vm10, %v570_v21, %v1194_v23  ;;  %vm566_vm13 = vcmp.lt.f32.partialorder %v563_v20, 1.0  ;;  %v620_v36 = vrot.slane %v1672_v5, 1  ;;  %p1310_p1 = pnand %p1309_p0, %p1303_p11 }
 0x18b   : > { %v577_v27 = vsel %vm565_vm11, %v571_v22, %v1195_v24  ;;  %v580_v28 = vsel %vm579_vm12, %v576_v42, 0.0  ;;  %v625_v37 = vsel %vm624_vm14, %v618_v34, 0.0  ;;  %v626_v38 = vsel %vm624_vm14, %v619_v35, 0.0 }
 0x18c   : > { %v581_v29 = vsel %vm579_vm12, %v577_v27, 0.0  ;;  %v578_v44 = vsel %vm566_vm13, %v572_v25, %v1196_v26  ;;  %v627_v43 = vsel %vm624_vm14, %v620_v36, 0.0  ;;  %v628_v39 = vsub.f32 %v625_v37, %v1660_v14 }
 0x18d   : > { %v582_v31 = vadd.f32 %v581_v29, %v580_v28  ;;  %v583_v32 = vsel %vm579_vm12, %v578_v44, 0.0  ;;  %v629_v45 = vsub.f32 %v626_v38, %v1663_v15  ;;  %v630_v46 = vsub.f32 %v627_v43, %v1672_v5 }
 0x18e   : > { %728 = vrot.lane.b32.xlu1 %v1485_v11, %s1379_s13  ;;  %779 = vrot.lane.b32.xlu0 %v1617_v62, %s1378_s12  ;;  %v633_v52 = vsel %vm318_vm1, %v628_v39, 0.0  ;;  %v1731_v22 = vmul.f32 2.0, %v1712_v60 }
 0x18f   : > { %v584_v33 = vadd.f32 %v583_v32, %v582_v31  ;;  %v634_v56 = vsel %vm318_vm1, %v629_v45, 0.0  ;;  %v635_v57 = vsel %vm318_vm1, %v630_v46, 0.0  ;;  %v668_v13 = vand.u32 2147483647, %v633_v52 }
 0x190   : > { %v669_v6 = vand.u32 2147483647, %v634_v56  ;;  %v670_v18 = vand.u32 2147483647, %v635_v57  ;;  %v674_v25 = vmul.f32 0.5, %v633_v52  ;;  %v675_v26 = vmul.f32 0.5, %v634_v56 }
 0x191   : > { %vm1736_vm1 = vcmp.lt.f32.partialorder %v668_v13, 1.0  ;;  %v676_v29 = vmul.f32 0.5, %v635_v57  ;;  %v1748_v32 = vadd.f32 -0.5, %v668_v13 }
 0x192   : > { %792 = vrot.lane.b32.xlu1 %v1610_v61, %s1379_s13  ;;  %781 = vrot.lane.b32.xlu0 %v1624_v63, %s1378_s12  ;;  %vm1740_vm5 = vcmp.lt.f32.partialorder %v669_v6, 1.0  ;;  %vm1744_vm6 = vcmp.lt.f32.partialorder %v670_v18, 1.0 }
 0x196   : > { %796 = vrot.lane.b32.xlu1 %v1624_v63, %s1379_s13  ;;  %794 = vrot.lane.b32.xlu0 %v1617_v62, %s1379_s13 }
 0x19a   : > { %851 = vrot.lane.b32.xlu1 %v1633_v0, %s1378_s12  ;;  %849 = vrot.lane.b32.xlu0 %v1637_v4, %s1378_s12 }
 0x19e   : > { %864 = vrot.lane.b32.xlu1 %v1637_v4, %s1379_s13  ;;  %853 = vrot.lane.b32.xlu0 %v1645_v48, %s1378_s12 }
 0x1a2   : > { %868 = vrot.lane.b32.xlu1 %v1645_v48, %s1379_s13  ;;  %866 = vrot.lane.b32.xlu0 %v1633_v0, %s1379_s13 }
 0x1a6   : > { %916 = vrot.lane.b32.xlu0 %v1487_v12, %s1378_s12  ;;  %921 = vrot.lane.b32.xlu1 %v1487_v12, %s1379_s13 }
 0x1aa   : > { %597 = vrot.lane.b32.xlu0 %v1660_v14, %s1378_s12  ;;  %599 = vrot.lane.b32.xlu1 %v1663_v15, %s1378_s12 }
 0x1ae   : > { %601 = vrot.lane.b32.xlu0 %v1672_v5, %s1378_s12 }
 0x1ce   : > { %585 = vadd.xlane.f32.xlu1 %v584_v33 }
 0x1f4   : > { %v714_v40 = vpop.permute.xlu1 %713  ;;  %v710_v41 = vpop.permute.xlu0 %709 }
 0x1f5   : > { %v718_v49 = vsel %vm606_vm15, %v710_v41, 0.0  ;;  %v720_v23 = vsel %vm606_vm15, %v714_v40, 0.0  ;;  %v1754_v41 = vmul.f32 %v674_v25, %v633_v52 }
 0x1f6   : > { %v721_v53 = vadd.f32 %v718_v49, %v1481_v9  ;;  %v1715_v9 = vmul.f32 2.0, %v1700_v51  ;;  %v723_v33 = vadd.f32 %v720_v23, %v1485_v11  ;;  %v1757_v49 = vmul.f32 %v675_v26, %v634_v56 }
 0x1f7   : > { %v683_v25 = vsel %vm1736_vm1, %v1754_v41, %v1748_v32 }
 0x1f8   : > { %v725_v54 = vpop.permute.xlu1 %724  ;;  %v712_v55 = vpop.permute.xlu0 %711 }
 0x1f9   : > { %v734_v47 = vsel %vm733_vm2, %v725_v54, 0.0  ;;  %v719_v59 = vsel %vm606_vm15, %v712_v55, 0.0  ;;  %v1761_v55 = vadd.f32 -0.5, %v669_v6 }
 0x1fa   : > { %v737_v30 = vadd.f32 %v734_v47, %v721_v53  ;;  %v722_v20 = vadd.f32 %v719_v59, %v1483_v10  ;;  %v1759_v53 = vmul.f32 %v676_v29, %v635_v57  ;;  %v1763_v47 = vadd.f32 -0.5, %v670_v18 }
 0x1fc   : > { %v743_v19 = vrot.slane %v737_v30, 1  ;;  %v755_v7 = vrot.slane %v737_v30, 2  ;;  %v778_v16 = vpop.permute.xlu1 %777  ;;  %v727_v21 = vpop.permute.xlu0 %726 }
 0x1fd   : > { %v735_v24 = vsel %vm733_vm2, %v727_v21, 0.0  ;;  %v786_v39 = vsel %vm606_vm15, %v778_v16, 0.0 }
 0x1fe   : > { %v749_v42 = vsel %vm624_vm14, %v743_v19, 0.0  ;;  %v738_v27 = vadd.f32 %v735_v24, %v722_v20  ;;  %v762_v34 = vsel %vm761_vm3, %v755_v7, 0.0  ;;  %v789_v59 = vadd.f32 %v786_v39, %v1610_v61 }
 0x1ff   : > { %v752_v10 = vadd.f32 %v749_v42, %v737_v30 }
 0x200   : > { %v744_v35 = vrot.slane %v738_v27, 1  ;;  %v756_v36 = vrot.slane %v738_v27, 2  ;;  %v729_v37 = vpop.permute.xlu1 %728  ;;  %v780_v38 = vpop.permute.xlu0 %779 }
 0x201   : > { %v765_v43 = vadd.f32 %v762_v34, %v752_v10  ;;  %v736_v40 = vsel %vm733_vm2, %v729_v37, 0.0  ;;  %v787_v56 = vsel %vm606_vm15, %v780_v38, 0.0  ;;  %v685_v37 = vsel %vm1744_vm6, %v1759_v53, %v1763_v47 }
 0x202   : > { %v750_v45 = vsel %vm624_vm14, %v744_v35, 0.0  ;;  %v739_v46 = vadd.f32 %v736_v40, %v723_v33  ;;  %v763_v30 = vsel %vm761_vm3, %v756_v36, 0.0  ;;  %v790_v35 = vadd.f32 %v787_v56, %v1617_v62 }
 0x203   : > { %v768_v11 = vmul.f32 0.11111111, %v765_v43  ;;  %v753_v54 = vadd.f32 %v750_v45, %v738_v27 }
 0x204   : > { %v745_v13 = vrot.slane %v739_v46, 1  ;;  %v757_v52 = vrot.slane %v739_v46, 2  ;;  %v793_v19 = vpop.permute.xlu1 %792  ;;  %v782_v7 = vpop.permute.xlu0 %781 }
 0x205   : > { %v939_v20 = vmul.f32 %v936_v58, %v768_v11  ;;  %v766_v16 = vadd.f32 %v763_v30, %v753_v54  ;;  %v801_v57 = vsel %vm733_vm2, %v793_v19, 0.0  ;;  %v837_v23 = vmul.f32 %v768_v11, %v768_v11 }
 0x206   : > { %v751_v21 = vsel %vm624_vm14, %v745_v13, 0.0  ;;  %v804_v6 = vadd.f32 %v801_v57, %v789_v59  ;;  %v788_v18 = vsel %vm606_vm15, %v782_v7, 0.0  ;;  %v684_v58 = vsel %vm1740_vm5, %v1757_v49, %v1761_v55 }
 0x207   : > { %v1771_v24 = vmul.f32 0.11111111, %v766_v16  ;;  %v754_v61 = vadd.f32 %v751_v21, %v739_v46  ;;  %v764_v26 = vsel %vm761_vm3, %v757_v52, 0.0  ;;  %v791_v29 = vadd.f32 %v788_v18, %v1624_v63 }
 0x208   : > { %v810_v42 = vrot.slane %v804_v6, 1  ;;  %v822_v27 = vrot.slane %v804_v6, 2  ;;  %v797_v10 = vpop.permute.xlu1 %796  ;;  %v795_v33 = vpop.permute.xlu0 %794  ;;  %v1789_v38 = vadd.f32 0.0001, %v939_v20  ;;  %v957_v39 = vadd.f32 %v1719_v8, %v837_v23 }
 0x209   : > { %v767_v34 = vadd.f32 %v764_v26, %v754_v61  ;;  %v803_v36 = vsel %vm733_vm2, %v797_v10, 0.0  ;;  %v1797_v62 = vmul.f32 %v1771_v24, %v1771_v24  ;;  %v802_v46 = vsel %vm733_vm2, %v795_v33, 0.0 }
 0x20a   : > { %v816_v43 = vsel %vm624_vm14, %v810_v42, 0.0  ;;  %v806_v40 = vadd.f32 %v803_v36, %v791_v29  ;;  %v828_v54 = vsel %vm761_vm3, %v822_v27, 0.0  ;;  %v805_v13 = vadd.f32 %v802_v46, %v790_v35 }
 0x20b   : > { %v1793_v63 = vmul.f32 0.11111111, %v767_v34  ;;  %v819_v45 = vadd.f32 %v816_v43, %v804_v6  ;;  %v940_v8 = vmul.f32 %v1715_v9, %v1771_v24  ;;  %v1806_v16 = vmul.f32 %v768_v11, %v1698_v50  ;;  %v703_v9 = vld [vmem:[#allocation3] sm:$0xff] }
 0x20c   : > { %v812_v59 = vrot.slane %v806_v40, 1  ;;  %v824_v30 = vrot.slane %v806_v40, 2  ;;  %v852_v52 = vpop.permute.xlu1 %851  ;;  %v850_v19 = vpop.permute.xlu0 %849  ;;  %v960_v56 = vadd.f32 0.0001, %v957_v39  ;;  %v811_v21 = vrot.slane %v805_v13, 1 }
 0x20d   : > { %v831_v7 = vadd.f32 %v828_v54, %v819_v45  ;;  %v839_v20 = vmul.f32 %v1793_v63, %v1793_v63  ;;  %v858_v6 = vsel %vm606_vm15, %v850_v19, 0.0  ;;  %v958_v26 = vadd.f32 %v1727_v17, %v1797_v62 }
 0x20e   : > { %v818_v57 = vsel %vm624_vm14, %v812_v59, 0.0  ;;  %v823_v42 = vrot.slane %v805_v13, 2  ;;  %v830_v29 = vsel %vm761_vm3, %v824_v30, 0.0  ;;  %v817_v50 = vsel %vm624_vm14, %v811_v21, 0.0  ;;  %v705_v30 = vld [vmem:[#allocation3 + $0x10] sm:$0xff] }
 0x20f   : > { %v834_v18 = vmul.f32 0.11111111, %v831_v7  ;;  %v821_v61 = vadd.f32 %v818_v57, %v806_v40  ;;  %v959_v27 = vadd.f32 %v1723_v2, %v839_v20  ;;  %v859_v11 = vsel %vm606_vm15, %v852_v52, 0.0 }
 0x210   : > { %v865_v10 = vpop.permute.xlu1 %864  ;;  %v854_v33 = vpop.permute.xlu0 %853  ;;  %v820_v36 = vadd.f32 %v817_v50, %v805_v13  ;;  %v861_v43 = vadd.f32 %v858_v6, %v1637_v4  ;;  %v1817_v39 = vadd.f32 0.0001, %v940_v8  ;;  %v829_v17 = vsel %vm761_vm3, %v823_v42, 0.0 }
 0x211   : > { %v840_v34 = vsub.f32 %v834_v18, %v837_v23  ;;  %v833_v35 = vadd.f32 %v830_v29, %v821_v61  ;;  %v873_v40 = vsel %vm733_vm2, %v865_v10, 0.0  ;;  %v860_v2 = vsel %vm606_vm15, %v854_v33, 0.0  ;;  %v704_v18 = vld [vmem:[#allocation3 + $0x8] sm:$0xff] }
 0x212   : > { %v832_v54 = vadd.f32 %v829_v17, %v820_v36  ;;  %v876_v59 = vadd.f32 %v873_v40, %v861_v43  ;;  %v962_v52 = vadd.f32 0.0001, %v959_v27  ;;  %v961_v19 = vadd.f32 0.0001, %v958_v26 }
 0x213   : > { %v963_v45 = vadd.f32 %v840_v34, %v703_v9  ;;  %v836_v46 = vmul.f32 0.11111111, %v833_v35  ;;  %v862_v23 = vadd.f32 %v859_v11, %v1633_v0  ;;  %v863_v13 = vadd.f32 %v860_v2, %v1645_v48 }
 0x214   : > { %v869_v4 = vpop.permute.xlu1 %868  ;;  %v867_v8 = vpop.permute.xlu0 %866  ;;  %v835_v21 = vmul.f32 0.11111111, %v832_v54  ;;  %v882_v6 = vrot.slane %v876_v59, 1  ;;  %v894_v61 = vrot.slane %v876_v59, 2  ;;  %v941_v27 = vmul.f32 %v1731_v22, %v1793_v63 }
 0x215   : > { %v966_v7 = vadd.f32 0.0009, %v963_v45  ;;  %v842_v57 = vsub.f32 %v836_v46, %v839_v20  ;;  %v875_v42 = vsel %vm733_vm2, %v869_v4, 0.0  ;;  %v874_v9 = vsel %vm733_vm2, %v867_v8, 0.0 }
 0x216   : > { %v841_v0 = vsub.f32 %v835_v21, %v1797_v62  ;;  %v888_v48 = vsel %vm624_vm14, %v882_v6, 0.0  ;;  %v900_v20 = vsel %vm761_vm3, %v894_v61, 0.0  ;;  %v878_v11 = vadd.f32 %v875_v42, %v863_v13 }
 0x217   : > { %v969_v26 = vmul.f32 %v966_v7, %v960_v56  ;;  %v965_v29 = vadd.f32 %v842_v57, %v705_v30  ;;  %v891_v50 = vadd.f32 %v888_v48, %v876_v59  ;;  %v877_v10 = vadd.f32 %v874_v9, %v862_v23 }
 0x218   : > { %v917_v33 = vpop.permute.xlu0 %916  ;;  %v922_v34 = vpop.permute.xlu1 %921  ;;  %v964_v36 = vadd.f32 %v841_v0, %v704_v18  ;;  %v884_v22 = vrot.slane %v878_v11, 1  ;;  %v896_v56 = vrot.slane %v878_v11, 2  ;;  %v910_v48 = vmul.f32 %v1771_v24, %v1700_v51 }
 0x219   : > { %1294 = vrcp.f32 %v969_v26  ;;  %v968_v35 = vadd.f32 0.0009, %v965_v29  ;;  %v919_v43 = vsel %vm606_vm15, %v917_v33, 0.0  ;;  %v903_v17 = vadd.f32 %v900_v20, %v891_v50 }
 0x21a   : > { %v883_v40 = vrot.slane %v877_v10, 1  ;;  %v967_v62 = vadd.f32 0.0009, %v964_v36  ;;  %v895_v45 = vrot.slane %v877_v10, 2  ;;  %v920_v46 = vadd.f32 %v919_v43, %v1487_v12 }
 0x21b   : > { %v971_v2 = vmul.f32 %v968_v35, %v962_v52  ;;  %v906_v54 = vmul.f32 0.11111111, %v903_v17  ;;  %v890_v59 = vsel %vm624_vm14, %v884_v22, 0.0  ;;  %v902_v30 = vsel %vm761_vm3, %v896_v56, 0.0 }
 0x21c   : > { %v889_v23 = vsel %vm624_vm14, %v883_v40, 0.0  ;;  %v598_v13 = vpop.permute.xlu0 %597  ;;  %v970_v4 = vmul.f32 %v967_v62, %v961_v19  ;;  %v893_v8 = vadd.f32 %v890_v59, %v878_v11  ;;  %v600_v57 = vpop.permute.xlu1 %599  ;;  %v901_v52 = vsel %vm761_vm3, %v895_v45, 0.0 }
 0x21d   : > { %1296 = vrcp.f32 %v971_v2  ;;  %v892_v7 = vadd.f32 %v889_v23, %v877_v10  ;;  %v912_v21 = vsub.f32 %v906_v54, %v1806_v16  ;;  %v924_v6 = vsel %vm733_vm2, %v922_v34, 0.0 }
 0x21e   : > { %v607_v12 = vsel %vm606_vm15, %v598_v13, 0.0  ;;  %1298 = vrcp.f32 %v970_v4  ;;  %v905_v18 = vadd.f32 %v902_v30, %v893_v8  ;;  %v925_v42 = vadd.f32 %v924_v6, %v920_v46 }
 0x21f   : > { %v904_v61 = vadd.f32 %v901_v52, %v892_v7  ;;  %v945_v9 = vmul.f32 2.0, %v912_v21  ;;  %v911_v26 = vmul.f32 %v1793_v63, %v1712_v60  ;;  %v610_v19 = vsub.f32 %v607_v12, %v1660_v14 }
 0x220   : > { %v608_v29 = vsel %vm606_vm15, %v600_v57, 0.0  ;;  %v602_v0 = vpop.permute.xlu0 %601  ;;  %v908_v16 = vmul.f32 0.11111111, %v905_v18  ;;  %v927_v20 = vrot.slane %v925_v42, 1  ;;  %v931_v11 = vrot.slane %v925_v42, 2 }
 0x221   : > { %v907_v50 = vmul.f32 0.11111111, %v904_v61  ;;  %v615_v10 = vsel %vm317_vm0, %v610_v19, 0.0  ;;  %v611_v33 = vsub.f32 %v608_v29, %v1663_v15  ;;  %v944_v34 = vadd.f32 0.0001, %v941_v27 }
 0x222   : > { %v948_v60 = vadd.f32 0.0009, %v945_v9  ;;  %v914_v63 = vsub.f32 %v908_v16, %v911_v26  ;;  %v609_v36 = vsel %vm606_vm15, %v602_v0, 0.0  ;;  %v929_v43 = vsel %vm624_vm14, %v927_v20, 0.0 }
 0x223   : > { %v1295_v35 = vpop.eup %1294  ;;  %v913_v14 = vsub.f32 %v907_v50, %v910_v48  ;;  %v636_v17 = vand.u32 2147483647, %v615_v10  ;;  %v642_v22 = vmul.f32 0.5, %v615_v10  ;;  %v616_v51 = vsel %vm317_vm0, %v611_v33, 0.0 }
 0x224   : > { %v947_v24 = vmul.f32 2.0, %v914_v63  ;;  %v637_v40 = vand.u32 2147483647, %v616_v51  ;;  %v643_v2 = vmul.f32 0.5, %v616_v51  ;;  %v933_v15 = vsel %vm761_vm3, %v931_v11, 0.0 }
 0x225   : > { %v946_v56 = vmul.f32 2.0, %v913_v14  ;;  %vm639_vm7 = vcmp.lt.f32.partialorder %v636_v17, 1.0  ;;  %v645_v27 = vmul.f32 %v642_v22, %v615_v10  ;;  %v1197_v62 = vadd.f32 -0.5, %v636_v17 }
 0x226   : > { %v950_v46 = vadd.f32 0.0009, %v947_v24  ;;  %vm1854_vm8 = vcmp.lt.f32.partialorder %v637_v40, 1.0  ;;  %v646_v30 = vmul.f32 %v643_v2, %v616_v51  ;;  %v930_v23 = vadd.f32 %v929_v43, %v925_v42 }
 0x227   : > { %v1297_v45 = vpop.eup %1296  ;;  %v949_v54 = vadd.f32 0.0009, %v946_v56  ;;  %v1198_v13 = vadd.f32 -0.5, %v637_v40  ;;  %v612_v4 = vsub.f32 %v609_v36, %v1672_v5  ;;  %v651_v8 = vsel %vm639_vm7, %v645_v27, %v1197_v62 }
 0x228   : > { %v1299_v7 = vpop.eup %1298  ;;  %v654_v57 = vsel %vm579_vm12, %v651_v8, 0.0  ;;  %v951_v21 = vmul.f32 %v948_v60, %v1789_v38  ;;  %v953_v6 = vmul.f32 %v950_v46, %v944_v34  ;;  %v686_v5 = vsel %vm579_vm12, %v683_v25, 0.0 }
 0x229   : > { %v952_v52 = vmul.f32 %v949_v54, %v1817_v39  ;;  %v617_v12 = vsel %vm317_vm0, %v612_v4, 0.0  ;;  %v652_v18 = vsel %vm1854_vm8, %v646_v30, %v1198_v13  ;;  %v687_v38 = vsel %vm579_vm12, %v684_v58, 0.0 }
 0x22a   : > { %v638_v39 = vand.u32 2147483647, %v617_v12  ;;  %v644_v1 = vmul.f32 0.5, %v617_v12  ;;  %v655_v61 = vsel %vm579_vm12, %v652_v18, 0.0  ;;  %v975_v42 = vmul.f32 %v1295_v35, %v951_v21 }
 0x22b   : > { %v934_v9 = vadd.f32 %v933_v15, %v930_v23  ;;  %v656_v26 = vadd.f32 %v655_v61, %v654_v57  ;;  %v976_v28 = vmul.f32 %v1299_v7, %v952_v52  ;;  %v977_v19 = vmul.f32 %v1297_v45, %v953_v6 }
 0x22c   : > { %v647_v29 = vmul.f32 %v644_v1, %v617_v12  ;;  %v1199_v32 = vadd.f32 -0.5, %v638_v39  ;;  %vm641_vm0 = vcmp.lt.f32.partialorder %v638_v39, 1.0  ;;  %v978_v41 = vsub.f32 1.0, %v975_v42 }
 0x22d   : > { %v979_v25 = vsub.f32 1.0, %v976_v28  ;;  %v980_v44 = vsub.f32 1.0, %v977_v19  ;;  %v688_v16 = vadd.f32 %v687_v38, %v686_v5  ;;  %v689_v58 = vsel %vm579_vm12, %v685_v37, 0.0 }
 0x22e   : > { %v653_v0 = vsel %vm641_vm0, %v647_v29, %v1199_v32  ;;  %v981_v49 = vmul.f32 0.5, %v978_v41  ;;  %v935_v11 = vmul.f32 0.11111111, %v934_v9 }
 0x22f   : > { %v657_v55 = vsel %vm579_vm12, %v653_v0, 0.0  ;;  %v982_v48 = vmul.f32 0.5, %v979_v25  ;;  %v983_v50 = vmul.f32 0.5, %v980_v44  ;;  %v690_v35 = vadd.f32 %v689_v58, %v688_v16 }
 0x230   : > { %v658_v20 = vadd.f32 %v657_v55, %v656_v26  ;;  %v984_v10 = vmax.f32 %v981_v49, 0.0 }
 0x231   : > { %v985_v33 = vmax.f32 %v982_v48, 0.0  ;;  %v986_v34 = vmax.f32 %v983_v50, 0.0 }
 0x232   : > { %659 = vadd.xlane.f32.xlu0 %v658_v20  ;;  %v987_v60 = vmin.f32 %v984_v10, 1.0 }
 0x233   : > { %v988_v63 = vmin.f32 %v985_v33, 1.0  ;;  %v989_v14 = vmin.f32 %v986_v34, 1.0 }
 0x234   : > { %v990_v36 = vmul.f32 %v987_v60, %v935_v11 }
 0x235   : > { %v991_v43 = vmul.f32 %v988_v63, %v935_v11  ;;  %v992_v31 = vmul.f32 %v989_v14, %v935_v11 }
 0x236   : > { %691 = vadd.xlane.f32.xlu0 %v690_v35  ;;  %v995_v53 = vsel %vm1459_vm4, %v990_v36, 0.0 }
 0x237   : > { %v996_v47 = vsel %vm1459_vm4, %v991_v43, 0.0  ;;  %v997_v37 = vsel %vm1459_vm4, %v992_v31, 0.0  ;;  %v998_v17 = vsel %vm579_vm12, %v995_v53, 0.0 }
 0x238   : > { %v999_v22 = vsel %vm579_vm12, %v996_v47, 0.0  ;;  %v1001_v24 = vsel %vm579_vm12, %v997_v37, 0.0 }
 0x239   : > { %v1000_v51 = vadd.f32 %v999_v22, %v998_v17 }
 0x23b   : > { %v1002_v56 = vadd.f32 %v1001_v24, %v1000_v51 }
 0x23d   : > { %1003 = vadd.xlane.f32.xlu1 %v1002_v56 }
 0x25b   : > { %v586_v40 = vpop.xlane.xlu1 %585 }
 0x25c   : > { %v587_v2 = vrot.slane %v586_v40, 4 }
 0x25e   : > { %v588_v15 = vadd.f32 %v587_v2, %v586_v40 }
 0x260   : > { %v589_v27 = vrot.slane %v588_v15, 2 }
 0x262   : > { %v590_v62 = vadd.f32 %v589_v27, %v588_v15 }
 0x264   : > { %v591_v45 = vrot.slane %v590_v62, 1 }
 0x266   : > { %v592_v46 = vadd.f32 %v591_v45, %v590_v62 }
 0x268   : > { %1224 = vpush %v592_v46 }
 0x269   : > { %1313 = shalt.err (!%p1310_p1)
}
 0x26a   : > { %s1380_s28 = smov [#allocation6]   ;;  %s1203_s30 = sshll.u32 %s1362_s19, 1 }
 0x26b   : > { %1235 = dma.smem_to_vmem (%p1897_p8), %s1380_s28, 32, %s1045_s26, [#allocation7]  }
 0x26c   : > { %s1013_s6 = sadd.s32 %s1358_s18, %s1203_s30  ;;  %s1033_s12 = sshll.u32 %s1950_s4, 4  ;;  %s1034_s12 = int_to_ptr.vmem [resolvable:$true] %s1033_s12 }
 0x26d   : > { %s1204_s27 = sshll.u32 %s1013_s6, 7  ;;  %s1314_s16 = scalar_lea.vmem %s1034_s12, 64 }
 0x26e   : > { %s1910_s7 = scalar_lea.smem [#allocation4], %s1204_s27  ;;  %p1315_p2 = scmp.ne.s32.totalorder %s1034_s12, %s1314_s16 }
 0x26f   : > { %s1118_s18 = scalar_lea.smem %s1910_s7, 1 [#allocation4]  ;;  %s1123_s8 = scalar_lea.smem %s1910_s7, 2 [#allocation4] }
 0x270   : > { %s1128_s13 = scalar_lea.smem %s1910_s7, 3 [#allocation4]  ;;  %p1316_p3 = pnand %p1315_p2, %p1897_p8 }
 0x271   : > { %p1321_p5 = scmp.lt.s32.totalorder %s1034_s12, %s1034_s12  ;;  %p1322_p6 = scmp.lt.s32.totalorder %s1314_s16, %s1314_s16 }
 0x272   : > { %p1317_p4 = pneg %p1316_p3 }
 0x273   : > { %p1323_p7 = por %p1322_p6, %p1321_p5 }
 0x275   : > { %p1324_p9 = pnand %p1323_p7, %p1317_p4 }
 0x299   : > { %s1225_s23 = spop %1224 }
 0x29a   : > { %1016 = sst [smem:[%s1910_s7]] %s1225_s23 }
 0x2bf   : > { %v660_v3 = vpop.xlane.xlu0 %659 }
 0x2c0   : > { %v661_v54 = vrot.slane %v660_v3, 4 }
 0x2c2   : > { %v662_v59 = vadd.f32 %v661_v54, %v660_v3 }
 0x2c3   : > { %v692_v30 = vpop.xlane.xlu0 %691 }
 0x2c4   : > { %v663_v23 = vrot.slane %v662_v59, 2  ;;  %v693_v13 = vrot.slane %v692_v30, 4 }
 0x2c6   : > { %v694_v4 = vadd.f32 %v693_v13, %v692_v30  ;;  %v664_v8 = vadd.f32 %v663_v23, %v662_v59 }
 0x2c8   : > { %v695_v7 = vrot.slane %v694_v4, 2  ;;  %v665_v57 = vrot.slane %v664_v8, 1 }
 0x2ca   : > { %v696_v21 = vadd.f32 %v695_v7, %v694_v4  ;;  %v666_v52 = vadd.f32 %v665_v57, %v664_v8  ;;  %v1004_v6 = vpop.xlane.xlu1 %1003 }
 0x2cb   : > { %v1005_v12 = vrot.slane %v1004_v6, 4 }
 0x2cc   : > { %1226 = vpush %v666_v52  ;;  %v697_v18 = vrot.slane %v696_v21, 1 }
 0x2cd   : > { %v1006_v5 = vadd.f32 %v1005_v12, %v1004_v6 }
 0x2ce   : > { %v698_v38 = vadd.f32 %v697_v18, %v696_v21 }
 0x2cf   : > { %v1007_v39 = vrot.slane %v1006_v5, 2 }
 0x2d0   : > { %1228 = vpush %v698_v38 }
 0x2d1   : > { %v1008_v1 = vadd.f32 %v1007_v39, %v1006_v5 }
 0x2d3   : > { %v1009_v61 = vrot.slane %v1008_v1, 1 }
 0x2d5   : > { %v1010_v42 = vadd.f32 %v1009_v61, %v1008_v1 }
 0x2d7   : > { %1230 = vpush %v1010_v42 }
 0x2fd   : > { %s1227_s19 = spop %1226 }
 0x2fe   : > { %1019 = sst [smem:[%s1118_s18]] %s1227_s19 }
 0x301   : > { %s1229_s9 = spop %1228 }
 0x302   : > { %1022 = sst [smem:[%s1123_s8]] %s1229_s9 }
 0x308   : > { %s1231_s14 = spop %1230 }
 0x309   : > { %1025 = sst [smem:[%s1128_s13]] %s1231_s14 }
 0x30a   : > { %1327 = shalt.err (!%p1324_p9)
}
 0x30b   : > { %s1381_s17 = smov [#allocation4]  }
 0x30c   : > { %1233 = dma.smem_to_vmem (%p1897_p8), %s1381_s17, 64, %s1034_s12, [#allocation5]  }
 0x30d   : > { %1349 = dma.done.wait (%p1897_p8), [#allocation5], 64  }
 0x30e   : > { %1351 = vsyncadd (%p1897_p8), [#allocation5], 4294967232 }
 0x30f   : > { %1353 = dma.done.wait (%p1897_p8), [#allocation7], 32  }
 0x310   : > { %1355 = vsyncadd (%p1897_p8), [#allocation7], 4294967264 }
 0x311   : > { %1056 = sfence }
 0x312 PF: > { %s18_s22 = sadd.s32 1, %s1374_s22   ;;  %s1964_s18 = smov %s1366_s20 }
 0x313   : > { %p15_p10 = scmp.ge.s32.totalorder %s18_s22, 6   ;;  %s1965_s19 = smov %s1370_s21 }
 0x314   : > { %s1966_s20 = smov %s1969_s24  ;;  %s1967_s21 = smov %s1973_s25 }
 0x315   :  { %17 = sbr.rel (!%p15_p10) target bundleno = 4 (0x4), region = 90 }
 0x31c   :  { %1062 = vsyncpa [#allocation5], 1 }
 0x31d   :  { %1064 = vsyncpa [#allocation5 + $0x1], 1 }
 0x31e   :  { %1065 = vsyncpa [#allocation7], 1 }

// kernel: unsup_loss_multistage.11
= control target key start
LH: loop header
LB: loop body
LE: loop exit
PB: predicated region body
PF: predicated region fallthrough
CT: control target
= control target key end

     0   :  { %7 = vsyncpa [#allocation4], 0  ;;  %s584_s0 = inlined_call_operand.vmem [shape: f32[2], index: 0, kind: input, shape index: {}]   ;;  %s585_s1 = inlined_call_operand.vmem [shape: s8[2,2,1,16,16], index: 1, kind: input, shape index: {}]   ;;  %s586_s2 = inlined_call_operand.vmem [shape: f32[2], index: 2, kind: output, shape index: {}]  }
   0x1   :  { %8 = vsyncpa [#allocation5], 0  ;;  %s482_s9 = smov 0   ;;  %s484_s10 = smov 0  }
   0x2   :  { %s486_s11 = smov 0   ;;  %s488_s12 = smov 0  }
   0x3   :  { %s490_s13 = smov 0  }
   0x4 LB: > { %s308_s14 = sadd.s32 4294967295, %s463_s13   ;;  %s23_s15 = sadd.s32 1, %s455_s11  ;;  %s463_s13 = sphi %s490_s13, %s14_s13   ;;  %s459_s12 = sphi %s488_s12, %s593_s12   ;;  %s455_s11 = sphi %s486_s11, %s592_s11   ;;  %s451_s10 = sphi %s484_s10, %s591_s10   ;;  %s447_s9 = sphi %s482_s9, %s590_s9  }
   0x5   : > { %p24_p0 = scmp.ge.s32.totalorder %s23_s15, 2  ;;  %s26_s16 = sadd.s32 1, %s459_s12 }
   0x6   : > { %p309_p1 = scmp.ge.s32.totalorder %s463_s13, 1  ;;  %p101_p2 = scmp.lt.s32.totalorder %s463_s13, 5 }
   0x7   : > { %s595_s15 = smov (%p24_p0, %s23_s15), 0  ;;  %s597_s16 = smov (!%p24_p0, %s26_s16), %s459_s12 }
   0x8   : > { %p515_p3 = pnand %p309_p1, %p101_p2  ;;  %p28_p4 = scmp.ge.s32.totalorder %s597_s16, 2 }
   0x9   : > { %p521_p5 = scmp.eq.s32.totalorder %s308_s14, 0  ;;  %s114_s21 = sshll.u32 %s584_s0, 4  ;;  %s115_s21 = int_to_ptr.vmem [resolvable:$true] %s114_s21 }
   0xa   : > { %p338_p6 = pneg %p515_p3  ;;  %s599_s16 = smov (%p28_p4, %s597_s16), 0 }
   0xb   : > { %s388_s22 = scalar_lea.vmem %s115_s21, 16  ;;  %p396_p12 = scmp.lt.s32.totalorder %s115_s21, %s115_s21 }
   0xc   : > { %p339_p7 = pnand %p521_p5, %p338_p6  ;;  %p389_p8 = scmp.ne.s32.totalorder %s115_s21, %s388_s22 }
   0xd   : > { %p397_p13 = scmp.lt.s32.totalorder %s388_s22, %s388_s22 }
   0xe   : > { %p390_p9 = pneg %p339_p7 }
   0xf   : > { %p398_p0 = por %p397_p13, %p396_p12 }
  0x10   : > { %p391_p10 = pnand %p390_p9, %p389_p8 }
  0x12   : > { %p392_p11 = pneg %p391_p10 }
  0x14   : > { %p399_p1 = pnand %p398_p0, %p392_p11 }
  0x16   : > { %402 = shalt.err (!%p399_p1)
}
  0x17   : > { %s465_s23 = smov [#allocation3]   ;;  %139 = sbr.rel (%p515_p3) target bundleno = 297 (0x129), region = 28 }
  0x18   : > { %341 = dma.vmem_to_smem (!%p339_p7), %s115_s21, 16, %s465_s23, [#allocation4]  }
  0x1e   : > { %438 = dma.done.wait (%p521_p5), [#allocation4], 16  }
  0x1f   : > { %440 = vsyncadd (%p521_p5), [#allocation4], 4294967280 }
  0x20   : > { %145 = sfence }
  0x21   : > { %p161_p2 = scmp.lt.s32.totalorder %s447_s9, 1  ;;  %p163_p4 = scmp.lt.s32.totalorder %s451_s10, 1 }
  0x22   : > { %s176_s30 = sld [smem:[#allocation3 + %s447_s9]]  ;;  %p317_p3 = scmp.ne.s32.totalorder %s447_s9, 0 }
  0x23   : > { %s162_s24 = scalar_select %p161_p2, %s447_s9, 1 }
  0x24   : > { %s164_s25 = scalar_select %p163_p4, %s451_s10, 1 }
  0x25   : > { %s315_s26 = sshll.u32 %s162_s24, 2  ;;  %vm188_vm0 = vcmask (!%p317_p3), 130048  }
  0x26   : > { %s314_s27 = sshll.u32 %s164_s25, 1 }
  0x27   : > { %s167_s28 = sadd.s32 %s315_s26, %s314_s27 }
  0x28   : > { %s316_s29 = sshll.u32 %s167_s28, 1  ;;  %v181_v7 = vstv %s176_s30 }
  0x29   : > { %s169_s5 = scalar_lea.vmem %s585_s1, %s316_s29 }
  0x2a   : > { %v325_v0 = vld [vmem:[%s169_s5] sm:$0xf]  }
  0x2b   : > { %v326_v1 = vunpack.c.0.s8 %v325_v0  ;;  %v327_v2 = vunpack.c.1.s8 %v325_v0 }
  0x2d   : > { %v174_v3 = vcvt.s32.f32 %v326_v1  ;;  %v175_v4 = vcvt.s32.f32 %v327_v2  ;;  %187 = sbr.rel (%p317_p3) target bundleno = 54 (0x36), region = 36 }
  0x2f   : > { %v177_v5 = vsub.f32 1.0, %v174_v3  ;;  %v178_v6 = vsub.f32 1.0, %v175_v4 }
  0x31   : > { %v179_v8 = vmul.f32 10000.0, %v177_v5  ;;  %v180_v9 = vmul.f32 10000.0, %v178_v6 }
  0x33   : > { %v182_v10 = vadd.f32 %v181_v7, %v179_v8  ;;  %v183_v11 = vadd.f32 %v181_v7, %v180_v9 }
  0x35   : > { %189 = vst.msk [vmem:[#allocation2] sm:$0xff] %vm188_vm0, %v182_v10  ;;  %190 = vst.msk [vmem:[#allocation2 + $0x8] sm:$0xff] %vm188_vm0, %v183_v11 }
  0x36 PF: > { %p318_p5 = scmp.le.s32.totalorder %s447_s9, 0 }
  0x37   : > { %vm199_vm1 = vcmask (!%p318_p5), 130048  }
  0x38   : > { %194 = sbr.rel (%p318_p5) target bundleno = 64 (0x40), region = 40 }
  0x3c   : > { %v195_v12 = vld [vmem:[#allocation2] sm:$0xff] (!%p318_p5)  ;;  %v196_v13 = vld [vmem:[#allocation2 + $0x8] sm:$0xff] (!%p318_p5) }
  0x3d   : > { %v197_v14 = vmin.f32 (!%p318_p5), %v195_v12, %v182_v10  ;;  %v198_v15 = vmin.f32 (!%p318_p5), %v196_v13, %v183_v11 }
  0x3f   : > { %200 = vst.msk [vmem:[#allocation2] sm:$0xff] %vm199_vm1, %v197_v14  ;;  %201 = vst.msk [vmem:[#allocation2 + $0x8] sm:$0xff] %vm199_vm1, %v198_v15 }
  0x40 PF: > { %p319_p6 = scmp.ne.s32.totalorder %s447_s9, 1 }
  0x41   : > { %vm212_vm2 = vcmask (!%p319_p6), 130048   ;;  %s225_s7 = scalar_lea.smem (!%p319_p6), [#allocation6], %s451_s10 }
  0x42   : > { %205 = sbr.rel (%p319_p6) target bundleno = 281 (0x119), region = 44 }
  0x46   : > { %v206_v16 = vld [vmem:[#allocation2] sm:$0xff] (!%p319_p6)  ;;  %v207_v17 = vld [vmem:[#allocation2 + $0x8] sm:$0xff] (!%p319_p6) }
  0x47   : > { %vm208_vm3 = vcmp.lt.f32.partialorder (!%p319_p6), %v206_v16, 10000.0  ;;  %vm209_vm4 = vcmp.lt.f32.partialorder (!%p319_p6), %v207_v17, 10000.0 }
  0x48   : > { %v210_v18 = vsel (!%p319_p6), %vm208_vm3, %v206_v16, 0.0  ;;  %v211_v19 = vsel (!%p319_p6), %vm209_vm4, %v207_v17, 0.0 }
  0x49   : > { %v213_v20 = vsel %vm212_vm2, %v210_v18, 0.0  ;;  %v214_v21 = vsel %vm212_vm2, %v211_v19, 0.0 }
  0x4a   : > { %v215_v22 = vadd.f32 %v214_v21, %v213_v20 }
  0x4c   : > { %216 = vadd.xlane.f32.xlu0 %v215_v22 }
  0xd9   : > { %v217_v23 = vpop.xlane.xlu0 %216 }
  0xda   : > { %v218_v24 = vrot.slane %v217_v23, 4 }
  0xdc   : > { %v219_v25 = vadd.f32 %v218_v24, %v217_v23 }
  0xde   : > { %v220_v26 = vrot.slane %v219_v25, 2 }
  0xe0   : > { %v221_v27 = vadd.f32 %v220_v26, %v219_v25 }
  0xe2   : > { %v222_v28 = vrot.slane %v221_v27, 1 }
  0xe4   : > { %v223_v29 = vadd.f32 %v222_v28, %v221_v27 }
  0xe6   : > { %328 = vpush %v223_v29 }
 0x117   : > { %s329_s6 = spop %328 }
 0x118   : > { %226 = sst [smem:[%s225_s7]] %s329_s6 }
 0x119 PF: > { %p554_p7 = scmp.eq.s32.totalorder %s308_s14, 3  ;;  %s234_s18 = sshll.u32 %s586_s2, 4  ;;  %s235_s18 = int_to_ptr.vmem [resolvable:$true] %s234_s18 }
 0x11a   : > { %s403_s19 = scalar_lea.vmem %s235_s18, 16  ;;  %p410_p11 = scmp.lt.s32.totalorder %s235_s18, %s235_s18 }
 0x11b   : > { %p404_p8 = scmp.ne.s32.totalorder %s235_s18, %s403_s19  ;;  %p411_p12 = scmp.lt.s32.totalorder %s403_s19, %s403_s19 }
 0x11d   : > { %p405_p9 = pnand %p404_p8, %p554_p7  ;;  %p412_p13 = por %p411_p12, %p410_p11 }
 0x11f   : > { %p406_p10 = pneg %p405_p9 }
 0x121   : > { %p413_p0 = pnand %p412_p13, %p406_p10 }
 0x123   : > { %416 = shalt.err (!%p413_p0)
}
 0x124   : > { %s466_s10 = smov [#allocation6]  }
 0x125   : > { %335 = dma.smem_to_vmem (%p554_p7), %s466_s10, 16, %s235_s18, [#allocation5]  }
 0x126   : > { %442 = dma.done.wait (%p554_p7), [#allocation5], 16  }
 0x127   : > { %444 = vsyncadd (%p554_p7), [#allocation5], 4294967280 }
 0x128   : > { %242 = sfence }
 0x129 PF: > { %s14_s13 = sadd.s32 1, %s463_s13   ;;  %s590_s9 = smov %s455_s11 }
 0x12a   : > { %p11_p1 = scmp.ge.s32.totalorder %s14_s13, 6   ;;  %s591_s10 = smov %s459_s12 }
 0x12b   : > { %s592_s11 = smov %s595_s15  ;;  %s593_s12 = smov %s599_s16 }
 0x12c   :  { %13 = sbr.rel (!%p11_p1) target bundleno = 4 (0x4), region = 73 }
 0x133   :  { %248 = vsyncpa [#allocation4], 1 }
 0x134   :  { %250 = vsyncpa [#allocation4 + $0x1], 1 }
 0x135   :  { %251 = vsyncpa [#allocation5], 1 }
 0x136   :  { %253 = vsyncpa [#allocation5 + $0x1], 1 }

// kernel: unsup_loss_multistage.10
= control target key start
LH: loop header
LB: loop body
LE: loop exit
PB: predicated region body
PF: predicated region fallthrough
CT: control target
= control target key end

     0   :  { %11 = vsyncpa [#allocation5], 0  ;;  %s3164_s0 = inlined_call_operand.vmem [shape: f32[2,2,3,16,16], index: 0, kind: input, shape index: {}]   ;;  %s3165_s1 = inlined_call_operand.vmem [shape: s8[2,2,1,16,16], index: 1, kind: input, shape index: {}]   ;;  %s3166_s2 = inlined_call_operand.vmem [shape: f32[2,3,16,16], index: 2, kind: input, shape index: {}]   ;;  %s3167_s3 = inlined_call_operand.vmem [shape: f32[2,1,16,16], index: 3, kind: input, shape index: {}]   ;;  %s3168_s4 = inlined_call_operand.vmem [shape: f32[4,4], index: 4, kind: output, shape index: {0}]   ;;  %s3169_s5 = inlined_call_operand.vmem [shape: f32[2,2], index: 5, kind: output, shape index: {1}]  }
   0x1   :  { %12 = vsyncpa [#allocation7], 0  ;;  %s2079_s18 = smov 0   ;;  %s2081_s19 = smov 0  }
   0x2   :  { %s2083_s20 = smov 0   ;;  %s2085_s21 = smov 0  }
   0x3   :  { %s2087_s22 = smov 0  }
   0x4 LB: > { %s1823_s23 = sadd.s32 4294967295, %s2041_s22   ;;  %s27_s24 = sadd.s32 1, %s2033_s20  ;;  %s2041_s22 = sphi %s2087_s22, %s18_s22   ;;  %s2037_s21 = sphi %s2085_s21, %s3224_s21   ;;  %s2033_s20 = sphi %s2083_s20, %s3223_s20   ;;  %s2029_s19 = sphi %s2081_s19, %s3222_s19   ;;  %s2025_s18 = sphi %s2079_s18, %s3221_s18  }
   0x5   : > { %p28_p0 = scmp.ge.s32.totalorder %s27_s24, 2  ;;  %s30_s25 = sadd.s32 1, %s2037_s21 }
   0x6   : > { %p1826_p1 = scmp.ge.s32.totalorder %s2041_s22, 1  ;;  %p236_p2 = scmp.lt.s32.totalorder %s2041_s22, 5 }
   0x7   : > { %s3226_s24 = smov (%p28_p0, %s27_s24), 0  ;;  %s3228_s25 = smov (!%p28_p0, %s30_s25), %s2037_s21 }
   0x8   : > { %p237_p3 = pnand %p1826_p1, %p236_p2  ;;  %p32_p4 = scmp.ge.s32.totalorder %s3228_s25, 2 }
   0xa   : > { %s3230_s25 = smov (%p32_p4, %s3228_s25), 0  ;;  %240 = sbr.rel (%p237_p3) target bundleno = 849 (0x351), region = 36 }
  0x11   : > { %p282_p5 = scmp.lt.s32.totalorder %s2025_s18, 1  ;;  %p284_p6 = scmp.lt.s32.totalorder %s2029_s19, 1  ;;  %v328_v0 = vlaneseq  ;;  %v3176_v4 = vmov 0 }
  0x12   : > { %p1834_p7 = scmp.ne.s32.totalorder %s2025_s18, 0 }
  0x13   : > { %s283_s26 = scalar_select %p282_p5, %s2025_s18, 1  ;;  %v2117_v1 = vand.u32 127, %v328_v0  ;;  %v331_v2 = vshrl.u32 %v328_v0, 7 }
  0x14   : > { %s285_s27 = scalar_select %p284_p6, %s2029_s19, 1 }
  0x15   : > { %s1875_s28 = smul.u32 12, %s283_s26  ;;  %s1829_s29 = sshll.u32 %s283_s26, 2  ;;  %v2120_v3 = vadd.s32 8, %v331_v2  ;;  %vm333_vm0 = vcmp.lt.s32.totalorder %v2117_v1, 15  ;;  %vm336_vm1 = vcmp.lt.s32.totalorder %v2117_v1, 14  ;;  %vm419_vm5 = vcmask (!%p1834_p7), 1046528  }
  0x16   : > { %s1874_s30 = smul.u32 6, %s285_s27  ;;  %s1828_s6 = sshll.u32 %s285_s27, 1  ;;  %vm475_vm6 = vcmask (!%p1834_p7), 130048   ;;  %vm369_vm7 = vcmask (!%p1834_p7), 121856   ;;  %vm400_vm8 = vcmask (!%p1834_p7), 113664   ;;  %vm444_vm9 = vcmask (!%p1834_p7), 1045504  }
  0x17   : > { %s297_s7 = sadd.s32 %s1829_s29, %s1828_s6  ;;  %s1876_s8 = smul.u32 48, %s285_s27  ;;  %vm335_vm2 = vcmp.lt.s32.totalorder %v2120_v3, 15  ;;  %vm338_vm3 = vcmp.lt.s32.totalorder %v2120_v3, 14 }
  0x18   : > { %s288_s9 = sadd.s32 %s1875_s28, %s1874_s30  ;;  %s1830_s10 = sshll.u32 %s297_s7, 1  ;;  %vm2128_vm4 = vmand %vm336_vm1, %vm338_vm3 }
  0x19   : > { %v3177_v4 = vsel %vm2128_vm4, 4294967295, %v3176_v4  ;;  %s1827_s11 = sshll.u32 %s288_s9, 3  ;;  %s299_s14 = scalar_lea.vmem %s3165_s1, %s1830_s10 }
  0x1a   : > { %3178 = vst [vmem:[#allocation10_spill] sm:$0xff] %v3177_v4  ;;  %s290_s17 = scalar_lea.vmem %s3164_s0, %s1827_s11  ;;  %s304_s28 = scalar_lea.vmem %s3166_s2, %s1876_s8  ;;  %v1871_v5 = vld [vmem:[%s299_s14] sm:$0xf]  }
  0x1b   : > { %s1869_s30 = sshll.u32 %s285_s27, 4  ;;  %v2141_v6 = vld [vmem:[%s290_s17] sm:$0xff]  ;;  %v2143_v7 = vld [vmem:[%s290_s17 + $0x8] sm:$0xff]  ;;  %v2145_v8 = vld [vmem:[%s290_s17 + $0x10] sm:$0xff]  ;;  %v1872_v9 = vunpack.c.0.s8 %v1871_v5  ;;  %v1873_v10 = vunpack.c.1.s8 %v1871_v5  ;;  %344 = sbr.rel (%p1834_p7) target bundleno = 393 (0x189), region = 40 }
  0x1c   : > { %s2150_s9 = scalar_lea.vmem %s3167_s3, %s1869_s30  ;;  %v2152_v11 = vld [vmem:[%s290_s17 + $0x18] sm:$0xff]  ;;  %v2154_v12 = vld [vmem:[%s290_s17 + $0x20] sm:$0xff]  ;;  %v2156_v13 = vld [vmem:[%s290_s17 + $0x28] sm:$0xff]  ;;  %s2043_s27 = smov (!%p1834_p7), 127  }
  0x1d   : > { %v2158_v14 = vld [vmem:[%s304_s28] sm:$0xff]  ;;  %v2160_v15 = vld [vmem:[%s304_s28 + $0x8] sm:$0xff]  ;;  %v2162_v16 = vld [vmem:[%s304_s28 + $0x10] sm:$0xff]  ;;  %v2164_v17 = vcvt.s32.f32 %v1872_v9  ;;  %v2166_v18 = vcvt.s32.f32 %v1873_v10  ;;  %s2044_s8 = smov (!%p1834_p7), 126   ;;  %s1835_s10 = sshll.u32 (!%p1834_p7), %s2029_s19, 7 }
  0x1e   : > { %v2168_v19 = vld [vmem:[%s304_s28 + $0x18] sm:$0xff]  ;;  %v2170_v20 = vld [vmem:[%s304_s28 + $0x20] sm:$0xff]  ;;  %v2172_v21 = vld [vmem:[%s304_s28 + $0x28] sm:$0xff]  ;;  %v660_v22 = vrot.slane (!%p1834_p7), %v2158_v14, 1  ;;  %355 = vrot.lane.b32.xlu1 (!%p1834_p7), %v2162_v16, %s2043_s27  ;;  %v661_v23 = vrot.slane (!%p1834_p7), %v2160_v15, 1  ;;  %v663_v24 = vrot.slane (!%p1834_p7), %v2162_v16, 1 }
  0x1f   : > { %351 = vrot.lane.b32.xlu0 (!%p1834_p7), %v2158_v14, %s2043_s27  ;;  %v664_v25 = vrot.slane (!%p1834_p7), %v2168_v19, 1  ;;  %v666_v26 = vrot.slane (!%p1834_p7), %v2170_v20, 1  ;;  %v667_v27 = vrot.slane (!%p1834_p7), %v2172_v21, 1  ;;  %v2208_v48 = vld [vmem:[%s2150_s9 + $0x8] sm:$0xff] (!%p1834_p7)  ;;  %v2211_v49 = vld [vmem:[%s2150_s9] sm:$0xff] (!%p1834_p7)  ;;  %s752_s11 = scalar_lea.smem (!%p1834_p7), [#allocation6], %s1835_s10 }
  0x20   : > { %v662_v28 = vsel (!%p1834_p7), %vm419_vm5, %v660_v22, %v661_v23  ;;  %v675_v29 = vsel (!%p1834_p7), %vm419_vm5, %v661_v23, 0.0  ;;  %v647_v0 = vrot.slane (!%p1834_p7), %v2208_v48, 1  ;;  %v646_v2 = vrot.slane (!%p1834_p7), %v2211_v49, 1  ;;  %s1750_s12 = scalar_lea.smem (!%p1834_p7), %s752_s11, 1 [#allocation6] }
  0x21   : > { %v665_v30 = vsel (!%p1834_p7), %vm419_vm5, %v663_v24, %v664_v25  ;;  %v668_v31 = vsel (!%p1834_p7), %vm419_vm5, %v666_v26, %v667_v27  ;;  %v676_v32 = vsel (!%p1834_p7), %vm419_vm5, %v664_v25, 0.0  ;;  %v677_v33 = vsel (!%p1834_p7), %vm419_vm5, %v667_v27, 0.0 }
  0x22   : > { %357 = vrot.lane.b32.xlu1 %v2168_v19, %s2043_s27  ;;  %v678_v34 = vsub.f32 %v2158_v14, %v662_v28  ;;  %v679_v35 = vsub.f32 %v2160_v15, %v675_v29  ;;  %v680_v36 = vsub.f32 %v2162_v16, %v665_v30  ;;  %v681_v37 = vsub.f32 %v2168_v19, %v676_v32 }
  0x23   : > { %353 = vrot.lane.b32.xlu0 %v2160_v15, %s2043_s27  ;;  %v682_v38 = vsub.f32 %v2170_v20, %v668_v31  ;;  %v683_v39 = vsub.f32 %v2172_v21, %v677_v33  ;;  %v651_v5 = vsel %vm419_vm5, %v647_v0, 0.0  ;;  %v648_v9 = vsel %vm419_vm5, %v646_v2, %v647_v0 }
  0x24   : > { %v709_v40 = vand.u32 2147483647, %v678_v34  ;;  %v710_v41 = vand.u32 2147483647, %v679_v35  ;;  %v711_v42 = vand.u32 2147483647, %v680_v36  ;;  %v653_v10 = vsub.f32 %v2208_v48, %v651_v5 }
  0x25   : > { %v712_v43 = vand.u32 2147483647, %v681_v37  ;;  %v713_v44 = vand.u32 2147483647, %v682_v38  ;;  %v714_v45 = vand.u32 2147483647, %v683_v39  ;;  %v652_v22 = vsub.f32 %v2211_v49, %v648_v9 }
  0x26   : > { %361 = vrot.lane.b32.xlu1 %v2172_v21, %s2043_s27  ;;  %v715_v46 = vsel %vm475_vm6, %v709_v40, 0.0  ;;  %v720_v47 = vsel %vm475_vm6, %v710_v41, 0.0  ;;  %v716_v50 = vsel %vm475_vm6, %v711_v42, 0.0  ;;  %v2239_v33 = vmul.f32 %v2160_v15, %v2160_v15 }
  0x27   : > { %359 = vrot.lane.b32.xlu0 %v2170_v20, %s2043_s27  ;;  %v718_v51 = vsel %vm475_vm6, %v713_v44, 0.0  ;;  %v721_v52 = vsel %vm475_vm6, %v712_v43, 0.0  ;;  %v717_v53 = vadd.f32 %v716_v50, %v715_v46  ;;  %v723_v55 = vsel %vm475_vm6, %v714_v45, 0.0 }
  0x28   : > { %v722_v54 = vadd.f32 %v721_v52, %v720_v47  ;;  %v2245_v34 = vmul.f32 %v2168_v19, %v2168_v19  ;;  %v2251_v35 = vmul.f32 %v2172_v21, %v2172_v21 }
  0x29   : > { %v719_v56 = vadd.f32 %v718_v51, %v717_v53 }
  0x2a   : > { %638 = vrot.lane.b32.xlu1 %v2208_v48, %s2043_s27  ;;  %v724_v57 = vadd.f32 %v723_v55, %v722_v54 }
  0x2b   : > { %636 = vrot.lane.b32.xlu0 %v2211_v49, %s2043_s27  ;;  %v725_v58 = vmul.f32 0.33333334, %v719_v56 }
  0x2c   : > { %v726_v59 = vmul.f32 0.33333334, %v724_v57 }
  0x2d   : > { %v727_v60 = vsub.f32 0.0, %v725_v58 }
  0x2e   : > { %v728_v61 = vsub.f32 0.0, %v726_v59 }
  0x2f   : > { %v729_v62 = vmul.f32 1.442695, %v727_v60 }
  0x30   : > { %v731_v63 = vmul.f32 1.442695, %v728_v61 }
  0x31   : > { %1947 = vpow2.f32 %v729_v62 }
  0x32   : > { %1949 = vpow2.f32 %v731_v63 }
  0x3b   : > { %v1948_v23 = vpop.eup %1947 }
  0x3c   : > { %v1950_v24 = vpop.eup %1949  ;;  %v754_v26 = vmul.f32 %v1948_v23, %v652_v22 }
  0x3d   : > { %v755_v25 = vmul.f32 %v1950_v24, %v653_v10 }
  0x3e   : > { %v756_v28 = vand.u32 2147483647, %v754_v26 }
  0x3f   : > { %v757_v27 = vand.u32 2147483647, %v755_v25 }
  0x40   : > { %v760_v30 = vsel %vm475_vm6, %v756_v28, 0.0 }
  0x41   : > { %v759_v29 = vsel %vm335_vm2, %v757_v27, 0.0 }
  0x42   : > { %v761_v31 = vsel %vm475_vm6, %v759_v29, 0.0 }
  0x43   : > { %v762_v32 = vadd.f32 %v761_v31, %v760_v30 }
  0x4e   : > { %763 = vadd.xlane.f32.xlu1 %v762_v32 }
  0x5f   : > { %384 = vrot.lane.b32.xlu1 %v2160_v15, %s2044_s8 }
  0x63   : > { %388 = vrot.lane.b32.xlu1 %v2168_v19, %s2044_s8 }
  0x67   : > { %392 = vrot.lane.b32.xlu1 %v2172_v21, %s2044_s8 }
  0x6b   : > { %496 = vrot.lane.b32.xlu1 %v2239_v33, %s2043_s27 }
  0x6f   : > { %500 = vrot.lane.b32.xlu1 %v2245_v34, %s2043_s27 }
  0x73   : > { %504 = vrot.lane.b32.xlu1 %v2251_v35, %s2043_s27 }
  0x77   : > { %526 = vrot.lane.b32.xlu1 %v2239_v33, %s2044_s8 }
  0x7b   : > { %530 = vrot.lane.b32.xlu1 %v2245_v34, %s2044_s8 }
  0x7f   : > { %534 = vrot.lane.b32.xlu1 %v2251_v35, %s2044_s8 }
  0x90   : > { %v356_v36 = vpop.permute.xlu1 %355 }
  0x91   : > { %v352_v37 = vpop.permute.xlu0 %351  ;;  %v2262_v38 = vsel %vm369_vm7, %v356_v36, 0.0 }
  0x92   : > { %v2265_v39 = vsel %vm369_vm7, %v352_v37, 0.0  ;;  %v656_v40 = vsub.f32 %v2162_v16, %v2262_v38 }
  0x93   : > { %v654_v41 = vsub.f32 %v2158_v14, %v2265_v39 }
  0x94   : > { %v358_v42 = vpop.permute.xlu1 %357  ;;  %v686_v47 = vand.u32 2147483647, %v656_v40 }
  0x95   : > { %v354_v43 = vpop.permute.xlu0 %353  ;;  %v2272_v44 = vsel %vm369_vm7, %v358_v42, 0.0  ;;  %v684_v50 = vand.u32 2147483647, %v654_v41 }
  0x96   : > { %v371_v45 = vsel %vm369_vm7, %v354_v43, 0.0  ;;  %v657_v46 = vsub.f32 %v2168_v19, %v2272_v44  ;;  %v691_v60 = vsel %vm475_vm6, %v686_v47, 0.0 }
  0x97   : > { %v655_v51 = vsub.f32 %v2160_v15, %v371_v45  ;;  %v690_v61 = vsel %vm475_vm6, %v684_v50, 0.0 }
  0x98   : > { %v687_v52 = vand.u32 2147483647, %v657_v46  ;;  %v362_v53 = vpop.permute.xlu1 %361  ;;  %v692_v9 = vadd.f32 %v691_v60, %v690_v61  ;;  %v377_v60 = vadd.f32 %v371_v45, %v2160_v15 }
  0x99   : > { %v360_v54 = vpop.permute.xlu0 %359  ;;  %v685_v55 = vand.u32 2147483647, %v655_v51  ;;  %v2279_v56 = vsel %vm369_vm7, %v362_v53, 0.0 }
  0x9a   : > { %v2282_v57 = vsel %vm369_vm7, %v360_v54, 0.0  ;;  %v696_v58 = vsel %vm475_vm6, %v687_v52, 0.0  ;;  %v659_v59 = vsub.f32 %v2172_v21, %v2279_v56 }
  0x9b   : > { %v695_v62 = vsel %vm475_vm6, %v685_v55, 0.0  ;;  %v658_v63 = vsub.f32 %v2170_v20, %v2282_v57 }
  0x9c   : > { %v689_v0 = vand.u32 2147483647, %v659_v59  ;;  %v697_v2 = vadd.f32 %v696_v58, %v695_v62  ;;  %v639_v31 = vpop.permute.xlu1 %638  ;;  %v2320_v59 = vmul.f32 %v2162_v16, %v2162_v16 }
  0x9d   : > { %v688_v5 = vand.u32 2147483647, %v658_v63  ;;  %v637_v32 = vpop.permute.xlu0 %636  ;;  %v643_v36 = vsel %vm369_vm7, %v639_v31, 0.0 }
  0x9e   : > { %v698_v10 = vsel %vm475_vm6, %v689_v0, 0.0  ;;  %v642_v37 = vsel %vm369_vm7, %v637_v32, 0.0  ;;  %v645_v40 = vsub.f32 %v2208_v48, %v643_v36  ;;  %v2312_v48 = vmul.f32 %v2158_v14, %v2158_v14 }
  0x9f   : > { %v699_v22 = vadd.f32 %v698_v10, %v697_v2  ;;  %v693_v23 = vsel %vm475_vm6, %v688_v5, 0.0  ;;  %v644_v41 = vsub.f32 %v2211_v49, %v642_v37  ;;  %v2330_v0 = vmul.f32 %v2170_v20, %v2170_v20 }
  0xa0   : > { %v694_v24 = vadd.f32 %v693_v23, %v692_v9  ;;  %v379_v2 = vadd.f32 %v2272_v44, %v2168_v19  ;;  %v381_v44 = vadd.f32 %v2279_v56, %v2172_v21 }
  0xa1   : > { %v702_v25 = vmul.f32 0.33333334, %v699_v22 }
  0xa2   : > { %v701_v26 = vmul.f32 0.33333334, %v694_v24 }
  0xa3   : > { %v704_v27 = vsub.f32 0.0, %v702_v25 }
  0xa4   : > { %v703_v28 = vsub.f32 0.0, %v701_v26 }
  0xa5   : > { %v707_v29 = vmul.f32 1.442695, %v704_v27 }
  0xa6   : > { %v705_v30 = vmul.f32 1.442695, %v703_v28 }
  0xa7   : > { %1951 = vpow2.f32 %v707_v29 }
  0xa8   : > { %1953 = vpow2.f32 %v705_v30 }
  0xb1   : > { %v1952_v42 = vpop.eup %1951 }
  0xb2   : > { %v1954_v43 = vpop.eup %1953  ;;  %v734_v46 = vmul.f32 %v1952_v42, %v645_v40 }
  0xb3   : > { %v733_v47 = vmul.f32 %v1954_v43, %v644_v41 }
  0xb4   : > { %v736_v50 = vand.u32 2147483647, %v734_v46 }
  0xb5   : > { %v735_v51 = vand.u32 2147483647, %v733_v47 }
  0xb6   : > { %v738_v52 = vsel %vm333_vm0, %v736_v50, 0.0 }
  0xb7   : > { %v737_v53 = vsel %vm333_vm0, %v735_v51, 0.0  ;;  %v740_v54 = vsel %vm475_vm6, %v738_v52, 0.0 }
  0xb8   : > { %v739_v55 = vsel %vm475_vm6, %v737_v53, 0.0 }
  0xb9   : > { %v741_v58 = vadd.f32 %v740_v54, %v739_v55 }
  0xbb   : > { %742 = vadd.xlane.f32.xlu0 %v741_v58 }
  0xd1   : > { %382 = vrot.lane.b32.xlu0 %v2158_v14, %s2044_s8 }
  0xd5   : > { %386 = vrot.lane.b32.xlu0 %v2162_v16, %s2044_s8 }
  0xd9   : > { %390 = vrot.lane.b32.xlu0 %v2170_v20, %s2044_s8 }
  0xdb   : > { %v2314_v49 = vpop.xlane.xlu1 %763 }
  0xdd   : > { %494 = vrot.lane.b32.xlu0 %v2312_v48, %s2043_s27 }
  0xdf   : > { %v385_v61 = vpop.permute.xlu1 %384 }
  0xe0   : > { %v402_v62 = vsel %vm400_vm8, %v385_v61, 0.0 }
  0xe1   : > { %v2324_v63 = vadd.f32 %v402_v62, %v377_v60  ;;  %498 = vrot.lane.b32.xlu0 %v2320_v59, %s2043_s27 }
  0xe3   : > { %v421_v5 = vrot.slane %v2324_v63, 1  ;;  %v446_v9 = vrot.slane %v2324_v63, 2  ;;  %v389_v45 = vpop.permute.xlu1 %388 }
  0xe4   : > { %v404_v10 = vsel %vm400_vm8, %v389_v45, 0.0 }
  0xe5   : > { %v435_v22 = vsel %vm419_vm5, %v421_v5, 0.0  ;;  %v2340_v23 = vadd.f32 %v404_v10, %v379_v2  ;;  %502 = vrot.lane.b32.xlu0 %v2330_v0, %s2043_s27  ;;  %v460_v25 = vsel %vm444_vm9, %v446_v9, 0.0 }
  0xe6   : > { %v439_v24 = vadd.f32 %v435_v22, %v2324_v63 }
  0xe7   : > { %v424_v26 = vrot.slane %v2340_v23, 1  ;;  %v449_v27 = vrot.slane %v2340_v23, 2  ;;  %v393_v28 = vpop.permute.xlu1 %392 }
  0xe8   : > { %v464_v29 = vadd.f32 %v460_v25, %v439_v24  ;;  %v406_v30 = vsel %vm400_vm8, %v393_v28, 0.0 }
  0xe9   : > { %v436_v31 = vsel %vm419_vm5, %v424_v26, 0.0  ;;  %v2356_v32 = vadd.f32 %v406_v30, %v381_v44  ;;  %524 = vrot.lane.b32.xlu0 %v2312_v48, %s2044_s8  ;;  %v461_v37 = vsel %vm444_vm9, %v449_v27, 0.0 }
  0xea   : > { %v470_v56 = vmul.f32 0.11111111, %v464_v29  ;;  %v441_v36 = vadd.f32 %v436_v31, %v2340_v23 }
  0xeb   : > { %v427_v40 = vrot.slane %v2356_v32, 1  ;;  %v452_v41 = vrot.slane %v2356_v32, 2  ;;  %v497_v42 = vpop.permute.xlu1 %496 }
  0xec   : > { %477 = vst.msk [vmem:[#allocation2 + $0x8] sm:$0xff] %vm475_vm6, %v470_v56  ;;  %v466_v43 = vadd.f32 %v461_v37, %v441_v36  ;;  %v513_v55 = vsel %vm369_vm7, %v497_v42, 0.0 }
  0xed   : > { %v437_v46 = vsel %vm419_vm5, %v427_v40, 0.0  ;;  %528 = vrot.lane.b32.xlu0 %v2320_v59, %s2044_s8  ;;  %v462_v51 = vsel %vm444_vm9, %v452_v41, 0.0  ;;  %v519_v60 = vadd.f32 %v513_v55, %v2239_v33 }
  0xee   : > { %v472_v47 = vmul.f32 0.11111111, %v466_v43  ;;  %v443_v50 = vadd.f32 %v437_v46, %v2356_v32 }
  0xef   : > { %v501_v52 = vpop.permute.xlu1 %500 }
  0xf0   : > { %479 = vst.msk [vmem:[#allocation2 + $0x18] sm:$0xff] %vm475_vm6, %v472_v47  ;;  %v468_v53 = vadd.f32 %v462_v51, %v443_v50  ;;  %v515_v61 = vsel %vm369_vm7, %v501_v52, 0.0  ;;  %v615_v52 = vmul.f32 %v470_v56, %v470_v56 }
  0xf1   : > { %532 = vrot.lane.b32.xlu0 %v2330_v0, %s2044_s8  ;;  %v521_v45 = vadd.f32 %v515_v61, %v2245_v34 }
  0xf2   : > { %v474_v54 = vmul.f32 0.11111111, %v468_v53 }
  0xf3   : > { %v505_v58 = vpop.permute.xlu1 %504 }
  0xf4   : > { %481 = vst.msk [vmem:[#allocation2 + $0x28] sm:$0xff] %vm475_vm6, %v474_v54  ;;  %v517_v22 = vsel %vm369_vm7, %v505_v58, 0.0 }
  0xf5   : > { %v523_v33 = vadd.f32 %v517_v22, %v2251_v35  ;;  %v617_v22 = vmul.f32 %v472_v47, %v472_v47 }
  0xf7   : > { %v527_v62 = vpop.permute.xlu1 %526 }
  0xf8   : > { %v543_v2 = vsel %vm400_vm8, %v527_v62, 0.0 }
  0xf9   : > { %v2385_v10 = vadd.f32 %v543_v2, %v519_v60 }
  0xfb   : > { %v561_v24 = vrot.slane %v2385_v10, 1  ;;  %v585_v44 = vrot.slane %v2385_v10, 2  ;;  %v531_v25 = vpop.permute.xlu1 %530 }
  0xfc   : > { %v545_v28 = vsel %vm400_vm8, %v531_v25, 0.0 }
  0xfd   : > { %v575_v29 = vsel %vm419_vm5, %v561_v24, 0.0  ;;  %v599_v34 = vsel %vm444_vm9, %v585_v44, 0.0  ;;  %v2398_v30 = vadd.f32 %v545_v28, %v521_v45 }
  0xfe   : > { %v579_v31 = vadd.f32 %v575_v29, %v2385_v10  ;;  %v619_v29 = vmul.f32 %v474_v54, %v474_v54 }
  0xff   : > { %v564_v36 = vrot.slane %v2398_v30, 1  ;;  %v588_v37 = vrot.slane %v2398_v30, 2  ;;  %v535_v42 = vpop.permute.xlu1 %534 }
 0x100   : > { %v603_v43 = vadd.f32 %v599_v34, %v579_v31  ;;  %v547_v35 = vsel %vm400_vm8, %v535_v42, 0.0  ;;  %v765_v42 = vrot.slane %v2314_v49, 4 }
 0x101   : > { %v576_v46 = vsel %vm419_vm5, %v564_v36, 0.0  ;;  %v600_v50 = vsel %vm444_vm9, %v588_v37, 0.0  ;;  %v2410_v51 = vadd.f32 %v547_v35, %v523_v33 }
 0x102   : > { %v609_v53 = vmul.f32 0.11111111, %v603_v43  ;;  %v581_v55 = vadd.f32 %v576_v46, %v2398_v30  ;;  %v766_v43 = vadd.f32 %v765_v42, %v2314_v49 }
 0x103   : > { %v567_v58 = vrot.slane %v2410_v51, 1  ;;  %v591_v60 = vrot.slane %v2410_v51, 2 }
 0x104   : > { %v621_v61 = vsub.f32 %v609_v53, %v615_v52  ;;  %v605_v62 = vadd.f32 %v600_v50, %v581_v55  ;;  %v767_v35 = vrot.slane %v766_v43, 2  ;;  %v376_v52 = vadd.f32 %v2265_v39, %v2158_v14 }
 0x105   : > { %v577_v2 = vsel %vm419_vm5, %v567_v58, 0.0  ;;  %v601_v45 = vsel %vm444_vm9, %v591_v60, 0.0 }
 0x106   : > { %627 = vst.msk [vmem:[#allocation3 + $0x8] sm:$0xff] %vm475_vm6, %v621_v61  ;;  %v611_v56 = vmul.f32 0.11111111, %v605_v62  ;;  %v583_v25 = vadd.f32 %v577_v2, %v2410_v51  ;;  %v768_v55 = vadd.f32 %v767_v35, %v766_v43 }
 0x108   : > { %v623_v28 = vsub.f32 %v611_v56, %v617_v22  ;;  %v607_v33 = vadd.f32 %v601_v45, %v583_v25  ;;  %v378_v45 = vadd.f32 %v2262_v38, %v2162_v16  ;;  %v769_v25 = vrot.slane %v768_v55, 1 }
 0x10a   : > { %629 = vst.msk [vmem:[#allocation3 + $0x18] sm:$0xff] %vm475_vm6, %v623_v28  ;;  %v613_v34 = vmul.f32 0.11111111, %v607_v33 }
 0x10c   : > { %v625_v31 = vsub.f32 %v613_v34, %v619_v29  ;;  %v380_v34 = vadd.f32 %v2282_v57, %v2170_v20 }
 0x10e   : > { %631 = vst.msk [vmem:[#allocation3 + $0x28] sm:$0xff] %vm475_vm6, %v625_v31 }
 0x148   : > { %v743_v47 = vpop.xlane.xlu0 %742 }
 0x149   : > { %v744_v46 = vrot.slane %v743_v47, 4 }
 0x14b   : > { %v745_v50 = vadd.f32 %v744_v46, %v743_v47  ;;  %v770_v46 = vadd.f32 %v769_v25, %v768_v55 }
 0x14c   : > { %v383_v53 = vpop.permute.xlu0 %382 }
 0x14d   : > { %v746_v54 = vrot.slane %v745_v50, 2  ;;  %v401_v61 = vsel %vm400_vm8, %v383_v53, 0.0 }
 0x14e   : > { %v407_v62 = vadd.f32 %v401_v61, %v376_v52 }
 0x14f   : > { %v747_v2 = vadd.f32 %v746_v54, %v745_v50 }
 0x150   : > { %v420_v22 = vrot.slane %v407_v62, 1  ;;  %v445_v56 = vrot.slane %v407_v62, 2  ;;  %v387_v49 = vpop.permute.xlu0 %386 }
 0x151   : > { %v403_v28 = vsel %vm400_vm8, %v387_v49, 0.0  ;;  %v748_v33 = vrot.slane %v747_v2, 1 }
 0x152   : > { %v422_v39 = vsel %vm419_vm5, %v420_v22, %v421_v5  ;;  %v409_v29 = vadd.f32 %v403_v28, %v378_v45  ;;  %v447_v38 = vsel %vm444_vm9, %v445_v56, %v446_v9 }
 0x153   : > { %v438_v31 = vadd.f32 %v422_v39, %v407_v62  ;;  %v749_v42 = vadd.f32 %v748_v33, %v747_v2 }
 0x154   : > { %v423_v43 = vrot.slane %v409_v29, 1  ;;  %v448_v35 = vrot.slane %v409_v29, 2  ;;  %v391_v47 = vpop.permute.xlu0 %390 }
 0x155   : > { %v463_v50 = vadd.f32 %v447_v38, %v438_v31  ;;  %v405_v52 = vsel %vm400_vm8, %v391_v47, 0.0  ;;  %1877 = vpush %v749_v42 }
 0x156   : > { %v425_v5 = vsel %vm419_vm5, %v423_v43, %v424_v26  ;;  %v411_v53 = vadd.f32 %v405_v52, %v380_v34  ;;  %1879 = vpush %v770_v46  ;;  %v450_v63 = vsel %vm444_vm9, %v448_v35, %v449_v27 }
 0x157   : > { %v469_v57 = vmul.f32 0.11111111, %v463_v50  ;;  %v440_v54 = vadd.f32 %v425_v5, %v409_v29 }
 0x158   : > { %v426_v9 = vrot.slane %v411_v53, 1  ;;  %v451_v61 = vrot.slane %v411_v53, 2  ;;  %v495_v62 = vpop.permute.xlu0 %494 }
 0x159   : > { %476 = vst.msk [vmem:[#allocation2] sm:$0xff] %vm475_vm6, %v469_v57  ;;  %v465_v55 = vadd.f32 %v450_v63, %v440_v54  ;;  %v512_v49 = vsel %vm369_vm7, %v495_v62, 0.0  ;;  %v614_v10 = vmul.f32 %v469_v57, %v469_v57 }
 0x15a   : > { %v428_v2 = vsel %vm419_vm5, %v426_v9, %v427_v40  ;;  %v453_v22 = vsel %vm444_vm9, %v451_v61, %v452_v41  ;;  %v518_v28 = vadd.f32 %v512_v49, %v2312_v48 }
 0x15b   : > { %v471_v45 = vmul.f32 0.11111111, %v465_v55  ;;  %v442_v26 = vadd.f32 %v428_v2, %v411_v53 }
 0x15c   : > { %v499_v56 = vpop.permute.xlu0 %498 }
 0x15d   : > { %478 = vst.msk [vmem:[#allocation2 + $0x10] sm:$0xff] %vm475_vm6, %v471_v45  ;;  %v467_v23 = vadd.f32 %v453_v22, %v442_v26  ;;  %v514_v40 = vsel %vm369_vm7, %v499_v56, 0.0  ;;  %v616_v30 = vmul.f32 %v471_v45, %v471_v45 }
 0x15e   : > { %v520_v32 = vadd.f32 %v514_v40, %v2320_v59 }
 0x15f   : > { %v473_v27 = vmul.f32 0.11111111, %v467_v23 }
 0x160   : > { %v503_v25 = vpop.permute.xlu0 %502 }
 0x161   : > { %480 = vst.msk [vmem:[#allocation2 + $0x20] sm:$0xff] %vm475_vm6, %v473_v27  ;;  %v516_v29 = vsel %vm369_vm7, %v503_v25, 0.0  ;;  %v618_v56 = vmul.f32 %v473_v27, %v473_v27 }
 0x162   : > { %v522_v43 = vadd.f32 %v516_v29, %v2330_v0 }
 0x164   : > { %v525_v33 = vpop.permute.xlu0 %524 }
 0x165   : > { %v542_v39 = vsel %vm400_vm8, %v525_v33, 0.0 }
 0x166   : > { %v548_v41 = vadd.f32 %v542_v39, %v518_v28 }
 0x168   : > { %v560_v34 = vrot.slane %v548_v41, 1  ;;  %v584_v31 = vrot.slane %v548_v41, 2  ;;  %v529_v42 = vpop.permute.xlu0 %528 }
 0x169   : > { %v544_v38 = vsel %vm400_vm8, %v529_v42, 0.0 }
 0x16a   : > { %v562_v48 = vsel %vm419_vm5, %v560_v34, %v561_v24  ;;  %v586_v35 = vsel %vm444_vm9, %v584_v31, %v585_v44  ;;  %v550_v47 = vadd.f32 %v544_v38, %v520_v32 }
 0x16b   : > { %v578_v59 = vadd.f32 %v562_v48, %v548_v41 }
 0x16c   : > { %v563_v46 = vrot.slane %v550_v47, 1  ;;  %v587_v50 = vrot.slane %v550_v47, 2  ;;  %v533_v52 = vpop.permute.xlu0 %532 }
 0x16d   : > { %v602_v5 = vadd.f32 %v586_v35, %v578_v59  ;;  %v546_v53 = vsel %vm400_vm8, %v533_v52, 0.0 }
 0x16e   : > { %v565_v0 = vsel %vm419_vm5, %v563_v46, %v564_v36  ;;  %v589_v24 = vsel %vm444_vm9, %v587_v50, %v588_v37  ;;  %v552_v54 = vadd.f32 %v546_v53, %v522_v43 }
 0x16f   : > { %v608_v63 = vmul.f32 0.11111111, %v602_v5  ;;  %v580_v44 = vadd.f32 %v565_v0, %v550_v47 }
 0x170   : > { %v566_v9 = vrot.slane %v552_v54, 1  ;;  %v590_v61 = vrot.slane %v552_v54, 2 }
 0x171   : > { %v620_v62 = vsub.f32 %v608_v63, %v614_v10  ;;  %v604_v55 = vadd.f32 %v589_v24, %v580_v44 }
 0x172   : > { %v568_v2 = vsel %vm419_vm5, %v566_v9, %v567_v58  ;;  %v592_v36 = vsel %vm444_vm9, %v590_v61, %v591_v60 }
 0x173   : > { %626 = vst.msk [vmem:[#allocation3] sm:$0xff] %vm475_vm6, %v620_v62  ;;  %v610_v37 = vmul.f32 0.11111111, %v604_v55  ;;  %v582_v57 = vadd.f32 %v568_v2, %v552_v54 }
 0x175   : > { %v622_v26 = vsub.f32 %v610_v37, %v616_v30  ;;  %v606_v22 = vadd.f32 %v592_v36, %v582_v57 }
 0x177   : > { %628 = vst.msk [vmem:[#allocation3 + $0x10] sm:$0xff] %vm475_vm6, %v622_v26  ;;  %v612_v23 = vmul.f32 0.11111111, %v606_v22 }
 0x179   : > { %v624_v49 = vsub.f32 %v612_v23, %v618_v56 }
 0x17b   : > { %630 = vst.msk [vmem:[#allocation3 + $0x20] sm:$0xff] %vm475_vm6, %v624_v49 }
 0x186   : > { %s1878_s13 = spop %1877 }
 0x187   : > { %753 = sst [smem:[%s752_s11]] %s1878_s13  ;;  %s1880_s14 = spop %1879 }
 0x188   : > { %774 = sst [smem:[%s1750_s12]] %s1880_s14 }
 0x189 PF: > { %s2045_s15 = smov 127   ;;  %s2046_s16 = smov 126   ;;  %v2502_v51 = vmul.f32 %v2143_v7, %v2143_v7  ;;  %v2506_v58 = vmul.f32 %v2141_v6, %v2141_v6  ;;  %v2518_v60 = vmul.f32 %v2152_v11, %v2152_v11  ;;  %v2522_v45 = vmul.f32 %v2145_v8, %v2145_v8 }
 0x18a   : > { %1058 = vrot.lane.b32.xlu1 %v2145_v8, %s2045_s15  ;;  %1054 = vrot.lane.b32.xlu0 %v2141_v6, %s2045_s15  ;;  %v2546_v27 = vmul.f32 %v2156_v13, %v2156_v13  ;;  %v2550_v25 = vmul.f32 %v2154_v12, %v2154_v12  ;;  %v2562_v28 = vmul.f32 %v2160_v15, %v2143_v7  ;;  %vm823_vm10 = vcmask 130048   ;;  %s1855_s17 = sshll.u32 %s2029_s19, 1  ;;  %p3117_p8 = scmp.eq.s32.totalorder %s1823_s23, 3 }
 0x18b   : > { %v2566_v40 = vmul.f32 %v2158_v14, %v2141_v6  ;;  %v2574_v33 = vmul.f32 %v2168_v19, %v2152_v11  ;;  %v2578_v39 = vmul.f32 %v2162_v16, %v2145_v8  ;;  %v2594_v32 = vmul.f32 %v2172_v21, %v2156_v13  ;;  %s1651_s26 = sadd.s32 %s2025_s18, %s1855_s17  ;;  %s1682_s7 = sshll.u32 %s3169_s5, 4  ;;  %s1683_s7 = int_to_ptr.vmem [resolvable:$true] %s1682_s7 }
 0x18c   : > { %v2598_v41 = vmul.f32 %v2170_v20, %v2154_v12  ;;  %v775_v29 = vsub.f32 %v2141_v6, %v2158_v14  ;;  %v776_v34 = vsub.f32 %v2143_v7, %v2160_v15  ;;  %v777_v31 = vsub.f32 %v2145_v8, %v2162_v16  ;;  %s1856_s29 = sshll.u32 %s1651_s26, 7  ;;  %s1967_s8 = scalar_lea.vmem %s1683_s7, 32 }
 0x18d   : > { %v778_v14 = vsub.f32 %v2152_v11, %v2168_v19  ;;  %v779_v15 = vsub.f32 %v2154_v12, %v2170_v20  ;;  %v780_v48 = vsub.f32 %v2156_v13, %v2172_v21  ;;  %vm889_vm11 = vcmask 1046528   ;;  %s3124_s27 = scalar_lea.smem [#allocation4], %s1856_s29  ;;  %p1968_p9 = scmp.ne.s32.totalorder %s1683_s7, %s1967_s8 }
 0x18e   : > { %1060 = vrot.lane.b32.xlu1 %v2152_v11, %s2045_s15  ;;  %1056 = vrot.lane.b32.xlu0 %v2143_v7, %s2045_s15  ;;  %v2623_v42 = vmul.f32 %v775_v29, %v2164_v17  ;;  %v2626_v38 = vmul.f32 %v776_v34, %v2166_v18  ;;  %v2637_v16 = vmul.f32 %v777_v31, %v2164_v17  ;;  %p1974_p12 = scmp.lt.s32.totalorder %s1683_s7, %s1683_s7  ;;  %p1975_p13 = scmp.lt.s32.totalorder %s1967_s8, %s1967_s8 }
 0x18f   : > { %v2640_v43 = vmul.f32 %v778_v14, %v2166_v18  ;;  %v2649_v19 = vmul.f32 %v779_v15, %v2164_v17  ;;  %v2652_v20 = vmul.f32 %v780_v48, %v2166_v18  ;;  %p1969_p10 = pnand %p1968_p9, %p3117_p8 }
 0x190   : > { %3179 = vst [vmem:[#allocation11_spill] sm:$0xff] %v2637_v16  ;;  %v787_v35 = vand.u32 2147483647, %v2623_v42  ;;  %v788_v47 = vand.u32 2147483647, %v2626_v38  ;;  %v799_v59 = vmul.f32 0.5, %v2623_v42  ;;  %p1976_p0 = por %p1975_p13, %p1974_p12 }
 0x191   : > { %3180 = vst [vmem:[#allocation12_spill] sm:$0xff] %v2640_v43  ;;  %3181 = vst [vmem:[#allocation13_spill] sm:$0xff] %v2649_v19  ;;  %v891_v21 = vrot.slane %v2626_v38, 1  ;;  %v800_v46 = vmul.f32 0.5, %v2626_v38  ;;  %v890_v50 = vrot.slane %v2623_v42, 1  ;;  %v893_v52 = vrot.slane %v2637_v16, 1  ;;  %p1970_p11 = pneg %p1969_p10 }
 0x192   : > { %1086 = vrot.lane.b32.xlu1 %v2143_v7, %s2046_s16  ;;  %1084 = vrot.lane.b32.xlu0 %v2141_v6, %s2046_s16  ;;  %3182 = vst [vmem:[#allocation14_spill] sm:$0xff] %v2652_v20  ;;  %v894_v5 = vrot.slane %v2640_v43, 1  ;;  %v789_v53 = vand.u32 2147483647, %v2637_v16  ;;  %v790_v0 = vand.u32 2147483647, %v2640_v43  ;;  %v805_v54 = vmul.f32 %v799_v59, %v2623_v42 }
 0x193   : > { %v791_v24 = vand.u32 2147483647, %v2649_v19  ;;  %v792_v10 = vand.u32 2147483647, %v2652_v20  ;;  %vm2671_vm12 = vcmp.lt.f32.partialorder %v787_v35, 1.0  ;;  %vm2675_vm13 = vcmp.lt.f32.partialorder %v788_v47, 1.0  ;;  %p1977_p1 = pnand %p1976_p0, %p1970_p11 }
 0x194   : > { %v801_v9 = vmul.f32 0.5, %v2637_v16  ;;  %vm2680_vm14 = vcmp.lt.f32.partialorder %v789_v53, 1.0  ;;  %vm2684_vm15 = vcmp.lt.f32.partialorder %v790_v0, 1.0  ;;  %v802_v2 = vmul.f32 0.5, %v2640_v43 }
 0x195   : > { %vm2688_vm3 = vcmp.lt.f32.partialorder %v791_v24, 1.0  ;;  %vm2693_vm5 = vcmp.lt.f32.partialorder %v792_v10, 1.0  ;;  %v803_v30 = vmul.f32 0.5, %v2649_v19  ;;  %v804_v37 = vmul.f32 0.5, %v2652_v20 }
 0x196   : > { %1190 = vrot.lane.b32.xlu1 %v2502_v51, %s2045_s15  ;;  %1188 = vrot.lane.b32.xlu0 %v2506_v58, %s2045_s15  ;;  %v806_v57 = vmul.f32 %v800_v46, %v2626_v38  ;;  %v807_v26 = vmul.f32 %v801_v9, %v2637_v16  ;;  %v808_v22 = vmul.f32 %v802_v2, %v2640_v43  ;;  %v1837_v56 = vadd.f32 -0.5, %v787_v35 }
 0x197   : > { %v1838_v23 = vadd.f32 -0.5, %v788_v47  ;;  %v809_v49 = vmul.f32 %v803_v30, %v2649_v19  ;;  %v810_v29 = vmul.f32 %v804_v37, %v2652_v20  ;;  %v1839_v34 = vadd.f32 -0.5, %v789_v53 }
 0x198   : > { %v1840_v31 = vadd.f32 -0.5, %v790_v0  ;;  %v1841_v14 = vadd.f32 -0.5, %v791_v24  ;;  %v1842_v15 = vadd.f32 -0.5, %v792_v10  ;;  %v817_v48 = vsel %vm2671_vm12, %v805_v54, %v1837_v56 }
 0x199   : > { %v818_v59 = vsel %vm2675_vm13, %v806_v57, %v1838_v23  ;;  %v819_v46 = vsel %vm2680_vm14, %v807_v26, %v1839_v34  ;;  %v824_v47 = vsel %vm823_vm10, %v817_v48, 0.0  ;;  %v892_v24 = vsel %vm889_vm11, %v890_v50, %v891_v21 }
 0x19a   : > { %1090 = vrot.lane.b32.xlu1 %v2152_v11, %s2046_s16  ;;  %1088 = vrot.lane.b32.xlu0 %v2145_v8, %s2046_s16  ;;  %v820_v35 = vsel %vm2684_vm15, %v808_v22, %v1840_v31  ;;  %v825_v9 = vsel %vm823_vm10, %v818_v59, 0.0  ;;  %v827_v0 = vsel %vm823_vm10, %v819_v46, 0.0  ;;  %v905_v54 = vsel %vm889_vm11, %v891_v21, 0.0 }
 0x19b   : > { %v826_v53 = vadd.f32 %v825_v9, %v824_v47  ;;  %v821_v10 = vsel %vm2688_vm3, %v809_v49, %v1841_v14  ;;  %v822_v63 = vsel %vm2693_vm5, %v810_v29, %v1842_v15  ;;  %v829_v44 = vsel %vm823_vm10, %v820_v35, 0.0 }
 0x19c   : > { %v895_v61 = vsel %vm889_vm11, %v893_v52, %v894_v5  ;;  %v896_v2 = vrot.slane %v2649_v19, 1  ;;  %v897_v30 = vrot.slane %v2652_v20, 1  ;;  %v906_v37 = vsel %vm889_vm11, %v894_v5, 0.0 }
 0x19d   : > { %v828_v62 = vadd.f32 %v827_v0, %v826_v53  ;;  %v908_v50 = vsub.f32 %v892_v24, %v2623_v42  ;;  %v909_v21 = vsub.f32 %v905_v54, %v2626_v38  ;;  %v910_v55 = vsub.f32 %v895_v61, %v2637_v16 }
 0x19e   : > { %1194 = vrot.lane.b32.xlu1 %v2518_v60, %s2045_s15  ;;  %1192 = vrot.lane.b32.xlu0 %v2522_v45, %s2045_s15  ;;  %v911_v36 = vsub.f32 %v906_v37, %v2640_v43  ;;  %v831_v26 = vsel %vm823_vm10, %v821_v10, 0.0  ;;  %v898_v52 = vsel %vm889_vm11, %v896_v2, %v897_v30  ;;  %v907_v22 = vsel %vm889_vm11, %v897_v30, 0.0 }
 0x19f   : > { %v830_v57 = vadd.f32 %v829_v44, %v828_v62  ;;  %v912_v56 = vsub.f32 %v898_v52, %v2649_v19  ;;  %v913_v23 = vsub.f32 %v907_v22, %v2652_v20  ;;  %v919_v5 = vsel %vm335_vm2, %v909_v21, 0.0 }
 0x1a0   : > { %v921_v49 = vsel %vm335_vm2, %v911_v36, 0.0  ;;  %v980_v29 = vand.u32 2147483647, %v908_v50  ;;  %v981_v34 = vand.u32 2147483647, %v919_v5  ;;  %v992_v15 = vmul.f32 0.5, %v908_v50 }
 0x1a1   : > { %v982_v31 = vand.u32 2147483647, %v910_v55  ;;  %v923_v14 = vsel %vm335_vm2, %v913_v23, 0.0  ;;  %v832_v48 = vadd.f32 %v831_v26, %v830_v57  ;;  %v833_v59 = vsel %vm823_vm10, %v822_v63, 0.0 }
 0x1a2   : > { %1220 = vrot.lane.b32.xlu1 %v2502_v51, %s2046_s16  ;;  %1218 = vrot.lane.b32.xlu0 %v2506_v58, %s2046_s16  ;;  %v983_v46 = vand.u32 2147483647, %v921_v49  ;;  %v984_v35 = vand.u32 2147483647, %v912_v56  ;;  %v985_v47 = vand.u32 2147483647, %v923_v14  ;;  %v998_v44 = vmul.f32 %v992_v15, %v908_v50 }
 0x1a3   : > { %vm2742_vm6 = vcmp.lt.f32.partialorder %v980_v29, 1.0  ;;  %vm2746_vm7 = vcmp.lt.f32.partialorder %v981_v34, 1.0  ;;  %v993_v0 = vmul.f32 0.5, %v919_v5  ;;  %vm2750_vm8 = vcmp.lt.f32.partialorder %v982_v31, 1.0 }
 0x1a4   : > { %v994_v3 = vmul.f32 0.5, %v910_v55  ;;  %v995_v54 = vmul.f32 0.5, %v921_v49  ;;  %v996_v10 = vmul.f32 0.5, %v912_v56  ;;  %v997_v63 = vmul.f32 0.5, %v923_v14 }
 0x1a5   : > { %v999_v61 = vmul.f32 %v993_v0, %v919_v5  ;;  %v1849_v62 = vadd.f32 -0.5, %v980_v29  ;;  %vm2754_vm2 = vcmp.lt.f32.partialorder %v983_v46, 1.0  ;;  %v1850_v21 = vadd.f32 -0.5, %v981_v34 }
 0x1a6   : > { %1064 = vrot.lane.b32.xlu1 %v2156_v13, %s2045_s15  ;;  %1062 = vrot.lane.b32.xlu0 %v2154_v12, %s2045_s15  ;;  %v1000_v30 = vmul.f32 %v994_v3, %v910_v55  ;;  %v1001_v37 = vmul.f32 %v995_v54, %v921_v49  ;;  %v1002_v36 = vmul.f32 %v996_v10, %v912_v56  ;;  %v1851_v57 = vadd.f32 -0.5, %v982_v31 }
 0x1a7   : > { %v1852_v26 = vadd.f32 -0.5, %v983_v46  ;;  %v1853_v52 = vadd.f32 -0.5, %v984_v35  ;;  %vm2758_vm9 = vcmp.lt.f32.partialorder %v984_v35, 1.0  ;;  %v1003_v23 = vmul.f32 %v997_v63, %v923_v14 }
 0x1a8   : > { %v1010_v50 = vsel %vm2742_vm6, %v998_v44, %v1849_v62  ;;  %v1011_v5 = vsel %vm2746_vm7, %v999_v61, %v1850_v21  ;;  %v1854_v29 = vadd.f32 -0.5, %v985_v47  ;;  %v1012_v55 = vsel %vm2750_vm8, %v1000_v30, %v1851_v57  ;;  %v2788_v30 = vld [vmem:[#allocation2 + $0x8] sm:$0xff]  ;;  %v2790_v21 = vld [vmem:[#allocation2] sm:$0xff]  ;;  %v2792_v57 = vld [vmem:[#allocation2 + $0x18] sm:$0xff] }
 0x1a9   : > { %v1013_v56 = vsel %vm2754_vm2, %v1001_v37, %v1852_v26  ;;  %v1016_v49 = vsel %vm823_vm10, %v1010_v50, 0.0  ;;  %vm2771_vm12 = vcmp.lt.f32.partialorder %v985_v47, 1.0  ;;  %v1017_v31 = vsel %vm823_vm10, %v1011_v5, 0.0  ;;  %v2796_v5 = vld [vmem:[#allocation2 + $0x10] sm:$0xff] }
 0x1aa   : > { %1224 = vrot.lane.b32.xlu1 %v2518_v60, %s2046_s16  ;;  %1222 = vrot.lane.b32.xlu0 %v2522_v45, %s2046_s16  ;;  %v1019_v14 = vsel %vm823_vm10, %v1012_v55, 0.0  ;;  %v1014_v35 = vsel %vm2758_vm9, %v1002_v36, %v1853_v52  ;;  %v1018_v9 = vadd.f32 %v1017_v31, %v1016_v49  ;;  %v834_v53 = vadd.f32 %v833_v59, %v832_v48 }
 0x1ab   : > { %v1021_v0 = vsel %vm823_vm10, %v1013_v56, 0.0  ;;  %vm868_vm13 = vcmask 121856   ;;  %v1015_v47 = vsel %vm2771_vm12, %v1003_v23, %v1854_v29  ;;  %v1023_v3 = vsel %vm823_vm10, %v1014_v35, 0.0  ;;  %v2807_v35 = vld [vmem:[#allocation2 + $0x20] sm:$0xff] }
 0x1ac   : > { %v1020_v24 = vadd.f32 %v1019_v14, %v1018_v9  ;;  %v1025_v62 = vsel %vm823_vm10, %v1015_v47, 0.0  ;;  %vm1102_vm14 = vcmask 113664   ;;  %vm1145_vm15 = vcmask 1045504  }
 0x1ad   : > { %v2801_v29 = vmul.f32 2.0, %v2792_v57  ;;  %v2805_v55 = vmul.f32 %v2788_v30, %v2788_v30  ;;  %v1542_v47 = vmul.f32 %v2790_v21, %v2790_v21 }
 0x1ae   : > { %1094 = vrot.lane.b32.xlu1 %v2156_v13, %s2046_s16  ;;  %1092 = vrot.lane.b32.xlu0 %v2154_v12, %s2046_s16  ;;  %v1022_v63 = vadd.f32 %v1021_v0, %v1020_v24  ;;  %v2812_v0 = vmul.f32 2.0, %v2796_v5 }
 0x1b0   : > { %v1024_v48 = vadd.f32 %v1023_v3, %v1022_v63  ;;  %v2824_v63 = vmul.f32 %v2796_v5, %v2796_v5 }
 0x1b2   : > { %1198 = vrot.lane.b32.xlu1 %v2546_v27, %s2045_s15  ;;  %1196 = vrot.lane.b32.xlu0 %v2550_v25, %s2045_s15  ;;  %v1026_v26 = vadd.f32 %v1025_v62, %v1024_v48 }
 0x1b6   : > { %1228 = vrot.lane.b32.xlu1 %v2546_v27, %s2046_s16  ;;  %1226 = vrot.lane.b32.xlu0 %v2550_v25, %s2046_s16 }
 0x1ba   : > { %1334 = vrot.lane.b32.xlu1 %v2562_v28, %s2045_s15  ;;  %1332 = vrot.lane.b32.xlu0 %v2566_v40, %s2045_s15 }
 0x1be   : > { %1338 = vrot.lane.b32.xlu1 %v2574_v33, %s2045_s15  ;;  %1336 = vrot.lane.b32.xlu0 %v2578_v39, %s2045_s15 }
 0x1c2   : > { %1364 = vrot.lane.b32.xlu1 %v2562_v28, %s2046_s16  ;;  %1362 = vrot.lane.b32.xlu0 %v2566_v40, %s2046_s16 }
 0x1c6   : > { %1368 = vrot.lane.b32.xlu1 %v2574_v33, %s2046_s16  ;;  %1366 = vrot.lane.b32.xlu0 %v2578_v39, %s2046_s16 }
 0x1ca   : > { %1342 = vrot.lane.b32.xlu1 %v2594_v32, %s2045_s15  ;;  %1340 = vrot.lane.b32.xlu0 %v2598_v41, %s2045_s15 }
 0x1ce   : > { %1372 = vrot.lane.b32.xlu1 %v2594_v32, %s2046_s16  ;;  %1370 = vrot.lane.b32.xlu0 %v2598_v41, %s2046_s16 }
 0x1d2   : > { %1468 = vrot.lane.b32.xlu1 %v2166_v18, %s2045_s15  ;;  %1466 = vrot.lane.b32.xlu0 %v2164_v17, %s2045_s15 }
 0x1d6   : > { %1478 = vrot.lane.b32.xlu1 %v2166_v18, %s2046_s16  ;;  %1476 = vrot.lane.b32.xlu0 %v2164_v17, %s2046_s16 }
 0x1da   : > { %850 = vrot.lane.b32.xlu0 %v2623_v42, %s2045_s15  ;;  %852 = vrot.lane.b32.xlu1 %v2626_v38, %s2045_s15 }
 0x1de   : > { %854 = vrot.lane.b32.xlu0 %v2637_v16, %s2045_s15  ;;  %856 = vrot.lane.b32.xlu1 %v2640_v43, %s2045_s15 }
 0x1e2   : > { %858 = vrot.lane.b32.xlu0 %v2649_v19, %s2045_s15  ;;  %860 = vrot.lane.b32.xlu1 %v2652_v20, %s2045_s15 }
 0x1fc   : > { %v1059_v15 = vpop.permute.xlu1 %1058  ;;  %v1055_v46 = vpop.permute.xlu0 %1054 }
 0x1fd   : > { %v1072_v44 = vsel %vm868_vm13, %v1055_v46, 0.0  ;;  %v1074_v9 = vsel %vm868_vm13, %v1059_v15, 0.0  ;;  %v2826_v15 = vld [vmem:[#allocation2 + $0x28] sm:$0xff] }
 0x1fe   : > { %v1078_v59 = vadd.f32 %v1072_v44, %v2141_v6  ;;  %v1507_v6 = vmul.f32 2.0, %v2788_v30  ;;  %v2833_v62 = vmul.f32 %v2826_v15, %v2826_v15  ;;  %v1080_v48 = vadd.f32 %v1074_v9, %v2145_v8 }
 0x200   : > { %v1061_v54 = vpop.permute.xlu1 %1060  ;;  %v1057_v10 = vpop.permute.xlu0 %1056 }
 0x201   : > { %v1073_v61 = vsel %vm868_vm13, %v1057_v10, 0.0  ;;  %835 = vadd.xlane.f32.xlu0 %v834_v53  ;;  %v1075_v53 = vsel %vm868_vm13, %v1061_v54, 0.0  ;;  %v2820_v10 = vmul.f32 %v2792_v57, %v2792_v57 }
 0x202   : > { %v1079_v2 = vadd.f32 %v1073_v61, %v2143_v7  ;;  %v1506_v7 = vmul.f32 2.0, %v2790_v21  ;;  %v2829_v61 = vmul.f32 2.0, %v2807_v35 }
 0x204   : > { %v1087_v37 = vpop.permute.xlu1 %1086  ;;  %v1085_v36 = vpop.permute.xlu0 %1084 }
 0x205   : > { %v1104_v52 = vsel %vm1102_vm14, %v1087_v37, 0.0  ;;  %v1103_v22 = vsel %vm1102_vm14, %v1085_v36, 0.0  ;;  %1027 = vadd.xlane.f32.xlu0 %v1026_v26 }
 0x206   : > { %v1110_v23 = vadd.f32 %v1104_v52, %v1079_v2  ;;  %v1109_v50 = vadd.f32 %v1103_v22, %v1078_v59  ;;  %v1081_v59 = vadd.f32 %v1075_v53, %v2152_v11  ;;  %v2845_v53 = vmul.f32 %v2807_v35, %v2807_v35 }
 0x208   : > { %v1122_v56 = vrot.slane %v1110_v23, 1  ;;  %v1147_v49 = vrot.slane %v1110_v23, 2  ;;  %v1121_v34 = vrot.slane %v1109_v50, 1  ;;  %v1146_v31 = vrot.slane %v1109_v50, 2  ;;  %v1191_v14 = vpop.permute.xlu1 %1190  ;;  %v1189_v46 = vpop.permute.xlu0 %1188 }
 0x20a   : > { %v1136_v24 = vsel %vm889_vm11, %v1122_v56, 0.0  ;;  %v1123_v3 = vsel %vm889_vm11, %v1121_v34, %v1122_v56  ;;  %v1161_v2 = vsel %vm1145_vm15, %v1147_v49, 0.0  ;;  %v1148_v37 = vsel %vm1145_vm15, %v1146_v31, %v1147_v49 }
 0x20b   : > { %v1140_v54 = vadd.f32 %v1136_v24, %v1110_v23  ;;  %v1139_v44 = vadd.f32 %v1123_v3, %v1109_v50  ;;  %v1207_v56 = vsel %vm868_vm13, %v1191_v14, 0.0  ;;  %v1206_v34 = vsel %vm868_vm13, %v1189_v46, 0.0 }
 0x20c   : > { %v1091_v36 = vpop.permute.xlu1 %1090  ;;  %v1089_v26 = vpop.permute.xlu0 %1088  ;;  %v2848_v49 = vmul.f32 2.0, %v2826_v15  ;;  %v1213_v46 = vadd.f32 %v1207_v56, %v2502_v51 }
 0x20d   : > { %v1165_v52 = vadd.f32 %v1161_v2, %v1140_v54  ;;  %v1164_v22 = vadd.f32 %v1148_v37, %v1139_v44  ;;  %v1106_v23 = vsel %vm1102_vm14, %v1091_v36, 0.0  ;;  %v1105_v50 = vsel %vm1102_vm14, %v1089_v26, 0.0 }
 0x20e   : > { %v1112_v24 = vadd.f32 %v1106_v23, %v1081_v59  ;;  %v1111_v8 = vadd.f32 %v1105_v50, %v1080_v48  ;;  %v1212_v48 = vadd.f32 %v1206_v34, %v2506_v58 }
 0x20f   : > { %v1171_v9 = vmul.f32 0.11111111, %v1165_v52  ;;  %v1170_v11 = vmul.f32 0.11111111, %v1164_v22 }
 0x210   : > { %v1125_v31 = vrot.slane %v1112_v24, 1  ;;  %v1150_v3 = vrot.slane %v1112_v24, 2  ;;  %v1124_v54 = vrot.slane %v1111_v8, 1  ;;  %v1149_v44 = vrot.slane %v1111_v8, 2  ;;  %v1195_v2 = vpop.permute.xlu1 %1194  ;;  %v1193_v37 = vpop.permute.xlu0 %1192 }
 0x211   : > { %v1513_v14 = vmul.f32 %v1507_v6, %v1171_v9  ;;  %v1512_v36 = vmul.f32 %v1506_v7, %v1170_v11  ;;  %v1209_v52 = vsel %vm868_vm13, %v1195_v2, 0.0  ;;  %v1208_v22 = vsel %vm868_vm13, %v1193_v37, 0.0 }
 0x212   : > { %v1137_v59 = vsel %vm889_vm11, %v1125_v31, 0.0  ;;  %v1126_v26 = vsel %vm889_vm11, %v1124_v54, %v1125_v31  ;;  %v1162_v50 = vsel %vm1145_vm15, %v1150_v3, 0.0  ;;  %v1151_v20 = vsel %vm1145_vm15, %v1149_v44, %v1150_v3 }
 0x213   : > { %v1142_v23 = vadd.f32 %v1137_v59, %v1112_v24  ;;  %v1141_v4 = vadd.f32 %v1126_v26, %v1111_v8  ;;  %v2858_v6 = vadd.f32 0.0001, %v1513_v14  ;;  %v2860_v7 = vadd.f32 0.0001, %v1512_v36 }
 0x214   : > { %v1221_v51 = vpop.permute.xlu1 %1220  ;;  %v2862_v58 = vmul.f32 %v1171_v9, %v1171_v9  ;;  %v2864_v56 = vmul.f32 %v1170_v11, %v1170_v11  ;;  %v1219_v34 = vpop.permute.xlu0 %1218  ;;  %v1215_v59 = vadd.f32 %v1209_v52, %v2518_v60  ;;  %v1214_v26 = vadd.f32 %v1208_v22, %v2522_v45 }
 0x215   : > { %v1167_v31 = vadd.f32 %v1162_v50, %v1142_v23  ;;  %v1166_v54 = vadd.f32 %v1151_v20, %v1141_v4  ;;  %v1237_v2 = vsel %vm1102_vm14, %v1221_v51, 0.0  ;;  %v1236_v24 = vsel %vm1102_vm14, %v1219_v34, 0.0 }
 0x216   : > { %v1243_v37 = vadd.f32 %v1237_v2, %v1213_v46  ;;  %v1549_v8 = vadd.f32 %v2805_v55, %v2862_v58  ;;  %v1548_v3 = vadd.f32 %v1542_v47, %v2864_v56  ;;  %v1242_v44 = vadd.f32 %v1236_v24, %v1212_v48 }
 0x217   : > { %v1173_v14 = vmul.f32 0.11111111, %v1167_v31  ;;  %v1172_v36 = vmul.f32 0.11111111, %v1166_v54  ;;  %v2874_v50 = vmul.f32 %v1171_v9, %v2788_v30  ;;  %v2877_v46 = vmul.f32 %v1170_v11, %v2790_v21 }
 0x218   : > { %v1255_v19 = vrot.slane %v1243_v37, 1  ;;  %v1279_v23 = vrot.slane %v1243_v37, 2  ;;  %v1065_v4 = vpop.permute.xlu1 %1064  ;;  %v1063_v20 = vpop.permute.xlu0 %1062  ;;  %v1254_v48 = vrot.slane %v1242_v44, 1  ;;  %v1278_v51 = vrot.slane %v1242_v44, 2 }
 0x219   : > { %v1515_v55 = vmul.f32 %v2801_v29, %v1173_v14  ;;  %v1514_v47 = vmul.f32 %v2812_v0, %v1172_v36  ;;  %v1555_v52 = vadd.f32 0.0001, %v1549_v8  ;;  %v2883_v22 = vadd.f32 0.0001, %v1548_v3 }
 0x21a   : > { %v1269_v60 = vsel %vm889_vm11, %v1255_v19, 0.0  ;;  %v1293_v45 = vsel %vm1145_vm15, %v1279_v23, 0.0  ;;  %v1256_v30 = vsel %vm889_vm11, %v1254_v48, %v1255_v19  ;;  %v1077_v9 = vsel %vm868_vm13, %v1065_v4, 0.0 }
 0x21b   : > { %v1273_v34 = vadd.f32 %v1269_v60, %v1243_v37  ;;  %v1076_v21 = vsel %vm868_vm13, %v1063_v20, 0.0  ;;  %v2888_v11 = vadd.f32 0.0001, %v1515_v55  ;;  %v2890_v29 = vadd.f32 0.0001, %v1514_v47 }
 0x21c   : > { %v1272_v0 = vadd.f32 %v1256_v30, %v1242_v44  ;;  %v1280_v31 = vsel %vm1145_vm15, %v1278_v51, %v1279_v23  ;;  %v1225_v54 = vpop.permute.xlu1 %1224  ;;  %v1223_v2 = vpop.permute.xlu0 %1222  ;;  %v2893_v8 = vmul.f32 %v1173_v14, %v1173_v14  ;;  %v2896_v3 = vmul.f32 %v1172_v36, %v1172_v36  ;;  %v1043_v51 = vld [vmem:[#allocation3 + $0x8] sm:$0xff] }
 0x21d   : > { %v1297_v24 = vadd.f32 %v1293_v45, %v1273_v34  ;;  %v1239_v37 = vsel %vm1102_vm14, %v1225_v54, 0.0  ;;  %v1083_v4 = vadd.f32 %v1077_v9, %v2156_v13  ;;  %v1238_v55 = vsel %vm1102_vm14, %v1223_v2, 0.0 }
 0x21e   : > { %v1296_v19 = vadd.f32 %v1280_v31, %v1272_v0  ;;  %v1245_v20 = vadd.f32 %v1239_v37, %v1215_v59  ;;  %v1082_v44 = vadd.f32 %v1076_v21, %v2154_v12  ;;  %v1244_v48 = vadd.f32 %v1238_v55, %v1214_v26  ;;  %v1042_v59 = vld [vmem:[#allocation3] sm:$0xff] }
 0x21f   : > { %v1303_v47 = vmul.f32 0.11111111, %v1297_v24  ;;  %v2902_v23 = vmul.f32 %v1173_v14, %v2792_v57  ;;  %v1551_v45 = vadd.f32 %v2820_v10, %v2893_v8  ;;  %v1550_v9 = vadd.f32 %v2824_v63, %v2896_v3 }
 0x220   : > { %v1302_v60 = vmul.f32 0.11111111, %v1296_v19  ;;  %v1258_v34 = vrot.slane %v1245_v20, 1  ;;  %v1282_v30 = vrot.slane %v1245_v20, 2  ;;  %v1095_v0 = vpop.permute.xlu1 %1094  ;;  %v1093_v31 = vpop.permute.xlu0 %1092  ;;  %v1257_v12 = vrot.slane %v1244_v48, 1 }
 0x221   : > { %v1315_v13 = vsub.f32 %v1303_v47, %v2862_v58  ;;  %v2910_v26 = vmul.f32 %v1172_v36, %v2796_v5  ;;  %v1281_v21 = vrot.slane %v1244_v48, 2  ;;  %v1108_v58 = vsel %vm1102_vm14, %v1095_v0, 0.0 }
 0x222   : > { %v1314_v57 = vsub.f32 %v1302_v60, %v2864_v56  ;;  %v1270_v14 = vsel %vm889_vm11, %v1258_v34, 0.0  ;;  %v1294_v10 = vsel %vm1145_vm15, %v1282_v30, 0.0  ;;  %v1259_v24 = vsel %vm889_vm11, %v1257_v12, %v1258_v34 }
 0x223   : > { %v1561_v54 = vadd.f32 %v1315_v13, %v1043_v51  ;;  %v1275_v2 = vadd.f32 %v1270_v14, %v1245_v20  ;;  %v1274_v19 = vadd.f32 %v1259_v24, %v1244_v48  ;;  %v1283_v63 = vsel %vm1145_vm15, %v1281_v21, %v1282_v30 }
 0x224   : > { %v1560_v37 = vadd.f32 %v1314_v57, %v1042_v59  ;;  %v1114_v55 = vadd.f32 %v1108_v58, %v1083_v4  ;;  %v1199_v5 = vpop.permute.xlu1 %1198  ;;  %v1197_v36 = vpop.permute.xlu0 %1196  ;;  %v1107_v60 = vsel %vm1102_vm14, %v1093_v31, 0.0  ;;  %v1557_v34 = vadd.f32 0.0001, %v1551_v45  ;;  %v1045_v57 = vld [vmem:[#allocation3 + $0x18] sm:$0xff] }
 0x225   : > { %v1567_v47 = vadd.f32 0.0009, %v1561_v54  ;;  %v1299_v56 = vadd.f32 %v1294_v10, %v1275_v2  ;;  %v1211_v43 = vsel %vm868_vm13, %v1199_v5, 0.0  ;;  %v1298_v51 = vadd.f32 %v1283_v63, %v1274_v19  ;;  %v1044_v2 = vld [vmem:[#allocation3 + $0x10] sm:$0xff] }
 0x226   : > { %v1566_v16 = vadd.f32 0.0009, %v1560_v37  ;;  %v1128_v20 = vrot.slane %v1114_v55, 1  ;;  %v1153_v13 = vrot.slane %v1114_v55, 2  ;;  %v1556_v0 = vadd.f32 0.0001, %v1550_v9 }
 0x227   : > { %v1305_v12 = vmul.f32 0.11111111, %v1299_v56  ;;  %v1113_v59 = vadd.f32 %v1107_v60, %v1082_v44  ;;  %v1573_v48 = vmul.f32 %v1567_v47, %v1555_v52  ;;  %v1304_v30 = vmul.f32 0.11111111, %v1298_v51 }
 0x228   : > { %v1138_v4 = vsel %vm889_vm11, %v1128_v20, 0.0  ;;  %v1217_v14 = vadd.f32 %v1211_v43, %v2546_v27  ;;  %v1229_v10 = vpop.permute.xlu1 %1228  ;;  %v1227_v21 = vpop.permute.xlu0 %1226  ;;  %v1572_v31 = vmul.f32 %v1566_v16, %v2883_v22  ;;  %v1163_v44 = vsel %vm1145_vm15, %v1153_v13, 0.0 }
 0x229   : > { %v1317_v54 = vsub.f32 %v1305_v12, %v2893_v8  ;;  %v1144_v24 = vadd.f32 %v1138_v4, %v1114_v55  ;;  %v1127_v58 = vrot.slane %v1113_v59, 1  ;;  %v1316_v45 = vsub.f32 %v1304_v30, %v2896_v3 }
 0x22a   : > { %v1152_v52 = vrot.slane %v1113_v59, 2  ;;  %v1210_v9 = vsel %vm868_vm13, %v1197_v36, 0.0  ;;  %v1241_v8 = vsel %vm1102_vm14, %v1229_v10, 0.0  ;;  %v1240_v36 = vsel %vm1102_vm14, %v1227_v21, 0.0 }
 0x22b   : > { %v1563_v37 = vadd.f32 %v1317_v54, %v1045_v57  ;;  %v1169_v19 = vadd.f32 %v1163_v44, %v1144_v24  ;;  %v1129_v27 = vsel %vm889_vm11, %v1127_v58, %v1128_v20  ;;  %v1216_v43 = vadd.f32 %v1210_v9, %v2550_v25 }
 0x22c   : > { %v1562_v63 = vadd.f32 %v1316_v45, %v1044_v2  ;;  %v1143_v16 = vadd.f32 %v1129_v27, %v1113_v59  ;;  %v1154_v22 = vsel %vm1145_vm15, %v1152_v52, %v1153_v13  ;;  %v1335_v55 = vpop.permute.xlu1 %1334  ;;  %v1333_v5 = vpop.permute.xlu0 %1332  ;;  %v1247_v56 = vadd.f32 %v1241_v8, %v1217_v14 }
 0x22d   : > { %v1569_v3 = vadd.f32 0.0009, %v1563_v37  ;;  %v2931_v47 = vmul.f32 0.11111111, %v1169_v19  ;;  %1955 = vrcp.f32 %v1573_v48  ;;  %v1246_v20 = vadd.f32 %v1240_v36, %v1216_v43 }
 0x22e   : > { %v1568_v60 = vadd.f32 0.0009, %v1562_v63  ;;  %v1168_v51 = vadd.f32 %v1154_v22, %v1143_v16  ;;  %v1261_v59 = vrot.slane %v1247_v56, 1  ;;  %v1285_v13 = vrot.slane %v1247_v56, 2 }
 0x22f   : > { %v1575_v12 = vmul.f32 %v1569_v3, %v1557_v34  ;;  %v1313_v25 = vmul.f32 %v2931_v47, %v2931_v47  ;;  %v1260_v4 = vrot.slane %v1246_v20, 1  ;;  %v1284_v10 = vrot.slane %v1246_v20, 2  ;;  %v1047_v3 = vld [vmem:[#allocation3 + $0x28] sm:$0xff] }
 0x230   : > { %v1574_v57 = vmul.f32 %v1568_v60, %v1556_v0  ;;  %v2936_v30 = vmul.f32 0.11111111, %v1168_v51  ;;  %v1339_v54 = vpop.permute.xlu1 %1338  ;;  %v1337_v2 = vpop.permute.xlu0 %1336  ;;  %1957 = vrcp.f32 %v1572_v31  ;;  %v1271_v48 = vsel %vm889_vm11, %v1261_v59, 0.0 }
 0x231   : > { %v1553_v14 = vadd.f32 %v2833_v62, %v1313_v25  ;;  %v1351_v21 = vsel %vm868_vm13, %v1335_v55, 0.0  ;;  %1959 = vrcp.f32 %v1575_v12  ;;  %v1277_v24 = vadd.f32 %v1271_v48, %v1247_v56 }
 0x232   : > { %v1516_v34 = vmul.f32 %v2829_v61, %v2936_v30  ;;  %v1295_v0 = vsel %vm1145_vm15, %v1285_v13, 0.0  ;;  %1961 = vrcp.f32 %v1574_v57  ;;  %v1312_v45 = vmul.f32 %v2936_v30, %v2936_v30 }
 0x233   : > { %v1559_v58 = vadd.f32 0.0001, %v1553_v14  ;;  %v1262_v31 = vsel %vm889_vm11, %v1260_v4, %v1261_v59  ;;  %v1301_v44 = vadd.f32 %v1295_v0, %v1277_v24  ;;  %v1286_v52 = vsel %vm1145_vm15, %v1284_v10, %v1285_v13  ;;  %v1046_v4 = vld [vmem:[#allocation3 + $0x20] sm:$0xff] }
 0x234   : > { %v1276_v62 = vadd.f32 %v1262_v31, %v1246_v20  ;;  %v1357_v9 = vadd.f32 %v1351_v21, %v2562_v28  ;;  %v1365_v37 = vpop.permute.xlu1 %1364  ;;  %v1363_v19 = vpop.permute.xlu0 %1362  ;;  %v1350_v61 = vsel %vm868_vm13, %v1333_v5, 0.0  ;;  %v1353_v27 = vsel %vm868_vm13, %v1339_v54, 0.0 }
 0x235   : > { %v1352_v43 = vsel %vm868_vm13, %v1337_v2, 0.0  ;;  %v1381_v63 = vsel %vm1102_vm14, %v1365_v37, 0.0  ;;  %v2953_v16 = vadd.f32 0.0001, %v1516_v34  ;;  %v1307_v22 = vmul.f32 0.11111111, %v1301_v44 }
 0x236   : > { %v1300_v8 = vadd.f32 %v1286_v52, %v1276_v62  ;;  %v1356_v55 = vadd.f32 %v1350_v61, %v2566_v40  ;;  %v1552_v56 = vadd.f32 %v2845_v53, %v1312_v45  ;;  %v1359_v28 = vadd.f32 %v1353_v27, %v2574_v33 }
 0x237   : > { %v1387_v36 = vadd.f32 %v1381_v63, %v1357_v9  ;;  %v1380_v5 = vsel %vm1102_vm14, %v1363_v19, 0.0  ;;  %v2959_v60 = vpop.eup %1955  ;;  %v1319_v51 = vsub.f32 %v1307_v22, %v1313_v25  ;;  %v1358_v12 = vadd.f32 %v1352_v43, %v2578_v39 }
 0x238   : > { %v1306_v20 = vmul.f32 0.11111111, %v1300_v8  ;;  %v1386_v59 = vadd.f32 %v1380_v5, %v1356_v55  ;;  %v1369_v13 = vpop.permute.xlu1 %1368  ;;  %v1367_v57 = vpop.permute.xlu0 %1366  ;;  %v1558_v25 = vadd.f32 0.0001, %v1552_v56 }
 0x239   : > { %v1399_v10 = vrot.slane %v1387_v36, 1  ;;  %v1423_v40 = vrot.slane %v1387_v36, 2  ;;  %v1383_v54 = vsel %vm1102_vm14, %v1369_v13, 0.0  ;;  %v1382_v53 = vsel %vm1102_vm14, %v1367_v57, 0.0 }
 0x23a   : > { %v1565_v33 = vadd.f32 %v1319_v51, %v1047_v3  ;;  %v1318_v2 = vsub.f32 %v1306_v20, %v1312_v45  ;;  %v1398_v14 = vrot.slane %v1386_v59, 1  ;;  %v1422_v48 = vrot.slane %v1386_v59, 2  ;;  %v2964_v21 = vpop.eup %1957 }
 0x23b   : > { %v1413_v34 = vsel %vm889_vm11, %v1399_v10, 0.0  ;;  %v1389_v39 = vadd.f32 %v1383_v54, %v1359_v28  ;;  %v1388_v24 = vadd.f32 %v1382_v53, %v1358_v12  ;;  %v2967_v0 = vpop.eup %1959  ;;  %v1437_v45 = vsel %vm1145_vm15, %v1423_v40, 0.0 }
 0x23c   : > { %v1571_v31 = vadd.f32 0.0009, %v1565_v33  ;;  %v1564_v44 = vadd.f32 %v1318_v2, %v1046_v4  ;;  %v1417_v62 = vadd.f32 %v1413_v34, %v1387_v36  ;;  %v1400_v52 = vsel %vm889_vm11, %v1398_v14, %v1399_v10  ;;  %v1343_v9 = vpop.permute.xlu1 %1342  ;;  %v1341_v37 = vpop.permute.xlu0 %1340 }
 0x23d   : > { %v2970_v19 = vpop.eup %1961  ;;  %v1416_v61 = vadd.f32 %v1400_v52, %v1386_v59  ;;  %v1402_v27 = vrot.slane %v1389_v39, 1  ;;  %v1426_v43 = vrot.slane %v1389_v39, 2  ;;  %v1424_v8 = vsel %vm1145_vm15, %v1422_v48, %v1423_v40 }
 0x23e   : > { %v1577_v63 = vmul.f32 %v1571_v31, %v1559_v58  ;;  %v1441_v22 = vadd.f32 %v1437_v45, %v1417_v62  ;;  %v1401_v55 = vrot.slane %v1388_v24, 1  ;;  %v1425_v28 = vrot.slane %v1388_v24, 2 }
 0x23f   : > { %v1440_v3 = vadd.f32 %v1424_v8, %v1416_v61  ;;  %v1414_v56 = vsel %vm889_vm11, %v1402_v27, 0.0  ;;  %v2977_v36 = vmul.f32 %v2931_v47, %v2826_v15  ;;  %v1570_v5 = vadd.f32 0.0009, %v1564_v44 }
 0x240   : > { %v1447_v51 = vmul.f32 0.11111111, %v1441_v22  ;;  %v1419_v20 = vadd.f32 %v1414_v56, %v1389_v39  ;;  %v1438_v12 = vsel %vm1145_vm15, %v1426_v43, 0.0  ;;  %v1373_v59 = vpop.permute.xlu1 %1372  ;;  %v1371_v13 = vpop.permute.xlu0 %1370  ;;  %1963 = vrcp.f32 %v1577_v63 }
 0x241   : > { %v1446_v58 = vmul.f32 0.11111111, %v1440_v3  ;;  %v1403_v57 = vsel %vm889_vm11, %v1401_v55, %v1402_v27  ;;  %v1355_v4 = vsel %vm868_vm13, %v1343_v9, 0.0  ;;  %v1427_v15 = vsel %vm1145_vm15, %v1425_v28, %v1426_v43 }
 0x242   : > { %v1459_v10 = vsub.f32 %v1447_v51, %v2874_v50  ;;  %v1443_v40 = vadd.f32 %v1438_v12, %v1419_v20  ;;  %v1418_v54 = vadd.f32 %v1403_v57, %v1388_v24  ;;  %v1361_v33 = vadd.f32 %v1355_v4, %v2594_v32 }
 0x243   : > { %v1458_v53 = vsub.f32 %v1446_v58, %v2877_v46  ;;  %v1354_v2 = vsel %vm868_vm13, %v1341_v37, 0.0  ;;  %v1385_v14 = vsel %vm1102_vm14, %v1373_v59, 0.0  ;;  %v1576_v50 = vmul.f32 %v1570_v5, %v1558_v25 }
 0x244   : > { %v1525_v48 = vmul.f32 2.0, %v1459_v10  ;;  %v1449_v34 = vmul.f32 0.11111111, %v1443_v40  ;;  %v1442_v39 = vadd.f32 %v1427_v15, %v1418_v54  ;;  %v1360_v31 = vadd.f32 %v1354_v2, %v2598_v41  ;;  %v1469_v44 = vpop.permute.xlu1 %1468  ;;  %v1467_v62 = vpop.permute.xlu0 %1466 }
 0x245   : > { %v1524_v52 = vmul.f32 2.0, %v1458_v53  ;;  %v1391_v24 = vadd.f32 %v1385_v14, %v1361_v33  ;;  %v1384_v9 = vsel %vm1102_vm14, %v1371_v13, 0.0  ;;  %v1473_v63 = vsel %vm868_vm13, %v1469_v44, 0.0 }
 0x246   : > { %v1531_v45 = vadd.f32 0.0009, %v1525_v48  ;;  %v1461_v46 = vsub.f32 %v1449_v34, %v2902_v23  ;;  %v1448_v32 = vmul.f32 0.11111111, %v1442_v39  ;;  %v1390_v61 = vadd.f32 %v1384_v9, %v1360_v31 }
 0x247   : > { %v1530_v37 = vadd.f32 0.0009, %v1524_v52  ;;  %v1405_v27 = vrot.slane %v1391_v24, 1  ;;  %v1429_v43 = vrot.slane %v1391_v24, 2  ;;  %1965 = vrcp.f32 %v1576_v50 }
 0x248   : > { %v1537_v22 = vmul.f32 %v1531_v45, %v2858_v6  ;;  %v1527_v41 = vmul.f32 2.0, %v1461_v46  ;;  %v1460_v8 = vsub.f32 %v1448_v32, %v2910_v26  ;;  %v1404_v25 = vrot.slane %v1390_v61, 1  ;;  %v1479_v55 = vpop.permute.xlu1 %1478  ;;  %v1477_v3 = vpop.permute.xlu0 %1476 }
 0x249   : > { %v1415_v56 = vsel %vm889_vm11, %v1405_v27, 0.0  ;;  %v1456_v23 = vmul.f32 %v2936_v30, %v2807_v35  ;;  %v1428_v28 = vrot.slane %v1390_v61, 2  ;;  %v1536_v5 = vmul.f32 %v1530_v37, %v2860_v7 }
 0x24a   : > { %v1526_v51 = vmul.f32 2.0, %v1460_v8  ;;  %v1421_v20 = vadd.f32 %v1415_v56, %v1391_v24  ;;  %v1439_v12 = vsel %vm1145_vm15, %v1429_v43, 0.0  ;;  %v2999_v6 = vpop.eup %1963  ;;  %v3002_v26 = vmul.f32 %v2959_v60, %v1537_v22 }
 0x24b   : > { %v1533_v59 = vadd.f32 0.0009, %v1527_v41  ;;  %v1406_v13 = vsel %vm889_vm11, %v1404_v25, %v1405_v27  ;;  %v1475_v58 = vadd.f32 %v1473_v63, %v2166_v18  ;;  %v1430_v30 = vsel %vm1145_vm15, %v1428_v28, %v1429_v43 }
 0x24c   : > { %v1532_v57 = vadd.f32 0.0009, %v1526_v51  ;;  %v1445_v4 = vadd.f32 %v1439_v12, %v1421_v20  ;;  %v1420_v35 = vadd.f32 %v1406_v13, %v1390_v61  ;;  %v851_v7 = vpop.permute.xlu0 %850  ;;  %v853_v10 = vpop.permute.xlu1 %852  ;;  %v1472_v40 = vsel %vm868_vm13, %v1467_v62, 0.0  ;;  %v3209_v12 = vld [vmem:[#allocation11_spill] sm:$0xff] }
 0x24d   : > { %v1483_v54 = vsel %vm1102_vm14, %v1479_v55, 0.0  ;;  %v1482_v15 = vsel %vm1102_vm14, %v1477_v3, 0.0  ;;  %v869_v60 = vsel %vm868_vm13, %v851_v7, 0.0  ;;  %v3012_v53 = vmul.f32 %v2964_v21, %v1536_v5 }
 0x24e   : > { %v1451_v33 = vmul.f32 0.11111111, %v1445_v4  ;;  %v1444_v18 = vadd.f32 %v1430_v30, %v1420_v35  ;;  %v1474_v2 = vadd.f32 %v1472_v40, %v2164_v17  ;;  %v3016_v14 = vmul.f32 %v1533_v59, %v2888_v11 }
 0x24f   : > { %v1485_v48 = vadd.f32 %v1483_v54, %v1475_v58  ;;  %v875_v34 = vsub.f32 %v869_v60, %v2623_v42  ;;  %v870_v39 = vsel %vm868_vm13, %v853_v10, 0.0  ;;  %v3021_v31 = vmul.f32 %v1532_v57, %v2890_v29  ;;  %v3210_v54 = vld [vmem:[#allocation12_spill] sm:$0xff]  ;;  %v3211_v60 = vld [vmem:[#allocation13_spill] sm:$0xff] }
 0x250   : > { %v1463_v44 = vsub.f32 %v1451_v33, %v2977_v36  ;;  %v1450_v62 = vmul.f32 0.11111111, %v1444_v18  ;;  %v1484_v21 = vadd.f32 %v1482_v15, %v1474_v2  ;;  %v855_v50 = vpop.permute.xlu0 %854  ;;  %v857_v52 = vpop.permute.xlu1 %856  ;;  %v876_v11 = vsub.f32 %v870_v39, %v2626_v38 }
 0x251   : > { %v1489_v24 = vrot.slane %v1485_v48, 1  ;;  %v1497_v9 = vrot.slane %v1485_v48, 2  ;;  %v883_v17 = vsel %vm333_vm0, %v875_v34, 0.0  ;;  %v3027_v61 = vpop.eup %1965  ;;  %v1517_v27 = vmul.f32 %v2848_v49, %v2931_v47  ;;  %v3212_v34 = vld [vmem:[#allocation14_spill] sm:$0xff] }
 0x252   : > { %v1529_v45 = vmul.f32 2.0, %v1463_v44  ;;  %v1462_v42 = vsub.f32 %v1450_v62, %v1456_v23  ;;  %v1488_v46 = vrot.slane %v1484_v21, 1  ;;  %v1496_v32 = vrot.slane %v1484_v21, 2 }
 0x253   : > { %v1493_v29 = vsel %vm889_vm11, %v1489_v24, 0.0  ;;  %v924_v36 = vand.u32 2147483647, %v883_v17  ;;  %v936_v37 = vmul.f32 0.5, %v883_v17  ;;  %v1501_v63 = vsel %vm1145_vm15, %v1497_v9, 0.0 }
 0x254   : > { %v1528_v43 = vmul.f32 2.0, %v1462_v42  ;;  %v1490_v22 = vsel %vm889_vm11, %v1488_v46, %v1489_v24  ;;  %v871_v38 = vsel %vm868_vm13, %v855_v50, 0.0  ;;  %v1495_v41 = vadd.f32 %v1493_v29, %v1485_v48  ;;  %v859_v3 = vpop.permute.xlu0 %858  ;;  %v861_v56 = vpop.permute.xlu1 %860 }
 0x255   : > { %v1494_v8 = vadd.f32 %v1490_v22, %v1484_v21  ;;  %vm3035_vm3 = vcmp.lt.f32.partialorder %v924_v36, 1.0  ;;  %v942_v55 = vmul.f32 %v936_v37, %v883_v17  ;;  %v1535_v23 = vadd.f32 0.0009, %v1529_v45 }
 0x256   : > { %v1498_v28 = vsel %vm1145_vm15, %v1496_v32, %v1497_v9  ;;  %v1843_v49 = vadd.f32 -0.5, %v924_v36  ;;  %v884_v47 = vsel %vm333_vm0, %v876_v11, 0.0  ;;  %v1534_v5 = vadd.f32 0.0009, %v1528_v43 }
 0x257   : > { %v925_v51 = vand.u32 2147483647, %v884_v47  ;;  %v937_v20 = vmul.f32 0.5, %v884_v47  ;;  %v877_v59 = vsub.f32 %v871_v38, %v3209_v12  ;;  %v872_v58 = vsel %vm868_vm13, %v857_v52, 0.0 }
 0x258   : > { %v954_v13 = vsel %vm3035_vm3, %v942_v55, %v1843_v49  ;;  %v873_v57 = vsel %vm868_vm13, %v859_v3, 0.0  ;;  %v874_v4 = vsel %vm868_vm13, %v861_v56, 0.0  ;;  %v3048_v35 = vadd.f32 %v1501_v63, %v1495_v41 }
 0x259   : > { %v1502_v30 = vadd.f32 %v1498_v28, %v1494_v8  ;;  %vm931_vm11 = vcmp.lt.f32.partialorder %v925_v51, 1.0  ;;  %v943_v7 = vmul.f32 %v937_v20, %v884_v47  ;;  %v1844_v10 = vadd.f32 -0.5, %v925_v51 }
 0x25a   : > { %v885_v40 = vsel %vm333_vm0, %v877_v59, 0.0  ;;  %v878_v15 = vsub.f32 %v872_v58, %v3210_v54  ;;  %v879_v33 = vsub.f32 %v873_v57, %v3211_v60  ;;  %v960_v18 = vsel %vm823_vm10, %v954_v13, 0.0 }
 0x25b   : > { %v926_v2 = vand.u32 2147483647, %v885_v40  ;;  %v938_v48 = vmul.f32 0.5, %v885_v40  ;;  %v880_v39 = vsub.f32 %v874_v4, %v3212_v34  ;;  %v955_v44 = vsel %vm931_vm11, %v943_v7, %v1844_v10 }
 0x25c   : > { %v886_v62 = vsel %vm333_vm0, %v878_v15, 0.0  ;;  %v887_v21 = vsel %vm333_vm0, %v879_v33, 0.0  ;;  %v1523_v50 = vadd.f32 0.0001, %v1517_v27  ;;  %v961_v52 = vsel %vm823_vm10, %v955_v44, 0.0 }
 0x25d   : > { %vm3061_vm5 = vcmp.lt.f32.partialorder %v926_v2, 1.0  ;;  %v944_v9 = vmul.f32 %v938_v48, %v885_v40  ;;  %v1845_v17 = vadd.f32 -0.5, %v926_v2  ;;  %v927_v11 = vand.u32 2147483647, %v886_v62 }
 0x25e   : > { %v939_v45 = vmul.f32 0.5, %v886_v62  ;;  %v928_v42 = vand.u32 2147483647, %v887_v21  ;;  %v940_v46 = vmul.f32 0.5, %v887_v21  ;;  %v888_v29 = vsel %vm333_vm0, %v880_v39, 0.0 }
 0x25f   : > { %v956_v32 = vsel %vm3061_vm5, %v944_v9, %v1845_v17  ;;  %v962_v36 = vadd.f32 %v961_v52, %v960_v18  ;;  %v1540_v37 = vmul.f32 %v1534_v5, %v2953_v16  ;;  %vm3070_vm6 = vcmp.lt.f32.partialorder %v927_v11, 1.0 }
 0x260   : > { %v945_v43 = vmul.f32 %v939_v45, %v886_v62  ;;  %v1846_v63 = vadd.f32 -0.5, %v927_v11  ;;  %vm3074_vm7 = vcmp.lt.f32.partialorder %v928_v42, 1.0  ;;  %v946_v38 = vmul.f32 %v940_v46, %v887_v21 }
 0x261   : > { %v1847_v41 = vadd.f32 -0.5, %v928_v42  ;;  %v929_v8 = vand.u32 2147483647, %v888_v29  ;;  %v941_v25 = vmul.f32 0.5, %v888_v29  ;;  %v963_v3 = vsel %vm823_vm10, %v956_v32, 0.0 }
 0x262   : > { %v957_v55 = vsel %vm3070_vm6, %v945_v43, %v1846_v63  ;;  %v1541_v16 = vmul.f32 %v1535_v23, %v1523_v50  ;;  %v1586_v56 = vmul.f32 %v2970_v19, %v3021_v31  ;;  %v964_v5 = vadd.f32 %v963_v3, %v962_v36 }
 0x263   : > { %v947_v28 = vmul.f32 %v941_v25, %v888_v29  ;;  %v1848_v49 = vadd.f32 -0.5, %v929_v8  ;;  %vm935_vm0 = vcmp.lt.f32.partialorder %v929_v8, 1.0  ;;  %v958_v47 = vsel %vm3074_vm7, %v946_v38, %v1847_v41 }
 0x264   : > { %v965_v51 = vsel %vm823_vm10, %v957_v55, 0.0  ;;  %v967_v20 = vsel %vm823_vm10, %v958_v47, 0.0  ;;  %v1587_v12 = vmul.f32 %v2967_v0, %v3016_v14  ;;  %v1588_v23 = vmul.f32 %v3027_v61, %v1540_v37 }
 0x265   : > { %v959_v59 = vsel %vm935_vm0, %v947_v28, %v1848_v49  ;;  %v1589_v13 = vmul.f32 %v2999_v6, %v1541_v16  ;;  %v1590_v19 = vsub.f32 1.0, %v3012_v53  ;;  %v966_v31 = vadd.f32 %v965_v51, %v964_v5 }
 0x266   : > { %v969_v58 = vsel %vm823_vm10, %v959_v59, 0.0  ;;  %v1591_v57 = vsub.f32 1.0, %v3002_v26  ;;  %v1592_v4 = vsub.f32 1.0, %v1586_v56  ;;  %v1593_v7 = vsub.f32 1.0, %v1587_v12 }
 0x267   : > { %v1594_v10 = vsub.f32 1.0, %v1588_v23  ;;  %v1595_v40 = vsub.f32 1.0, %v1589_v13  ;;  %v1596_v54 = vmul.f32 0.5, %v1590_v19  ;;  %v1504_v15 = vmul.f32 0.11111111, %v1502_v30 }
 0x268   : > { %v968_v60 = vadd.f32 %v967_v20, %v966_v31  ;;  %v1597_v0 = vmul.f32 0.5, %v1591_v57  ;;  %v1598_v14 = vmul.f32 0.5, %v1592_v4  ;;  %v1599_v33 = vmul.f32 0.5, %v1593_v7 }
 0x269   : > { %v1600_v61 = vmul.f32 0.5, %v1594_v10  ;;  %v1601_v18 = vmul.f32 0.5, %v1595_v40  ;;  %v1602_v6 = vmax.f32 %v1596_v54, 0.0  ;;  %v1505_v53 = vmul.f32 0.11111111, %v3048_v35 }
 0x26a   : > { %v970_v2 = vadd.f32 %v969_v58, %v968_v60  ;;  %v1603_v48 = vmax.f32 %v1597_v0, 0.0  ;;  %v1604_v34 = vmax.f32 %v1598_v14, 0.0  ;;  %v1605_v39 = vmax.f32 %v1599_v33, 0.0 }
 0x26b   : > { %v1606_v26 = vmax.f32 %v1600_v61, 0.0  ;;  %v1607_v44 = vmax.f32 %v1601_v18, 0.0  ;;  %v1608_v62 = vmin.f32 %v1602_v6, 1.0 }
 0x26c   : > { %971 = vadd.xlane.f32.xlu1 %v970_v2  ;;  %v1609_v21 = vmin.f32 %v1603_v48, 1.0  ;;  %v1610_v50 = vmin.f32 %v1604_v34, 1.0  ;;  %v1611_v30 = vmin.f32 %v1605_v39, 1.0 }
 0x26d   : > { %v1612_v52 = vmin.f32 %v1606_v26, 1.0  ;;  %v1613_v24 = vmin.f32 %v1607_v44, 1.0  ;;  %v1614_v9 = vmul.f32 %v1608_v62, %v1504_v15 }
 0x26e   : > { %v1615_v17 = vmul.f32 %v1609_v21, %v1505_v53  ;;  %v1616_v11 = vmul.f32 %v1610_v50, %v1504_v15  ;;  %v1617_v45 = vmul.f32 %v1611_v30, %v1505_v53 }
 0x26f   : > { %v1618_v42 = vmul.f32 %v1612_v52, %v1504_v15  ;;  %v1624_v35 = vsel %vm336_vm1, %v1614_v9, 0.0  ;;  %v1619_v37 = vmul.f32 %v1613_v24, %v1505_v53 }
 0x270   : > { %v1625_v32 = vsel %vm2128_vm4, %v1615_v17, 0.0  ;;  %v1626_v29 = vsel %vm336_vm1, %v1616_v11, 0.0  ;;  %v1630_v36 = vsel %vm823_vm10, %v1624_v35, 0.0  ;;  %v1627_v43 = vsel %vm2128_vm4, %v1617_v45, 0.0 }
 0x271   : > { %v1631_v27 = vsel %vm823_vm10, %v1625_v32, 0.0  ;;  %v1628_v63 = vsel %vm336_vm1, %v1618_v42, 0.0  ;;  %v1633_v38 = vsel %vm823_vm10, %v1626_v29, 0.0  ;;  %v1635_v8 = vsel %vm823_vm10, %v1627_v43, 0.0 }
 0x272   : > { %v1632_v22 = vadd.f32 %v1631_v27, %v1630_v36  ;;  %v1637_v25 = vsel %vm823_vm10, %v1628_v63, 0.0  ;;  %v1629_v55 = vsel %vm2128_vm4, %v1619_v37, 0.0 }
 0x273   : > { %v1639_v56 = vsel %vm823_vm10, %v1629_v55, 0.0 }
 0x274   : > { %v1634_v41 = vadd.f32 %v1633_v38, %v1632_v22 }
 0x276   : > { %v1636_v3 = vadd.f32 %v1635_v8, %v1634_v41 }
 0x278   : > { %v1638_v16 = vadd.f32 %v1637_v25, %v1636_v3 }
 0x27a   : > { %v1640_v1 = vadd.f32 %v1639_v56, %v1638_v16 }
 0x27c   : > { %1641 = vadd.xlane.f32.xlu0 %v1640_v1 }
 0x28e   : > { %v836_v28 = vpop.xlane.xlu0 %835 }
 0x28f   : > { %v837_v49 = vrot.slane %v836_v28, 4 }
 0x291   : > { %v838_v47 = vadd.f32 %v837_v49, %v836_v28 }
 0x293   : > { %v839_v5 = vrot.slane %v838_v47, 2 }
 0x295   : > { %v840_v51 = vadd.f32 %v839_v5, %v838_v47 }
 0x297   : > { %v841_v20 = vrot.slane %v840_v51, 1 }
 0x299   : > { %v842_v12 = vadd.f32 %v841_v20, %v840_v51 }
 0x29b   : > { %1881 = vpush %v842_v12 }
 0x2cc   : > { %s1882_s9 = spop %1881 }
 0x2cd   : > { %1654 = sst [smem:[%s3124_s27]] %s1882_s9 }
 0x2ce   : > { %1980 = shalt.err (!%p1977_p1)
}
 0x2cf   : > { %s2047_s18 = smov [#allocation6]   ;;  %v1028_v59 = vpop.xlane.xlu0 %1027  ;;  %s1759_s19 = scalar_lea.smem %s3124_s27, 1 [#allocation4] }
 0x2d0   : > { %1892 = dma.smem_to_vmem (%p3117_p8), %s2047_s18, 32, %s1683_s7, [#allocation7]   ;;  %v1029_v23 = vrot.slane %v1028_v59, 4 }
 0x2d1   : > { %s1764_s23 = scalar_lea.smem %s3124_s27, 2 [#allocation4]  ;;  %s1671_s14 = sshll.u32 %s3168_s4, 4  ;;  %s1672_s14 = int_to_ptr.vmem [resolvable:$true] %s1671_s14 }
 0x2d2   : > { %v1030_v13 = vadd.f32 %v1029_v23, %v1028_v59  ;;  %s1769_s15 = scalar_lea.smem %s3124_s27, 3 [#allocation4]  ;;  %s1981_s17 = scalar_lea.vmem %s1672_s14, 64 }
 0x2d3   : > { %p1982_p2 = scmp.ne.s32.totalorder %s1672_s14, %s1981_s17  ;;  %p1988_p5 = scmp.lt.s32.totalorder %s1672_s14, %s1672_s14 }
 0x2d4   : > { %v1031_v19 = vrot.slane %v1030_v13, 2  ;;  %p1989_p6 = scmp.lt.s32.totalorder %s1981_s17, %s1981_s17 }
 0x2d5   : > { %p1983_p3 = pnand %p1982_p2, %p3117_p8 }
 0x2d6   : > { %v1032_v4 = vadd.f32 %v1031_v19, %v1030_v13  ;;  %p1990_p7 = por %p1989_p6, %p1988_p5 }
 0x2d7   : > { %p1984_p4 = pneg %p1983_p3 }
 0x2d8   : > { %v1033_v40 = vrot.slane %v1032_v4, 1 }
 0x2d9   : > { %p1991_p9 = pnand %p1990_p7, %p1984_p4 }
 0x2da   : > { %v1034_v60 = vadd.f32 %v1033_v40, %v1032_v4 }
 0x2f9   : > { %v972_v31 = vpop.xlane.xlu1 %971 }
 0x2fa   : > { %v973_v58 = vrot.slane %v972_v31, 4 }
 0x2fc   : > { %v974_v57 = vadd.f32 %v973_v58, %v972_v31 }
 0x2fe   : > { %v975_v7 = vrot.slane %v974_v57, 2 }
 0x300   : > { %v976_v10 = vadd.f32 %v975_v7, %v974_v57 }
 0x302   : > { %v977_v54 = vrot.slane %v976_v10, 1 }
 0x304   : > { %v978_v15 = vadd.f32 %v977_v54, %v976_v10 }
 0x306   : > { %1883 = vpush %v978_v15 }
 0x307   : > { %1885 = vpush %v1034_v60 }
 0x309   : > { %v1642_v0 = vpop.xlane.xlu0 %1641 }
 0x30a   : > { %v1643_v14 = vrot.slane %v1642_v0, 4 }
 0x30c   : > { %v1644_v33 = vadd.f32 %v1643_v14, %v1642_v0 }
 0x30e   : > { %v1645_v61 = vrot.slane %v1644_v33, 2 }
 0x310   : > { %v1646_v18 = vadd.f32 %v1645_v61, %v1644_v33 }
 0x312   : > { %v1647_v6 = vrot.slane %v1646_v18, 1 }
 0x314   : > { %v1648_v2 = vadd.f32 %v1647_v6, %v1646_v18 }
 0x316   : > { %1887 = vpush %v1648_v2 }
 0x337   : > { %s1884_s10 = spop %1883 }
 0x338   : > { %1657 = sst [smem:[%s1759_s19]] %s1884_s10  ;;  %s1886_s11 = spop %1885 }
 0x339   : > { %1660 = sst [smem:[%s1764_s23]] %s1886_s11 }
 0x347   : > { %s1888_s16 = spop %1887 }
 0x348   : > { %1663 = sst [smem:[%s1769_s15]] %s1888_s16 }
 0x349   : > { %1994 = shalt.err (!%p1991_p9)
}
 0x34a   : > { %s2048_s26 = smov [#allocation4]  }
 0x34b   : > { %1890 = dma.smem_to_vmem (%p3117_p8), %s2048_s26, 64, %s1672_s14, [#allocation5]  }
 0x34c   : > { %2016 = dma.done.wait (%p3117_p8), [#allocation5], 64  }
 0x34d   : > { %2018 = vsyncadd (%p3117_p8), [#allocation5], 4294967232 }
 0x34e   : > { %2020 = dma.done.wait (%p3117_p8), [#allocation7], 32  }
 0x34f   : > { %2022 = vsyncadd (%p3117_p8), [#allocation7], 4294967264 }
 0x350   : > { %1694 = sfence }
 0x351 PF: > { %s18_s22 = sadd.s32 1, %s2041_s22   ;;  %s3221_s18 = smov %s2033_s20 }
 0x352   : > { %p15_p10 = scmp.ge.s32.totalorder %s18_s22, 6   ;;  %s3222_s19 = smov %s2037_s21 }
 0x353   : > { %s3223_s20 = smov %s3226_s24  ;;  %s3224_s21 = smov %s3230_s25 }
 0x354   :  { %17 = sbr.rel (!%p15_p10) target bundleno = 4 (0x4), region = 90 }
 0x35b   :  { %1700 = vsyncpa [#allocation5], 1 }
 0x35c   :  { %1702 = vsyncpa [#allocation5 + $0x1], 1 }
 0x35d   :  { %1703 = vsyncpa [#allocation7], 1 }

</bundles_post_ra>
